<compile_context>
chip_gen: v5e
topology: v5e:2x2
jax: 0.10.0
libtpu: 0.0.40
codegen_flags: <defaults>
</compile_context>

<pallas_src>
import functools

import jax
import jax.numpy as jnp
from jax.experimental import pallas as pl
from jax.experimental.pallas import tpu as pltpu

EPS = 1e-5
C = 64                      # fixed by the module: Conv2d(64 -> 64)


def _resblock_kernel(x_ref, w1_ref, w2_ref, g1_ref, b1_ref, g2_ref, b2_ref,
                     out_ref, xpad, act1, act2, stat, bnp,
                     *, N, H, W, RB):
    """Grid = (phase, image).  RB = conv row-block height (divides H)."""
    p = pl.program_id(0)
    n = pl.program_id(1)
    HW = H * W
    rows_blk = RB * W
    nblk = H // RB
    inv_cnt = 1.0 / float(N * HW)
    # Hoisted constant (JAX does not CSE broadcast_in_dim inside loops).
    ones_row = jnp.ones((1, rows_blk), jnp.float32)

    def _row_off(rb):
        off = rb * rows_blk
        if isinstance(off, int):
            return off
        return pl.multiple_of(off, 8) if rows_blk % 8 == 0 else off

    def _for_each_row_block(body):
        # Single-block case stays a straight-line static body; otherwise a
        # real loop bounds live ranges / VMEM temporaries.
        if nblk == 1:
            body(0)
        else:
            pl.loop(0, nblk, unroll=nblk <= 4)(body)

    def _conv_store_stats(w_ref, act_ref, bn_idx):
        # 3x3 conv on the zero-padded bf16 buffer `xpad`: per row block, one
        # merged K = 9*C = 576 bf16 MXU matmul with f32 accumulation.
        # BN sum / sum-of-squares go through ones-vector matmuls (MXU) so the
        # XLU stays free for the shifted-window slice relayouts.
        def body(rb):
            r0 = rb * RB
            taps = [xpad[pl.ds(r0 + ky, RB), kx:kx + W, :].reshape(rows_blk, C)
                    for ky in range(3) for kx in range(3)]
            lhs = jnp.concatenate(taps, axis=-1)              # (rows, 9C) bf16
            y = jnp.dot(lhs, w_ref[...],
                        preferred_element_type=jnp.float32)   # (rows, C) f32
            stat[2 * bn_idx:2 * bn_idx + 1, :] += jnp.dot(
                ones_row, y, preferred_element_type=jnp.float32)
            stat[2 * bn_idx + 1:2 * bn_idx + 2, :] += jnp.dot(
                ones_row, y * y, preferred_element_type=jnp.float32)
            # bf16 activation staging: halves the two largest scratch tensors.
            act_ref[n, pl.ds(_row_off(rb), rows_blk), :] = (
                y.astype(jnp.bfloat16))
        _for_each_row_block(body)

    def _finalize_bn(bn_idx, g_ref, b_ref):
        # Biased batch variance (PyTorch BN training forward), default eps.
        # TODO(synk): E[x^2]-E[x]^2 in f32 is fine at these scales; move to
        # Welford / two-pass stats if production N*H*W tightens tolerances.
        mean = stat[2 * bn_idx:2 * bn_idx + 1, :] * inv_cnt
        var = stat[2 * bn_idx + 1:2 * bn_idx + 2, :] * inv_cnt - mean * mean
        scale = g_ref[...] * jax.lax.rsqrt(var + EPS)
        bnp[2 * bn_idx:2 * bn_idx + 1, :] = scale
        bnp[2 * bn_idx + 1:2 * bn_idx + 2, :] = b_ref[...] - mean * scale

    # ---------------- phase 0: conv1, accumulate bn1 statistics -------------
    @pl.when(p == 0)
    def _phase0():
        @pl.when(n == 0)
        def _init():
            # Zero the reused padded buffer ONCE; only its interior is ever
            # rewritten, so the 1-pixel border stays 0 for both convs.
            xpad[...] = jnp.zeros_like(xpad)
            stat[...] = jnp.zeros_like(stat)
            # Defensive: the output block parked on index 0 during phases 0/1
            # is never flushed under flush-on-index-change semantics, but give
            # it defined contents so any early writeback stays benign (phase 2
            # overwrites it before its final flush).
            out_ref[...] = jnp.zeros_like(out_ref)

        xpad[1:H + 1, 1:W + 1, :] = x_ref[0].astype(jnp.bfloat16)
        _conv_store_stats(w1_ref, act1, 0)

    # --------- phase 1: bn1 + relu, conv2, accumulate bn2 statistics --------
    @pl.when(p == 1)
    def _phase1():
        @pl.when(n == 0)
        def _finalize_bn1():
            _finalize_bn(0, g1_ref, b1_ref)

        scale1 = bnp[0:1, :]
        shift1 = bnp[1:2, :]

        def body(rb):
            off = _row_off(rb)
            a = act1[n, pl.ds(off, rows_blk), :].astype(jnp.float32)
            a = jnp.maximum(a * scale1 + shift1, 0.0)
            xpad[pl.ds(1 + rb * RB, RB), 1:W + 1, :] = (
                a.astype(jnp.bfloat16).reshape(RB, W, C))
        _for_each_row_block(body)          # fill the whole interior (halo)
        _conv_store_stats(w2_ref, act2, 1)

    # ---------------- phase 2: bn2 + residual add, write output -------------
    @pl.when(p == 2)
    def _phase2():
        @pl.when(n == 0)
        def _finalize_bn2():
            _finalize_bn(1, g2_ref, b2_ref)

        scale2 = bnp[2:3, :]
        shift2 = bnp[3:4, :]

        def body(rb):
            off = _row_off(rb)
            a = act2[n, pl.ds(off, rows_blk), :].astype(jnp.float32)
            identity = x_ref[0, pl.ds(rb * RB, RB), :, :].reshape(rows_blk, C)
            out_ref[0, pl.ds(off, rows_blk), :] = (
                a * scale2 + shift2 + identity)
        _for_each_row_block(body)


def _pick_row_block(H, W, max_rows=2048):
    """Largest divisor of H whose row block (RB*W im2col rows) keeps the
    per-block lhs / accumulator VMEM temporaries bounded."""
    rb = 1
    for cand in range(1, H + 1):
        if H % cand == 0 and cand * W <= max_rows:
            rb = cand
    return rb


def _vmem_limit_bytes():
    """Scoped-VMEM limit with headroom under the physical per-core capacity
    (v7x: 64 MiB -> ~48 MiB; v5e/v6e: 128 MiB -> 100 MiB)."""
    try:
        phys = int(pltpu.get_tpu_info().vmem_capacity_bytes)
    except Exception:
        phys = 64 * 1024 * 1024              # assume the smallest (v7x) VMEM
    return max(32 * 1024 * 1024,
               min(phys - 16 * 1024 * 1024, 100 * 1024 * 1024))


def residual_block_nhwc(x_nhwc, params):
    """Fused _Residual_Block forward on NHWC input (N, H, W, 64) -> NHWC.

    Keeping the surrounding model NHWC avoids the two extra HBM transpose
    passes of the NCHW adapter below.
    """
    w1, w2, g1, b1, g2, b2 = params          # conv weights in HWIO layout
    N, H, W, Cin = x_nhwc.shape
    assert Cin == C, "the module is fixed at 64 channels"
    HW = H * W
    RB = _pick_row_block(H, W)

    x = x_nhwc.astype(jnp.float32)
    # HWIO (3,3,C,C) -> (9C, C): rows ordered (ky, kx, cin), matching the
    # in-kernel tap concatenation; cast to bf16 once (MXU bf16 x bf16, f32 acc).
    w1r = w1.astype(jnp.bfloat16).reshape(9 * C, C)
    w2r = w2.astype(jnp.bfloat16).reshape(9 * C, C)
    g1r = g1.reshape(1, C).astype(jnp.float32)
    b1r = b1.reshape(1, C).astype(jnp.float32)
    g2r = g2.reshape(1, C).astype(jnp.float32)
    b2r = b2.reshape(1, C).astype(jnp.float32)

    kernel = functools.partial(_resblock_kernel, N=N, H=H, W=W, RB=RB)
    const2 = lambda p, n: (0, 0)

    # TODO(synk): for very large N*H*W stage act1/act2 through HBM (pl.ANY +
    # manual make_async_copy double-buffer) instead of resident VMEM scratch.
    # TODO(synk): on v7x the two TensorCores could split spatial row blocks
    # (1-row halo) with per-core partial BN sums; no benefit on v5e/v6e.
    out = pl.pallas_call(
        kernel,
        out_shape=jax.ShapeDtypeStruct((N, HW, C), jnp.float32),
        grid_spec=pltpu.PrefetchScalarGridSpec(
            num_scalar_prefetch=0,
            grid=(3, N),                     # (phase, image); both sequential
            in_specs=[
                # x is only read by phase 0 (pad build) and phase 2 (identity
                # add): park its block index during phase 1 so the (1,H,W,C)
                # f32 tile is DMA'd 2N, not 3N, times per call.
                pl.BlockSpec((1, H, W, C),
                             lambda p, n: (jnp.where(p == 1, 0, n), 0, 0, 0)),
                pl.BlockSpec((9 * C, C), const2),
                pl.BlockSpec((9 * C, C), const2),
                pl.BlockSpec((1, C), const2),
                pl.BlockSpec((1, C), const2),
                pl.BlockSpec((1, C), const2),
                pl.BlockSpec((1, C), const2),
            ],
            # The output block for image n is produced only in phase 2; park
            # earlier phases on block 0 so no extra writebacks happen and no
            # undefined block can be flushed (block 0 is zero-initialized).
            out_specs=pl.BlockSpec(
                (1, HW, C), lambda p, n: (jnp.where(p == 2, n, 0), 0, 0)),
            scratch_shapes=[
                pltpu.VMEM((H + 2, W + 2, C), jnp.bfloat16),  # shared pad buf
                pltpu.VMEM((N, HW, C), jnp.bfloat16),         # conv1 raw out
                pltpu.VMEM((N, HW, C), jnp.bfloat16),         # conv2 raw out
                pltpu.VMEM((4, C), jnp.float32),              # sum / sumsq
                pltpu.VMEM((4, C), jnp.float32),              # scale / shift
            ]),
        compiler_params=pltpu.CompilerParams(
            # BatchNorm couples the whole batch inside this fused call and the
            # phases are ordered, so both grid axes must run sequentially.
            dimension_semantics=("arbitrary", "arbitrary"),
            vmem_limit_bytes=_vmem_limit_bytes()),
    )(x, w1r, w2r, g1r, b1r, g2r, b2r)

    return out.reshape(N, H, W, C)


def residual_block(x_nchw, params):
    """NCHW adapter (PyTorch layout in/out) around residual_block_nhwc.
    The two transposes are full HBM passes in XLA; prefer the NHWC entry
    point when the surrounding model can stay NHWC."""
    x_nhwc = jnp.transpose(x_nchw, (0, 2, 3, 1))
    y = residual_block_nhwc(x_nhwc, params)
    return jnp.transpose(y, (0, 3, 1, 2))


def _reference_nhwc(x, params, conv_dtype):
    """Pure-JAX reference (same semantics); conv operands cast to conv_dtype
    with f32 accumulation.  Used only for the correctness check."""
    w1, w2, g1, b1, g2, b2 = params

    def conv(h, w):
        return jax.lax.conv_general_dilated(
            h.astype(conv_dtype), w.astype(conv_dtype),
            window_strides=(1, 1), padding="SAME",
            dimension_numbers=("NHWC", "HWIO", "NHWC"),
            preferred_element_type=jnp.float32)

    def bn(h, g, b):
        m = jnp.mean(h, axis=(0, 1, 2), keepdims=True)
        v = jnp.mean((h - m) ** 2, axis=(0, 1, 2), keepdims=True)
        return (h - m) * jax.lax.rsqrt(v + EPS) * g.reshape(1, 1, 1, C) \
            + b.reshape(1, 1, 1, C)

    y = jnp.maximum(bn(conv(x, w1), g1, b1), 0.0)
    y = bn(conv(y, w2), g2, b2)
    return y + x


if __name__ == "__main__":
    key = jax.random.PRNGKey(0)
    kx_, k1, k2, kg1, kb1, kg2, kb2 = jax.random.split(key, 7)

    N, H, W = 2, 16, 16
    x_nchw = jax.random.normal(kx_, (N, C, H, W), jnp.float32)

    # Deterministic synthetic parameters (shapes from the module __init__);
    # conv weights are HWIO here (PyTorch OIHW would be permute(2, 3, 1, 0)).
    std = (2.0 / (9 * C)) ** 0.5                       # kaiming-like scale
    w1 = jax.random.normal(k1, (3, 3, C, C), jnp.float32) * std    # HWIO
    w2 = jax.random.normal(k2, (3, 3, C, C), jnp.float32) * std    # HWIO
    g1 = 1.0 + 0.1 * jax.random.normal(kg1, (C,), jnp.float32)     # bn1.weight
    b1 = 0.1 * jax.random.normal(kb1, (C,), jnp.float32)           # bn1.bias
    g2 = 1.0 + 0.1 * jax.random.normal(kg2, (C,), jnp.float32)     # bn2.weight
    b2 = 0.1 * jax.random.normal(kb2, (C,), jnp.float32)           # bn2.bias
    params = (w1, w2, g1, b1, g2, b2)

    out = jax.block_until_ready(residual_block(x_nchw, params))
    assert out.shape == x_nchw.shape and out.dtype == jnp.float32

    import numpy as np
    x_nhwc = jnp.transpose(x_nchw, (0, 2, 3, 1))
    # Check against a reference using the same conv precision (bf16 operands,
    # f32 accumulation); margin covers the bf16 activation staging.
    ref_bf16 = jnp.transpose(
        _reference_nhwc(x_nhwc, params, jnp.bfloat16), (0, 3, 1, 2))
    np.testing.assert_allclose(np.asarray(out), np.asarray(ref_bf16),
                               atol=2e-2, rtol=2e-2)
    # Loose drift bound against the full-f32 reference (mixed precision).
    ref_f32 = jnp.transpose(
        _reference_nhwc(x_nhwc, params, jnp.float32), (0, 3, 1, 2))
    np.testing.assert_allclose(np.asarray(out), np.asarray(ref_f32),
                               atol=1e-1, rtol=1e-1)

    print("KERNEL_OK")
</pallas_src>

<mosaic_0001>
module attributes {stable_mosaic.version = 11 : i64} {
  func.func @_resblock_kernel(%arg0: i32, %arg1: i32, %arg2: memref<1x16x16x64xf32, #tpu.memory_space<vmem>>, %arg3: memref<576x64xbf16, #tpu.memory_space<vmem>>, %arg4: memref<576x64xbf16, #tpu.memory_space<vmem>>, %arg5: memref<1x64xf32, #tpu.memory_space<vmem>>, %arg6: memref<1x64xf32, #tpu.memory_space<vmem>>, %arg7: memref<1x64xf32, #tpu.memory_space<vmem>>, %arg8: memref<1x64xf32, #tpu.memory_space<vmem>>, %arg9: memref<1x256x64xf32, #tpu.memory_space<vmem>>, %arg10: memref<18x18x64xbf16, #tpu.memory_space<vmem>>, %arg11: memref<2x256x64xbf16, #tpu.memory_space<vmem>>, %arg12: memref<2x256x64xbf16, #tpu.memory_space<vmem>>, %arg13: memref<4x64xf32, #tpu.memory_space<vmem>>, %arg14: memref<4x64xf32, #tpu.memory_space<vmem>>) attributes {dimension_semantics = [#tpu.dimension_semantics<arbitrary>, #tpu.dimension_semantics<arbitrary>], iteration_bounds = array<i64: 3, 2>, scalar_prefetch = 0 : i64, scratch_operands = 5 : i64, tpu.core_type = #tpu.core_type<tc>, window_params = [{transform_indices = @transform_0, window_bounds = array<i64: 1, 16, 16, 64>}, {pipeline_mode = #tpu.pipeline_mode<synchronous>, transform_indices = @transform_1, window_bounds = array<i64: 576, 64>}, {pipeline_mode = #tpu.pipeline_mode<synchronous>, transform_indices = @transform_2, window_bounds = array<i64: 576, 64>}, {pipeline_mode = #tpu.pipeline_mode<synchronous>, transform_indices = @transform_3, window_bounds = array<i64: 1, 64>}, {pipeline_mode = #tpu.pipeline_mode<synchronous>, transform_indices = @transform_4, window_bounds = array<i64: 1, 64>}, {pipeline_mode = #tpu.pipeline_mode<synchronous>, transform_indices = @transform_5, window_bounds = array<i64: 1, 64>}, {pipeline_mode = #tpu.pipeline_mode<synchronous>, transform_indices = @transform_6, window_bounds = array<i64: 1, 64>}, {transform_indices = @transform_7, window_bounds = array<i64: 1, 256, 64>}]} {
    %cst = arith.constant 1.000000e+00 : f32
    %0 = vector.broadcast %cst : f32 to vector<1x256xf32>
    %c0_i32 = arith.constant 0 : i32
    %1 = arith.cmpi eq, %arg0, %c0_i32 : i32
    %2 = arith.extui %1 : i1 to i32
    %c0_i32_0 = arith.constant 0 : i32
    %3 = arith.cmpi ne, %2, %c0_i32_0 : i32
    scf.if %3 {
      %c0_i32_3 = arith.constant 0 : i32
      %10 = arith.cmpi eq, %arg1, %c0_i32_3 : i32
      %11 = arith.extui %10 : i1 to i32
      %c0_i32_4 = arith.constant 0 : i32
      %12 = arith.cmpi ne, %11, %c0_i32_4 : i32
      scf.if %12 {
        %cst_51 = arith.constant 0.000000e+00 : bf16
        %52 = vector.broadcast %cst_51 : bf16 to vector<18x18x64xbf16>
        %c0_52 = arith.constant 0 : index
        %c0_53 = arith.constant 0 : index
        %c0_54 = arith.constant 0 : index
        %53 = vector.load %arg10[%c0_52, %c0_53, %c0_54] : memref<18x18x64xbf16, #tpu.memory_space<vmem>>, vector<18x18x64xbf16>
        tpu.vector_store %arg10[%c0_52, %c0_53, %c0_54], %52 {strides = array<i32>} : memref<18x18x64xbf16, #tpu.memory_space<vmem>>, vector<18x18x64xbf16>,
        %cst_55 = arith.constant 0.000000e+00 : f32
        %54 = vector.broadcast %cst_55 : f32 to vector<4x64xf32>
        %c0_56 = arith.constant 0 : index
        %c0_57 = arith.constant 0 : index
        %55 = vector.load %arg13[%c0_56, %c0_57] : memref<4x64xf32, #tpu.memory_space<vmem>>, vector<4x64xf32>
        tpu.vector_store %arg13[%c0_56, %c0_57], %54 {strides = array<i32>} : memref<4x64xf32, #tpu.memory_space<vmem>>, vector<4x64xf32>,
        %cst_58 = arith.constant 0.000000e+00 : f32
        %56 = vector.broadcast %cst_58 : f32 to vector<1x256x64xf32>
        %c0_59 = arith.constant 0 : index
        %c0_60 = arith.constant 0 : index
        %c0_61 = arith.constant 0 : index
        %57 = vector.load %arg9[%c0_59, %c0_60, %c0_61] : memref<1x256x64xf32, #tpu.memory_space<vmem>>, vector<1x256x64xf32>
        tpu.vector_store %arg9[%c0_59, %c0_60, %c0_61], %56 {strides = array<i32>} : memref<1x256x64xf32, #tpu.memory_space<vmem>>, vector<1x256x64xf32>,
      } else {
      }
      %c0 = arith.constant 0 : index
      %c0_5 = arith.constant 0 : index
      %c0_6 = arith.constant 0 : index
      %c0_7 = arith.constant 0 : index
      %13 = vector.load %arg2[%c0, %c0_5, %c0_6, %c0_7] : memref<1x16x16x64xf32, #tpu.memory_space<vmem>>, vector<1x16x16x64xf32>
      %14 = vector.shape_cast %13 : vector<1x16x16x64xf32> to vector<16x16x64xf32>
      %15 = arith.truncf %14 : vector<16x16x64xf32> to vector<16x16x64xbf16>
      %c1 = arith.constant 1 : index
      %c1_8 = arith.constant 1 : index
      %c0_9 = arith.constant 0 : index
      %16 = vector.load %arg10[%c1, %c1_8, %c0_9] : memref<18x18x64xbf16, #tpu.memory_space<vmem>>, vector<16x16x64xbf16>
      tpu.vector_store %arg10[%c1, %c1_8, %c0_9], %15 {strides = array<i32>} : memref<18x18x64xbf16, #tpu.memory_space<vmem>>, vector<16x16x64xbf16>,
      %c0_10 = arith.constant 0 : index
      %c0_11 = arith.constant 0 : index
      %c0_12 = arith.constant 0 : index
      %17 = vector.load %arg10[%c0_10, %c0_11, %c0_12] : memref<18x18x64xbf16, #tpu.memory_space<vmem>>, vector<16x16x64xbf16>
      %18 = vector.shape_cast %17 : vector<16x16x64xbf16> to vector<256x64xbf16>
      %c0_13 = arith.constant 0 : index
      %c1_14 = arith.constant 1 : index
      %c0_15 = arith.constant 0 : index
      %19 = vector.load %arg10[%c0_13, %c1_14, %c0_15] : memref<18x18x64xbf16, #tpu.memory_space<vmem>>, vector<16x16x64xbf16>
      %20 = vector.shape_cast %19 : vector<16x16x64xbf16> to vector<256x64xbf16>
      %c0_16 = arith.constant 0 : index
      %c2 = arith.constant 2 : index
      %c0_17 = arith.constant 0 : index
      %21 = vector.load %arg10[%c0_16, %c2, %c0_17] : memref<18x18x64xbf16, #tpu.memory_space<vmem>>, vector<16x16x64xbf16>
      %22 = vector.shape_cast %21 : vector<16x16x64xbf16> to vector<256x64xbf16>
      %c1_18 = arith.constant 1 : index
      %c0_19 = arith.constant 0 : index
      %c0_20 = arith.constant 0 : index
      %23 = vector.load %arg10[%c1_18, %c0_19, %c0_20] : memref<18x18x64xbf16, #tpu.memory_space<vmem>>, vector<16x16x64xbf16>
      %24 = vector.shape_cast %23 : vector<16x16x64xbf16> to vector<256x64xbf16>
      %c1_21 = arith.constant 1 : index
      %c1_22 = arith.constant 1 : index
      %c0_23 = arith.constant 0 : index
      %25 = vector.load %arg10[%c1_21, %c1_22, %c0_23] : memref<18x18x64xbf16, #tpu.memory_space<vmem>>, vector<16x16x64xbf16>
      %26 = vector.shape_cast %25 : vector<16x16x64xbf16> to vector<256x64xbf16>
      %c1_24 = arith.constant 1 : index
      %c2_25 = arith.constant 2 : index
      %c0_26 = arith.constant 0 : index
      %27 = vector.load %arg10[%c1_24, %c2_25, %c0_26] : memref<18x18x64xbf16, #tpu.memory_space<vmem>>, vector<16x16x64xbf16>
      %28 = vector.shape_cast %27 : vector<16x16x64xbf16> to vector<256x64xbf16>
      %c2_27 = arith.constant 2 : index
      %c0_28 = arith.constant 0 : index
      %c0_29 = arith.constant 0 : index
      %29 = vector.load %arg10[%c2_27, %c0_28, %c0_29] : memref<18x18x64xbf16, #tpu.memory_space<vmem>>, vector<16x16x64xbf16>
      %30 = vector.shape_cast %29 : vector<16x16x64xbf16> to vector<256x64xbf16>
      %c2_30 = arith.constant 2 : index
      %c1_31 = arith.constant 1 : index
      %c0_32 = arith.constant 0 : index
      %31 = vector.load %arg10[%c2_30, %c1_31, %c0_32] : memref<18x18x64xbf16, #tpu.memory_space<vmem>>, vector<16x16x64xbf16>
      %32 = vector.shape_cast %31 : vector<16x16x64xbf16> to vector<256x64xbf16>
      %c2_33 = arith.constant 2 : index
      %c2_34 = arith.constant 2 : index
      %c0_35 = arith.constant 0 : index
      %33 = vector.load %arg10[%c2_33, %c2_34, %c0_35] : memref<18x18x64xbf16, #tpu.memory_space<vmem>>, vector<16x16x64xbf16>
      %34 = vector.shape_cast %33 : vector<16x16x64xbf16> to vector<256x64xbf16>
      %35 = tpu.concatenate %18, %20, %22, %24, %26, %28, %30, %32, %34 in 1 : vector<256x64xbf16>, vector<256x64xbf16>, vector<256x64xbf16>, vector<256x64xbf16>, vector<256x64xbf16>, vector<256x64xbf16>, vector<256x64xbf16>, vector<256x64xbf16>, vector<256x64xbf16> -> vector<256x576xbf16>
      %c0_36 = arith.constant 0 : index
      %c0_37 = arith.constant 0 : index
      %36 = vector.load %arg3[%c0_36, %c0_37] : memref<576x64xbf16, #tpu.memory_space<vmem>>, vector<576x64xbf16>
      %cst_38 = arith.constant dense<0.000000e+00> : vector<256x64xf32>
      %37 = tpu.matmul %35, %36, %cst_38 {dimension_numbers = #tpu.dot_dimension_numbers<[1], [0], [0], [1], [0, 0, 1, 1], [], []>} : vector<256x576xbf16>, vector<576x64xbf16>, vector<256x64xf32> -> vector<256x64xf32>
      %c0_39 = arith.constant 0 : index
      %c0_40 = arith.constant 0 : index
      %38 = vector.load %arg13[%c0_39, %c0_40] : memref<4x64xf32, #tpu.memory_space<vmem>>, vector<1x64xf32>
      %cst_41 = arith.constant dense<0.000000e+00> : vector<1x64xf32>
      %39 = tpu.matmul %0, %37, %cst_41 {dimension_numbers = #tpu.dot_dimension_numbers<[1], [0], [0], [1], [0, 0, 1, 1], [], []>} : vector<1x256xf32>, vector<256x64xf32>, vector<1x64xf32> -> vector<1x64xf32>
      %40 = arith.addf %38, %39 : vector<1x64xf32>
      %c0_42 = arith.constant 0 : index
      %c0_43 = arith.constant 0 : index
      %41 = vector.load %arg13[%c0_42, %c0_43] : memref<4x64xf32, #tpu.memory_space<vmem>>, vector<1x64xf32>
      tpu.vector_store %arg13[%c0_42, %c0_43], %40 {strides = array<i32>} : memref<4x64xf32, #tpu.memory_space<vmem>>, vector<1x64xf32>,
      %c1_44 = arith.constant 1 : index
      %c0_45 = arith.constant 0 : index
      %42 = vector.load %arg13[%c1_44, %c0_45] : memref<4x64xf32, #tpu.memory_space<vmem>>, vector<1x64xf32>
      %43 = arith.mulf %37, %37 : vector<256x64xf32>
      %cst_46 = arith.constant dense<0.000000e+00> : vector<1x64xf32>
      %44 = tpu.matmul %0, %43, %cst_46 {dimension_numbers = #tpu.dot_dimension_numbers<[1], [0], [0], [1], [0, 0, 1, 1], [], []>} : vector<1x256xf32>, vector<256x64xf32>, vector<1x64xf32> -> vector<1x64xf32>
      %45 = arith.addf %42, %44 : vector<1x64xf32>
      %c1_47 = arith.constant 1 : index
      %c0_48 = arith.constant 0 : index
      %46 = vector.load %arg13[%c1_47, %c0_48] : memref<4x64xf32, #tpu.memory_space<vmem>>, vector<1x64xf32>
      tpu.vector_store %arg13[%c1_47, %c0_48], %45 {strides = array<i32>} : memref<4x64xf32, #tpu.memory_space<vmem>>, vector<1x64xf32>,
      %47 = arith.truncf %37 : vector<256x64xf32> to vector<256x64xbf16>
      %48 = arith.index_cast %arg1 : i32 to index
      %c0_49 = arith.constant 0 : index
      %c0_50 = arith.constant 0 : index
      %49 = vector.load %arg11[%48, %c0_49, %c0_50] : memref<2x256x64xbf16, #tpu.memory_space<vmem>>, vector<1x256x64xbf16>
      %50 = vector.shape_cast %49 : vector<1x256x64xbf16> to vector<256x64xbf16>
      %51 = vector.shape_cast %47 : vector<256x64xbf16> to vector<1x256x64xbf16>
      tpu.vector_store %arg11[%48, %c0_49, %c0_50], %51 {strides = array<i32>} : memref<2x256x64xbf16, #tpu.memory_space<vmem>>, vector<1x256x64xbf16>,
    } else {
    }
    %c1_i32 = arith.constant 1 : i32
    %4 = arith.cmpi eq, %arg0, %c1_i32 : i32
    %5 = arith.extui %4 : i1 to i32
    %c0_i32_1 = arith.constant 0 : i32
    %6 = arith.cmpi ne, %5, %c0_i32_1 : i32
    scf.if %6 {
      %c0_i32_3 = arith.constant 0 : i32
      %10 = arith.cmpi eq, %arg1, %c0_i32_3 : i32
      %11 = arith.extui %10 : i1 to i32
      %c0_i32_4 = arith.constant 0 : i32
      %12 = arith.cmpi ne, %11, %c0_i32_4 : i32
      scf.if %12 {
        %c0_53 = arith.constant 0 : index
        %c0_54 = arith.constant 0 : index
        %63 = vector.load %arg13[%c0_53, %c0_54] : memref<4x64xf32, #tpu.memory_space<vmem>>, vector<1x64xf32>
        %cst_55 = arith.constant 0.001953125 : f32
        %64 = vector.broadcast %cst_55 : f32 to vector<1x64xf32>
        %65 = arith.mulf %63, %64 : vector<1x64xf32>
        %c1_56 = arith.constant 1 : index
        %c0_57 = arith.constant 0 : index
        %66 = vector.load %arg13[%c1_56, %c0_57] : memref<4x64xf32, #tpu.memory_space<vmem>>, vector<1x64xf32>
        %cst_58 = arith.constant 0.001953125 : f32
        %67 = vector.broadcast %cst_58 : f32 to vector<1x64xf32>
        %68 = arith.mulf %66, %67 : vector<1x64xf32>
        %69 = arith.mulf %65, %65 : vector<1x64xf32>
        %70 = arith.subf %68, %69 : vector<1x64xf32>
        %c0_59 = arith.constant 0 : index
        %c0_60 = arith.constant 0 : index
        %71 = vector.load %arg5[%c0_59, %c0_60] : memref<1x64xf32, #tpu.memory_space<vmem>>, vector<1x64xf32>
        %cst_61 = arith.constant 9.99999974E-6 : f32
        %72 = vector.broadcast %cst_61 : f32 to vector<1x64xf32>
        %73 = arith.addf %70, %72 : vector<1x64xf32>
        %74 = math.rsqrt %73 : vector<1x64xf32>
        %75 = arith.mulf %71, %74 : vector<1x64xf32>
        %c0_62 = arith.constant 0 : index
        %c0_63 = arith.constant 0 : index
        %76 = vector.load %arg14[%c0_62, %c0_63] : memref<4x64xf32, #tpu.memory_space<vmem>>, vector<1x64xf32>
        tpu.vector_store %arg14[%c0_62, %c0_63], %75 {strides = array<i32>} : memref<4x64xf32, #tpu.memory_space<vmem>>, vector<1x64xf32>,
        %c0_64 = arith.constant 0 : index
        %c0_65 = arith.constant 0 : index
        %77 = vector.load %arg6[%c0_64, %c0_65] : memref<1x64xf32, #tpu.memory_space<vmem>>, vector<1x64xf32>
        %78 = arith.mulf %65, %75 : vector<1x64xf32>
        %79 = arith.subf %77, %78 : vector<1x64xf32>
        %c1_66 = arith.constant 1 : index
        %c0_67 = arith.constant 0 : index
        %80 = vector.load %arg14[%c1_66, %c0_67] : memref<4x64xf32, #tpu.memory_space<vmem>>, vector<1x64xf32>
        tpu.vector_store %arg14[%c1_66, %c0_67], %79 {strides = array<i32>} : memref<4x64xf32, #tpu.memory_space<vmem>>, vector<1x64xf32>,
      } else {
      }
      %c0 = arith.constant 0 : index
      %c0_5 = arith.constant 0 : index
      %13 = vector.load %arg14[%c0, %c0_5] : memref<4x64xf32, #tpu.memory_space<vmem>>, vector<1x64xf32>
      %c1 = arith.constant 1 : index
      %c0_6 = arith.constant 0 : index
      %14 = vector.load %arg14[%c1, %c0_6] : memref<4x64xf32, #tpu.memory_space<vmem>>, vector<1x64xf32>
      %15 = arith.index_cast %arg1 : i32 to index
      %c0_7 = arith.constant 0 : index
      %c0_8 = arith.constant 0 : index
      %16 = vector.load %arg11[%15, %c0_7, %c0_8] : memref<2x256x64xbf16, #tpu.memory_space<vmem>>, vector<1x256x64xbf16>
      %17 = vector.shape_cast %16 : vector<1x256x64xbf16> to vector<256x64xbf16>
      %18 = arith.extf %17 : vector<256x64xbf16> to vector<256x64xf32>
      %19 = vector.broadcast %13 : vector<1x64xf32> to vector<256x64xf32>
      %20 = arith.mulf %18, %19 : vector<256x64xf32>
      %21 = vector.broadcast %14 : vector<1x64xf32> to vector<256x64xf32>
      %22 = arith.addf %20, %21 : vector<256x64xf32>
      %cst_9 = arith.constant 0.000000e+00 : f32
      %23 = vector.broadcast %cst_9 : f32 to vector<256x64xf32>
      %24 = arith.maximumf %22, %23 : vector<256x64xf32>
      %25 = arith.truncf %24 : vector<256x64xf32> to vector<256x64xbf16>
      %26 = vector.shape_cast %25 : vector<256x64xbf16> to vector<16x16x64xbf16>
      %c1_10 = arith.constant 1 : index
      %c1_11 = arith.constant 1 : index
      %c0_12 = arith.constant 0 : index
      %27 = vector.load %arg10[%c1_10, %c1_11, %c0_12] : memref<18x18x64xbf16, #tpu.memory_space<vmem>>, vector<16x16x64xbf16>
      tpu.vector_store %arg10[%c1_10, %c1_11, %c0_12], %26 {strides = array<i32>} : memref<18x18x64xbf16, #tpu.memory_space<vmem>>, vector<16x16x64xbf16>,
      %c0_13 = arith.constant 0 : index
      %c0_14 = arith.constant 0 : index
      %c0_15 = arith.constant 0 : index
      %28 = vector.load %arg10[%c0_13, %c0_14, %c0_15] : memref<18x18x64xbf16, #tpu.memory_space<vmem>>, vector<16x16x64xbf16>
      %29 = vector.shape_cast %28 : vector<16x16x64xbf16> to vector<256x64xbf16>
      %c0_16 = arith.constant 0 : index
      %c1_17 = arith.constant 1 : index
      %c0_18 = arith.constant 0 : index
      %30 = vector.load %arg10[%c0_16, %c1_17, %c0_18] : memref<18x18x64xbf16, #tpu.memory_space<vmem>>, vector<16x16x64xbf16>
      %31 = vector.shape_cast %30 : vector<16x16x64xbf16> to vector<256x64xbf16>
      %c0_19 = arith.constant 0 : index
      %c2 = arith.constant 2 : index
      %c0_20 = arith.constant 0 : index
      %32 = vector.load %arg10[%c0_19, %c2, %c0_20] : memref<18x18x64xbf16, #tpu.memory_space<vmem>>, vector<16x16x64xbf16>
      %33 = vector.shape_cast %32 : vector<16x16x64xbf16> to vector<256x64xbf16>
      %c1_21 = arith.constant 1 : index
      %c0_22 = arith.constant 0 : index
      %c0_23 = arith.constant 0 : index
      %34 = vector.load %arg10[%c1_21, %c0_22, %c0_23] : memref<18x18x64xbf16, #tpu.memory_space<vmem>>, vector<16x16x64xbf16>
      %35 = vector.shape_cast %34 : vector<16x16x64xbf16> to vector<256x64xbf16>
      %c1_24 = arith.constant 1 : index
      %c1_25 = arith.constant 1 : index
      %c0_26 = arith.constant 0 : index
      %36 = vector.load %arg10[%c1_24, %c1_25, %c0_26] : memref<18x18x64xbf16, #tpu.memory_space<vmem>>, vector<16x16x64xbf16>
      %37 = vector.shape_cast %36 : vector<16x16x64xbf16> to vector<256x64xbf16>
      %c1_27 = arith.constant 1 : index
      %c2_28 = arith.constant 2 : index
      %c0_29 = arith.constant 0 : index
      %38 = vector.load %arg10[%c1_27, %c2_28, %c0_29] : memref<18x18x64xbf16, #tpu.memory_space<vmem>>, vector<16x16x64xbf16>
      %39 = vector.shape_cast %38 : vector<16x16x64xbf16> to vector<256x64xbf16>
      %c2_30 = arith.constant 2 : index
      %c0_31 = arith.constant 0 : index
      %c0_32 = arith.constant 0 : index
      %40 = vector.load %arg10[%c2_30, %c0_31, %c0_32] : memref<18x18x64xbf16, #tpu.memory_space<vmem>>, vector<16x16x64xbf16>
      %41 = vector.shape_cast %40 : vector<16x16x64xbf16> to vector<256x64xbf16>
      %c2_33 = arith.constant 2 : index
      %c1_34 = arith.constant 1 : index
      %c0_35 = arith.constant 0 : index
      %42 = vector.load %arg10[%c2_33, %c1_34, %c0_35] : memref<18x18x64xbf16, #tpu.memory_space<vmem>>, vector<16x16x64xbf16>
      %43 = vector.shape_cast %42 : vector<16x16x64xbf16> to vector<256x64xbf16>
      %c2_36 = arith.constant 2 : index
      %c2_37 = arith.constant 2 : index
      %c0_38 = arith.constant 0 : index
      %44 = vector.load %arg10[%c2_36, %c2_37, %c0_38] : memref<18x18x64xbf16, #tpu.memory_space<vmem>>, vector<16x16x64xbf16>
      %45 = vector.shape_cast %44 : vector<16x16x64xbf16> to vector<256x64xbf16>
      %46 = tpu.concatenate %29, %31, %33, %35, %37, %39, %41, %43, %45 in 1 : vector<256x64xbf16>, vector<256x64xbf16>, vector<256x64xbf16>, vector<256x64xbf16>, vector<256x64xbf16>, vector<256x64xbf16>, vector<256x64xbf16>, vector<256x64xbf16>, vector<256x64xbf16> -> vector<256x576xbf16>
      %c0_39 = arith.constant 0 : index
      %c0_40 = arith.constant 0 : index
      %47 = vector.load %arg4[%c0_39, %c0_40] : memref<576x64xbf16, #tpu.memory_space<vmem>>, vector<576x64xbf16>
      %cst_41 = arith.constant dense<0.000000e+00> : vector<256x64xf32>
      %48 = tpu.matmul %46, %47, %cst_41 {dimension_numbers = #tpu.dot_dimension_numbers<[1], [0], [0], [1], [0, 0, 1, 1], [], []>} : vector<256x576xbf16>, vector<576x64xbf16>, vector<256x64xf32> -> vector<256x64xf32>
      %c2_42 = arith.constant 2 : index
      %c0_43 = arith.constant 0 : index
      %49 = vector.load %arg13[%c2_42, %c0_43] : memref<4x64xf32, #tpu.memory_space<vmem>>, vector<1x64xf32>
      %cst_44 = arith.constant dense<0.000000e+00> : vector<1x64xf32>
      %50 = tpu.matmul %0, %48, %cst_44 {dimension_numbers = #tpu.dot_dimension_numbers<[1], [0], [0], [1], [0, 0, 1, 1], [], []>} : vector<1x256xf32>, vector<256x64xf32>, vector<1x64xf32> -> vector<1x64xf32>
      %51 = arith.addf %49, %50 : vector<1x64xf32>
      %c2_45 = arith.constant 2 : index
      %c0_46 = arith.constant 0 : index
      %52 = vector.load %arg13[%c2_45, %c0_46] : memref<4x64xf32, #tpu.memory_space<vmem>>, vector<1x64xf32>
      tpu.vector_store %arg13[%c2_45, %c0_46], %51 {strides = array<i32>} : memref<4x64xf32, #tpu.memory_space<vmem>>, vector<1x64xf32>,
      %c3 = arith.constant 3 : index
      %c0_47 = arith.constant 0 : index
      %53 = vector.load %arg13[%c3, %c0_47] : memref<4x64xf32, #tpu.memory_space<vmem>>, vector<1x64xf32>
      %54 = arith.mulf %48, %48 : vector<256x64xf32>
      %cst_48 = arith.constant dense<0.000000e+00> : vector<1x64xf32>
      %55 = tpu.matmul %0, %54, %cst_48 {dimension_numbers = #tpu.dot_dimension_numbers<[1], [0], [0], [1], [0, 0, 1, 1], [], []>} : vector<1x256xf32>, vector<256x64xf32>, vector<1x64xf32> -> vector<1x64xf32>
      %56 = arith.addf %53, %55 : vector<1x64xf32>
      %c3_49 = arith.constant 3 : index
      %c0_50 = arith.constant 0 : index
      %57 = vector.load %arg13[%c3_49, %c0_50] : memref<4x64xf32, #tpu.memory_space<vmem>>, vector<1x64xf32>
      tpu.vector_store %arg13[%c3_49, %c0_50], %56 {strides = array<i32>} : memref<4x64xf32, #tpu.memory_space<vmem>>, vector<1x64xf32>,
      %58 = arith.truncf %48 : vector<256x64xf32> to vector<256x64xbf16>
      %59 = arith.index_cast %arg1 : i32 to index
      %c0_51 = arith.constant 0 : index
      %c0_52 = arith.constant 0 : index
      %60 = vector.load %arg12[%59, %c0_51, %c0_52] : memref<2x256x64xbf16, #tpu.memory_space<vmem>>, vector<1x256x64xbf16>
      %61 = vector.shape_cast %60 : vector<1x256x64xbf16> to vector<256x64xbf16>
      %62 = vector.shape_cast %58 : vector<256x64xbf16> to vector<1x256x64xbf16>
      tpu.vector_store %arg12[%59, %c0_51, %c0_52], %62 {strides = array<i32>} : memref<2x256x64xbf16, #tpu.memory_space<vmem>>, vector<1x256x64xbf16>,
    } else {
    }
    %c2_i32 = arith.constant 2 : i32
    %7 = arith.cmpi eq, %arg0, %c2_i32 : i32
    %8 = arith.extui %7 : i1 to i32
    %c0_i32_2 = arith.constant 0 : i32
    %9 = arith.cmpi ne, %8, %c0_i32_2 : i32
    scf.if %9 {
      %c0_i32_3 = arith.constant 0 : i32
      %10 = arith.cmpi eq, %arg1, %c0_i32_3 : i32
      %11 = arith.extui %10 : i1 to i32
      %c0_i32_4 = arith.constant 0 : i32
      %12 = arith.cmpi ne, %11, %c0_i32_4 : i32
      scf.if %12 {
        %c2_15 = arith.constant 2 : index
        %c0_16 = arith.constant 0 : index
        %30 = vector.load %arg13[%c2_15, %c0_16] : memref<4x64xf32, #tpu.memory_space<vmem>>, vector<1x64xf32>
        %cst_17 = arith.constant 0.001953125 : f32
        %31 = vector.broadcast %cst_17 : f32 to vector<1x64xf32>
        %32 = arith.mulf %30, %31 : vector<1x64xf32>
        %c3_18 = arith.constant 3 : index
        %c0_19 = arith.constant 0 : index
        %33 = vector.load %arg13[%c3_18, %c0_19] : memref<4x64xf32, #tpu.memory_space<vmem>>, vector<1x64xf32>
        %cst_20 = arith.constant 0.001953125 : f32
        %34 = vector.broadcast %cst_20 : f32 to vector<1x64xf32>
        %35 = arith.mulf %33, %34 : vector<1x64xf32>
        %36 = arith.mulf %32, %32 : vector<1x64xf32>
        %37 = arith.subf %35, %36 : vector<1x64xf32>
        %c0_21 = arith.constant 0 : index
        %c0_22 = arith.constant 0 : index
        %38 = vector.load %arg7[%c0_21, %c0_22] : memref<1x64xf32, #tpu.memory_space<vmem>>, vector<1x64xf32>
        %cst_23 = arith.constant 9.99999974E-6 : f32
        %39 = vector.broadcast %cst_23 : f32 to vector<1x64xf32>
        %40 = arith.addf %37, %39 : vector<1x64xf32>
        %41 = math.rsqrt %40 : vector<1x64xf32>
        %42 = arith.mulf %38, %41 : vector<1x64xf32>
        %c2_24 = arith.constant 2 : index
        %c0_25 = arith.constant 0 : index
        %43 = vector.load %arg14[%c2_24, %c0_25] : memref<4x64xf32, #tpu.memory_space<vmem>>, vector<1x64xf32>
        tpu.vector_store %arg14[%c2_24, %c0_25], %42 {strides = array<i32>} : memref<4x64xf32, #tpu.memory_space<vmem>>, vector<1x64xf32>,
        %c0_26 = arith.constant 0 : index
        %c0_27 = arith.constant 0 : index
        %44 = vector.load %arg8[%c0_26, %c0_27] : memref<1x64xf32, #tpu.memory_space<vmem>>, vector<1x64xf32>
        %45 = arith.mulf %32, %42 : vector<1x64xf32>
        %46 = arith.subf %44, %45 : vector<1x64xf32>
        %c3_28 = arith.constant 3 : index
        %c0_29 = arith.constant 0 : index
        %47 = vector.load %arg14[%c3_28, %c0_29] : memref<4x64xf32, #tpu.memory_space<vmem>>, vector<1x64xf32>
        tpu.vector_store %arg14[%c3_28, %c0_29], %46 {strides = array<i32>} : memref<4x64xf32, #tpu.memory_space<vmem>>, vector<1x64xf32>,
      } else {
      }
      %c2 = arith.constant 2 : index
      %c0 = arith.constant 0 : index
      %13 = vector.load %arg14[%c2, %c0] : memref<4x64xf32, #tpu.memory_space<vmem>>, vector<1x64xf32>
      %c3 = arith.constant 3 : index
      %c0_5 = arith.constant 0 : index
      %14 = vector.load %arg14[%c3, %c0_5] : memref<4x64xf32, #tpu.memory_space<vmem>>, vector<1x64xf32>
      %15 = arith.index_cast %arg1 : i32 to index
      %c0_6 = arith.constant 0 : index
      %c0_7 = arith.constant 0 : index
      %16 = vector.load %arg12[%15, %c0_6, %c0_7] : memref<2x256x64xbf16, #tpu.memory_space<vmem>>, vector<1x256x64xbf16>
      %17 = vector.shape_cast %16 : vector<1x256x64xbf16> to vector<256x64xbf16>
      %18 = arith.extf %17 : vector<256x64xbf16> to vector<256x64xf32>
      %c0_8 = arith.constant 0 : index
      %c0_9 = arith.constant 0 : index
      %c0_10 = arith.constant 0 : index
      %c0_11 = arith.constant 0 : index
      %19 = vector.load %arg2[%c0_8, %c0_9, %c0_10, %c0_11] : memref<1x16x16x64xf32, #tpu.memory_space<vmem>>, vector<1x16x16x64xf32>
      %20 = vector.shape_cast %19 : vector<1x16x16x64xf32> to vector<16x16x64xf32>
      %21 = vector.shape_cast %20 : vector<16x16x64xf32> to vector<256x64xf32>
      %22 = vector.broadcast %13 : vector<1x64xf32> to vector<256x64xf32>
      %23 = arith.mulf %18, %22 : vector<256x64xf32>
      %24 = vector.broadcast %14 : vector<1x64xf32> to vector<256x64xf32>
      %25 = arith.addf %23, %24 : vector<256x64xf32>
      %26 = arith.addf %25, %21 : vector<256x64xf32>
      %c0_12 = arith.constant 0 : index
      %c0_13 = arith.constant 0 : index
      %c0_14 = arith.constant 0 : index
      %27 = vector.load %arg9[%c0_12, %c0_13, %c0_14] : memref<1x256x64xf32, #tpu.memory_space<vmem>>, vector<1x256x64xf32>
      %28 = vector.shape_cast %27 : vector<1x256x64xf32> to vector<256x64xf32>
      %29 = vector.shape_cast %26 : vector<256x64xf32> to vector<1x256x64xf32>
      tpu.vector_store %arg9[%c0_12, %c0_13, %c0_14], %29 {strides = array<i32>} : memref<1x256x64xf32, #tpu.memory_space<vmem>>, vector<1x256x64xf32>,
    } else {
    }
    return
  }
  func.func @transform_0(%arg0: i32, %arg1: i32) -> (i32, i32, i32, i32) {
    %c1_i32 = arith.constant 1 : i32
    %0 = arith.cmpi eq, %arg0, %c1_i32 : i32
    %c0_i32 = arith.constant 0 : i32
    %1 = arith.select %0, %c0_i32, %arg1 : i32
    %c0_i32_0 = arith.constant 0 : i32
    %c0_i32_1 = arith.constant 0 : i32
    %c0_i32_2 = arith.constant 0 : i32
    %c0_i32_3 = arith.constant 0 : i32
    return %1, %c0_i32_0, %c0_i32_1, %c0_i32_2 : i32, i32, i32, i32
  }
  func.func @transform_1(%arg0: i32, %arg1: i32) -> (i32, i32) {
    %c0_i32 = arith.constant 0 : i32
    %c0_i32_0 = arith.constant 0 : i32
    %c0_i32_1 = arith.constant 0 : i32
    return %c0_i32, %c0_i32_0 : i32, i32
  }
  func.func @transform_2(%arg0: i32, %arg1: i32) -> (i32, i32) {
    %c0_i32 = arith.constant 0 : i32
    %c0_i32_0 = arith.constant 0 : i32
    %c0_i32_1 = arith.constant 0 : i32
    return %c0_i32, %c0_i32_0 : i32, i32
  }
  func.func @transform_3(%arg0: i32, %arg1: i32) -> (i32, i32) {
    %c0_i32 = arith.constant 0 : i32
    %c0_i32_0 = arith.constant 0 : i32
    %c0_i32_1 = arith.constant 0 : i32
    return %c0_i32, %c0_i32_0 : i32, i32
  }
  func.func @transform_4(%arg0: i32, %arg1: i32) -> (i32, i32) {
    %c0_i32 = arith.constant 0 : i32
    %c0_i32_0 = arith.constant 0 : i32
    %c0_i32_1 = arith.constant 0 : i32
    return %c0_i32, %c0_i32_0 : i32, i32
  }
  func.func @transform_5(%arg0: i32, %arg1: i32) -> (i32, i32) {
    %c0_i32 = arith.constant 0 : i32
    %c0_i32_0 = arith.constant 0 : i32
    %c0_i32_1 = arith.constant 0 : i32
    return %c0_i32, %c0_i32_0 : i32, i32
  }
  func.func @transform_6(%arg0: i32, %arg1: i32) -> (i32, i32) {
    %c0_i32 = arith.constant 0 : i32
    %c0_i32_0 = arith.constant 0 : i32
    %c0_i32_1 = arith.constant 0 : i32
    return %c0_i32, %c0_i32_0 : i32, i32
  }
  func.func @transform_7(%arg0: i32, %arg1: i32) -> (i32, i32, i32) {
    %c2_i32 = arith.constant 2 : i32
    %0 = arith.cmpi eq, %arg0, %c2_i32 : i32
    %c0_i32 = arith.constant 0 : i32
    %1 = arith.select %0, %arg1, %c0_i32 : i32
    %c0_i32_0 = arith.constant 0 : i32
    %c0_i32_1 = arith.constant 0 : i32
    %c0_i32_2 = arith.constant 0 : i32
    return %1, %c0_i32_0, %c0_i32_1 : i32, i32, i32
  }
}

</mosaic_0001>

<bundles_post_ra>
// kernel: tpu_custom_call.1
= control target key start
LH: loop header
LB: loop body
LE: loop exit
PB: predicated region body
PF: predicated region fallthrough
CT: control target
= control target key end

     0   :  { %s10750_s24 = smov 0   ;;  %s10752_s25 = smov 0   ;;  %s14317_s0 = inlined_call_operand.vmem [shape: f32[2,16,16,64], index: 0, kind: input, shape index: {}]   ;;  %s14318_s1 = inlined_call_operand.vmem [shape: bf16[576,64], index: 1, kind: input, shape index: {}]   ;;  %s14319_s2 = inlined_call_operand.vmem [shape: bf16[576,64], index: 2, kind: input, shape index: {}]   ;;  %s14320_s3 = inlined_call_operand.vmem [shape: f32[1,64], index: 3, kind: input, shape index: {}]   ;;  %s14321_s4 = inlined_call_operand.vmem [shape: f32[1,64], index: 4, kind: input, shape index: {}]   ;;  %s14322_s5 = inlined_call_operand.vmem [shape: f32[1,64], index: 5, kind: input, shape index: {}]   ;;  %s14323_s6 = inlined_call_operand.vmem [shape: f32[1,64], index: 6, kind: input, shape index: {}]   ;;  %s14324_s7 = inlined_call_operand.vmem [shape: f32[2,256,64], index: 7, kind: output, shape index: {}]  }
   0x1   :  { %s10754_s26 = smov 0   ;;  %s10756_s27 = smov 0  }
   0x2   :  { %s10758_s28 = smov 0  }
   0x3 LB: > { %s26_s29 = sadd.s32 1, %s10694_s26  ;;  %s29_s30 = sadd.s32 1, %s10698_s27  ;;  %s10702_s28 = sphi %s10758_s28, %s17_s28   ;;  %s10698_s27 = sphi %s10756_s27, %s14488_s27   ;;  %s10694_s26 = sphi %s10754_s26, %s14487_s26   ;;  %s10690_s25 = sphi %s10752_s25, %s14486_s25   ;;  %s10686_s24 = sphi %s10750_s24, %s14485_s24  }
   0x4   : > { %p27_p0 = scmp.ge.s32.totalorder %s26_s29, 2  ;;  %p9269_p1 = scmp.ge.s32.totalorder %s10702_s28, 1 }
   0x5   : > { %p261_p2 = scmp.lt.s32.totalorder %s10702_s28, 7 }
   0x6   : > { %s14490_s29 = smov (%p27_p0, %s26_s29), 0  ;;  %s14492_s30 = smov (!%p27_p0, %s29_s30), %s10698_s27 }
   0x7   : > { %p262_p3 = pnand %p9269_p1, %p261_p2  ;;  %p31_p4 = scmp.ge.s32.totalorder %s14492_s30, 3 }
   0x8   : > { %p297_p5 = scmp.eq.s32.totalorder (!%p262_p3), %s10690_s25, 1  ;;  %p306_p6 = scmp.eq.s32.totalorder (!%p262_p3), %s10690_s25, 2 }
   0x9   : > { %s14494_s30 = smov (%p31_p4, %s14492_s30), 0  ;;  %265 = sbr.rel (%p262_p3) target bundleno = 1933 (0x78d), region = 48 }
   0xa   : > { %p9274_p9 = scmp.ne.s32.totalorder (!%p262_p3), %s10690_s25, 0 }
   0xe   : > { %s298_s8 = scalar_select %p297_p5, 0, %s10686_s24 }
   0xf   : > { %s307_s9 = scalar_select %p306_p6, %s10686_s24, 0 }
  0x10   : > { %p299_p7 = scmp.lt.s32.totalorder %s298_s8, 1 }
  0x11   : > { %p308_p8 = scmp.lt.s32.totalorder %s307_s9, 1  ;;  %319 = sbr.rel (%p9274_p9) target bundleno = 943 (0x3af), region = 52 }
  0x12   : > { %s14496_s8 = smov (!%p299_p7, %s298_s8), 1 }
  0x13   : > { %s14498_s9 = smov (!%p308_p8, %s307_s9), 1  ;;  %s10089_s10 = sshll.u32 %s14496_s8, 8 }
  0x14   : > { %s10791_s13 = scalar_lea.vmem %s14317_s0, %s10089_s10  ;;  %s10090_s14 = sshll.u32 %s14498_s9, 8 }
  0x15   : > { %s10796_s17 = scalar_lea.vmem %s14324_s7, %s10090_s14 }
  0x16   : > { %p9275_p10 = scmp.ne.s32.totalorder %s10686_s24, 0 }
  0x18   : > { %323 = sbr.rel (%p9275_p10) target bundleno = 117 (0x75), region = 56 }
  0x1d   : > { %vm324_vm0 = vcmask 519168   ;;  %v10704_v0 = vmov 0   ;;  %vm327_vm1 = vcmask 516096   ;;  %vm381_vm2 = vcmask 523264  }
  0x1e   : > { %325 = vst.msk [vmem:[#allocation2] sm:$0xf] %vm324_vm0, %v10704_v0  ;;  %v10705_v1 = vmov 0.0  }
  0x1f   : > { %326 = vst.msk [vmem:[#allocation2 + $0x4] sm:$0xf] %vm324_vm0, %v10704_v0 }
  0x20   : > { %329 = vst.msk [vmem:[#allocation2 + $0xc] sm:$0xf] %vm324_vm0, %v10704_v0 }
  0x21   : > { %330 = vst.msk [vmem:[#allocation2 + $0x10] sm:$0xf] %vm324_vm0, %v10704_v0 }
  0x22   : > { %332 = vst.msk [vmem:[#allocation2 + $0x18] sm:$0xf] %vm324_vm0, %v10704_v0 }
  0x23   : > { %333 = vst.msk [vmem:[#allocation2 + $0x1c] sm:$0xf] %vm324_vm0, %v10704_v0 }
  0x24   : > { %335 = vst.msk [vmem:[#allocation2 + $0x24] sm:$0xf] %vm324_vm0, %v10704_v0 }
  0x25   : > { %336 = vst.msk [vmem:[#allocation2 + $0x28] sm:$0xf] %vm324_vm0, %v10704_v0 }
  0x26   : > { %338 = vst.msk [vmem:[#allocation2 + $0x30] sm:$0xf] %vm324_vm0, %v10704_v0 }
  0x27   : > { %339 = vst.msk [vmem:[#allocation2 + $0x34] sm:$0xf] %vm324_vm0, %v10704_v0 }
  0x28   : > { %341 = vst.msk [vmem:[#allocation2 + $0x3c] sm:$0xf] %vm324_vm0, %v10704_v0 }
  0x29   : > { %342 = vst.msk [vmem:[#allocation2 + $0x40] sm:$0xf] %vm324_vm0, %v10704_v0 }
  0x2a   : > { %344 = vst.msk [vmem:[#allocation2 + $0x48] sm:$0xf] %vm324_vm0, %v10704_v0 }
  0x2b   : > { %345 = vst.msk [vmem:[#allocation2 + $0x4c] sm:$0xf] %vm324_vm0, %v10704_v0 }
  0x2c   : > { %347 = vst.msk [vmem:[#allocation2 + $0x54] sm:$0xf] %vm324_vm0, %v10704_v0 }
  0x2d   : > { %348 = vst.msk [vmem:[#allocation2 + $0x58] sm:$0xf] %vm324_vm0, %v10704_v0 }
  0x2e   : > { %350 = vst.msk [vmem:[#allocation2 + $0x60] sm:$0xf] %vm324_vm0, %v10704_v0 }
  0x2f   : > { %351 = vst.msk [vmem:[#allocation2 + $0x64] sm:$0xf] %vm324_vm0, %v10704_v0 }
  0x30   : > { %353 = vst.msk [vmem:[#allocation2 + $0x6c] sm:$0xf] %vm324_vm0, %v10704_v0 }
  0x31   : > { %354 = vst.msk [vmem:[#allocation2 + $0x70] sm:$0xf] %vm324_vm0, %v10704_v0 }
  0x32   : > { %356 = vst.msk [vmem:[#allocation2 + $0x78] sm:$0xf] %vm324_vm0, %v10704_v0 }
  0x33   : > { %357 = vst.msk [vmem:[#allocation2 + $0x7c] sm:$0xf] %vm324_vm0, %v10704_v0 }
  0x34   : > { %359 = vst.msk [vmem:[#allocation2 + $0x84] sm:$0xf] %vm324_vm0, %v10704_v0 }
  0x35   : > { %360 = vst.msk [vmem:[#allocation2 + $0x88] sm:$0xf] %vm324_vm0, %v10704_v0 }
  0x36   : > { %362 = vst.msk [vmem:[#allocation2 + $0x90] sm:$0xf] %vm324_vm0, %v10704_v0 }
  0x37   : > { %363 = vst.msk [vmem:[#allocation2 + $0x94] sm:$0xf] %vm324_vm0, %v10704_v0 }
  0x38   : > { %365 = vst.msk [vmem:[#allocation2 + $0x9c] sm:$0xf] %vm324_vm0, %v10704_v0 }
  0x39   : > { %366 = vst.msk [vmem:[#allocation2 + $0xa0] sm:$0xf] %vm324_vm0, %v10704_v0 }
  0x3a   : > { %368 = vst.msk [vmem:[#allocation2 + $0xa8] sm:$0xf] %vm324_vm0, %v10704_v0 }
  0x3b   : > { %369 = vst.msk [vmem:[#allocation2 + $0xac] sm:$0xf] %vm324_vm0, %v10704_v0 }
  0x3c   : > { %371 = vst.msk [vmem:[#allocation2 + $0xb4] sm:$0xf] %vm324_vm0, %v10704_v0 }
  0x3d   : > { %372 = vst.msk [vmem:[#allocation2 + $0xb8] sm:$0xf] %vm324_vm0, %v10704_v0 }
  0x3e   : > { %374 = vst.msk [vmem:[#allocation2 + $0xc0] sm:$0xf] %vm324_vm0, %v10704_v0 }
  0x3f   : > { %375 = vst.msk [vmem:[#allocation2 + $0xc4] sm:$0xf] %vm324_vm0, %v10704_v0 }
  0x40   : > { %377 = vst.msk [vmem:[#allocation2 + $0xcc] sm:$0xf] %vm324_vm0, %v10704_v0 }
  0x41   : > { %378 = vst.msk [vmem:[#allocation2 + $0xd0] sm:$0xf] %vm324_vm0, %v10704_v0 }
  0x42   : > { %328 = vst.msk [vmem:[#allocation2 + $0x8] sm:$0x1] %vm327_vm1, %v10704_v0 }
  0x43   : > { %331 = vst.msk [vmem:[#allocation2 + $0x14] sm:$0x1] %vm327_vm1, %v10704_v0 }
  0x44   : > { %334 = vst.msk [vmem:[#allocation2 + $0x20] sm:$0x1] %vm327_vm1, %v10704_v0 }
  0x45   : > { %337 = vst.msk [vmem:[#allocation2 + $0x2c] sm:$0x1] %vm327_vm1, %v10704_v0 }
  0x46   : > { %340 = vst.msk [vmem:[#allocation2 + $0x38] sm:$0x1] %vm327_vm1, %v10704_v0 }
  0x47   : > { %343 = vst.msk [vmem:[#allocation2 + $0x44] sm:$0x1] %vm327_vm1, %v10704_v0 }
  0x48   : > { %346 = vst.msk [vmem:[#allocation2 + $0x50] sm:$0x1] %vm327_vm1, %v10704_v0 }
  0x49   : > { %349 = vst.msk [vmem:[#allocation2 + $0x5c] sm:$0x1] %vm327_vm1, %v10704_v0 }
  0x4a   : > { %352 = vst.msk [vmem:[#allocation2 + $0x68] sm:$0x1] %vm327_vm1, %v10704_v0 }
  0x4b   : > { %355 = vst.msk [vmem:[#allocation2 + $0x74] sm:$0x1] %vm327_vm1, %v10704_v0 }
  0x4c   : > { %358 = vst.msk [vmem:[#allocation2 + $0x80] sm:$0x1] %vm327_vm1, %v10704_v0 }
  0x4d   : > { %361 = vst.msk [vmem:[#allocation2 + $0x8c] sm:$0x1] %vm327_vm1, %v10704_v0 }
  0x4e   : > { %364 = vst.msk [vmem:[#allocation2 + $0x98] sm:$0x1] %vm327_vm1, %v10704_v0 }
  0x4f   : > { %367 = vst.msk [vmem:[#allocation2 + $0xa4] sm:$0x1] %vm327_vm1, %v10704_v0 }
  0x50   : > { %370 = vst.msk [vmem:[#allocation2 + $0xb0] sm:$0x1] %vm327_vm1, %v10704_v0 }
  0x51   : > { %373 = vst.msk [vmem:[#allocation2 + $0xbc] sm:$0x1] %vm327_vm1, %v10704_v0 }
  0x52   : > { %376 = vst.msk [vmem:[#allocation2 + $0xc8] sm:$0x1] %vm327_vm1, %v10704_v0 }
  0x53   : > { %379 = vst.msk [vmem:[#allocation2 + $0xd4] sm:$0x1] %vm327_vm1, %v10704_v0 }
  0x54   : > { %380 = vst.msk [vmem:[#allocation5] sm:$0xf] %vm324_vm0, %v10705_v1 }
  0x55   : > { %382 = vst.msk [vmem:[%s10796_s17] sm:$0xff] %vm381_vm2, %v10705_v1 }
  0x56   : > { %383 = vst.msk [vmem:[%s10796_s17 + $0x8] sm:$0xff] %vm381_vm2, %v10705_v1 }
  0x57   : > { %384 = vst.msk [vmem:[%s10796_s17 + $0x10] sm:$0xff] %vm381_vm2, %v10705_v1 }
  0x58   : > { %385 = vst.msk [vmem:[%s10796_s17 + $0x18] sm:$0xff] %vm381_vm2, %v10705_v1 }
  0x59   : > { %386 = vst.msk [vmem:[%s10796_s17 + $0x20] sm:$0xff] %vm381_vm2, %v10705_v1 }
  0x5a   : > { %387 = vst.msk [vmem:[%s10796_s17 + $0x28] sm:$0xff] %vm381_vm2, %v10705_v1 }
  0x5b   : > { %388 = vst.msk [vmem:[%s10796_s17 + $0x30] sm:$0xff] %vm381_vm2, %v10705_v1 }
  0x5c   : > { %389 = vst.msk [vmem:[%s10796_s17 + $0x38] sm:$0xff] %vm381_vm2, %v10705_v1 }
  0x5d   : > { %390 = vst.msk [vmem:[%s10796_s17 + $0x40] sm:$0xff] %vm381_vm2, %v10705_v1 }
  0x5e   : > { %391 = vst.msk [vmem:[%s10796_s17 + $0x48] sm:$0xff] %vm381_vm2, %v10705_v1 }
  0x5f   : > { %392 = vst.msk [vmem:[%s10796_s17 + $0x50] sm:$0xff] %vm381_vm2, %v10705_v1 }
  0x60   : > { %393 = vst.msk [vmem:[%s10796_s17 + $0x58] sm:$0xff] %vm381_vm2, %v10705_v1 }
  0x61   : > { %394 = vst.msk [vmem:[%s10796_s17 + $0x60] sm:$0xff] %vm381_vm2, %v10705_v1 }
  0x62   : > { %395 = vst.msk [vmem:[%s10796_s17 + $0x68] sm:$0xff] %vm381_vm2, %v10705_v1 }
  0x63   : > { %396 = vst.msk [vmem:[%s10796_s17 + $0x70] sm:$0xff] %vm381_vm2, %v10705_v1 }
  0x64   : > { %397 = vst.msk [vmem:[%s10796_s17 + $0x78] sm:$0xff] %vm381_vm2, %v10705_v1 }
  0x65   : > { %398 = vst.msk [vmem:[%s10796_s17 + $0x80] sm:$0xff] %vm381_vm2, %v10705_v1 }
  0x66   : > { %399 = vst.msk [vmem:[%s10796_s17 + $0x88] sm:$0xff] %vm381_vm2, %v10705_v1 }
  0x67   : > { %400 = vst.msk [vmem:[%s10796_s17 + $0x90] sm:$0xff] %vm381_vm2, %v10705_v1 }
  0x68   : > { %401 = vst.msk [vmem:[%s10796_s17 + $0x98] sm:$0xff] %vm381_vm2, %v10705_v1 }
  0x69   : > { %402 = vst.msk [vmem:[%s10796_s17 + $0xa0] sm:$0xff] %vm381_vm2, %v10705_v1 }
  0x6a   : > { %403 = vst.msk [vmem:[%s10796_s17 + $0xa8] sm:$0xff] %vm381_vm2, %v10705_v1 }
  0x6b   : > { %404 = vst.msk [vmem:[%s10796_s17 + $0xb0] sm:$0xff] %vm381_vm2, %v10705_v1 }
  0x6c   : > { %405 = vst.msk [vmem:[%s10796_s17 + $0xb8] sm:$0xff] %vm381_vm2, %v10705_v1 }
  0x6d   : > { %406 = vst.msk [vmem:[%s10796_s17 + $0xc0] sm:$0xff] %vm381_vm2, %v10705_v1 }
  0x6e   : > { %407 = vst.msk [vmem:[%s10796_s17 + $0xc8] sm:$0xff] %vm381_vm2, %v10705_v1 }
  0x6f   : > { %408 = vst.msk [vmem:[%s10796_s17 + $0xd0] sm:$0xff] %vm381_vm2, %v10705_v1 }
  0x70   : > { %409 = vst.msk [vmem:[%s10796_s17 + $0xd8] sm:$0xff] %vm381_vm2, %v10705_v1 }
  0x71   : > { %410 = vst.msk [vmem:[%s10796_s17 + $0xe0] sm:$0xff] %vm381_vm2, %v10705_v1 }
  0x72   : > { %411 = vst.msk [vmem:[%s10796_s17 + $0xe8] sm:$0xff] %vm381_vm2, %v10705_v1 }
  0x73   : > { %412 = vst.msk [vmem:[%s10796_s17 + $0xf0] sm:$0xff] %vm381_vm2, %v10705_v1 }
  0x74   : > { %413 = vst.msk [vmem:[%s10796_s17 + $0xf8] sm:$0xff] %vm381_vm2, %v10705_v1 }
  0x75 PF: > { %v432_v2 = vld [vmem:[%s10791_s13 + $0x90] sm:$0xff]  ;;  %v433_v3 = vld [vmem:[%s10791_s13 + $0x98] sm:$0xff]  ;;  %vm478_vm3 = vsmask.f32 256  ;;  %vm479_vm4 = vsmask.f32 4368 }
  0x76   : > { %v464_v4 = vpack.c.bf16 %v432_v2, %v432_v2  ;;  %v465_v5 = vpack.c.bf16 %v433_v3, %v433_v3  ;;  %vm802_vm5 = vcmask 519168   ;;  %vm803_vm6 = vsmask.f32 7938  ;;  %v434_v6 = vld [vmem:[%s10791_s13 + $0xa0] sm:$0xff]  ;;  %v435_v11 = vld [vmem:[%s10791_s13 + $0xa8] sm:$0xff]  ;;  %vm10925_vm8 = vmor %vm478_vm3, %vm479_vm4  ;;  %s10706_s18 = smov 64  }
  0x77   : > { %vm810_vm7 = vcmask 516096   ;;  %v422_v12 = vld [vmem:[%s10791_s13 + $0x40] sm:$0xff]  ;;  %v466_v14 = vpack.c.bf16 %v434_v6, %v434_v6  ;;  %v467_v15 = vpack.c.bf16 %v435_v11, %v435_v11  ;;  %vm10931_vm9 = vmand %vm802_vm5, %vm803_vm6  ;;  %v871_v20 = vld [vmem:[#allocation2 + $0x78] sm:$0xf]  ;;  %vm968_vm11 = vsmask.f32 3328 }
  0x78   : > { %v635_v7 = vshrl.u32 %v464_v4, 16  ;;  %v638_v8 = vshll.u32 %v464_v4, 16  ;;  %v643_v9 = vshrl.u32 %v465_v5, 16  ;;  %v646_v10 = vshll.u32 %v465_v5, 16  ;;  %v423_v21 = vld [vmem:[%s10791_s13 + $0x48] sm:$0xff]  ;;  %vm10938_vm10 = vmand %vm810_vm7, %vm478_vm3  ;;  %v414_v59 = vld [vmem:[%s10791_s13] sm:$0xff] }
  0x79   : > { %v454_v16 = vpack.c.bf16 %v422_v12, %v422_v12  ;;  %v875_v23 = vld [vmem:[#allocation2 + $0x80] sm:$0x1]  ;;  %v652_v24 = vshrl.u32 %v466_v14, 16  ;;  %v655_v25 = vshll.u32 %v466_v14, 16  ;;  %v660_v26 = vshrl.u32 %v467_v15, 16  ;;  %v416_v11 = vld [vmem:[%s10791_s13 + $0x10] sm:$0xff] }
  0x7a   : > { %v637_v17 = vrot.slane %v635_v7, 7  ;;  %v645_v18 = vrot.slane %v643_v9, 7  ;;  %v663_v27 = vshll.u32 %v467_v15, 16  ;;  %v878_v32 = vld [vmem:[#allocation2 + $0x84] sm:$0xf]  ;;  %v455_v35 = vpack.c.bf16 %v423_v21, %v423_v21  ;;  %v415_v7 = vld [vmem:[%s10791_s13 + $0x8] sm:$0xff] }
  0x7b   : > { %v654_v33 = vrot.slane %v652_v24, 7  ;;  %v662_v34 = vrot.slane %v660_v26, 7  ;;  %v550_v36 = vshrl.u32 %v454_v16, 16  ;;  %v920_v37 = vld [vmem:[#allocation2] sm:$0xf]  ;;  %v553_v42 = vshll.u32 %v454_v16, 16 }
  0x7c   : > { %v640_v28 = vor.u32 %v638_v8, %v637_v17  ;;  %v641_v29 = vrot.slane %v637_v17, 4  ;;  %v648_v30 = vor.u32 %v646_v10, %v645_v18  ;;  %v650_v31 = vrot.slane %v645_v18, 4  ;;  %v882_v41 = vld [vmem:[#allocation2 + $0x8c] sm:$0x1]  ;;  %v921_v43 = vld [vmem:[#allocation2 + $0x4] sm:$0xf] }
  0x7d   : > { %v657_v44 = vor.u32 %v655_v25, %v654_v33  ;;  %v658_v45 = vrot.slane %v654_v33, 4  ;;  %v665_v46 = vor.u32 %v663_v27, %v662_v34  ;;  %v667_v47 = vrot.slane %v662_v34, 4  ;;  %v836_v48 = vld [vmem:[#allocation2 + $0x3c] sm:$0xf]  ;;  %v952_v49 = vld [vmem:[#allocation2 + $0x8] sm:$0x1] }
  0x7e   : > { %v649_v38 = vsel %vm10925_vm8, %v641_v29, %v648_v30  ;;  %v872_v39 = vsel %vm10931_vm9, %v640_v28, %v871_v20  ;;  %v876_v40 = vsel %vm10938_vm10, %v650_v31, %v875_v23  ;;  %v552_v50 = vrot.slane %v550_v36, 7  ;;  %v840_v57 = vld [vmem:[#allocation2 + $0x44] sm:$0x1]  ;;  %v417_v18 = vld [vmem:[%s10791_s13 + $0x18] sm:$0xff]  ;;  %s10175_s10 = sshll.u32 %s10686_s24, 7 }
  0x7f   : > { %873 = vst [vmem:[#allocation2 + $0x78] sm:$0xf] %v872_v39  ;;  %v558_v51 = vshrl.u32 %v455_v35, 16  ;;  %v561_v52 = vshll.u32 %v455_v35, 16  ;;  %v972_v53 = vshrl.u32 %v920_v37, 16  ;;  %v666_v54 = vsel %vm10925_vm8, %v658_v45, %v665_v46  ;;  %v418_v36 = vld [vmem:[%s10791_s13 + $0x20] sm:$0xff] }
  0x80   : > { %874 = vst.msk [vmem:[#allocation2 + $0x7c] sm:$0xf] %vm802_vm5, %v649_v38  ;;  %vm969_vm12 = vsmask.f32 7440  ;;  %v879_v55 = vsel %vm10931_vm9, %v657_v44, %v878_v32  ;;  %v883_v56 = vsel %vm10938_vm10, %v667_v47, %v882_v41  ;;  %v975_v58 = vshll.u32 %v920_v37, 16  ;;  %s12070_s11 = scalar_lea.vmem [#allocation3], %s10175_s10 }
  0x81   : > { %877 = vst [vmem:[#allocation2 + $0x80] sm:$0x1] %v876_v40  ;;  %v555_v60 = vor.u32 %v553_v42, %v552_v50  ;;  %v556_v61 = vrot.slane %v552_v50, 4  ;;  %v560_v62 = vrot.slane %v558_v51, 7  ;;  %v10956_v63 = vrot.slane %v972_v53, 4  ;;  %vm10993_vm13 = vmor %vm968_vm11, %vm969_vm12 }
  0x82   : > { %880 = vst [vmem:[#allocation2 + $0x84] sm:$0xf] %v879_v55  ;;  %v10959_v0 = vrot.slane %v975_v58, 5  ;;  %v981_v1 = vshll.u32 %v921_v43, 16  ;;  %v985_v2 = vshrl.u32 %v921_v43, 16  ;;  %v991_v3 = vshll.u32 %v952_v49, 16 }
  0x83   : > { %881 = vst.msk [vmem:[#allocation2 + $0x88] sm:$0xf] %vm802_vm5, %v666_v54  ;;  %v563_v4 = vor.u32 %v561_v52, %v560_v62  ;;  %v565_v5 = vrot.slane %v560_v62, 4  ;;  %v837_v6 = vsel %vm10931_vm9, %v555_v60, %v836_v48  ;;  %v10964_v8 = vpack.c.bf16 %v414_v59, %v414_v59 }
  0x84   : > { %884 = vst [vmem:[#allocation2 + $0x8c] sm:$0x1] %v883_v56  ;;  %v10966_v9 = vrot.slane %v981_v1, 5  ;;  %v10968_v10 = vrot.slane %v985_v2, 4  ;;  %v10975_v16 = vrot.slane %v991_v3, 5  ;;  %v978_v24 = vor.u32 %v10959_v0, %v10956_v63 }
  0x85   : > { %838 = vst [vmem:[#allocation2 + $0x3c] sm:$0xf] %v837_v6  ;;  %v564_v14 = vsel %vm10925_vm8, %v556_v61, %v563_v4  ;;  %v841_v15 = vsel %vm10938_vm10, %v565_v5, %v840_v57  ;;  %v482_v17 = vshrl.u32 %v10964_v8, 16  ;;  %v10982_v25 = vpack.c.bf16 %v415_v7, %v415_v7 }
  0x86   : > { %v940_v12 = vld [vmem:[#allocation2 + $0x78] sm:$0xf]  ;;  %839 = vst.msk [vmem:[#allocation2 + $0x40] sm:$0xf] %vm802_vm5, %v564_v14  ;;  %v988_v29 = vor.u32 %v10968_v10, %v10966_v9  ;;  %v10986_v30 = vpack.c.bf16 %v416_v11, %v416_v11  ;;  %v10988_v35 = vpack.c.bf16 %v417_v18, %v417_v18  ;;  %v10997_v56 = vpack.c.bf16 %v418_v36, %v418_v36 }
  0x87   : > { %v941_v20 = vld [vmem:[#allocation2 + $0x7c] sm:$0xf]  ;;  %v1212_v21 = vshrl.u32 %v940_v12, 16  ;;  %v1215_v23 = vshll.u32 %v940_v12, 16  ;;  %842 = vst [vmem:[#allocation2 + $0x44] sm:$0x1] %v841_v15 }
  0x88   : > { %v962_v26 = vld [vmem:[#allocation2 + $0x80] sm:$0x1]  ;;  %v1221_v27 = vshll.u32 %v941_v20, 16  ;;  %v1225_v28 = vshrl.u32 %v941_v20, 16  ;;  %v979_v20 = vrot.slane %v978_v24, 4  ;;  %v989_v36 = vrot.slane %v988_v29, 4 }
  0x89   : > { %v1214_v31 = vrot.slane %v1212_v21, 4  ;;  %v1217_v32 = vrot.slane %v1215_v23, 5  ;;  %v1231_v33 = vshll.u32 %v962_v26, 16  ;;  %v942_v34 = vld [vmem:[#allocation2 + $0x84] sm:$0xf]  ;;  %v484_v24 = vrot.slane %v482_v17, 7 }
  0x8a   : > { %v1223_v37 = vrot.slane %v1221_v27, 5  ;;  %v1227_v38 = vrot.slane %v1225_v28, 4  ;;  %v943_v39 = vld [vmem:[#allocation2 + $0x88] sm:$0xf]  ;;  %v1236_v40 = vshrl.u32 %v942_v34, 16  ;;  %v1239_v41 = vshll.u32 %v942_v34, 16 }
  0x8b   : > { %v1218_v42 = vor.u32 %v1217_v32, %v1214_v31  ;;  %v1233_v43 = vrot.slane %v1231_v33, 5  ;;  %v963_v44 = vld [vmem:[#allocation2 + $0x8c] sm:$0x1]  ;;  %v1245_v45 = vshll.u32 %v943_v39, 16  ;;  %v1249_v46 = vshrl.u32 %v943_v39, 16 }
  0x8c   : > { %v1228_v48 = vor.u32 %v1227_v38, %v1223_v37  ;;  %v1238_v49 = vrot.slane %v1236_v40, 4  ;;  %v1241_v50 = vrot.slane %v1239_v41, 5  ;;  %v1255_v51 = vshll.u32 %v963_v44, 16  ;;  %v930_v52 = vld [vmem:[#allocation2 + $0x3c] sm:$0xf] }
  0x8d   : > { %v1219_v53 = vrot.slane %v1218_v42, 4  ;;  %v1247_v54 = vrot.slane %v1245_v45, 5  ;;  %v1251_v55 = vrot.slane %v1249_v46, 4  ;;  %v931_v60 = vld [vmem:[#allocation2 + $0x40] sm:$0xf]  ;;  %v1092_v61 = vshrl.u32 %v930_v52, 16 }
  0x8e   : > { %v1229_v57 = vrot.slane %v1228_v48, 4  ;;  %v1242_v58 = vor.u32 %v1241_v50, %v1238_v49  ;;  %v1257_v59 = vrot.slane %v1255_v51, 5  ;;  %v957_v0 = vld [vmem:[#allocation2 + $0x44] sm:$0x1]  ;;  %v1095_v1 = vshll.u32 %v930_v52, 16  ;;  %v419_v52 = vld [vmem:[%s10791_s13 + $0x28] sm:$0xff] }
  0x8f   : > { %v1224_v62 = vsel %vm10993_vm13, %v1219_v53, %v1223_v37  ;;  %v1252_v63 = vor.u32 %v1251_v55, %v1247_v54  ;;  %v1101_v2 = vshll.u32 %v931_v60, 16  ;;  %v1094_v6 = vrot.slane %v1092_v61, 4  ;;  %v805_v44 = vld [vmem:[#allocation2 + $0xc] sm:$0xf]  ;;  %v815_v61 = vld [vmem:[#allocation2 + $0x18] sm:$0xf] }
  0x90   : > { %v1234_v3 = vsel %vm10993_vm13, %v1229_v57, %v1233_v43  ;;  %v2835_v4 = vunpack.c.l.b16 %v1224_v62  ;;  %v1243_v5 = vrot.slane %v1242_v58, 4  ;;  %v1097_v11 = vrot.slane %v1095_v1, 5  ;;  %v426_v1 = vld [vmem:[%s10791_s13 + $0x60] sm:$0xff] }
  0x91   : > { %v2836_v7 = vunpack.c.l.b16 %v1234_v3  ;;  %v1253_v10 = vrot.slane %v1252_v63, 4  ;;  %v1103_v12 = vrot.slane %v1101_v2, 5  ;;  %v1105_v15 = vshrl.u32 %v931_v60, 16 }
  0x92   : > { %v1248_v14 = vsel %vm10993_vm13, %v1243_v5, %v1247_v54  ;;  %v1111_v18 = vshll.u32 %v957_v0, 16  ;;  %v1098_v27 = vor.u32 %v1097_v11, %v1094_v6  ;;  %v984_v33 = vsel %vm10993_vm13, %v979_v20, %v10966_v9  ;;  %v812_v54 = vld [vmem:[#allocation2 + $0x14] sm:$0x1]  ;;  %v819_v5 = vld [vmem:[#allocation2 + $0x20] sm:$0x1] }
  0x93   : > { %v2857_v21 = vpack.c.b16 %v2836_v7, %v2835_v4  ;;  %v1258_v23 = vsel %vm10993_vm13, %v1253_v10, %v1257_v59  ;;  %v2837_v26 = vunpack.c.l.b16 %v1248_v14  ;;  %v1107_v31 = vrot.slane %v1105_v15, 4  ;;  %v822_v6 = vld [vmem:[#allocation2 + $0x24] sm:$0xf]  ;;  %v427_v7 = vld [vmem:[%s10791_s13 + $0x68] sm:$0xff]  ;;  %v420_v14 = vld [vmem:[%s10791_s13 + $0x30] sm:$0xff] }
  0x94   : > { %v2838_v28 = vunpack.c.l.b16 %v1258_v23  ;;  %v1113_v32 = vrot.slane %v1111_v18, 5  ;;  %v1099_v34 = vrot.slane %v1098_v27, 4  ;;  %v2815_v37 = vunpack.c.l.b16 %v984_v33  ;;  %v421_v23 = vld [vmem:[%s10791_s13 + $0x38] sm:$0xff] }
  0x95   : > { %2883 = vrot.lane.b32.xlu0 %v2857_v21, %s10706_s18  ;;  %v1108_v39 = vor.u32 %v1107_v31, %v1103_v12  ;;  %v485_v40 = vshll.u32 %v10964_v8, 16  ;;  %v490_v41 = vshrl.u32 %v10982_v25, 16  ;;  %v994_v9 = vsel %vm10993_vm13, %v989_v36, %v10975_v16 }
  0x96   : > { %v2858_v38 = vpack.c.b16 %v2838_v28, %v2837_v26  ;;  %v1104_v42 = vsel %vm10993_vm13, %v1099_v34, %v1103_v12  ;;  %v488_v43 = vrot.slane %v484_v24, 4  ;;  %v493_v29 = vshll.u32 %v10982_v25, 16  ;;  %v424_v26 = vld [vmem:[%s10791_s13 + $0x50] sm:$0xff] }
  0x97   : > { %v1109_v17 = vrot.slane %v1108_v39, 4  ;;  %v2825_v45 = vunpack.c.l.b16 %v1104_v42  ;;  %v2816_v46 = vunpack.c.l.b16 %v994_v9  ;;  %v487_v8 = vor.u32 %v485_v40, %v484_v24  ;;  %v826_v39 = vld [vmem:[#allocation2 + $0x2c] sm:$0x1] }
  0x98   : > { %2885 = vrot.lane.b32.xlu1 %v2858_v38, %s10706_s18  ;;  %v492_v48 = vrot.slane %v490_v41, 7  ;;  %v499_v49 = vshrl.u32 %v10986_v30, 16  ;;  %v502_v50 = vshll.u32 %v10986_v30, 16  ;;  %v507_v51 = vshrl.u32 %v10988_v35, 16 }
  0x99   : > { %v1114_v16 = vsel %vm10993_vm13, %v1109_v17, %v1113_v32  ;;  %v2847_v25 = vpack.c.b16 %v2816_v46, %v2815_v37  ;;  %v806_v53 = vsel %vm10931_vm9, %v487_v8, %v805_v44  ;;  %v510_v55 = vshll.u32 %v10988_v35, 16  ;;  %v425_v17 = vld [vmem:[%s10791_s13 + $0x58] sm:$0xff] }
  0x9a   : > { %v2826_v57 = vunpack.c.l.b16 %v1114_v16  ;;  %v495_v58 = vor.u32 %v493_v29, %v492_v48  ;;  %v497_v59 = vrot.slane %v492_v48, 4  ;;  %807 = vst [vmem:[#allocation2 + $0xc] sm:$0xf] %v806_v53  ;;  %v501_v30 = vrot.slane %v499_v49, 7  ;;  %v428_v49 = vld [vmem:[%s10791_s13 + $0x70] sm:$0xff] }
  0x9b   : > { %v509_v60 = vrot.slane %v507_v51, 7  ;;  %v451_v62 = vpack.c.bf16 %v419_v52, %v419_v52  ;;  %v516_v63 = vshrl.u32 %v10997_v56, 16  ;;  %v519_v0 = vshll.u32 %v10997_v56, 16 }
  0x9c   : > { %v2852_v2 = vpack.c.b16 %v2826_v57, %v2825_v45  ;;  %v496_v3 = vsel %vm10925_vm8, %v488_v43, %v495_v58  ;;  %v813_v35 = vsel %vm10938_vm10, %v497_v59, %v812_v54  ;;  %v504_v4 = vor.u32 %v502_v50, %v501_v30 }
  0x9d   : > { %809 = vst.msk [vmem:[#allocation2 + $0x10] sm:$0xf] %vm802_vm5, %v496_v3  ;;  %v505_v10 = vrot.slane %v501_v30, 4  ;;  %v512_v11 = vor.u32 %v510_v55, %v509_v60  ;;  %v514_v12 = vrot.slane %v509_v60, 4  ;;  %v518_v56 = vrot.slane %v516_v63, 7 }
  0x9e   : > { %2873 = vrot.lane.b32.xlu0 %v2852_v2, %s10706_s18  ;;  %814 = vst [vmem:[#allocation2 + $0x14] sm:$0x1] %v813_v35  ;;  %v816_v15 = vsel %vm10931_vm9, %v504_v4, %v815_v61  ;;  %v524_v18 = vshrl.u32 %v451_v62, 16  ;;  %v527_v20 = vshll.u32 %v451_v62, 16  ;;  %v458_v21 = vpack.c.bf16 %v426_v1, %v426_v1 }
  0x9f   : > { %v513_v27 = vsel %vm10925_vm8, %v505_v10, %v512_v11  ;;  %817 = vst [vmem:[#allocation2 + $0x18] sm:$0xf] %v816_v15  ;;  %v820_v28 = vsel %vm10938_vm10, %v514_v12, %v819_v5  ;;  %v521_v31 = vor.u32 %v519_v0, %v518_v56  ;;  %v522_v32 = vrot.slane %v518_v56, 4 }
  0xa0   : > { %2863 = vrot.lane.b32.xlu1 %v2847_v25, %s10706_s18  ;;  %818 = vst.msk [vmem:[#allocation2 + $0x1c] sm:$0xf] %vm802_vm5, %v513_v27  ;;  %v526_v33 = vrot.slane %v524_v18, 7  ;;  %v11052_v34 = vpack.c.bf16 %v427_v7, %v427_v7  ;;  %v584_v36 = vshrl.u32 %v458_v21, 16  ;;  %v587_v37 = vshll.u32 %v458_v21, 16 }
  0xa1   : > { %v922_v24 = vld [vmem:[#allocation2 + $0xc] sm:$0xf]  ;;  %821 = vst [vmem:[#allocation2 + $0x20] sm:$0x1] %v820_v28  ;;  %v823_v38 = vsel %vm10931_vm9, %v521_v31, %v822_v6  ;;  %v11056_v40 = vpack.c.bf16 %v420_v14, %v420_v14  ;;  %v11058_v41 = vpack.c.bf16 %v421_v23, %v421_v23  ;;  %v11060_v42 = vpack.c.bf16 %v424_v26, %v424_v26 }
  0xa2   : > { %v996_v9 = vshrl.u32 %v922_v24, 16  ;;  %v999_v43 = vshll.u32 %v922_v24, 16  ;;  %v529_v29 = vor.u32 %v527_v20, %v526_v33  ;;  %v531_v44 = vrot.slane %v526_v33, 4  ;;  %824 = vst [vmem:[#allocation2 + $0x24] sm:$0xf] %v823_v38 }
  0xa3   : > { %v11063_v45 = vrot.slane %v584_v36, 7  ;;  %v592_v46 = vshrl.u32 %v11052_v34, 16  ;;  %v595_v8 = vshll.u32 %v11052_v34, 16  ;;  %v533_v48 = vshrl.u32 %v11056_v40, 16 }
  0xa4   : > { %v923_v50 = vld [vmem:[#allocation2 + $0x10] sm:$0xf]  ;;  %v998_v51 = vrot.slane %v996_v9, 4  ;;  %v1001_v52 = vrot.slane %v999_v43, 5  ;;  %v530_v16 = vsel %vm10925_vm8, %v522_v32, %v529_v29  ;;  %v827_v25 = vsel %vm10938_vm10, %v531_v44, %v826_v39 }
  0xa5   : > { %v953_v53 = vld [vmem:[#allocation2 + $0x14] sm:$0x1]  ;;  %v1005_v54 = vshll.u32 %v923_v50, 16  ;;  %v1009_v55 = vshrl.u32 %v923_v50, 16  ;;  %825 = vst.msk [vmem:[#allocation2 + $0x28] sm:$0xf] %vm802_vm5, %v530_v16  ;;  %v11075_v57 = vor.u32 %v587_v37, %v11063_v45  ;;  %v11077_v58 = vpack.c.bf16 %v425_v17, %v425_v17 }
  0xa6   : > { %v1002_v59 = vor.u32 %v1001_v52, %v998_v51  ;;  %v1015_v30 = vshll.u32 %v953_v53, 16  ;;  %v924_v60 = vld [vmem:[#allocation2 + $0x18] sm:$0xf]  ;;  %828 = vst [vmem:[#allocation2 + $0x2c] sm:$0x1] %v827_v25  ;;  %v590_v61 = vrot.slane %v11063_v45, 4  ;;  %v11080_v62 = vpack.c.bf16 %v428_v49, %v428_v49 }
  0xa7   : > { %v1007_v63 = vrot.slane %v1005_v54, 5  ;;  %v1011_v0 = vrot.slane %v1009_v55, 4  ;;  %v925_v1 = vld [vmem:[#allocation2 + $0x1c] sm:$0xf]  ;;  %v1020_v2 = vshrl.u32 %v924_v60, 16  ;;  %v1023_v3 = vshll.u32 %v924_v60, 16 }
  0xa8   : > { %v1003_v35 = vrot.slane %v1002_v59, 4  ;;  %v1017_v4 = vrot.slane %v1015_v30, 5  ;;  %v954_v5 = vld [vmem:[#allocation2 + $0x20] sm:$0x1]  ;;  %v1029_v6 = vshll.u32 %v925_v1, 16  ;;  %v1033_v7 = vshrl.u32 %v925_v1, 16 }
  0xa9   : > { %v1012_v10 = vor.u32 %v1011_v0, %v1007_v63  ;;  %v1022_v11 = vrot.slane %v1020_v2, 4  ;;  %v1025_v12 = vrot.slane %v1023_v3, 5  ;;  %v1039_v56 = vshll.u32 %v954_v5, 16  ;;  %v926_v14 = vld [vmem:[#allocation2 + $0x24] sm:$0xf] }
  0xaa   : > { %v1008_v15 = vsel %vm10993_vm13, %v1003_v35, %v1007_v63  ;;  %v1031_v18 = vrot.slane %v1029_v6, 5  ;;  %v1035_v20 = vrot.slane %v1033_v7, 4  ;;  %v1044_v21 = vshrl.u32 %v926_v14, 16  ;;  %v850_v52 = vld [vmem:[#allocation2 + $0x54] sm:$0xf] }
  0xab   : > { %v1013_v23 = vrot.slane %v1012_v10, 4  ;;  %v2817_v26 = vunpack.c.l.b16 %v1008_v15  ;;  %v1026_v27 = vor.u32 %v1025_v12, %v1022_v11  ;;  %v1041_v28 = vrot.slane %v1039_v56, 5  ;;  %v854_v60 = vld [vmem:[#allocation2 + $0x5c] sm:$0x1]  ;;  %v829_v7 = vld [vmem:[#allocation2 + $0x30] sm:$0xf] }
  0xac   : > { %v1036_v31 = vor.u32 %v1035_v20, %v1031_v18  ;;  %v927_v32 = vld [vmem:[#allocation2 + $0x28] sm:$0xf]  ;;  %v1046_v33 = vrot.slane %v1044_v21, 4  ;;  %v1047_v34 = vshll.u32 %v926_v14, 16  ;;  %v594_v36 = vrot.slane %v592_v46, 7  ;;  %v429_v12 = vld [vmem:[%s10791_s13 + $0x78] sm:$0xff] }
  0xad   : > { %v1018_v37 = vsel %vm10993_vm13, %v1013_v23, %v1017_v4  ;;  %v1027_v24 = vrot.slane %v1026_v27, 4  ;;  %v955_v38 = vld [vmem:[#allocation2 + $0x2c] sm:$0x1]  ;;  %v1053_v39 = vshll.u32 %v927_v32, 16  ;;  %v1057_v9 = vshrl.u32 %v927_v32, 16 }
  0xae   : > { %v2818_v43 = vunpack.c.l.b16 %v1018_v37  ;;  %v1037_v29 = vrot.slane %v1036_v31, 4  ;;  %v1049_v44 = vrot.slane %v1047_v34, 5  ;;  %v1063_v17 = vshll.u32 %v955_v38, 16  ;;  %v833_v14 = vld [vmem:[#allocation2 + $0x38] sm:$0x1] }
  0xaf   : > { %v1032_v45 = vsel %vm10993_vm13, %v1027_v24, %v1031_v18  ;;  %v1055_v49 = vrot.slane %v1053_v39, 5  ;;  %v1059_v50 = vrot.slane %v1057_v9, 4  ;;  %v597_v51 = vor.u32 %v595_v8, %v594_v36  ;;  %v843_v32 = vld [vmem:[#allocation2 + $0x48] sm:$0xf]  ;;  %v847_v37 = vld [vmem:[#allocation2 + $0x50] sm:$0x1] }
  0xb0   : > { %v2848_v16 = vpack.c.b16 %v2818_v43, %v2817_v26  ;;  %v1042_v46 = vsel %vm10993_vm13, %v1037_v29, %v1041_v28  ;;  %v2819_v25 = vunpack.c.l.b16 %v1032_v45  ;;  %v1050_v53 = vor.u32 %v1049_v44, %v1046_v33 }
  0xb1   : > { %v2820_v54 = vunpack.c.l.b16 %v1042_v46  ;;  %v1060_v55 = vor.u32 %v1059_v50, %v1055_v49  ;;  %v1065_v59 = vrot.slane %v1063_v17, 5  ;;  %v598_v30 = vsel %vm10925_vm8, %v590_v61, %v597_v51 }
  0xb2   : > { %2865 = vrot.lane.b32.xlu0 %v2848_v16, %s10706_s18  ;;  %v1051_v63 = vrot.slane %v1050_v53, 4  ;;  %v599_v0 = vrot.slane %v594_v36, 4  ;;  %v851_v8 = vsel %vm10931_vm9, %v11075_v57, %v850_v52  ;;  %853 = vst.msk [vmem:[#allocation2 + $0x58] sm:$0xf] %vm802_vm5, %v598_v30  ;;  %v535_v1 = vrot.slane %v533_v48, 7 }
  0xb3   : > { %v2849_v2 = vpack.c.b16 %v2820_v54, %v2819_v25  ;;  %v1061_v3 = vrot.slane %v1060_v55, 4  ;;  %852 = vst [vmem:[#allocation2 + $0x54] sm:$0xf] %v851_v8  ;;  %v536_v61 = vshll.u32 %v11056_v40, 16  ;;  %v541_v35 = vshrl.u32 %v11058_v41, 16 }
  0xb4   : > { %v1056_v4 = vsel %vm10993_vm13, %v1051_v63, %v1055_v49  ;;  %v855_v5 = vsel %vm10938_vm10, %v599_v0, %v854_v60  ;;  %v539_v57 = vrot.slane %v535_v1, 4  ;;  %v544_v6 = vshll.u32 %v11058_v41, 16  ;;  %v857_v63 = vld [vmem:[#allocation2 + $0x60] sm:$0xf]  ;;  %v436_v0 = vld [vmem:[%s10791_s13 + $0xb0] sm:$0xff] }
  0xb5   : > { %v1066_v48 = vsel %vm10993_vm13, %v1061_v3, %v1065_v59  ;;  %v11108_v10 = vunpack.c.l.b16 %v1056_v4  ;;  %856 = vst [vmem:[#allocation2 + $0x5c] sm:$0x1] %v855_v5  ;;  %v538_v11 = vor.u32 %v536_v61, %v535_v1  ;;  %v543_v40 = vrot.slane %v541_v35, 7 }
  0xb6   : > { %v11111_v56 = vunpack.c.l.b16 %v1066_v48  ;;  %v567_v15 = vshrl.u32 %v11060_v42, 16  ;;  %v570_v18 = vshll.u32 %v11060_v42, 16  ;;  %v575_v20 = vshrl.u32 %v11077_v58, 16 }
  0xb7   : > { %v546_v41 = vor.u32 %v544_v6, %v543_v40  ;;  %v548_v21 = vrot.slane %v543_v40, 4  ;;  %v830_v23 = vsel %vm10931_vm9, %v538_v11, %v829_v7  ;;  %v578_v26 = vshll.u32 %v11077_v58, 16 }
  0xb8   : > { %v2850_v27 = vpack.c.b16 %v11111_v56, %v11108_v10  ;;  %831 = vst [vmem:[#allocation2 + $0x30] sm:$0xf] %v830_v23  ;;  %v569_v28 = vrot.slane %v567_v15, 7  ;;  %v577_v31 = vrot.slane %v575_v20, 7  ;;  %v11121_v33 = vpack.c.bf16 %v429_v12, %v429_v12 }
  0xb9   : > { %v935_v34 = vld [vmem:[#allocation2 + $0x58] sm:$0xf]  ;;  %v547_v42 = vsel %vm10925_vm8, %v539_v57, %v546_v41  ;;  %v834_v36 = vsel %vm10938_vm10, %v548_v21, %v833_v14  ;;  %v601_v24 = vshrl.u32 %v11080_v62, 16  ;;  %v604_v58 = vshll.u32 %v11080_v62, 16 }
  0xba   : > { %2867 = vrot.lane.b32.xlu0 %v2849_v2, %s10706_s18  ;;  %v934_v38 = vld [vmem:[#allocation2 + $0x54] sm:$0xf]  ;;  %v1149_v39 = vshll.u32 %v935_v34, 16  ;;  %v1153_v9 = vshrl.u32 %v935_v34, 16  ;;  %832 = vst.msk [vmem:[#allocation2 + $0x34] sm:$0xf] %vm802_vm5, %v547_v42  ;;  %v572_v43 = vor.u32 %v570_v18, %v569_v28  ;;  %v580_v29 = vor.u32 %v578_v26, %v577_v31 }
  0xbb   : > { %v1140_v44 = vshrl.u32 %v934_v38, 16  ;;  %v1143_v17 = vshll.u32 %v934_v38, 16  ;;  %835 = vst [vmem:[#allocation2 + $0x38] sm:$0x1] %v834_v36  ;;  %v573_v45 = vrot.slane %v569_v28, 4  ;;  %v582_v49 = vrot.slane %v577_v31, 4 }
  0xbc   : > { %v959_v50 = vld [vmem:[#allocation2 + $0x5c] sm:$0x1]  ;;  %v1151_v51 = vrot.slane %v1149_v39, 5  ;;  %v1155_v52 = vrot.slane %v1153_v9, 4  ;;  %v844_v62 = vsel %vm10931_vm9, %v572_v43, %v843_v32  ;;  %v11133_v16 = vrot.slane %v601_v24, 7 }
  0xbd   : > { %v1142_v46 = vrot.slane %v1140_v44, 4  ;;  %v1145_v25 = vrot.slane %v1143_v17, 5  ;;  %v1159_v53 = vshll.u32 %v959_v50, 16  ;;  %v581_v54 = vsel %vm10925_vm8, %v573_v45, %v580_v29  ;;  %845 = vst [vmem:[#allocation2 + $0x48] sm:$0xf] %v844_v62  ;;  %v437_v31 = vld [vmem:[%s10791_s13 + $0xb8] sm:$0xff] }
  0xbe   : > { %v1156_v55 = vor.u32 %v1155_v52, %v1151_v51  ;;  %846 = vst.msk [vmem:[#allocation2 + $0x4c] sm:$0xf] %vm802_vm5, %v581_v54  ;;  %v848_v59 = vsel %vm10938_vm10, %v582_v49, %v847_v37  ;;  %v606_v30 = vor.u32 %v604_v58, %v11133_v16  ;;  %v607_v60 = vrot.slane %v11133_v16, 4 }
  0xbf   : > { %v1146_v8 = vor.u32 %v1145_v25, %v1142_v46  ;;  %v1161_v1 = vrot.slane %v1159_v53, 5  ;;  %v928_v2 = vld [vmem:[#allocation2 + $0x30] sm:$0xf]  ;;  %849 = vst [vmem:[#allocation2 + $0x50] sm:$0x1] %v848_v59  ;;  %v609_v3 = vshrl.u32 %v11121_v33, 16  ;;  %v11147_v10 = vpack.c.bf16 %v436_v0, %v436_v0 }
  0xc0   : > { %v1157_v61 = vrot.slane %v1156_v55, 4  ;;  %v1068_v35 = vshrl.u32 %v928_v2, 16  ;;  %v1071_v4 = vshll.u32 %v928_v2, 16  ;;  %v612_v5 = vshll.u32 %v11121_v33, 16  ;;  %v861_v46 = vld [vmem:[#allocation2 + $0x68] sm:$0x1] }
  0xc1   : > { %v1147_v57 = vrot.slane %v1146_v8, 4  ;;  %v929_v6 = vld [vmem:[#allocation2 + $0x34] sm:$0xf]  ;;  %v611_v7 = vrot.slane %v609_v3, 7  ;;  %v858_v48 = vsel %vm10931_vm9, %v606_v30, %v857_v63  ;;  %v469_v50 = vpack.c.bf16 %v437_v31, %v437_v31 }
  0xc2   : > { %2869 = vrot.lane.b32.xlu0 %v2850_v27, %s10706_s18  ;;  %v1162_v11 = vsel %vm10993_vm13, %v1157_v61, %v1161_v1  ;;  %v956_v40 = vld [vmem:[#allocation2 + $0x38] sm:$0x1]  ;;  %v1070_v12 = vrot.slane %v1068_v35, 4  ;;  %v1073_v56 = vrot.slane %v1071_v4, 5  ;;  %v1077_v14 = vshll.u32 %v929_v6, 16  ;;  %v431_v35 = vld [vmem:[%s10791_s13 + $0x88] sm:$0xff] }
  0xc3   : > { %v1152_v15 = vsel %vm10993_vm13, %v1147_v57, %v1151_v51  ;;  %v2830_v18 = vunpack.c.l.b16 %v1162_v11  ;;  %v1081_v20 = vshrl.u32 %v929_v6, 16  ;;  %v1087_v41 = vshll.u32 %v956_v40, 16  ;;  %859 = vst [vmem:[#allocation2 + $0x60] sm:$0xf] %v858_v48 }
  0xc4   : > { %v2829_v21 = vunpack.c.l.b16 %v1152_v15  ;;  %v1074_v23 = vor.u32 %v1073_v56, %v1070_v12  ;;  %v1079_v26 = vrot.slane %v1077_v14, 5  ;;  %v932_v28 = vld [vmem:[#allocation2 + $0x48] sm:$0xf]  ;;  %v614_v27 = vor.u32 %v612_v5, %v611_v7  ;;  %v885_v56 = vld [vmem:[#allocation2 + $0x90] sm:$0xf] }
  0xc5   : > { %v1083_v32 = vrot.slane %v1081_v20, 4  ;;  %v1089_v33 = vrot.slane %v1087_v41, 5  ;;  %v933_v34 = vld [vmem:[#allocation2 + $0x4c] sm:$0xf]  ;;  %v1116_v42 = vshrl.u32 %v932_v28, 16  ;;  %v1119_v36 = vshll.u32 %v932_v28, 16 }
  0xc6   : > { %v2854_v37 = vpack.c.b16 %v2830_v18, %v2829_v21  ;;  %v1075_v24 = vrot.slane %v1074_v23, 4  ;;  %v958_v58 = vld [vmem:[#allocation2 + $0x50] sm:$0x1]  ;;  %v1125_v38 = vshll.u32 %v933_v34, 16  ;;  %v1129_v39 = vshrl.u32 %v933_v34, 16  ;;  %v439_v41 = vld [vmem:[%s10791_s13 + $0xc8] sm:$0xff] }
  0xc7   : > { %v1084_v9 = vor.u32 %v1083_v32, %v1079_v26  ;;  %v1118_v43 = vrot.slane %v1116_v42, 4  ;;  %v1121_v29 = vrot.slane %v1119_v36, 5  ;;  %v1135_v44 = vshll.u32 %v958_v58, 16 }
  0xc8   : > { %2877 = vrot.lane.b32.xlu1 %v2854_v37, %s10706_s18  ;;  %v1080_v17 = vsel %vm10993_vm13, %v1075_v24, %v1079_v26  ;;  %v1127_v45 = vrot.slane %v1125_v38, 5  ;;  %v1131_v49 = vrot.slane %v1129_v39, 4  ;;  %v615_v53 = vsel %vm10925_vm8, %v607_v60, %v614_v27  ;;  %v430_v60 = vld [vmem:[%s10791_s13 + $0x80] sm:$0xff]  ;;  %v10107_v24 = vld [vmem:[#allocation2 + $0xc] sm:$0xff] }
  0xc9   : > { %v1085_v51 = vrot.slane %v1084_v9, 4  ;;  %v2823_v52 = vunpack.c.l.b16 %v1080_v17  ;;  %v1122_v62 = vor.u32 %v1121_v29, %v1118_v43  ;;  %v1137_v16 = vrot.slane %v1135_v44, 5  ;;  %860 = vst.msk [vmem:[#allocation2 + $0x64] sm:$0xf] %vm802_vm5, %v615_v53  ;;  %v864_v43 = vld [vmem:[#allocation2 + $0x6c] sm:$0xf] }
  0xca   : > { %v1132_v25 = vor.u32 %v1131_v49, %v1127_v45  ;;  %v616_v54 = vrot.slane %v611_v7, 4  ;;  %v936_v55 = vld [vmem:[#allocation2 + $0x60] sm:$0xf]  ;;  %v669_v59 = vshrl.u32 %v11147_v10, 16  ;;  %v672_v6 = vshll.u32 %v11147_v10, 16 }
  0xcb   : > { %v1090_v30 = vsel %vm10993_vm13, %v1085_v51, %v1089_v33  ;;  %v1123_v63 = vrot.slane %v1122_v62, 4  ;;  %v1164_v0 = vshrl.u32 %v936_v55, 16  ;;  %v1167_v8 = vshll.u32 %v936_v55, 16  ;;  %v438_v7 = vld [vmem:[%s10791_s13 + $0xc0] sm:$0xff]  ;;  %v889_v33 = vld [vmem:[#allocation2 + $0x98] sm:$0x1] }
  0xcc   : > { %v2824_v1 = vunpack.c.l.b16 %v1090_v30  ;;  %v1133_v2 = vrot.slane %v1132_v25, 4  ;;  %v862_v3 = vsel %vm10938_vm10, %v616_v54, %v861_v46  ;;  %v671_v61 = vrot.slane %v669_v59, 7  ;;  %v440_v46 = vld [vmem:[%s10791_s13 + $0xd0] sm:$0xff]  ;;  %v441_v59 = vld [vmem:[%s10791_s13 + $0xd8] sm:$0xff] }
  0xcd   : > { %v1128_v4 = vsel %vm10993_vm13, %v1123_v63, %v1127_v45  ;;  %863 = vst [vmem:[#allocation2 + $0x68] sm:$0x1] %v862_v3  ;;  %v1166_v5 = vrot.slane %v1164_v0, 4  ;;  %v1169_v57 = vrot.slane %v1167_v8, 5  ;;  %v677_v20 = vshrl.u32 %v469_v50, 16 }
  0xce   : > { %v2851_v48 = vpack.c.b16 %v2824_v1, %v2823_v52  ;;  %v1138_v11 = vsel %vm10993_vm13, %v1133_v2, %v1137_v16  ;;  %v2827_v40 = vunpack.c.l.b16 %v1128_v4  ;;  %v675_v12 = vrot.slane %v671_v61, 4  ;;  %v868_v16 = vld [vmem:[#allocation2 + $0x74] sm:$0x1]  ;;  %v10146_v1 = vld [vmem:[%s14318_s1 + $0x38] sm:$0xff] }
  0xcf   : > { %v2828_v14 = vunpack.c.l.b16 %v1138_v11  ;;  %v1170_v15 = vor.u32 %v1169_v57, %v1166_v5  ;;  %v674_v18 = vor.u32 %v672_v6, %v671_v61  ;;  %v680_v21 = vshll.u32 %v469_v50, 16  ;;  %10422 = vmatpush.bf16.msra.mxu3 %v10146_v1  ;;  %10421 = vmatpush.bf16.msra.mxu2 %v10146_v1 }
  0xd0   : > { %2871 = vrot.lane.b32.xlu0 %v2851_v48, %s10706_s18  ;;  %v462_v23 = vpack.c.bf16 %v430_v60, %v430_v60  ;;  %v463_v26 = vpack.c.bf16 %v431_v35, %v431_v35  ;;  %v11176_v28 = vpack.c.bf16 %v438_v7, %v438_v7  ;;  %v679_v31 = vrot.slane %v677_v20, 7  ;;  %v937_v34 = vld [vmem:[#allocation2 + $0x64] sm:$0xf]  ;;  %3952 = vmatpush.bf16.msra.mxu0 %v10146_v1 }
  0xd1   : > { %v2853_v10 = vpack.c.b16 %v2828_v14, %v2827_v40  ;;  %v1171_v27 = vrot.slane %v1170_v15, 4  ;;  %v886_v32 = vsel %vm10931_vm9, %v674_v18, %v885_v56  ;;  %v11180_v37 = vpack.c.bf16 %v439_v41, %v439_v41  ;;  %v10109_v1 = vld [vmem:[#allocation2 + $0x24] sm:$0xff] }
  0xd2   : > { %887 = vst [vmem:[#allocation2 + $0x90] sm:$0xf] %v886_v32  ;;  %v618_v42 = vshrl.u32 %v462_v23, 16  ;;  %v621_v36 = vshll.u32 %v462_v23, 16  ;;  %v1173_v58 = vshll.u32 %v937_v34, 16  ;;  %v1177_v38 = vshrl.u32 %v937_v34, 16 }
  0xd3   : > { %2875 = vrot.lane.b32.xlu2 %v2853_v10, %s10706_s18  ;;  %v682_v39 = vor.u32 %v680_v21, %v679_v31  ;;  %v684_v9 = vrot.slane %v679_v31, 4  ;;  %v626_v17 = vshrl.u32 %v463_v26, 16  ;;  %v629_v45 = vshll.u32 %v463_v26, 16  ;;  %v10108_v23 = vld [vmem:[#allocation2 + $0x18] sm:$0xff] }
  0xd4   : > { %v960_v29 = vld [vmem:[#allocation2 + $0x68] sm:$0x1]  ;;  %v620_v44 = vrot.slane %v618_v42, 7  ;;  %v686_v49 = vshrl.u32 %v11176_v28, 16  ;;  %v1175_v50 = vrot.slane %v1173_v58, 5  ;;  %v1179_v51 = vrot.slane %v1177_v38, 4 }
  0xd5   : > { %v1183_v52 = vshll.u32 %v960_v29, 16  ;;  %v683_v62 = vsel %vm10925_vm8, %v675_v12, %v682_v39  ;;  %v890_v25 = vsel %vm10938_vm10, %v684_v9, %v889_v33  ;;  %v628_v55 = vrot.slane %v626_v17, 7  ;;  %v892_v12 = vld [vmem:[#allocation2 + $0x9c] sm:$0xf]  ;;  %v896_v9 = vld [vmem:[#allocation2 + $0xa4] sm:$0x1] }
  0xd6   : > { %888 = vst.msk [vmem:[#allocation2 + $0x94] sm:$0xf] %vm802_vm5, %v683_v62  ;;  %v623_v53 = vor.u32 %v621_v36, %v620_v44  ;;  %v624_v54 = vrot.slane %v620_v44, 4  ;;  %v1176_v30 = vsel %vm10993_vm13, %v1171_v27, %v1175_v50  ;;  %v1180_v63 = vor.u32 %v1179_v51, %v1175_v50 }
  0xd7   : > { %v1185_v0 = vrot.slane %v1183_v52, 5  ;;  %891 = vst [vmem:[#allocation2 + $0x98] sm:$0x1] %v890_v25  ;;  %v688_v8 = vrot.slane %v686_v49, 7  ;;  %v631_v2 = vor.u32 %v629_v45, %v628_v55  ;;  %v633_v3 = vrot.slane %v628_v55, 4 }
  0xd8   : > { %3007 = vrot.lane.b32.xlu0 %v10107_v24, %s10706_s18  ;;  %v865_v61 = vsel %vm10931_vm9, %v623_v53, %v864_v43  ;;  %v11199_v60 = vpack.c.bf16 %v440_v46, %v440_v46  ;;  %v1181_v35 = vrot.slane %v1180_v63, 4  ;;  %v2831_v4 = vunpack.c.l.b16 %v1176_v30  ;;  %v10145_v43 = vld [vmem:[%s14318_s1 + $0x30] sm:$0xff] }
  0xd9   : > { %v944_v5 = vld [vmem:[#allocation2 + $0x90] sm:$0xf]  ;;  %866 = vst [vmem:[#allocation2 + $0x6c] sm:$0xf] %v865_v61  ;;  %v689_v57 = vshll.u32 %v11176_v28, 16  ;;  %v11202_v6 = vpack.c.bf16 %v441_v59, %v441_v59  ;;  %v632_v11 = vsel %vm10925_vm8, %v624_v54, %v631_v2  ;;  %v869_v40 = vsel %vm10938_vm10, %v633_v3, %v868_v16  ;;  %10424 = vmatpush.bf16.msra.mxu3 %v10145_v43  ;;  %v10144_v16 = vld [vmem:[%s14318_s1 + $0x28] sm:$0xff] }
  0xda   : > { %v1260_v7 = vshrl.u32 %v944_v5, 16  ;;  %v1263_v48 = vshll.u32 %v944_v5, 16  ;;  %v1186_v56 = vsel %vm10993_vm13, %v1181_v35, %v1185_v0  ;;  %867 = vst.msk [vmem:[#allocation2 + $0x70] sm:$0xf] %vm802_vm5, %v632_v11  ;;  %v692_v15 = vrot.slane %v688_v8, 4  ;;  %10423 = vmatpush.bf16.msra.mxu2 %v10145_v43  ;;  %3953 = vmatpush.bf16.msra.mxu0 %v10145_v43  ;;  %v10143_v11 = vld [vmem:[%s14318_s1 + $0x20] sm:$0xff] }
  0xdb   : > { %v691_v14 = vor.u32 %v689_v57, %v688_v8  ;;  %v694_v18 = vshrl.u32 %v11180_v37, 16  ;;  %v2832_v20 = vunpack.c.l.b16 %v1186_v56  ;;  %870 = vst [vmem:[#allocation2 + $0x74] sm:$0x1] %v869_v40  ;;  %v697_v26 = vshll.u32 %v11180_v37, 16  ;;  %v899_v2 = vld [vmem:[#allocation2 + $0xa8] sm:$0xf] }
  0xdc   : > { %v1262_v41 = vrot.slane %v1260_v7, 4  ;;  %v1265_v21 = vrot.slane %v1263_v48, 5  ;;  %v703_v31 = vshrl.u32 %v11199_v60, 16  ;;  %v706_v32 = vshll.u32 %v11199_v60, 16 }
  0xdd   : > { %v945_v28 = vld [vmem:[#allocation2 + $0x94] sm:$0xf]  ;;  %v696_v10 = vrot.slane %v694_v18, 7  ;;  %v893_v27 = vsel %vm10931_vm9, %v691_v14, %v892_v12  ;;  %v2855_v33 = vpack.c.b16 %v2832_v20, %v2831_v4  ;;  %v711_v49 = vshrl.u32 %v11202_v6, 16  ;;  %10426 = vmatpush.bf16.msra.mxu3 %v10144_v16 }
  0xde   : > { %v964_v34 = vld [vmem:[#allocation2 + $0x98] sm:$0x1]  ;;  %v1266_v42 = vor.u32 %v1265_v21, %v1262_v41  ;;  %v1269_v36 = vshll.u32 %v945_v28, 16  ;;  %v1273_v24 = vshrl.u32 %v945_v28, 16  ;;  %894 = vst [vmem:[#allocation2 + $0x9c] sm:$0xf] %v893_v27  ;;  %10425 = vmatpush.bf16.msra.mxu2 %v10144_v16  ;;  %3954 = vmatpush.bf16.msra.mxu0 %v10144_v16 }
  0xdf   : > { %v1279_v58 = vshll.u32 %v964_v34, 16  ;;  %v699_v38 = vor.u32 %v697_v26, %v696_v10  ;;  %v701_v39 = vrot.slane %v696_v10, 4  ;;  %v11217_v37 = vrot.slane %v703_v31, 7  ;;  %2879 = vrot.lane.b32.xlu1 %v2855_v33, %s10706_s18  ;;  %v903_v28 = vld [vmem:[#allocation2 + $0xb0] sm:$0x1] }
  0xe0   : > { %v1267_v29 = vrot.slane %v1266_v42, 4  ;;  %v1271_v44 = vrot.slane %v1269_v36, 5  ;;  %v1275_v17 = vrot.slane %v1273_v24, 4  ;;  %3009 = vrot.lane.b32.xlu0 %v10108_v23, %s10706_s18  ;;  %v938_v45 = vld [vmem:[#allocation2 + $0x6c] sm:$0xf]  ;;  %v713_v7 = vrot.slane %v711_v49, 7 }
  0xe1   : > { %v1281_v50 = vrot.slane %v1279_v58, 5  ;;  %v1188_v51 = vshrl.u32 %v938_v45, 16  ;;  %v1191_v52 = vshll.u32 %v938_v45, 16  ;;  %v700_v62 = vsel %vm10925_vm8, %v692_v15, %v699_v38  ;;  %v939_v53 = vld [vmem:[#allocation2 + $0x70] sm:$0xf]  ;;  %10428 = vmatpush.bf16.msra.mxu3 %v10143_v11  ;;  %v10142_v42 = vld [vmem:[%s14318_s1 + $0x18] sm:$0xff] }
  0xe2   : > { %v1272_v46 = vsel %vm10993_vm13, %v1267_v29, %v1271_v44  ;;  %v1276_v25 = vor.u32 %v1275_v17, %v1271_v44  ;;  %895 = vst.msk [vmem:[#allocation2 + $0xa0] sm:$0xf] %vm802_vm5, %v700_v62  ;;  %v897_v54 = vsel %vm10938_vm10, %v701_v39, %v896_v9  ;;  %v708_v55 = vor.u32 %v706_v32, %v11217_v37  ;;  %v961_v30 = vld [vmem:[#allocation2 + $0x74] sm:$0x1]  ;;  %v11250_v34 = vld [vmem:[#allocation2 + $0x10] sm:$0xf] }
  0xe3   : > { %v2839_v59 = vunpack.c.l.b16 %v1272_v46  ;;  %v1190_v63 = vrot.slane %v1188_v51, 4  ;;  %v1193_v0 = vrot.slane %v1191_v52, 5  ;;  %v1197_v8 = vshll.u32 %v939_v53, 16  ;;  %898 = vst [vmem:[#allocation2 + $0xa4] sm:$0x1] %v897_v54  ;;  %v442_v9 = vld [vmem:[%s10791_s13 + $0xe0] sm:$0xff]  ;;  %10427 = vmatpush.bf16.msra.mxu2 %v10143_v11  ;;  %3955 = vmatpush.bf16.msra.mxu0 %v10143_v11 }
  0xe4   : > { %v1277_v3 = vrot.slane %v1276_v25, 4  ;;  %v1201_v61 = vshrl.u32 %v939_v53, 16  ;;  %v1207_v60 = vshll.u32 %v961_v30, 16  ;;  %v709_v35 = vrot.slane %v11217_v37, 4  ;;  %v11256_v39 = vld [vmem:[#allocation2 + $0x14] sm:$0x1] }
  0xe5   : > { %v1194_v4 = vor.u32 %v1193_v0, %v1190_v63  ;;  %v1199_v5 = vrot.slane %v1197_v8, 5  ;;  %v946_v57 = vld [vmem:[#allocation2 + $0x9c] sm:$0xf]  ;;  %v714_v48 = vshll.u32 %v11202_v6, 16  ;;  %v718_v6 = vrot.slane %v713_v7, 4  ;;  %v10110_v51 = vld [vmem:[#allocation2 + $0x30] sm:$0xff]  ;;  %10430 = vmatpush.bf16.msra.mxu3 %v10142_v42 }
  0xe6   : > { %v1282_v40 = vsel %vm10993_vm13, %v1277_v3, %v1281_v50  ;;  %v1203_v12 = vrot.slane %v1201_v61, 4  ;;  %v1209_v56 = vrot.slane %v1207_v60, 5  ;;  %v1284_v14 = vshrl.u32 %v946_v57, 16  ;;  %v1966_v44 = vld [vmem:[#allocation2 + $0xc] sm:$0xe] }
  0xe7   : > { %v2840_v15 = vunpack.c.l.b16 %v1282_v40  ;;  %v1195_v18 = vrot.slane %v1194_v4, 4  ;;  %v1287_v20 = vshll.u32 %v946_v57, 16  ;;  %v716_v41 = vor.u32 %v714_v48, %v713_v7  ;;  %10429 = vmatpush.bf16.msra.mxu2 %v10142_v42  ;;  %3956 = vmatpush.bf16.msra.mxu0 %v10142_v42  ;;  %v10140_v42 = vld [vmem:[%s14318_s1 + $0x8] sm:$0xff] }
  0xe8   : > { %v1204_v21 = vor.u32 %v1203_v12, %v1199_v5  ;;  %v1286_v23 = vrot.slane %v1284_v14, 4  ;;  %3011 = vrot.lane.b32.xlu0 %v10109_v1, %s10706_s18  ;;  %v900_v26 = vsel %vm10931_vm9, %v708_v55, %v899_v2  ;;  %v904_v29 = vsel %vm10938_vm10, %v718_v6, %v903_v28  ;;  %v443_v55 = vld [vmem:[%s10791_s13 + $0xe8] sm:$0xff]  ;;  %v1537_v12 = vld [vmem:[#allocation2 + $0x1c] sm:$0xf] }
  0xe9   : > { %v2859_v10 = vpack.c.b16 %v2840_v15, %v2839_v59  ;;  %v1200_v27 = vsel %vm10993_vm13, %v1195_v18, %v1199_v5  ;;  %v947_v31 = vld [vmem:[#allocation2 + $0xa0] sm:$0xf]  ;;  %v1289_v32 = vrot.slane %v1287_v20, 5  ;;  %v717_v33 = vsel %vm10925_vm8, %v709_v35, %v716_v41  ;;  %901 = vst [vmem:[#allocation2 + $0xa8] sm:$0xf] %v900_v26 }
  0xea   : > { %v1205_v36 = vrot.slane %v1204_v21, 4  ;;  %v2833_v24 = vunpack.c.l.b16 %v1200_v27  ;;  %v1293_v58 = vshll.u32 %v947_v31, 16  ;;  %v1297_v38 = vshrl.u32 %v947_v31, 16  ;;  %902 = vst.msk [vmem:[#allocation2 + $0xac] sm:$0xf] %vm802_vm5, %v717_v33  ;;  %v10141_v21 = vld [vmem:[%s14318_s1 + $0x10] sm:$0xff] }
  0xeb   : > { %2887 = vrot.lane.b32.xlu2 %v2859_v10, %s10706_s18  ;;  %v965_v37 = vld [vmem:[#allocation2 + $0xa4] sm:$0x1]  ;;  %v1290_v43 = vor.u32 %v1289_v32, %v1286_v23  ;;  %vm1419_vm14 = vcmask 1042432   ;;  %vm1420_vm15 = vcmask 1046532   ;;  %905 = vst [vmem:[#allocation2 + $0xb0] sm:$0x1] %v904_v29  ;;  %v474_v0 = vpack.c.bf16 %v442_v9, %v442_v9  ;;  %10432 = vmatpush.bf16.msra.mxu3 %v10141_v21 }
  0xec   : > { %v1210_v17 = vsel %vm10993_vm13, %v1205_v36, %v1209_v56  ;;  %v1295_v45 = vrot.slane %v1293_v58, 5  ;;  %v1299_v49 = vrot.slane %v1297_v38, 4  ;;  %v1303_v50 = vshll.u32 %v965_v37, 16  ;;  %vm11264_vm0 = vmor %vm1419_vm14, %vm1420_vm15  ;;  %v1967_v56 = vld [vmem:[#allocation2 + $0x18] sm:$0xe]  ;;  %v10111_v10 = vld [vmem:[#allocation2 + $0x3c] sm:$0xff]  ;;  %10431 = vmatpush.bf16.msra.mxu2 %v10141_v21  ;;  %3957 = vmatpush.bf16.msra.mxu0 %v10141_v21 }
  0xed   : > { %v2834_v52 = vunpack.c.l.b16 %v1210_v17  ;;  %v1291_v62 = vrot.slane %v1290_v43, 4  ;;  %v9292_v53 = vrot.slane %v1966_v44, 9  ;;  %v2032_v54 = vrot.slane %v11250_v34, 5  ;;  %v1567_v9 = vld [vmem:[#allocation2 + $0x20] sm:$0x1] }
  0xee   : > { %v1300_v46 = vor.u32 %v1299_v49, %v1295_v45  ;;  %v1305_v25 = vrot.slane %v1303_v50, 5  ;;  %v2035_v63 = vrot.slane %v11256_v39, 5  ;;  %v475_v57 = vpack.c.bf16 %v443_v55, %v443_v55 }
  0xef   : > { %v2856_v59 = vpack.c.b16 %v2834_v52, %v2833_v24  ;;  %v1296_v30 = vsel %vm10993_vm13, %v1291_v62, %v1295_v45  ;;  %v2033_v3 = vsel %vm11264_vm0, %v9292_v53, %v2032_v54  ;;  %v2034_v61 = vrot.slane %v2032_v54, 4  ;;  %v910_v62 = vld [vmem:[#allocation2 + $0xbc] sm:$0x1]  ;;  %10434 = vmatpush.bf16.msra.mxu3 %v10140_v42  ;;  %v10139_v54 = vld [vmem:[%s14318_s1] sm:$0xff] }
  0xf0   : > { %v1301_v8 = vrot.slane %v1300_v46, 4  ;;  %v2841_v1 = vunpack.c.l.b16 %v1296_v30  ;;  %v948_v2 = vld [vmem:[#allocation2 + $0xa8] sm:$0xf]  ;;  %3013 = vrot.lane.b32.xlu0 %v10110_v51, %s10706_s18  ;;  %v3087_v5 = vunpack.c.l.b16 %v2033_v3  ;;  %v720_v28 = vshrl.u32 %v474_v0, 16  ;;  %v906_v51 = vld [vmem:[#allocation2 + $0xb4] sm:$0xf]  ;;  %10433 = vmatpush.bf16.msra.mxu2 %v10140_v42 }
  0xf1   : > { %2881 = vrot.lane.b32.xlu1 %v2856_v59, %s10706_s18  ;;  %v949_v60 = vld [vmem:[#allocation2 + $0xac] sm:$0xf]  ;;  %v1308_v35 = vshrl.u32 %v948_v2, 16  ;;  %v1311_v4 = vshll.u32 %v948_v2, 16  ;;  %v2036_v40 = vsel %vm11264_vm0, %v2034_v61, %v2035_v63  ;;  %v723_v33 = vshll.u32 %v474_v0, 16  ;;  %3958 = vmatpush.bf16.msra.mxu0 %v10140_v42 }
  0xf2   : > { %v1306_v7 = vsel %vm10993_vm13, %v1301_v8, %v1305_v25  ;;  %v1317_v48 = vshll.u32 %v949_v60, 16  ;;  %v1321_v11 = vshrl.u32 %v949_v60, 16  ;;  %v966_v15 = vld [vmem:[#allocation2 + $0xb0] sm:$0x1]  ;;  %v3088_v41 = vunpack.c.l.b16 %v2036_v40  ;;  %v2143_v0 = vld [vmem:[#allocation2 + $0x18] sm:$0xf] }
  0xf3   : > { %v2842_v14 = vunpack.c.l.b16 %v1306_v7  ;;  %v1310_v18 = vrot.slane %v1308_v35, 4  ;;  %v1313_v20 = vrot.slane %v1311_v4, 5  ;;  %v1327_v26 = vshll.u32 %v966_v15, 16  ;;  %v11299_v8 = vld [vmem:[#allocation2 + $0x1c] sm:$0xf]  ;;  %10436 = vmatpush.bf16.msra.mxu3 %v10139_v54 }
  0xf4   : > { %v1319_v23 = vrot.slane %v1317_v48, 5  ;;  %v1323_v6 = vrot.slane %v1321_v11, 4  ;;  %v3119_v32 = vpack.c.b16 %v3088_v41, %v3087_v5  ;;  %v722_v58 = vrot.slane %v720_v28, 7  ;;  %v1539_v60 = vld [vmem:[#allocation2 + $0x28] sm:$0xf]  ;;  %10435 = vmatpush.bf16.msra.mxu2 %v10139_v54 }
  0xf5   : > { %v2860_v27 = vpack.c.b16 %v2842_v14, %v2841_v1  ;;  %v1314_v31 = vor.u32 %v1313_v20, %v1310_v18  ;;  %v1329_v24 = vrot.slane %v1327_v26, 5  ;;  %v728_v38 = vshrl.u32 %v475_v57, 16  ;;  %v1568_v35 = vld [vmem:[#allocation2 + $0x2c] sm:$0x1]  ;;  %v1968_v7 = vld [vmem:[#allocation2 + $0x24] sm:$0xe]  ;;  %3959 = vmatpush.bf16.msra.mxu0 %v10139_v54 }
  0xf6   : > { %v1324_v36 = vor.u32 %v1323_v6, %v1319_v23  ;;  %v731_v43 = vshll.u32 %v475_v57, 16  ;;  %v9293_v29 = vrot.slane %v1967_v56, 9  ;;  %v2039_v44 = vrot.slane %v1537_v12, 5  ;;  %v10112_v48 = vld [vmem:[#allocation2 + $0x48] sm:$0xff] }
  0xf7   : > { %2889 = vrot.lane.b32.xlu2 %v2860_v27, %s10706_s18  ;;  %v1315_v37 = vrot.slane %v1314_v31, 4  ;;  %v725_v45 = vor.u32 %v723_v33, %v722_v58  ;;  %v726_v49 = vrot.slane %v722_v58, 4  ;;  %v730_v50 = vrot.slane %v728_v38, 7  ;;  %v10101_v33 = vld [vmem:[#allocation2 + $0x78] sm:$0xff] }
  0xf8   : > { %v1325_v17 = vrot.slane %v1324_v36, 4  ;;  %3015 = vrot.lane.b32.xlu0 %v10111_v10, %s10706_s18  ;;  %v2040_v46 = vsel %vm11264_vm0, %v9293_v29, %v2039_v44  ;;  %v2041_v25 = vrot.slane %v2039_v44, 4  ;;  %v2042_v53 = vrot.slane %v1567_v9, 5 }
  0xf9   : > { %v1320_v52 = vsel %vm10993_vm13, %v1315_v37, %v1319_v23  ;;  %3135 = vrot.lane.b32.xlu1 %v3119_v32, %s10706_s18  ;;  %v733_v30 = vor.u32 %v731_v43, %v730_v50  ;;  %v735_v63 = vrot.slane %v730_v50, 4  ;;  %v907_v2 = vsel %vm10931_vm9, %v725_v45, %v906_v51  ;;  %v11315_v23 = vld [vmem:[#allocation2 + $0x20] sm:$0x1]  ;;  %v10154_v45 = vld [vmem:[%s14318_s1 + $0x78] sm:$0xff] }
  0xfa   : > { %v1330_v55 = vsel %vm10993_vm13, %v1325_v17, %v1329_v24  ;;  %v2843_v59 = vunpack.c.l.b16 %v1320_v52  ;;  %v2043_v3 = vsel %vm11264_vm0, %v2041_v25, %v2042_v53  ;;  %v3089_v61 = vunpack.c.l.b16 %v2040_v46  ;;  %908 = vst [vmem:[#allocation2 + $0xb4] sm:$0xf] %v907_v2  ;;  %v2145_v46 = vld [vmem:[#allocation2 + $0x24] sm:$0xf]  ;;  %4041 = vmatpush.bf16.msra.mxu1 %v10154_v45 }
  0xfb   : > { %v2844_v1 = vunpack.c.l.b16 %v1330_v55  ;;  %v734_v4 = vsel %vm10925_vm8, %v726_v49, %v733_v30  ;;  %v911_v5 = vsel %vm10938_vm10, %v735_v63, %v910_v62  ;;  %v3090_v57 = vunpack.c.l.b16 %v2043_v3  ;;  %v10153_v30 = vld [vmem:[%s14318_s1 + $0x70] sm:$0xff] }
  0xfc   : > { %909 = vst.msk [vmem:[#allocation2 + $0xb8] sm:$0xf] %vm802_vm5, %v734_v4  ;;  %v2192_v40 = vshrl.u32 %v2143_v0, 16  ;;  %v2195_v12 = vshll.u32 %v2143_v0, 16  ;;  %v2201_v56 = vshll.u32 %v11299_v8, 16  ;;  %v2205_v15 = vshrl.u32 %v11299_v8, 16 }
  0xfd   : > { %v2861_v11 = vpack.c.b16 %v2844_v1, %v2843_v59  ;;  %912 = vst [vmem:[#allocation2 + $0xbc] sm:$0x1] %v911_v5  ;;  %v3120_v14 = vpack.c.b16 %v3090_v57, %v3089_v61  ;;  %v9294_v21 = vrot.slane %v1968_v7, 9  ;;  %v2046_v26 = vrot.slane %v1539_v60, 5  ;;  %v11329_v59 = vld [vmem:[#allocation2 + $0x28] sm:$0xf] }
  0xfe   : > { %v2194_v18 = vrot.slane %v2192_v40, 4  ;;  %v2197_v20 = vrot.slane %v2195_v12, 5  ;;  %v11313_v41 = vrot.slane %v2201_v56, 5  ;;  %v2207_v6 = vrot.slane %v2205_v15, 4  ;;  %v1969_v5 = vld [vmem:[#allocation2 + $0x30] sm:$0xe]  ;;  %4042 = vmatpush.bf16.msra.mxu1 %v10153_v30 }
  0xff   : > { %2891 = vrot.lane.b32.xlu2 %v2861_v11, %s10706_s18  ;;  %v2049_v28 = vrot.slane %v1568_v35, 5  ;;  %v2047_v27 = vsel %vm11264_vm0, %v9294_v21, %v2046_v26  ;;  %v2048_v31 = vrot.slane %v2046_v26, 4  ;;  %vm3359_vm1 = vcmask 523264   ;;  %v1541_v40 = vld [vmem:[#allocation2 + $0x34] sm:$0xf] }
 0x100   : > { %3017 = vrot.lane.b32.xlu0 %v10112_v48, %s10706_s18  ;;  %v2198_v10 = vor.u32 %v2197_v20, %v2194_v18  ;;  %v2208_v42 = vor.u32 %v2207_v6, %v11313_v41  ;;  %v2211_v36 = vshll.u32 %v11315_v23, 16  ;;  %v3091_v37 = vunpack.c.l.b16 %v2047_v27  ;;  %v11339_v48 = vld [vmem:[#allocation2 + $0x2c] sm:$0x1]  ;;  %v1569_v18 = vld [vmem:[#allocation2 + $0x38] sm:$0x1] }
 0x101   : > { %3137 = vrot.lane.b32.xlu1 %v3120_v14, %s10706_s18  ;;  %v950_v32 = vld [vmem:[#allocation2 + $0xb4] sm:$0xf]  ;;  %v2050_v9 = vsel %vm11264_vm0, %v2048_v31, %v2049_v28  ;;  %v2216_v60 = vshrl.u32 %v2145_v46, 16  ;;  %v2219_v35 = vshll.u32 %v2145_v46, 16  ;;  %v2225_v4 = vshll.u32 %v11329_v59, 16  ;;  %v10151_v46 = vld [vmem:[%s14318_s1 + $0x60] sm:$0xff] }
 0x102   : > { %v1332_v58 = vshrl.u32 %v950_v32, 16  ;;  %v1335_v38 = vshll.u32 %v950_v32, 16  ;;  %v3092_v17 = vunpack.c.l.b16 %v2050_v9  ;;  %v2199_v62 = vrot.slane %v2198_v10, 4  ;;  %v10096_v10 = vld [vmem:[#allocation2 + $0x3c] sm:$0xff]  ;;  %v10152_v9 = vld [vmem:[%s14318_s1 + $0x68] sm:$0xff] }
 0x103   : > { %v951_v24 = vld [vmem:[#allocation2 + $0xb8] sm:$0xf]  ;;  %v2213_v55 = vrot.slane %v2211_v36, 5  ;;  %v2209_v1 = vrot.slane %v2208_v42, 4  ;;  %v2229_v11 = vshrl.u32 %v11329_v59, 16  ;;  %v2218_v56 = vrot.slane %v2216_v60, 4  ;;  %4043 = vmatpush.bf16.msra.mxu1 %v10152_v9 }
 0x104   : > { %v967_v43 = vld [vmem:[#allocation2 + $0xbc] sm:$0x1]  ;;  %v1341_v29 = vshll.u32 %v951_v24, 16  ;;  %v1345_v44 = vshrl.u32 %v951_v24, 16  ;;  %v1334_v49 = vrot.slane %v1332_v58, 4  ;;  %v1337_v50 = vrot.slane %v1335_v38, 5 }
 0x105   : > { %v1351_v51 = vshll.u32 %v967_v43, 16  ;;  %v3121_v2 = vpack.c.b16 %v3092_v17, %v3091_v37  ;;  %v2204_v7 = vsel %vm10993_vm13, %v2199_v62, %v11313_v41  ;;  %v2221_v14 = vrot.slane %v2219_v35, 5  ;;  %v10113_v37 = vld [vmem:[#allocation2 + $0x54] sm:$0xff] }
 0x106   : > { %v1343_v25 = vrot.slane %v1341_v29, 5  ;;  %v1347_v53 = vrot.slane %v1345_v44, 4  ;;  %v1338_v63 = vor.u32 %v1337_v50, %v1334_v49  ;;  %v2227_v15 = vrot.slane %v2225_v4, 5  ;;  %v2147_v4 = vld [vmem:[#allocation2 + $0x30] sm:$0xf] }
 0x107   : > { %v2884_v52 = vpop.permute.xlu0 %2883  ;;  %v1353_v0 = vrot.slane %v1351_v51, 5  ;;  %v2214_v21 = vsel %vm10993_vm13, %v2209_v1, %v2213_v55  ;;  %v2231_v41 = vrot.slane %v2229_v11, 4  ;;  %v9295_v6 = vrot.slane %v1969_v5, 9  ;;  %v10102_v51 = vld [vmem:[#allocation2 + $0x84] sm:$0xff]  ;;  %4044 = vmatpush.bf16.msra.mxu1 %v10151_v46  ;;  %v11370_v5 = vld [vmem:[#allocation2 + $0x34] sm:$0xf] }
 0x108   : > { %v3402_v54 = vsel %vm3359_vm1, %v10101_v33, %v2884_v52  ;;  %v1348_v3 = vor.u32 %v1347_v53, %v1343_v25  ;;  %v1339_v57 = vrot.slane %v1338_v63, 4  ;;  %v2235_v27 = vshll.u32 %v11339_v48, 16  ;;  %v10091_v33 = vld [vmem:[#allocation2] sm:$0xff]  ;;  %3019 = vrot.lane.b32.xlu0 %v10113_v37, %s10706_s18 }
 0x109   : > { %4010 = vmatmul.bf16.vlgmr.msra.gmra.mxu3 %v3402_v54  ;;  %3139 = vrot.lane.b32.xlu1 %v3121_v2, %s10706_s18  ;;  %v2053_v31 = vrot.slane %v1541_v40, 5  ;;  %v2222_v42 = vor.u32 %v2221_v14, %v2218_v56  ;;  %v2232_v36 = vor.u32 %v2231_v41, %v2227_v15  ;;  %v2056_v24 = vrot.slane %v1569_v18, 5  ;;  %v1543_v18 = vld [vmem:[#allocation2 + $0x40] sm:$0xf] }
 0x10a   : > { %v2886_v61 = vpop.permute.xlu1 %2885  ;;  %v1349_v12 = vrot.slane %v1348_v3, 4  ;;  %v1344_v20 = vsel %vm10993_vm13, %v1339_v57, %v1343_v25  ;;  %v3231_v29 = vunpack.c.l.b16 %v2204_v7  ;;  %v3232_v45 = vunpack.c.l.b16 %v2214_v21 }
 0x10b   : > { %v2845_v28 = vunpack.c.l.b16 %v1344_v20  ;;  %v2054_v58 = vsel %vm11264_vm0, %v9295_v6, %v2053_v31  ;;  %v2055_v38 = vrot.slane %v2053_v31, 4  ;;  %v2237_v52 = vrot.slane %v2235_v27, 5  ;;  %v10092_v27 = vld [vmem:[#allocation2 + $0xc] sm:$0xff] }
 0x10c   : > { %v1354_v26 = vsel %vm10993_vm13, %v1349_v12, %v1353_v0  ;;  %v3093_v17 = vunpack.c.l.b16 %v2054_v58  ;;  %v2223_v53 = vrot.slane %v2222_v42, 4  ;;  %v2233_v54 = vrot.slane %v2232_v36, 4 }
 0x10d   : > { %v2846_v32 = vunpack.c.l.b16 %v1354_v26  ;;  %v2057_v62 = vsel %vm11264_vm0, %v2055_v38, %v2056_v24  ;;  %v3406_v63 = vsel %vm3359_vm1, %v10102_v51, %v2886_v61  ;;  %v3263_v0 = vpack.c.b16 %v3232_v45, %v3231_v29  ;;  %v1570_v26 = vld [vmem:[#allocation2 + $0x44] sm:$0x1]  ;;  %v10150_v38 = vld [vmem:[%s14318_s1 + $0x58] sm:$0xff] }
 0x10e   : > { %v3094_v55 = vunpack.c.l.b16 %v2057_v62  ;;  %v2228_v1 = vsel %vm10993_vm13, %v2223_v53, %v2227_v15  ;;  %v2238_v2 = vsel %vm10993_vm13, %v2233_v54, %v2237_v52  ;;  %v2240_v61 = vshrl.u32 %v2147_v4, 16  ;;  %v11374_v15 = vld [vmem:[#allocation2 + $0x38] sm:$0x1]  ;;  %4045 = vmatpush.bf16.msra.mxu1 %v10150_v38  ;;  %v10114_v51 = vld [vmem:[#allocation2 + $0x60] sm:$0xff]  ;;  %v10097_v62 = vld [vmem:[#allocation2 + $0x48] sm:$0xff] }
 0x10f   : > { %v2862_v43 = vpack.c.b16 %v2846_v32, %v2845_v28  ;;  %v3233_v3 = vunpack.c.l.b16 %v2228_v1  ;;  %v3234_v60 = vunpack.c.l.b16 %v2238_v2  ;;  %v2243_v57 = vshll.u32 %v2147_v4, 16  ;;  %v1970_v28 = vld [vmem:[#allocation2 + $0x3c] sm:$0xe] }
 0x110   : > { %v2874_v44 = vpop.permute.xlu0 %2873  ;;  %v3122_v30 = vpack.c.b16 %v3094_v55, %v3093_v17  ;;  %v2249_v7 = vshll.u32 %v11370_v5, 16  ;;  %v2253_v11 = vshrl.u32 %v11370_v5, 16  ;;  %v2242_v40 = vrot.slane %v2240_v61, 4  ;;  %3021 = vrot.lane.b32.xlu0 %v10114_v51, %s10706_s18  ;;  %v2149_v54 = vld [vmem:[#allocation2 + $0x3c] sm:$0xf] }
 0x111   : > { %v3382_v49 = vsel %vm3359_vm1, %v10096_v10, %v2874_v44  ;;  %2893 = vrot.lane.b32.xlu2 %v2862_v43, %s10706_s18  ;;  %v3264_v35 = vpack.c.b16 %v3234_v60, %v3233_v3  ;;  %v2245_v12 = vrot.slane %v2243_v57, 5  ;;  %v2259_v41 = vshll.u32 %v11374_v15, 16  ;;  %v2150_v55 = vld [vmem:[#allocation2 + $0x40] sm:$0xf]  ;;  %v10093_v57 = vld [vmem:[#allocation2 + $0x18] sm:$0xff] }
 0x112   : > { %v2864_v50 = vpop.permute.xlu1 %2863  ;;  %3985 = vmatmul.bf16.vlgmr.msra.gmra.mxu2 %v3382_v49  ;;  %3141 = vrot.lane.b32.xlu1 %v3122_v30, %s10706_s18  ;;  %v2251_v56 = vrot.slane %v2249_v7, 5  ;;  %v2255_v14 = vrot.slane %v2253_v11, 4  ;;  %v2060_v6 = vrot.slane %v1543_v18, 5  ;;  %v9296_v42 = vrot.slane %v1970_v28, 9  ;;  %v10147_v60 = vld [vmem:[%s14318_s1 + $0x40] sm:$0xff] }
 0x113   : > { %v3362_v25 = vsel %vm3359_vm1, %v10091_v33, %v2864_v50  ;;  %v2246_v20 = vor.u32 %v2245_v12, %v2242_v40  ;;  %v2261_v33 = vrot.slane %v2259_v41, 5  ;;  %v2063_v24 = vrot.slane %v1570_v26, 5  ;;  %v10149_v50 = vld [vmem:[%s14318_s1 + $0x50] sm:$0xff]  ;;  %v11403_v7 = vld [vmem:[#allocation2 + $0x44] sm:$0x1] }
 0x114   : > { %3960 = vmatmul.bf16.vlgmr.msra.gmra.mxu0 %v3362_v25  ;;  %v2256_v21 = vor.u32 %v2255_v14, %v2251_v56  ;;  %v2062_v36 = vrot.slane %v2060_v6, 4  ;;  %v2061_v43 = vsel %vm11264_vm0, %v9296_v42, %v2060_v6  ;;  %4046 = vmatpush.bf16.msra.mxu1 %v10149_v50  ;;  %v10148_v25 = vld [vmem:[%s14318_s1 + $0x48] sm:$0xff]  ;;  %v2267_v1 = vshll.u32 %v2149_v54, 16  ;;  %v1355_v40 = vld [vmem:[#allocation2] sm:$0xe] }
 0x115   : > { %v2247_v31 = vrot.slane %v2246_v20, 4  ;;  %v3095_v45 = vunpack.c.l.b16 %v2061_v43  ;;  %v2273_v2 = vshll.u32 %v2150_v55, 16  ;;  %v2277_v3 = vshrl.u32 %v2150_v55, 16  ;;  %v1545_v14 = vld [vmem:[#allocation2 + $0x4c] sm:$0xf] }
 0x116   : > { %v2257_v32 = vrot.slane %v2256_v21, 4  ;;  %v2064_v17 = vsel %vm11264_vm0, %v2062_v36, %v2063_v24  ;;  %v2269_v4 = vrot.slane %v2267_v1, 5  ;;  %v10499_v18 = vld [vmem:[#allocation2 + $0x4] sm:$0xf]  ;;  %v1571_v41 = vld [vmem:[#allocation2 + $0x50] sm:$0x1] }
 0x117   : > { %v2252_v9 = vsel %vm10993_vm13, %v2247_v31, %v2251_v56  ;;  %v3096_v49 = vunpack.c.l.b16 %v2064_v17  ;;  %v2275_v61 = vrot.slane %v2273_v2, 5  ;;  %v2279_v11 = vrot.slane %v2277_v3, 4  ;;  %v1971_v6 = vld [vmem:[#allocation2 + $0x48] sm:$0xe]  ;;  %v10500_v50 = vld [vmem:[#allocation2 + $0x8] sm:$0x1] }
 0x118   : > { %v2262_v37 = vsel %vm10993_vm13, %v2257_v32, %v2261_v33  ;;  %v3235_v29 = vunpack.c.l.b16 %v2252_v9  ;;  %4047 = vmatpush.bf16.msra.mxu1 %v10148_v25  ;;  %v2283_v56 = vshll.u32 %v11403_v7, 16  ;;  %v1424_v20 = vrot.slane %v10499_v18, 5  ;;  %v2152_v1 = vld [vmem:[#allocation2 + $0x4c] sm:$0xf] }
 0x119   : > { %4015 = vmatmul.bf16.gmra.mxu3 %v3406_v63  ;;  %3279 = vrot.lane.b32.xlu2 %v3263_v0, %s10706_s18  ;;  %v3236_v44 = vunpack.c.l.b16 %v2262_v37  ;;  %v3123_v46 = vpack.c.b16 %v3096_v49, %v3095_v45  ;;  %v2264_v0 = vshrl.u32 %v2149_v54, 16  ;;  %v2280_v21 = vor.u32 %v2279_v11, %v2275_v61  ;;  %v10098_v45 = vld [vmem:[#allocation2 + $0x54] sm:$0xff]  ;;  %v10501_v11 = vld [vmem:[#allocation2 + $0x10] sm:$0xf] }
 0x11a   : > { %v2067_v26 = vrot.slane %v1545_v14, 5  ;;  %v9297_v31 = vrot.slane %v1971_v6, 9  ;;  %v2070_v42 = vrot.slane %v1571_v41, 5  ;;  %v9276_v36 = vrot.slane %v1355_v40, 9  ;;  %v1547_v41 = vld [vmem:[#allocation2 + $0x58] sm:$0xf] }
 0x11b   : > { %v3265_v52 = vpack.c.b16 %v3236_v44, %v3235_v29  ;;  %3143 = vrot.lane.b32.xlu1 %v3123_v46, %s10706_s18  ;;  %v2281_v32 = vrot.slane %v2280_v21, 4  ;;  %v10162_v29 = vld [vmem:[%s14318_s1 + $0xb8] sm:$0xff]  ;;  %v10115_v44 = vld [vmem:[#allocation2 + $0x6c] sm:$0xff]  ;;  %v1426_v49 = vrot.slane %v1424_v20, 4  ;;  %v1427_v51 = vrot.slane %v10500_v50, 5 }
 0x11c   : > { %4048 = vmatpush.bf16.msra.mxu1 %v10147_v60  ;;  %v2069_v33 = vrot.slane %v2067_v26, 4  ;;  %4130 = vmatpush.bf16.msrb.mxu2 %v10162_v29  ;;  %v10161_v46 = vld [vmem:[%s14318_s1 + $0xb0] sm:$0xff]  ;;  %v2297_v60 = vshll.u32 %v2152_v1, 16  ;;  %v1431_v40 = vrot.slane %v10501_v11, 5  ;;  %v1596_v11 = vshrl.u32 %v11250_v34, 16 }
 0x11d   : > { %3023 = vrot.lane.b32.xlu0 %v10115_v44, %s10706_s18  ;;  %v2179_v21 = vld [vmem:[#allocation2 + $0x50] sm:$0x1]  ;;  %v10502_v50 = vld [vmem:[#allocation2 + $0x14] sm:$0x1] }
 0x11e   : > { %v2071_v37 = vsel %vm11264_vm0, %v2069_v33, %v2070_v42  ;;  %v2299_v14 = vrot.slane %v2297_v60, 5  ;;  %v10103_v6 = vld [vmem:[#allocation2 + $0x90] sm:$0xff]  ;;  %v1572_v33 = vld [vmem:[#allocation2 + $0x5c] sm:$0x1] }
 0x11f   : > { %v1972_v42 = vld [vmem:[#allocation2 + $0x54] sm:$0xe] }
 0x120   : > { %4131 = vmatpush.bf16.msrb.mxu2 %v10161_v46 }
 0x121   : > { %3281 = vrot.lane.b32.xlu2 %v3264_v35, %s10706_s18  ;;  %v2266_v35 = vrot.slane %v2264_v0, 4  ;;  %v2151_v0 = vld [vmem:[#allocation2 + $0x48] sm:$0xf] }
 0x122   : > { %v2288_v2 = vshrl.u32 %v2151_v0, 16  ;;  %v2291_v3 = vshll.u32 %v2151_v0, 16  ;;  %v10116_v0 = vld [vmem:[#allocation2 + $0x78] sm:$0xff] }
 0x123   : > { %v2270_v12 = vor.u32 %v2269_v4, %v2266_v35  ;;  %v2301_v35 = vshrl.u32 %v2152_v1, 16  ;;  %v10159_v1 = vld [vmem:[%s14318_s1 + $0xa0] sm:$0xff] }
 0x124   : > { %v2866_v10 = vpop.permute.xlu0 %2865 }
 0x125   : > { %v3366_v58 = vsel %vm3359_vm1, %v10092_v27, %v2866_v10  ;;  %v2271_v10 = vrot.slane %v2270_v12, 4  ;;  %v2285_v27 = vrot.slane %v2283_v56, 5  ;;  %v2290_v12 = vrot.slane %v2288_v2, 4  ;;  %3025 = vrot.lane.b32.xlu0 %v10116_v0, %s10706_s18 }
 0x126   : > { %3965 = vmatmul.bf16.gmra.mxu0 %v3366_v58  ;;  %v2068_v58 = vsel %vm11264_vm0, %v9297_v31, %v2067_v26  ;;  %v2293_v56 = vrot.slane %v2291_v3, 5  ;;  %v2303_v18 = vrot.slane %v2301_v35, 4 }
 0x127   : > { %v2276_v24 = vsel %vm10993_vm13, %v2271_v10, %v2275_v61  ;;  %v2286_v38 = vsel %vm10993_vm13, %v2281_v32, %v2285_v27  ;;  %v3097_v43 = vunpack.c.l.b16 %v2068_v58  ;;  %v2307_v32 = vshll.u32 %v2179_v21, 16  ;;  %v2154_v21 = vld [vmem:[#allocation2 + $0x58] sm:$0xf] }
 0x128   : > { %v3237_v9 = vunpack.c.l.b16 %v2276_v24  ;;  %v2304_v10 = vor.u32 %v2303_v18, %v2299_v14 }
 0x129   : > { %3283 = vrot.lane.b32.xlu2 %v3265_v52, %s10706_s18  ;;  %v3238_v52 = vunpack.c.l.b16 %v2286_v38  ;;  %v2309_v29 = vrot.slane %v2307_v32, 5  ;;  %v10104_v32 = vld [vmem:[#allocation2 + $0x9c] sm:$0xff] }
 0x12a   : > { %v2305_v38 = vrot.slane %v2304_v10, 4 }
 0x12c   : > { %v2868_v30 = vpop.permute.xlu0 %2867 }
 0x12d   : > { %v2876_v53 = vpop.permute.xlu2 %2875  ;;  %v3370_v28 = vsel %vm3359_vm1, %v10093_v57, %v2868_v30  ;;  %v1425_v30 = vsel %vm11264_vm0, %v9276_v36, %v1424_v20  ;;  %v10094_v57 = vld [vmem:[#allocation2 + $0x24] sm:$0xff]  ;;  %v1356_v20 = vld [vmem:[#allocation2 + $0xc] sm:$0xe]  ;;  %v2074_v36 = vrot.slane %v1547_v41, 5 }
 0x12e   : > { %v3386_v63 = vsel %vm3359_vm1, %v10097_v62, %v2876_v53  ;;  %v3098_v62 = vunpack.c.l.b16 %v2071_v37  ;;  %v3266_v53 = vpack.c.b16 %v3238_v52, %v3237_v9  ;;  %v2895_v4 = vunpack.c.l.b16 %v1425_v30  ;;  %v10170_v52 = vld [vmem:[%s14318_s1 + $0xf8] sm:$0xff] }
 0x12f   : > { %3990 = vmatmul.bf16.gmra.mxu2 %v3386_v63  ;;  %v1428_v63 = vsel %vm11264_vm0, %v1426_v49, %v1427_v51  ;;  %v9277_v24 = vrot.slane %v1356_v20, 9  ;;  %v9298_v9 = vrot.slane %v1972_v42, 9  ;;  %v2076_v44 = vrot.slane %v2074_v36, 4  ;;  %4219 = vmatpush.bf16.msrb.mxu3 %v10170_v52  ;;  %v2153_v20 = vld [vmem:[#allocation2 + $0x54] sm:$0xf] }
 0x130   : > { %v3124_v54 = vpack.c.b16 %v3098_v62, %v3097_v43  ;;  %v2896_v61 = vunpack.c.l.b16 %v1428_v63  ;;  %v1433_v43 = vrot.slane %v1431_v40, 4  ;;  %v1434_v51 = vrot.slane %v10502_v50, 5 }
 0x131   : > { %3285 = vrot.lane.b32.xlu2 %v3266_v53, %s10706_s18  ;;  %v2075_v46 = vsel %vm11264_vm0, %v9298_v9, %v2074_v36  ;;  %v1432_v3 = vsel %vm11264_vm0, %v9277_v24, %v1431_v40  ;;  %v10158_v40 = vld [vmem:[%s14318_s1 + $0x98] sm:$0xff]  ;;  %v2312_v10 = vshrl.u32 %v2153_v20, 16  ;;  %v10504_v24 = vld [vmem:[#allocation2 + $0x20] sm:$0x1]  ;;  %v10157_v9 = vld [vmem:[%s14318_s1 + $0x90] sm:$0xff] }
 0x132   : > { %3145 = vrot.lane.b32.xlu1 %v3124_v54, %s10706_s18  ;;  %v2927_v27 = vpack.c.b16 %v2896_v61, %v2895_v4  ;;  %v10169_v4 = vld [vmem:[%s14318_s1 + $0xf0] sm:$0xff] }
 0x133   : > { %4220 = vmatpush.bf16.msrb.mxu3 %v10169_v4 }
 0x134   : > { %v2870_v17 = vpop.permute.xlu0 %2869 }
 0x135   : > { %v3374_v31 = vsel %vm3359_vm1, %v10094_v57, %v2870_v17  ;;  %v10160_v17 = vld [vmem:[%s14318_s1 + $0xa8] sm:$0xff]  ;;  %v1435_v57 = vsel %vm11264_vm0, %v1433_v43, %v1434_v51  ;;  %v1549_v51 = vld [vmem:[#allocation2 + $0x64] sm:$0xf] }
 0x136   : > { %3970 = vmatmul.bf16.gmra.mxu0 %v3370_v28  ;;  %v2294_v28 = vor.u32 %v2293_v56, %v2290_v12  ;;  %4132 = vmatpush.bf16.msrb.mxu2 %v10160_v17  ;;  %v2897_v12 = vunpack.c.l.b16 %v1432_v3  ;;  %v10168_v56 = vld [vmem:[%s14318_s1 + $0xe8] sm:$0xff]  ;;  %v2898_v41 = vunpack.c.l.b16 %v1435_v57 }
 0x137   : > { %4221 = vmatpush.bf16.msrb.mxu3 %v10168_v56  ;;  %v10156_v56 = vld [vmem:[%s14318_s1 + $0x88] sm:$0xff] }
 0x138   : > { %v2295_v58 = vrot.slane %v2294_v28, 4  ;;  %v1357_v28 = vld [vmem:[#allocation2 + $0x18] sm:$0xe] }
 0x139   : > { %v9278_v42 = vrot.slane %v1357_v28, 9 }
 0x13a   : > { %v2878_v25 = vpop.permute.xlu1 %2877  ;;  %v2300_v62 = vsel %vm10993_vm13, %v2295_v58, %v2299_v14  ;;  %4133 = vmatpush.bf16.msrb.mxu2 %v10159_v1  ;;  %v10503_v14 = vld [vmem:[#allocation2 + $0x1c] sm:$0xf]  ;;  %v1441_v58 = vrot.slane %v10504_v24, 5  ;;  %v1573_v1 = vld [vmem:[#allocation2 + $0x68] sm:$0x1] }
 0x13b   : > { %v3390_v55 = vsel %vm3359_vm1, %v10098_v45, %v2878_v25  ;;  %v2077_v45 = vrot.slane %v1572_v33, 5  ;;  %v2310_v25 = vsel %vm10993_vm13, %v2305_v38, %v2309_v29  ;;  %v3239_v53 = vunpack.c.l.b16 %v2300_v62  ;;  %v10099_v33 = vld [vmem:[#allocation2 + $0x60] sm:$0xff] }
 0x13c   : > { %v3240_v30 = vunpack.c.l.b16 %v2310_v25  ;;  %v1438_v18 = vrot.slane %v10503_v14, 5  ;;  %v2325_v38 = vshrl.u32 %v2154_v21, 16  ;;  %v2928_v62 = vpack.c.b16 %v2898_v41, %v2897_v12  ;;  %v10166_v14 = vld [vmem:[%s14318_s1 + $0xd8] sm:$0xff]  ;;  %v10117_v24 = vld [vmem:[#allocation2 + $0x84] sm:$0xff] }
 0x13d   : > { %v2078_v54 = vsel %vm11264_vm0, %v2076_v44, %v2077_v45  ;;  %v1534_v44 = vld [vmem:[#allocation2 + $0xc] sm:$0xf]  ;;  %v2084_v57 = vrot.slane %v1573_v1, 5  ;;  %3027 = vrot.lane.b32.xlu0 %v10117_v24, %s10706_s18  ;;  %v1551_v24 = vld [vmem:[#allocation2 + $0x70] sm:$0xf] }
 0x13e   : > { %v3100_v63 = vunpack.c.l.b16 %v2078_v54  ;;  %v3267_v60 = vpack.c.b16 %v3240_v30, %v3239_v53  ;;  %v1440_v36 = vrot.slane %v1438_v18, 4  ;;  %4134 = vmatpush.bf16.msrb.mxu2 %v10158_v40  ;;  %v2327_v50 = vrot.slane %v2325_v38, 4 }
 0x13f   : > { %3995 = vmatmul.bf16.gmra.mxu2 %v3390_v55  ;;  %v3099_v55 = vunpack.c.l.b16 %v2075_v46  ;;  %v1583_v17 = vshrl.u32 %v1534_v44, 16  ;;  %v10167_v46 = vld [vmem:[%s14318_s1 + $0xe0] sm:$0xff]  ;;  %v11478_v53 = vsel %vm11264_vm0, %v9278_v42, %v1438_v18  ;;  %v10174_v18 = vld [vmem:[%s14318_s1 + $0x118] sm:$0xff] }
 0x140   : > { %3287 = vrot.lane.b32.xlu2 %v3267_v60, %s10706_s18  ;;  %v1442_v30 = vsel %vm11264_vm0, %v1440_v36, %v1441_v58  ;;  %4222 = vmatpush.bf16.msrb.mxu3 %v10167_v46  ;;  %v2899_v28 = vunpack.c.l.b16 %v11478_v53  ;;  %v10105_v58 = vld [vmem:[#allocation2 + $0xa8] sm:$0xff]  ;;  %v2644_v46 = vrot.slane %v11315_v23, 5 }
 0x141   : > { %v3125_v35 = vpack.c.b16 %v3100_v63, %v3099_v55  ;;  %v1585_v40 = vrot.slane %v1583_v17, 4  ;;  %4312 = vmatpush.bf16.msrb.mxu0 %v10174_v18  ;;  %v1358_v17 = vld [vmem:[#allocation2 + $0x24] sm:$0xe]  ;;  %v10164_v23 = vld [vmem:[%s14318_s1 + $0xc8] sm:$0xff] }
 0x142   : > { %v11429_v26 = vpop.permute.xlu0 %2871  ;;  %4135 = vmatpush.bf16.msrb.mxu2 %v10157_v9 }
 0x143   : > { %3147 = vrot.lane.b32.xlu1 %v3125_v35, %s10706_s18 }
 0x144   : > { %4223 = vmatpush.bf16.msrb.mxu3 %v10166_v14 }
 0x145   : > { %v2888_v37 = vpop.permute.xlu2 %2887 }
 0x146   : > { %v3410_v49 = vsel %vm3359_vm1, %v10103_v6, %v2888_v37  ;;  %3975 = vmatmul.bf16.gmra.mxu0 %v3374_v31  ;;  %v10095_v6 = vld [vmem:[#allocation2 + $0x30] sm:$0xff]  ;;  %v2321_v31 = vshll.u32 %v2154_v21, 16  ;;  %v2314_v37 = vrot.slane %v2312_v10, 4  ;;  %v2900_v10 = vunpack.c.l.b16 %v1442_v30  ;;  %4136 = vmatpush.bf16.msrb.mxu2 %v10156_v56  ;;  %v2156_v30 = vld [vmem:[#allocation2 + $0x64] sm:$0xf] }
 0x147   : > { %4020 = vmatmul.bf16.gmra.mxu3 %v3410_v49  ;;  %v2180_v49 = vld [vmem:[#allocation2 + $0x5c] sm:$0x1]  ;;  %v3378_v25 = vsel %vm3359_vm1, %v10095_v6, %v11429_v26  ;;  %v2081_v26 = vrot.slane %v1549_v51, 5  ;;  %v1586_v6 = vshll.u32 %v1534_v44, 16  ;;  %v1602_v44 = vshll.u32 %v11256_v39, 16 }
 0x148   : > { %v2323_v29 = vrot.slane %v2321_v31, 5  ;;  %v2331_v0 = vshll.u32 %v2180_v49, 16  ;;  %v10165_v49 = vld [vmem:[%s14318_s1 + $0xd0] sm:$0xff] }
 0x149   : > { %v2083_v41 = vrot.slane %v2081_v26, 4  ;;  %v1588_v36 = vrot.slane %v1586_v6, 5  ;;  %4224 = vmatpush.bf16.msrb.mxu3 %v10165_v49 }
 0x14a   : > { %v3008_v2 = vpop.permute.xlu0 %3007  ;;  %v2328_v63 = vor.u32 %v2327_v50, %v2323_v29  ;;  %v10173_v50 = vld [vmem:[%s14318_s1 + $0x110] sm:$0xff] }
 0x14b   : > { %v3426_v61 = vsel %vm3359_vm1, %v2927_v27, %v3008_v2  ;;  %v2315_v27 = vshll.u32 %v2153_v20, 16  ;;  %v1973_v2 = vld [vmem:[#allocation2 + $0x60] sm:$0xe]  ;;  %v1589_v51 = vor.u32 %v1588_v36, %v1585_v40  ;;  %4313 = vmatpush.bf16.msrb.mxu0 %v10173_v50 }
 0x14c   : > { %4049 = vmatmul.bf16.vlgmr.msra.gmra.mxu1 %v3426_v61  ;;  %v9299_v35 = vrot.slane %v1973_v2, 9  ;;  %v2329_v4 = vrot.slane %v2328_v63, 4  ;;  %v2333_v61 = vrot.slane %v2331_v0, 5  ;;  %v1604_v2 = vrot.slane %v1602_v44, 5  ;;  %v1974_v44 = vld [vmem:[#allocation2 + $0x6c] sm:$0xe] }
 0x14d   : > { %v2317_v43 = vrot.slane %v2315_v27, 5  ;;  %v1590_v1 = vrot.slane %v1589_v51, 4  ;;  %4225 = vmatpush.bf16.msrb.mxu3 %v10164_v23 }
 0x14e   : > { %v2082_v21 = vsel %vm11264_vm0, %v9299_v35, %v2081_v26  ;;  %v2334_v27 = vsel %vm10993_vm13, %v2329_v4, %v2333_v61  ;;  %v10506_v4 = vld [vmem:[#allocation2 + $0x2c] sm:$0x1] }
 0x14f   : > { %v2318_v54 = vor.u32 %v2317_v43, %v2314_v37  ;;  %v3101_v42 = vunpack.c.l.b16 %v2082_v21  ;;  %v10155_v37 = vld [vmem:[%s14318_s1 + $0x80] sm:$0xff]  ;;  %v1592_v43 = vshll.u32 %v11250_v34, 16  ;;  %v1448_v61 = vrot.slane %v10506_v4, 5  ;;  %v10507_v4 = vld [vmem:[#allocation2 + $0x1c] sm:$0xf] }
 0x150   : > { %4137 = vmatpush.bf16.msrb.mxu2 %v10155_v37 }
 0x151   : > { %v2890_v45 = vpop.permute.xlu2 %2889  ;;  %v2880_v52 = vpop.permute.xlu1 %2879  ;;  %v2319_v60 = vrot.slane %v2318_v54, 4  ;;  %v11517_v34 = vrot.slane %v1592_v43, 5  ;;  %v9279_v54 = vrot.slane %v1358_v17, 9 }
 0x152   : > { %v3394_v55 = vsel %vm3359_vm1, %v10099_v33, %v2880_v52  ;;  %v3414_v3 = vsel %vm3359_vm1, %v10104_v32, %v2890_v45  ;;  %v3010_v12 = vpop.permute.xlu0 %3009  ;;  %v3242_v32 = vunpack.c.l.b16 %v2334_v27  ;;  %v2085_v33 = vsel %vm11264_vm0, %v2083_v41, %v2084_v57  ;;  %v2575_v57 = vld [vmem:[#allocation2 + $0x18] sm:$0xe]  ;;  %v10163_v41 = vld [vmem:[%s14318_s1 + $0xc0] sm:$0xff] }
 0x153   : > { %4000 = vmatmul.bf16.gmra.mxu2 %v3394_v55  ;;  %v2324_v20 = vsel %vm10993_vm13, %v2319_v60, %v2323_v29  ;;  %v3430_v38 = vsel %vm3359_vm1, %v2928_v62, %v3010_v12  ;;  %v3102_v9 = vunpack.c.l.b16 %v2085_v33  ;;  %v1598_v29 = vrot.slane %v1596_v11, 4  ;;  %v10505_v11 = vld [vmem:[#allocation2 + $0x28] sm:$0xf]  ;;  %v2155_v55 = vld [vmem:[#allocation2 + $0x60] sm:$0xf]  ;;  %v10100_v12 = vld [vmem:[#allocation2 + $0x6c] sm:$0xff]  ;;  %4226 = vmatpush.bf16.msrb.mxu3 %v10163_v41 }
 0x154   : > { %v3241_v31 = vunpack.c.l.b16 %v2324_v20  ;;  %v1445_v39 = vrot.slane %v10505_v11, 5  ;;  %v2641_v60 = vrot.slane %v11299_v8, 5  ;;  %v2336_v40 = vshrl.u32 %v2155_v55, 16 }
 0x155   : > { %v3126_v62 = vpack.c.b16 %v3102_v9, %v3101_v42  ;;  %v1599_v53 = vor.u32 %v1598_v29, %v11517_v34  ;;  %v9308_v56 = vrot.slane %v2575_v57, 9  ;;  %v2339_v18 = vshll.u32 %v2155_v55, 16  ;;  %v2181_v42 = vld [vmem:[#allocation2 + $0x68] sm:$0x1]  ;;  %v1574_v29 = vld [vmem:[#allocation2 + $0x74] sm:$0x1] }
 0x156   : > { %3980 = vmatmul.bf16.gmra.mxu0 %v3378_v25  ;;  %v3268_v45 = vpack.c.b16 %v3242_v32, %v3241_v31  ;;  %v2929_v25 = vpack.c.b16 %v2900_v10, %v2899_v28  ;;  %v1447_v26 = vrot.slane %v1445_v39, 4  ;;  %v2643_v14 = vrot.slane %v2641_v60, 4  ;;  %v1536_v10 = vld [vmem:[#allocation2 + $0x18] sm:$0xf]  ;;  %v10171_v31 = vld [vmem:[%s14318_s1 + $0x100] sm:$0xff] }
 0x157   : > { %4025 = vmatmul.bf16.gmra.mxu3 %v3414_v3  ;;  %3149 = vrot.lane.b32.xlu1 %v3126_v62, %s10706_s18  ;;  %v10172_v3 = vld [vmem:[%s14318_s1 + $0x108] sm:$0xff]  ;;  %v1600_v35 = vrot.slane %v1599_v53, 4  ;;  %v2345_v20 = vshll.u32 %v2156_v30, 16  ;;  %v11537_v8 = vsel %vm11264_vm0, %v9279_v54, %v1445_v39  ;;  %v2338_v6 = vrot.slane %v2336_v40, 4 }
 0x158   : > { %3289 = vrot.lane.b32.xlu2 %v3268_v45, %s10706_s18  ;;  %v2349_v28 = vshrl.u32 %v2156_v30, 16  ;;  %v1595_v27 = vsel %vm10993_vm13, %v1590_v1, %v11517_v34  ;;  %4314 = vmatpush.bf16.msrb.mxu0 %v10172_v3  ;;  %v2642_v32 = vsel %vm11264_vm0, %v9308_v56, %v2641_v60  ;;  %v2645_v33 = vsel %vm11264_vm0, %v2643_v14, %v2644_v46 }
 0x159   : > { %v2892_v52 = vpop.permute.xlu2 %2891  ;;  %v2341_v36 = vrot.slane %v2339_v18, 5  ;;  %v3311_v9 = vunpack.c.l.b16 %v2642_v32  ;;  %v3312_v37 = vunpack.c.l.b16 %v2645_v33  ;;  %v2347_v43 = vrot.slane %v2345_v20, 5 }
 0x15a   : > { %v3418_v63 = vsel %vm3359_vm1, %v10105_v58, %v2892_v52  ;;  %v3012_v0 = vpop.permute.xlu0 %3011  ;;  %v1605_v49 = vsel %vm10993_vm13, %v1600_v35, %v1604_v2  ;;  %v2351_v51 = vrot.slane %v2349_v28, 4  ;;  %v2355_v52 = vshll.u32 %v2181_v42, 16  ;;  %v2157_v42 = vld [vmem:[#allocation2 + $0x6c] sm:$0xf] }
 0x15b   : > { %v3434_v21 = vsel %vm3359_vm1, %v2929_v25, %v3012_v0  ;;  %v2342_v50 = vor.u32 %v2341_v36, %v2338_v6  ;;  %v3343_v17 = vpack.c.b16 %v3312_v37, %v3311_v9  ;;  %v9300_v62 = vrot.slane %v1974_v44, 9  ;;  %v10118_v0 = vld [vmem:[#allocation2 + $0x90] sm:$0xff] }
 0x15c   : > { %4054 = vmatmul.bf16.gmra.mxu1 %v3430_v38  ;;  %v11551_v38 = vsel %vm11264_vm0, %v1447_v26, %v1448_v61  ;;  %v2088_v34 = vrot.slane %v1551_v24, 5  ;;  %4315 = vmatpush.bf16.msrb.mxu0 %v10171_v31  ;;  %v2352_v39 = vor.u32 %v2351_v51, %v2347_v43  ;;  %v2091_v46 = vrot.slane %v1574_v29, 5  ;;  %v2158_v36 = vld [vmem:[#allocation2 + $0x70] sm:$0xf]  ;;  %v10106_v24 = vld [vmem:[#allocation2 + $0xb4] sm:$0xff] }
 0x15d   : > { %v2343_v11 = vrot.slane %v2342_v50, 4  ;;  %v1607_v25 = vshrl.u32 %v1536_v10, 16  ;;  %v3039_v53 = vunpack.c.l.b16 %v1595_v27  ;;  %v3040_v54 = vunpack.c.l.b16 %v1605_v49  ;;  %3029 = vrot.lane.b32.xlu0 %v10118_v0, %s10706_s18  ;;  %v10509_v37 = vld [vmem:[#allocation2 + $0x34] sm:$0xf]  ;;  %v2576_v50 = vld [vmem:[#allocation2 + $0x24] sm:$0xe] }
 0x15e   : > { %v2357_v55 = vrot.slane %v2355_v52, 5  ;;  %v2089_v30 = vsel %vm11264_vm0, %v9300_v62, %v2088_v34  ;;  %v2353_v2 = vrot.slane %v2352_v39, 4  ;;  %v2090_v23 = vrot.slane %v2088_v34, 4 }
 0x15f   : > { %v2348_v1 = vsel %vm10993_vm13, %v2343_v11, %v2347_v43  ;;  %v3103_v3 = vunpack.c.l.b16 %v2089_v30  ;;  %v1609_v35 = vrot.slane %v1607_v25, 4  ;;  %v1610_v26 = vshll.u32 %v1536_v10, 16  ;;  %v1359_v10 = vld [vmem:[#allocation2 + $0x30] sm:$0xe] }
 0x160   : > { %v3243_v60 = vunpack.c.l.b16 %v2348_v1  ;;  %v2358_v61 = vsel %vm10993_vm13, %v2353_v2, %v2357_v55  ;;  %v2092_v57 = vsel %vm11264_vm0, %v2090_v23, %v2091_v46  ;;  %v1620_v40 = vshrl.u32 %v10507_v4, 16  ;;  %v2182_v23 = vld [vmem:[#allocation2 + $0x74] sm:$0x1] }
 0x161   : > { %v3244_v14 = vunpack.c.l.b16 %v2358_v61  ;;  %v3104_v18 = vunpack.c.l.b16 %v2092_v57  ;;  %v1612_v20 = vrot.slane %v1610_v26, 5  ;;  %v2901_v6 = vunpack.c.l.b16 %v11537_v8  ;;  %v1975_v26 = vld [vmem:[#allocation2 + $0x78] sm:$0xe] }
 0x162   : > { %v1622_v28 = vrot.slane %v1620_v40, 4  ;;  %v2902_v27 = vunpack.c.l.b16 %v11551_v38  ;;  %v1452_v43 = vrot.slane %v10509_v37, 5  ;;  %v2648_v29 = vrot.slane %v11329_v59, 5  ;;  %v3014_v30 = vpop.permute.xlu0 %3013  ;;  %v1538_v40 = vld [vmem:[#allocation2 + $0x24] sm:$0xf] }
 0x163   : > { %v2882_v58 = vpop.permute.xlu1 %2881  ;;  %v3269_v31 = vpack.c.b16 %v3244_v14, %v3243_v60  ;;  %v3127_v32 = vpack.c.b16 %v3104_v18, %v3103_v3  ;;  %v1613_v33 = vor.u32 %v1612_v20, %v1609_v35  ;;  %v9280_v38 = vrot.slane %v1359_v10, 9  ;;  %v1553_v20 = vld [vmem:[#allocation2 + $0x7c] sm:$0xf] }
 0x164   : > { %v3398_v45 = vsel %vm3359_vm1, %v10100_v12, %v2882_v58  ;;  %v10508_v12 = vld [vmem:[#allocation2 + $0x20] sm:$0x1]  ;;  %v3071_v58 = vpack.c.b16 %v3040_v54, %v3039_v53  ;;  %v2360_v52 = vshrl.u32 %v2157_v42, 16  ;;  %v2363_v62 = vshll.u32 %v2157_v42, 16 }
 0x165   : > { %4005 = vmatmul.bf16.gmra.mxu2 %v3398_v45  ;;  %v1626_v56 = vshll.u32 %v10508_v12, 16  ;;  %3291 = vrot.lane.b32.xlu2 %v3269_v31, %s10706_s18  ;;  %v10510_v45 = vld [vmem:[#allocation2 + $0x38] sm:$0x1]  ;;  %v2369_v34 = vshll.u32 %v2158_v36, 16  ;;  %v1454_v39 = vrot.slane %v1452_v43, 4  ;;  %v2650_v46 = vrot.slane %v2648_v29, 4 }
 0x166   : > { %9660 = vmatmul.msk.bf16.vlgmr.msrb.gmra.mxu0 %vm3359_vm1, %v3343_v17  ;;  %3151 = vrot.lane.b32.xlu1 %v3127_v32, %s10706_s18  ;;  %v1455_v49 = vrot.slane %v10510_v45, 5  ;;  %v9309_v17 = vrot.slane %v2576_v50, 9  ;;  %v2651_v59 = vrot.slane %v11339_v48, 5  ;;  %v2930_v53 = vpack.c.b16 %v2902_v27, %v2901_v6  ;;  %v10119_v31 = vld [vmem:[#allocation2 + $0x9c] sm:$0xff] }
 0x167   : > { %4030 = vmatmul.bf16.gmra.mxu3 %v3418_v63  ;;  %v1616_v63 = vshll.u32 %v10507_v4, 16  ;;  %v1628_v8 = vrot.slane %v1626_v56, 5  ;;  %v11578_v0 = vsel %vm11264_vm0, %v9280_v38, %v1452_v43  ;;  %v2362_v60 = vrot.slane %v2360_v52, 4  ;;  %3031 = vrot.lane.b32.xlu0 %v10119_v31, %s10706_s18  ;;  %v10514_v31 = vld [vmem:[#allocation2 + $0x44] sm:$0x1] }
 0x168   : > { %v2649_v54 = vsel %vm11264_vm0, %v9309_v17, %v2648_v29  ;;  %v2652_v1 = vsel %vm11264_vm0, %v2650_v46, %v2651_v59  ;;  %v2365_v35 = vrot.slane %v2363_v62, 5  ;;  %v2371_v61 = vrot.slane %v2369_v34, 5  ;;  %v1360_v34 = vld [vmem:[#allocation2 + $0x3c] sm:$0xe] }
 0x169   : > { %v1618_v41 = vrot.slane %v1616_v63, 5  ;;  %v3313_v2 = vunpack.c.l.b16 %v2649_v54  ;;  %v3314_v3 = vunpack.c.l.b16 %v2652_v1  ;;  %v11588_v63 = vsel %vm11264_vm0, %v1454_v39, %v1455_v49 }
 0x16a   : > { %v2373_v57 = vshrl.u32 %v2158_v36, 16  ;;  %v3438_v12 = vsel %vm3359_vm1, %v2930_v53, %v3014_v30  ;;  %v2366_v14 = vor.u32 %v2365_v35, %v2362_v60  ;;  %v2379_v18 = vshll.u32 %v2182_v23, 16  ;;  %v2577_v35 = vld [vmem:[#allocation2 + $0x30] sm:$0xe] }
 0x16b   : > { %v1623_v9 = vor.u32 %v1622_v28, %v1618_v41  ;;  %v3136_v44 = vpop.permute.xlu1 %3135  ;;  %v2894_v51 = vpop.permute.xlu2 %2893  ;;  %v3344_v56 = vpack.c.b16 %v3314_v3, %v3313_v2  ;;  %v2903_v28 = vunpack.c.l.b16 %v11578_v0  ;;  %v9301_v27 = vrot.slane %v1975_v26, 9  ;;  %v10512_v0 = vld [vmem:[#allocation2 + $0x2c] sm:$0x1]  ;;  %v10513_v3 = vld [vmem:[#allocation2 + $0x40] sm:$0xf] }
 0x16c   : > { %4059 = vmatmul.bf16.gmra.mxu1 %v3434_v21  ;;  %v1614_v21 = vrot.slane %v1613_v33, 4  ;;  %v3490_v25 = vsel %vm3359_vm1, %v3071_v58, %v3136_v44  ;;  %v3422_v55 = vsel %vm3359_vm1, %v10106_v24, %v2894_v51  ;;  %v2375_v10 = vrot.slane %v2373_v57, 4  ;;  %v10511_v44 = vld [vmem:[#allocation2 + $0x28] sm:$0xf]  ;;  %v2159_v57 = vld [vmem:[#allocation2 + $0x78] sm:$0xf] }
 0x16d   : > { %v1624_v11 = vrot.slane %v1623_v9, 4  ;;  %v2904_v33 = vunpack.c.l.b16 %v11588_v63  ;;  %v2367_v42 = vrot.slane %v2366_v14, 4  ;;  %v2381_v36 = vrot.slane %v2379_v18, 5 }
 0x16e   : > { %v1619_v48 = vsel %vm10993_vm13, %v1614_v21, %v1618_v41  ;;  %v1575_v41 = vld [vmem:[#allocation2 + $0x80] sm:$0x1]  ;;  %v2376_v24 = vor.u32 %v2375_v10, %v2371_v61  ;;  %v2095_v58 = vrot.slane %v1553_v20, 5  ;;  %v1631_v37 = vshrl.u32 %v1538_v40, 16 }
 0x16f   : > { %v1629_v4 = vsel %vm10993_vm13, %v1624_v11, %v1628_v8  ;;  %v3041_v6 = vunpack.c.l.b16 %v1619_v48  ;;  %v2098_v9 = vrot.slane %v1575_v41, 5  ;;  %v2372_v43 = vsel %vm10993_vm13, %v2367_v42, %v2371_v61  ;;  %v10123_v11 = vld [vmem:[#allocation2 + $0x18] sm:$0xff] }
 0x170   : > { %v3042_v32 = vunpack.c.l.b16 %v1629_v4  ;;  %v1634_v29 = vshll.u32 %v1538_v40, 16  ;;  %v1640_v21 = vshll.u32 %v10511_v44, 16  ;;  %v1644_v8 = vshrl.u32 %v10511_v44, 16 }
 0x171   : > { %v2377_v38 = vrot.slane %v2376_v24, 4  ;;  %v3245_v45 = vunpack.c.l.b16 %v2372_v43  ;;  %v2096_v49 = vsel %vm11264_vm0, %v9301_v27, %v2095_v58  ;;  %v2097_v50 = vrot.slane %v2095_v58, 4  ;;  %v2183_v58 = vld [vmem:[#allocation2 + $0x80] sm:$0x1] }
 0x172   : > { %v3105_v51 = vunpack.c.l.b16 %v2096_v49  ;;  %v1633_v17 = vrot.slane %v1631_v37, 4  ;;  %v1636_v52 = vrot.slane %v1634_v29, 5  ;;  %v1642_v62 = vrot.slane %v1640_v21, 5 }
 0x173   : > { %v3072_v39 = vpack.c.b16 %v3042_v32, %v3041_v6  ;;  %v2382_v46 = vsel %vm10993_vm13, %v2377_v38, %v2381_v36  ;;  %v2099_v59 = vsel %vm11264_vm0, %v2097_v50, %v2098_v9  ;;  %v3280_v53 = vpop.permute.xlu2 %3279  ;;  %v1650_v1 = vshll.u32 %v10512_v0, 16  ;;  %v3138_v2 = vpop.permute.xlu1 %3137  ;;  %v2160_v6 = vld [vmem:[#allocation2 + $0x7c] sm:$0xf] }
 0x174   : > { %v3246_v54 = vunpack.c.l.b16 %v2382_v46  ;;  %v1637_v30 = vor.u32 %v1636_v52, %v1633_v17  ;;  %v9281_v48 = vrot.slane %v1360_v34, 9  ;;  %v1459_v60 = vrot.slane %v10513_v3, 5  ;;  %v10120_v17 = vld [vmem:[#allocation2 + $0xa8] sm:$0xff]  ;;  %v11625_v52 = vld [vmem:[#allocation2 + $0x50] sm:$0x1] }
 0x175   : > { %4138 = vmatmul.bf16.vlgmr.msrb.gmra.mxu2 %v3490_v25  ;;  %v1646_v25 = vrot.slane %v1644_v8, 4  ;;  %v1652_v61 = vrot.slane %v1650_v1, 5  ;;  %v3554_v40 = vsel %vm3359_vm1, %v10123_v11, %v3280_v53  ;;  %v3494_v14 = vsel %vm3359_vm1, %v3072_v39, %v3138_v2  ;;  %v1555_v8 = vld [vmem:[#allocation2 + $0x88] sm:$0xf]  ;;  %v1576_v46 = vld [vmem:[#allocation2 + $0x8c] sm:$0x1]  ;;  %3033 = vrot.lane.b32.xlu0 %v10120_v17, %s10706_s18 }
 0x176   : > { %9661 = vmatmul.msk.bf16.gmra.mxu0 %vm3359_vm1, %v3344_v56  ;;  %v3270_v26 = vpack.c.b16 %v3246_v54, %v3245_v45  ;;  %v1638_v63 = vrot.slane %v1637_v30, 4  ;;  %v9310_v56 = vrot.slane %v2577_v35, 9  ;;  %v2931_v18 = vpack.c.b16 %v2904_v33, %v2903_v28 }
 0x177   : > { %4035 = vmatmul.bf16.gmra.mxu3 %v3422_v55  ;;  %v3106_v55 = vunpack.c.l.b16 %v2099_v59  ;;  %v1647_v23 = vor.u32 %v1646_v25, %v1642_v62  ;;  %v2655_v20 = vrot.slane %v11370_v5, 5  ;;  %v2658_v41 = vrot.slane %v11374_v15, 5  ;;  %v3016_v15 = vpop.permute.xlu0 %3015  ;;  %v1540_v59 = vld [vmem:[#allocation2 + $0x30] sm:$0xf] }
 0x178   : > { %3293 = vrot.lane.b32.xlu2 %v3270_v26, %s10706_s18  ;;  %v1643_v10 = vsel %vm10993_vm13, %v1638_v63, %v1642_v62  ;;  %v1462_v32 = vrot.slane %v10514_v31, 5  ;;  %v2384_v42 = vshrl.u32 %v2159_v57, 16  ;;  %v11615_v28 = vsel %vm11264_vm0, %v9281_v48, %v1459_v60  ;;  %v10516_v63 = vld [vmem:[#allocation2 + $0x34] sm:$0xf] }
 0x179   : > { %v3128_v4 = vpack.c.b16 %v3106_v55, %v3105_v51  ;;  %v1461_v33 = vrot.slane %v1459_v60, 4  ;;  %v2656_v5 = vsel %vm11264_vm0, %v9310_v56, %v2655_v20  ;;  %v2657_v36 = vrot.slane %v2655_v20, 4  ;;  %v1976_v51 = vld [vmem:[#allocation2 + $0x84] sm:$0xe] }
 0x17a   : > { %v3315_v24 = vunpack.c.l.b16 %v2656_v5  ;;  %v2386_v9 = vrot.slane %v2384_v42, 4  ;;  %v2387_v37 = vshll.u32 %v2159_v57, 16  ;;  %v2393_v43 = vshll.u32 %v2160_v6, 16  ;;  %v10517_v5 = vld [vmem:[#allocation2 + $0x38] sm:$0x1] }
 0x17b   : > { %3153 = vrot.lane.b32.xlu1 %v3128_v4, %s10706_s18  ;;  %v11619_v29 = vunpack.c.l.b16 %v1643_v10  ;;  %v2659_v21 = vsel %vm11264_vm0, %v2657_v36, %v2658_v41  ;;  %v2397_v50 = vshrl.u32 %v2160_v6, 16  ;;  %v1469_v62 = vrot.slane %v11625_v52, 5  ;;  %v1361_v10 = vld [vmem:[#allocation2 + $0x48] sm:$0xe]  ;;  %v3140_v31 = vpop.permute.xlu1 %3139  ;;  %v1977_v52 = vld [vmem:[#allocation2 + $0x90] sm:$0xe] }
 0x17c   : > { %4064 = vmatmul.bf16.gmra.mxu1 %v3438_v12  ;;  %v1648_v12 = vrot.slane %v1647_v23, 4  ;;  %v3316_v38 = vunpack.c.l.b16 %v2659_v21  ;;  %v2389_v45 = vrot.slane %v2387_v37, 5  ;;  %v2395_v49 = vrot.slane %v2393_v43, 5  ;;  %v10518_v43 = vld [vmem:[#allocation2 + $0x4c] sm:$0xf] }
 0x17d   : > { %v3442_v34 = vsel %vm3359_vm1, %v2931_v18, %v3016_v15  ;;  %v2905_v11 = vunpack.c.l.b16 %v11615_v28  ;;  %v2403_v39 = vshll.u32 %v2183_v58, 16  ;;  %v11632_v25 = vsel %vm11264_vm0, %v1461_v33, %v1462_v32  ;;  %v2578_v15 = vld [vmem:[#allocation2 + $0x3c] sm:$0xe] }
 0x17e   : > { %v1653_v27 = vsel %vm10993_vm13, %v1648_v12, %v1652_v61  ;;  %v3345_v53 = vpack.c.b16 %v3316_v38, %v3315_v24  ;;  %v2390_v54 = vor.u32 %v2389_v45, %v2386_v9  ;;  %v2399_v55 = vrot.slane %v2397_v50, 4  ;;  %v2161_v45 = vld [vmem:[#allocation2 + $0x84] sm:$0xf] }
 0x17f   : > { %v11621_v44 = vunpack.c.l.b16 %v1653_v27  ;;  %v2405_v0 = vrot.slane %v2403_v39, 5  ;;  %v9302_v1 = vrot.slane %v1976_v51, 9  ;;  %v2102_v2 = vrot.slane %v1555_v8, 5  ;;  %v3282_v27 = vpop.permute.xlu2 %3281 }
 0x180   : > { %v2391_v23 = vrot.slane %v2390_v54, 4  ;;  %v2400_v48 = vor.u32 %v2399_v55, %v2395_v49  ;;  %v2105_v3 = vrot.slane %v1576_v46, 5  ;;  %v1655_v60 = vshrl.u32 %v1540_v59, 16  ;;  %v2162_v55 = vld [vmem:[#allocation2 + $0x88] sm:$0xf] }
 0x181   : > { %v3073_v30 = vpack.c.b16 %v11621_v44, %v11619_v29  ;;  %v2103_v35 = vsel %vm11264_vm0, %v9302_v1, %v2102_v2  ;;  %v2104_v26 = vrot.slane %v2102_v2, 4  ;;  %v1658_v4 = vshll.u32 %v1540_v59, 16  ;;  %v10519_v59 = vld [vmem:[#allocation2 + $0x40] sm:$0xf] }
 0x182   : > { %v1664_v61 = vshll.u32 %v10516_v63, 16  ;;  %v2396_v57 = vsel %vm10993_vm13, %v2391_v23, %v2395_v49  ;;  %v3107_v12 = vunpack.c.l.b16 %v2103_v35  ;;  %v1657_v56 = vrot.slane %v1655_v60, 4  ;;  %v10125_v60 = vld [vmem:[#allocation2 + $0x30] sm:$0xff] }
 0x183   : > { %v3247_v18 = vunpack.c.l.b16 %v2396_v57  ;;  %v2106_v20 = vsel %vm11264_vm0, %v2104_v26, %v2105_v3  ;;  %v1660_v41 = vrot.slane %v1658_v4, 5  ;;  %v1668_v33 = vshrl.u32 %v10516_v63, 16  ;;  %v3018_v3 = vpop.permute.xlu0 %3017 }
 0x184   : > { %v1666_v6 = vrot.slane %v1664_v61, 5  ;;  %v3108_v42 = vunpack.c.l.b16 %v2106_v20  ;;  %v1674_v36 = vshll.u32 %v10517_v5, 16  ;;  %v2906_v24 = vunpack.c.l.b16 %v11632_v25 }
 0x185   : > { %4143 = vmatmul.bf16.gmra.mxu2 %v3494_v14  ;;  %v10124_v14 = vld [vmem:[#allocation2 + $0x24] sm:$0xff]  ;;  %v1661_v9 = vor.u32 %v1660_v41, %v1657_v56  ;;  %v1466_v29 = vrot.slane %v10518_v43, 5  ;;  %v1670_v21 = vrot.slane %v1668_v33, 4  ;;  %v9282_v8 = vrot.slane %v1361_v10, 9 }
 0x186   : > { %9662 = vmatmul.msk.bf16.gmra.mxu0 %vm3359_vm1, %v3345_v53  ;;  %v3129_v44 = vpack.c.b16 %v3108_v42, %v3107_v12  ;;  %v9311_v38 = vrot.slane %v2578_v15, 9  ;;  %v3558_v49 = vsel %vm3359_vm1, %v10124_v14, %v3282_v27  ;;  %v3498_v50 = vsel %vm3359_vm1, %v3073_v30, %v3140_v31  ;;  %v10121_v12 = vld [vmem:[#allocation2 + $0xb4] sm:$0xff] }
 0x187   : > { %4227 = vmatmul.bf16.vlgmr.msrb.gmra.mxu3 %v3554_v40  ;;  %v2401_v40 = vrot.slane %v2400_v48, 4  ;;  %v1662_v17 = vrot.slane %v1661_v9, 4  ;;  %v1676_v39 = vrot.slane %v1674_v36, 5  ;;  %v1468_v46 = vrot.slane %v1466_v29, 4  ;;  %v3284_v61 = vpop.permute.xlu2 %3283  ;;  %3035 = vrot.lane.b32.xlu0 %v10121_v12, %s10706_s18  ;;  %v1557_v36 = vld [vmem:[#allocation2 + $0x94] sm:$0xf] }
 0x188   : > { %3155 = vrot.lane.b32.xlu1 %v3129_v44, %s10706_s18  ;;  %v2662_v25 = vrot.slane %v10519_v59, 5  ;;  %v2665_v54 = vrot.slane %v11403_v7, 5  ;;  %v2411_v1 = vshll.u32 %v2161_v45, 16  ;;  %v2932_v30 = vpack.c.b16 %v2906_v24, %v2905_v11  ;;  %v2184_v7 = vld [vmem:[#allocation2 + $0x8c] sm:$0x1] }
 0x189   : > { %v2406_v32 = vsel %vm10993_vm13, %v2401_v40, %v2405_v0  ;;  %v1667_v53 = vsel %vm10993_vm13, %v1662_v17, %v1666_v6  ;;  %v2408_v0 = vshrl.u32 %v2161_v45, 16  ;;  %v11660_v23 = vsel %vm11264_vm0, %v9282_v8, %v1466_v29  ;;  %v1577_v15 = vld [vmem:[#allocation2 + $0x98] sm:$0x1] }
 0x18a   : > { %v3248_v58 = vunpack.c.l.b16 %v2406_v32  ;;  %v2663_v48 = vsel %vm11264_vm0, %v9311_v38, %v2662_v25  ;;  %v3045_v35 = vunpack.c.l.b16 %v1667_v53  ;;  %v2664_v26 = vrot.slane %v2662_v25, 4  ;;  %v1542_v32 = vld [vmem:[#allocation2 + $0x3c] sm:$0xf] }
 0x18b   : > { %v2410_v4 = vrot.slane %v2408_v0, 4  ;;  %v2413_v63 = vrot.slane %v2411_v1, 5  ;;  %v11670_v11 = vsel %vm11264_vm0, %v1468_v46, %v1469_v62  ;;  %v3317_v57 = vunpack.c.l.b16 %v2663_v48  ;;  %v10520_v46 = vld [vmem:[#allocation2 + $0x40] sm:$0xf]  ;;  %v10521_v0 = vld [vmem:[#allocation2 + $0x44] sm:$0x1] }
 0x18c   : > { %4069 = vmatmul.bf16.gmra.mxu1 %v3442_v34  ;;  %v3271_v51 = vpack.c.b16 %v3248_v58, %v3247_v18  ;;  %v1671_v34 = vor.u32 %v1670_v21, %v1666_v6  ;;  %v2417_v40 = vshll.u32 %v2162_v55, 16  ;;  %v2666_v14 = vsel %vm11264_vm0, %v2664_v26, %v2665_v54  ;;  %v3142_v6 = vpop.permute.xlu1 %3141 }
 0x18d   : > { %v2414_v18 = vor.u32 %v2413_v63, %v2410_v4  ;;  %v2421_v20 = vshrl.u32 %v2162_v55, 16  ;;  %v3446_v41 = vsel %vm3359_vm1, %v2932_v30, %v3018_v3  ;;  %v3318_v10 = vunpack.c.l.b16 %v2666_v14  ;;  %v1362_v30 = vld [vmem:[#allocation2 + $0x54] sm:$0xe]  ;;  %v11695_v63 = vpop.f32.mrf.mxu3  ;;  %v10523_v14 = vld [vmem:[#allocation2 + $0x5c] sm:$0x1] }
 0x18e   : > { %3295 = vrot.lane.b32.xlu2 %v3271_v51, %s10706_s18  ;;  %v1672_v2 = vrot.slane %v1671_v34, 4  ;;  %v2419_v27 = vrot.slane %v2417_v40, 5  ;;  %v2427_v31 = vshll.u32 %v2184_v7, 16  ;;  %v11677_v62 = vsel %vm3359_vm1, %v10125_v60, %v3284_v61  ;;  %v2579_v60 = vld [vmem:[#allocation2 + $0x48] sm:$0xe]  ;;  %14344 = vst [vmem:[#allocation8_spill] sm:$0xff] %v11695_v63 }
 0x18f   : > { %v2415_v33 = vrot.slane %v2414_v18, 4  ;;  %v2423_v5 = vrot.slane %v2421_v20, 4  ;;  %v2907_v58 = vunpack.c.l.b16 %v11660_v23  ;;  %v2908_v9 = vunpack.c.l.b16 %v11670_v11 }
 0x190   : > { %v1677_v28 = vsel %vm10993_vm13, %v1672_v2, %v1676_v39  ;;  %v3346_v43 = vpack.c.b16 %v3318_v10, %v3317_v57  ;;  %v2429_v29 = vrot.slane %v2427_v31, 5  ;;  %v9303_v38 = vrot.slane %v1977_v52, 9  ;;  %v10522_v57 = vld [vmem:[#allocation2 + $0x58] sm:$0xf] }
 0x191   : > { %v11647_v37 = vpop.f32.mrf.mxu0  ;;  %v3046_v56 = vunpack.c.l.b16 %v1677_v28  ;;  %v2420_v21 = vsel %vm10993_vm13, %v2415_v33, %v2419_v27  ;;  %v2424_v8 = vor.u32 %v2423_v5, %v2419_v27  ;;  %v1679_v51 = vshrl.u32 %v1542_v32, 16  ;;  %v10524_v33 = vld [vmem:[#allocation2 + $0x4c] sm:$0xf] }
 0x192   : > { %v3249_v45 = vunpack.c.l.b16 %v2420_v21  ;;  %v1682_v39 = vshll.u32 %v1542_v32, 16  ;;  %v1688_v59 = vshll.u32 %v10520_v46, 16  ;;  %v1692_v25 = vshrl.u32 %v10520_v46, 16 }
 0x193   : > { %v3074_v42 = vpack.c.b16 %v3046_v56, %v3045_v35  ;;  %v2425_v34 = vrot.slane %v2424_v8, 4  ;;  %v1681_v55 = vrot.slane %v1679_v51, 4  ;;  %v1698_v1 = vshll.u32 %v10521_v0, 16  ;;  %v2164_v8 = vld [vmem:[#allocation2 + $0x94] sm:$0xf]  ;;  %v10126_v51 = vld [vmem:[#allocation2 + $0x3c] sm:$0xff] }
 0x194   : > { %v1684_v48 = vrot.slane %v1682_v39, 5  ;;  %v1690_v3 = vrot.slane %v1688_v59, 5  ;;  %v1694_v7 = vrot.slane %v1692_v25, 4  ;;  %v9283_v11 = vrot.slane %v1362_v30, 9 }
 0x195   : > { %4148 = vmatmul.bf16.gmra.mxu2 %v3498_v50  ;;  %v3502_v44 = vsel %vm3359_vm1, %v3074_v42, %v3142_v6  ;;  %v2112_v50 = vrot.slane %v1577_v15, 5  ;;  %v11687_v17 = vpop.f32.mrf.mxu2  ;;  %v2430_v2 = vsel %vm10993_vm13, %v2425_v34, %v2429_v29  ;;  %v1700_v4 = vrot.slane %v1698_v1, 5  ;;  %v3144_v1 = vpop.permute.xlu1 %3143 }
 0x196   : > { %9663 = vmatmul.msk.bf16.gmra.mxu0 %vm3359_vm1, %v3346_v43  ;;  %14343 = vst [vmem:[#allocation7_spill] sm:$0xff] %v11687_v17  ;;  %v3250_v35 = vunpack.c.l.b16 %v2430_v2  ;;  %v1685_v28 = vor.u32 %v1684_v48, %v1681_v55  ;;  %v1473_v40 = vrot.slane %v10522_v57, 5  ;;  %v1695_v56 = vor.u32 %v1694_v7, %v1690_v3  ;;  %v3020_v43 = vpop.permute.xlu0 %3019  ;;  %v1578_v7 = vld [vmem:[#allocation2 + $0xa4] sm:$0x1]  ;;  %v10557_v17 = vld [vmem:[#allocation2 + $0x88] sm:$0xf] }
 0x197   : > { %4232 = vmatmul.bf16.gmra.mxu3 %v3558_v49  ;;  %v2109_v49 = vrot.slane %v1557_v36, 5  ;;  %v1476_v18 = vrot.slane %v10523_v14, 5  ;;  %v9312_v20 = vrot.slane %v2579_v60, 9  ;;  %v2933_v32 = vpack.c.b16 %v2908_v9, %v2907_v58  ;;  %v10525_v36 = vld [vmem:[#allocation2 + $0x50] sm:$0x1] }
 0x198   : > { %v3272_v12 = vpack.c.b16 %v3250_v35, %v3249_v45  ;;  %v1686_v10 = vrot.slane %v1685_v28, 4  ;;  %v1474_v31 = vsel %vm11264_vm0, %v9283_v11, %v1473_v40  ;;  %v1475_v52 = vrot.slane %v1473_v40, 4 }
 0x199   : > { %v11679_v24 = vpop.f32.mrf.mxu0  ;;  %v2110_v53 = vsel %vm11264_vm0, %v9303_v38, %v2109_v49  ;;  %v2111_v54 = vrot.slane %v2109_v49, 4  ;;  %v1696_v42 = vrot.slane %v1695_v56, 4  ;;  %v2669_v5 = vrot.slane %v10524_v33, 5  ;;  %v10526_v33 = vld [vmem:[#allocation2 + $0x4c] sm:$0xf] }
 0x19a   : > { %v3109_v23 = vunpack.c.l.b16 %v2110_v53  ;;  %3297 = vrot.lane.b32.xlu2 %v3272_v12, %s10706_s18  ;;  %v2672_v15 = vrot.slane %v10525_v36, 5  ;;  %v1691_v29 = vsel %vm10993_vm13, %v1686_v10, %v1690_v3  ;;  %v1477_v21 = vsel %vm11264_vm0, %v1475_v52, %v1476_v18  ;;  %v3286_v53 = vpop.permute.xlu2 %3285  ;;  %v1559_v3 = vld [vmem:[#allocation2 + $0xa0] sm:$0xf]  ;;  %v1544_v12 = vld [vmem:[#allocation2 + $0x48] sm:$0xf] }
 0x19b   : > { %v2113_v26 = vsel %vm11264_vm0, %v2111_v54, %v2112_v50  ;;  %v1701_v58 = vsel %vm10993_vm13, %v1696_v42, %v1700_v4  ;;  %v3047_v9 = vunpack.c.l.b16 %v1691_v29  ;;  %v2909_v45 = vunpack.c.l.b16 %v1474_v31  ;;  %v11710_v50 = vld [vmem:[#allocation2 + $0x98] sm:$0x1]  ;;  %v1978_v4 = vld [vmem:[#allocation2 + $0x9c] sm:$0xe] }
 0x19c   : > { %4074 = vmatmul.bf16.gmra.mxu1 %v3446_v41  ;;  %v3110_v61 = vunpack.c.l.b16 %v2113_v26  ;;  %v2163_v41 = vld [vmem:[#allocation2 + $0x90] sm:$0xf]  ;;  %v2910_v49 = vunpack.c.l.b16 %v1477_v21  ;;  %v3048_v39 = vunpack.c.l.b16 %v1701_v58  ;;  %v2670_v46 = vsel %vm11264_vm0, %v9312_v20, %v2669_v5 }
 0x19d   : > { %v2432_v38 = vshrl.u32 %v2163_v41, 16  ;;  %v11712_v34 = vpop.f32.mrf.mxu2  ;;  %v2671_v59 = vrot.slane %v2669_v5, 4  ;;  %v3319_v54 = vunpack.c.l.b16 %v2670_v46  ;;  %v2441_v0 = vshll.u32 %v2164_v8, 16  ;;  %v444_v21 = vld [vmem:[%s10791_s13 + $0xf0] sm:$0xff] }
 0x19e   : > { %v3130_v6 = vpack.c.b16 %v3110_v61, %v3109_v23  ;;  %14345 = vst [vmem:[#allocation9_spill] sm:$0xff] %v11712_v34  ;;  %v3075_v30 = vpack.c.b16 %v3048_v39, %v3047_v9  ;;  %v2445_v23 = vshrl.u32 %v2164_v8, 16  ;;  %v2451_v48 = vshll.u32 %v11710_v50, 16  ;;  %v11720_v61 = vpop.f32.mrf.mxu3  ;;  %v445_v9 = vld [vmem:[%s10791_s13 + $0xf8] sm:$0xff] }
 0x19f   : > { %v2434_v25 = vrot.slane %v2432_v38, 4  ;;  %v2673_v2 = vsel %vm11264_vm0, %v2671_v59, %v2672_v15  ;;  %v2443_v26 = vrot.slane %v2441_v0, 5  ;;  %14346 = vst [vmem:[#allocation10_spill] sm:$0xff] %v11720_v61  ;;  %v3566_v28 = vsel %vm3359_vm1, %v10126_v51, %v3286_v53  ;;  %v10527_v59 = vld [vmem:[#allocation2 + $0x50] sm:$0x1] }
 0x1a0   : > { %3157 = vrot.lane.b32.xlu1 %v3130_v6, %s10706_s18  ;;  %v3320_v60 = vunpack.c.l.b16 %v2673_v2  ;;  %v11723_v11 = vpack.c.b16 %v2910_v49, %v2909_v45  ;;  %v2447_v57 = vrot.slane %v2445_v23, 4  ;;  %v3506_v56 = vsel %vm3359_vm1, %v3075_v30, %v3144_v1  ;;  %v1363_v45 = vld [vmem:[#allocation2 + $0x60] sm:$0xe] }
 0x1a1   : > { %v2453_v20 = vrot.slane %v2451_v48, 5  ;;  %v9304_v6 = vrot.slane %v1978_v4, 9  ;;  %v2116_v10 = vrot.slane %v1559_v3, 5  ;;  %v2119_v31 = vrot.slane %v1578_v7, 5  ;;  %v3022_v48 = vpop.permute.xlu0 %3021 }
 0x1a2   : > { %v3347_v14 = vpack.c.b16 %v3320_v60, %v3319_v54  ;;  %v1706_v42 = vshll.u32 %v1544_v12, 16  ;;  %v1712_v5 = vshll.u32 %v10526_v33, 16  ;;  %v1716_v46 = vshrl.u32 %v10526_v33, 16  ;;  %v2580_v33 = vld [vmem:[#allocation2 + $0x54] sm:$0xe] }
 0x1a3   : > { %v11697_v27 = vpop.f32.mrf.mxu0  ;;  %v2118_v29 = vrot.slane %v2116_v10, 4  ;;  %v477_v30 = vpack.c.bf16 %v445_v9, %v445_v9  ;;  %v9284_v23 = vrot.slane %v1363_v45, 9 }
 0x1a4   : > { %v1714_v58 = vrot.slane %v1712_v5, 5  ;;  %v1718_v0 = vrot.slane %v1716_v46, 4 }
 0x1a5   : > { %4153 = vmatmul.bf16.gmra.mxu2 %v3502_v44  ;;  %v2435_v44 = vshll.u32 %v2163_v41, 16  ;;  %v2448_v41 = vor.u32 %v2447_v57, %v2443_v26  ;;  %v2120_v39 = vsel %vm11264_vm0, %v2118_v29, %v2119_v31  ;;  %v3454_v31 = vsel %vm3359_vm1, %v11723_v11, %v3022_v48 }
 0x1a6   : > { %9664 = vmatmul.msk.bf16.gmra.mxu0 %vm3359_vm1, %v3347_v14  ;;  %v11743_v7 = vpop.f32.mrf.mxu3  ;;  %v1719_v4 = vor.u32 %v1718_v0, %v1714_v58  ;;  %v748_v14 = vshll.u32 %v477_v30, 16 }
 0x1a7   : > { %4237 = vmatmul.bf16.gmra.mxu3 %v11677_v62  ;;  %v3450_v62 = vsel %vm3359_vm1, %v2933_v32, %v3020_v43  ;;  %v2437_v55 = vrot.slane %v2435_v44, 5  ;;  %v1703_v32 = vshrl.u32 %v1544_v12, 16  ;;  %v2449_v36 = vrot.slane %v2448_v41, 4  ;;  %14348 = vst [vmem:[#allocation12_spill] sm:$0xff] %v11743_v7  ;;  %v10528_v41 = vld [vmem:[#allocation2 + $0x64] sm:$0xf] }
 0x1a8   : > { %v2117_v43 = vsel %vm11264_vm0, %v9304_v6, %v2116_v10  ;;  %v1708_v44 = vrot.slane %v1706_v42, 5  ;;  %v745_v12 = vshrl.u32 %v477_v30, 16  ;;  %v10529_v6 = vld [vmem:[#allocation2 + $0x68] sm:$0x1]  ;;  %v10546_v7 = vld [vmem:[#allocation2 + $0x74] sm:$0x1] }
 0x1a9   : > { %v2438_v35 = vor.u32 %v2437_v55, %v2434_v25  ;;  %v3111_v8 = vunpack.c.l.b16 %v2117_v43  ;;  %v1705_v38 = vrot.slane %v1703_v32, 4  ;;  %v2454_v51 = vsel %vm10993_vm13, %v2449_v36, %v2453_v20 }
 0x1aa   : > { %v1722_v25 = vshll.u32 %v10527_v59, 16  ;;  %v3252_v53 = vunpack.c.l.b16 %v2454_v51  ;;  %v476_v55 = vpack.c.bf16 %v444_v21, %v444_v21  ;;  %v1483_v10 = vrot.slane %v10529_v6, 5  ;;  %v10530_v59 = vld [vmem:[#allocation2 + $0x58] sm:$0xf] }
 0x1ab   : > { %v11725_v40 = vpop.f32.mrf.mxu0  ;;  %v2439_v18 = vrot.slane %v2438_v35, 4  ;;  %v1709_v54 = vor.u32 %v1708_v44, %v1705_v38  ;;  %v11751_v42 = vrot.slane %v745_v12, 7  ;;  %v2165_v38 = vld [vmem:[#allocation2 + $0x9c] sm:$0xf]  ;;  %v2166_v44 = vld [vmem:[#allocation2 + $0xa0] sm:$0xf] }
 0x1ac   : > { %4079 = vmatmul.bf16.gmra.mxu1 %v3450_v62  ;;  %v3112_v62 = vunpack.c.l.b16 %v2120_v39  ;;  %v1724_v1 = vrot.slane %v1722_v25, 5  ;;  %v740_v57 = vshll.u32 %v476_v55, 16  ;;  %v9313_v51 = vrot.slane %v2580_v33, 9  ;;  %v1579_v33 = vld [vmem:[#allocation2 + $0xb0] sm:$0x1] }
 0x1ad   : > { %v2444_v52 = vsel %vm10993_vm13, %v2439_v18, %v2443_v26  ;;  %v1710_v35 = vrot.slane %v1709_v54, 4  ;;  %v737_v26 = vshrl.u32 %v476_v55, 16  ;;  %v750_v11 = vor.u32 %v748_v14, %v11751_v42  ;;  %v10127_v55 = vld [vmem:[#allocation2 + $0x48] sm:$0xff] }
 0x1ae   : > { %v3251_v15 = vunpack.c.l.b16 %v2444_v52  ;;  %v3131_v60 = vpack.c.b16 %v3112_v62, %v3111_v8  ;;  %v1720_v52 = vrot.slane %v1719_v4, 4  ;;  %v2676_v25 = vrot.slane %v10530_v59, 5  ;;  %v3024_v4 = vpop.permute.xlu0 %3023 }
 0x1af   : > { %v1715_v18 = vsel %vm10993_vm13, %v1710_v35, %v1714_v58  ;;  %v739_v20 = vrot.slane %v737_v26, 7  ;;  %v2456_v19 = vshrl.u32 %v2165_v38, 16  ;;  %v2465_v30 = vshll.u32 %v2166_v44, 16  ;;  %v3146_v26 = vpop.permute.xlu1 %3145 }
 0x1b0   : > { %v3273_v3 = vpack.c.b16 %v3252_v53, %v3251_v15  ;;  %3159 = vrot.lane.b32.xlu1 %v3131_v60, %s10706_s18  ;;  %v3049_v32 = vunpack.c.l.b16 %v1715_v18  ;;  %v1725_v21 = vsel %vm10993_vm13, %v1720_v52, %v1724_v1  ;;  %v10531_v53 = vld [vmem:[#allocation2 + $0x5c] sm:$0x1]  ;;  %v2459_v1 = vshll.u32 %v2165_v38, 16  ;;  %v11771_v60 = vld [vmem:[#allocation2 + $0xa4] sm:$0x1] }
 0x1b1   : > { %v742_v5 = vor.u32 %v740_v57, %v739_v20  ;;  %v743_v36 = vrot.slane %v739_v20, 4  ;;  %v3050_v58 = vunpack.c.l.b16 %v1725_v21  ;;  %v2679_v62 = vrot.slane %v10531_v53, 5  ;;  %v1979_v18 = vld [vmem:[#allocation2 + $0xa8] sm:$0xe]  ;;  %v11773_v20 = vpop.f32.mrf.mxu3 }
 0x1b2   : > { %v11735_v49 = vpop.f32.mrf.mxu2  ;;  %3299 = vrot.lane.b32.xlu2 %v3273_v3, %s10706_s18  ;;  %v2677_v13 = vsel %vm11264_vm0, %v9313_v51, %v2676_v25  ;;  %v2678_v3 = vrot.slane %v2676_v25, 4  ;;  %v2469_v35 = vshrl.u32 %v2166_v44, 16  ;;  %v2458_v12 = vrot.slane %v2456_v19, 4  ;;  %14350 = vst [vmem:[#allocation14_spill] sm:$0xff] %v11773_v20  ;;  %v1364_v19 = vld [vmem:[#allocation2 + $0x6c] sm:$0xe] }
 0x1b3   : > { %14347 = vst [vmem:[#allocation11_spill] sm:$0xff] %v11735_v49  ;;  %v11741_v2 = vpop.f32.mrf.mxu0  ;;  %v751_v39 = vsel %vm10925_vm8, %v743_v36, %v750_v11  ;;  %v3076_v0 = vpack.c.b16 %v3050_v58, %v3049_v32  ;;  %v3321_v57 = vunpack.c.l.b16 %v2677_v13  ;;  %v2461_v14 = vrot.slane %v2459_v1, 5 }
 0x1b4   : > { %916 = vst.msk [vmem:[#allocation2 + $0xc4] sm:$0xf] %vm802_vm5, %v751_v39  ;;  %v2471_v6 = vrot.slane %v2469_v35, 4  ;;  %v9305_v21 = vrot.slane %v1979_v18, 9  ;;  %v2126_v51 = vrot.slane %v1579_v33, 5  ;;  %v9285_v18 = vrot.slane %v1364_v19, 9 }
 0x1b5   : > { %4158 = vmatmul.bf16.gmra.mxu2 %v3506_v56  ;;  %v1480_v56 = vrot.slane %v10528_v41, 5  ;;  %v2680_v41 = vsel %vm11264_vm0, %v2678_v3, %v2679_v62  ;;  %v2462_v32 = vor.u32 %v2461_v14, %v2458_v12  ;;  %v3510_v36 = vsel %vm3359_vm1, %v3076_v0, %v3146_v26  ;;  %v10533_v12 = vld [vmem:[#allocation2 + $0x5c] sm:$0x1]  ;;  %v11797_v33 = vld [vmem:[#allocation2 + $0x80] sm:$0x1] }
 0x1b6   : > { %v3322_v52 = vunpack.c.l.b16 %v2680_v41  ;;  %v1746_v14 = vshll.u32 %v10533_v12, 16 }
 0x1b7   : > { %4242 = vmatmul.bf16.gmra.mxu3 %v3566_v28  ;;  %v913_v28 = vld [vmem:[#allocation2 + $0xc0] sm:$0xf]  ;;  %v1481_v15 = vsel %vm11264_vm0, %v9284_v23, %v1480_v56  ;;  %v1482_v43 = vrot.slane %v1480_v56, 4  ;;  %v3288_v23 = vpop.permute.xlu2 %3287  ;;  %v2467_v56 = vrot.slane %v2465_v30, 5  ;;  %v2463_v38 = vrot.slane %v2462_v32, 4 }
 0x1b8   : > { %v2911_v8 = vunpack.c.l.b16 %v1481_v15  ;;  %v914_v9 = vsel %vm10931_vm9, %v742_v5, %v913_v28  ;;  %v2475_v28 = vshll.u32 %v11771_v60, 16  ;;  %v1546_v5 = vld [vmem:[#allocation2 + $0x54] sm:$0xf] }
 0x1b9   : > { %v1484_v45 = vsel %vm11264_vm0, %v1482_v43, %v1483_v10  ;;  %915 = vst [vmem:[#allocation2 + $0xc0] sm:$0xf] %v914_v9  ;;  %v1561_v10 = vld [vmem:[#allocation2 + $0xac] sm:$0xf]  ;;  %v2472_v43 = vor.u32 %v2471_v6, %v2467_v56  ;;  %v1727_v39 = vshrl.u32 %v1546_v5, 16  ;;  %v2468_v25 = vsel %vm10993_vm13, %v2463_v38, %v2467_v56 }
 0x1ba   : > { %v11755_v29 = vpop.f32.mrf.mxu2  ;;  %v2912_v46 = vunpack.c.l.b16 %v1484_v45  ;;  %v2477_v44 = vrot.slane %v2475_v28, 5  ;;  %v2123_v58 = vrot.slane %v1561_v10, 5  ;;  %v3253_v30 = vunpack.c.l.b16 %v2468_v25  ;;  %v10534_v10 = vld [vmem:[#allocation2 + $0x70] sm:$0xf]  ;;  %v10535_v32 = vld [vmem:[#allocation2 + $0x74] sm:$0x1] }
 0x1bb   : > { %14349 = vst [vmem:[#allocation13_spill] sm:$0xff] %v11755_v29  ;;  %v11766_v54 = vpop.f32.mrf.mxu0  ;;  %v2473_v45 = vrot.slane %v2472_v43, 4  ;;  %v1490_v28 = vrot.slane %v10535_v32, 5 }
 0x1bc   : > { %4084 = vmatmul.bf16.gmra.mxu1 %v3454_v31  ;;  %v2935_v48 = vpack.c.b16 %v2912_v46, %v2911_v8  ;;  %v3570_v31 = vsel %vm3359_vm1, %v10127_v55, %v3288_v23  ;;  %v3348_v8 = vpack.c.b16 %v3322_v52, %v3321_v57  ;;  %v1730_v46 = vshll.u32 %v1546_v5, 16  ;;  %v10532_v55 = vld [vmem:[#allocation2 + $0x58] sm:$0xf] }
 0x1bd   : > { %v2124_v53 = vsel %vm11264_vm0, %v9305_v21, %v2123_v58  ;;  %v2125_v62 = vrot.slane %v2123_v58, 4  ;;  %v1736_v0 = vshll.u32 %v10532_v55, 16  ;;  %v2478_v1 = vsel %vm10993_vm13, %v2473_v45, %v2477_v44  ;;  %v2167_v44 = vld [vmem:[#allocation2 + $0xa8] sm:$0xf] }
 0x1be   : > { %v3458_v15 = vsel %vm3359_vm1, %v2935_v48, %v3024_v4  ;;  %9665 = vmatmul.msk.bf16.gmra.mxu0 %vm3359_vm1, %v3348_v8  ;;  %v3113_v23 = vunpack.c.l.b16 %v2124_v53  ;;  %v1729_v48 = vrot.slane %v1727_v39, 4  ;;  %v3254_v13 = vunpack.c.l.b16 %v2478_v1  ;;  %v10538_v53 = vld [vmem:[#allocation2 + $0x64] sm:$0xf] }
 0x1bf   : > { %v2127_v3 = vsel %vm11264_vm0, %v2125_v62, %v2126_v51  ;;  %v1732_v35 = vrot.slane %v1730_v46, 5  ;;  %v1738_v26 = vrot.slane %v1736_v0, 5  ;;  %v1740_v57 = vshrl.u32 %v10532_v55, 16 }
 0x1c0   : > { %v10122_v9 = vld [vmem:[#allocation2 + $0xc0] sm:$0xff]  ;;  %v3114_v4 = vunpack.c.l.b16 %v2127_v3  ;;  %v3274_v56 = vpack.c.b16 %v3254_v13, %v3253_v30  ;;  %v1487_v52 = vrot.slane %v10534_v10, 5  ;;  %v2683_v62 = vrot.slane %v10538_v53, 5  ;;  %v10539_v30 = vld [vmem:[#allocation2 + $0x68] sm:$0x1] }
 0x1c1   : > { %3037 = vrot.lane.b32.xlu0 %v10122_v9, %s10706_s18  ;;  %v1733_v6 = vor.u32 %v1732_v35, %v1729_v48  ;;  %v1742_v38 = vrot.slane %v1740_v57, 4  ;;  %v1748_v9 = vrot.slane %v1746_v14, 5  ;;  %v2480_v48 = vshrl.u32 %v2167_v44, 16  ;;  %v11821_v57 = vld [vmem:[#allocation2 + $0xb0] sm:$0x1] }
 0x1c2   : > { %v11781_v11 = vpop.f32.mrf.mxu2  ;;  %v3132_v8 = vpack.c.b16 %v3114_v4, %v3113_v23  ;;  %3301 = vrot.lane.b32.xlu2 %v3274_v56, %s10706_s18  ;;  %v1488_v45 = vsel %vm11264_vm0, %v9285_v18, %v1487_v52  ;;  %v1489_v51 = vrot.slane %v1487_v52, 4  ;;  %v2686_v23 = vrot.slane %v10539_v30, 5  ;;  %v3290_v56 = vpop.permute.xlu2 %3289 }
 0x1c3   : > { %14351 = vst [vmem:[#allocation15_spill] sm:$0xff] %v11781_v11  ;;  %v11783_v59 = vpop.f32.mrf.mxu0  ;;  %v1734_v58 = vrot.slane %v1733_v6, 4  ;;  %v1743_v39 = vor.u32 %v1742_v38, %v1738_v26  ;;  %v2913_v46 = vunpack.c.l.b16 %v1488_v45  ;;  %v2685_v12 = vrot.slane %v2683_v62, 4  ;;  %v10128_v6 = vld [vmem:[#allocation2 + $0x54] sm:$0xff]  ;;  %v3026_v38 = vpop.permute.xlu0 %3025  ;;  %v11953_v11 = vld [vmem:[#allocation2 + $0x88] sm:$0xf] }
 0x1c4   : > { %3161 = vrot.lane.b32.xlu1 %v3132_v8, %s10706_s18  ;;  %v1491_v1 = vsel %vm11264_vm0, %v1489_v51, %v1490_v28  ;;  %v2482_v18 = vrot.slane %v2480_v48, 4  ;;  %v10540_v51 = vld [vmem:[#allocation2 + $0x64] sm:$0xf] }
 0x1c5   : > { %4163 = vmatmul.bf16.gmra.mxu2 %v3510_v36  ;;  %v11800_v36 = vld [vmem:[#allocation2 + $0x8c] sm:$0x1]  ;;  %v1739_v19 = vsel %vm10993_vm13, %v1734_v58, %v1738_v26  ;;  %v1744_v13 = vrot.slane %v1743_v39, 4  ;;  %v2914_v35 = vunpack.c.l.b16 %v1491_v1  ;;  %v2483_v26 = vshll.u32 %v2167_v44, 16  ;;  %v10541_v1 = vld [vmem:[#allocation2 + $0x68] sm:$0x1] }
 0x1c6   : > { %v3051_v3 = vunpack.c.l.b16 %v1739_v19  ;;  %v2687_v58 = vsel %vm11264_vm0, %v2685_v12, %v2686_v23  ;;  %v2499_v44 = vshll.u32 %v11821_v57, 16  ;;  %v1764_v39 = vshrl.u32 %v10540_v51, 16  ;;  %v1548_v19 = vld [vmem:[#allocation2 + $0x60] sm:$0xf]  ;;  %v1580_v23 = vld [vmem:[#allocation2 + $0xbc] sm:$0x1] }
 0x1c7   : > { %4247 = vmatmul.bf16.gmra.mxu3 %v3570_v31  ;;  %v2581_v31 = vld [vmem:[#allocation2 + $0x60] sm:$0xe]  ;;  %v1749_v10 = vsel %vm10993_vm13, %v1744_v13, %v1748_v9  ;;  %v2936_v52 = vpack.c.b16 %v2914_v35, %v2913_v46  ;;  %v2485_v45 = vrot.slane %v2483_v26, 5  ;;  %v3148_v9 = vpop.permute.xlu1 %3147  ;;  %v3324_v46 = vunpack.c.l.b16 %v2687_v58 }
 0x1c8   : > { %v9314_v25 = vrot.slane %v2581_v31, 9  ;;  %v3052_v8 = vunpack.c.l.b16 %v1749_v10  ;;  %v1770_v30 = vshll.u32 %v10541_v1, 16  ;;  %v3574_v12 = vsel %vm3359_vm1, %v10128_v6, %v3290_v56 }
 0x1c9   : > { %v11795_v41 = vpop.f32.mrf.mxu1  ;;  %v2486_v13 = vor.u32 %v2485_v45, %v2482_v18  ;;  %v3462_v26 = vsel %vm3359_vm1, %v2936_v52, %v3026_v38  ;;  %v2501_v43 = vrot.slane %v2499_v44, 5  ;;  %v2133_v18 = vrot.slane %v1580_v23, 5  ;;  %v2582_v23 = vld [vmem:[#allocation2 + $0x6c] sm:$0xe] }
 0x1ca   : > { %v11803_v21 = vpop.f32.mrf.mxu3  ;;  %v11811_v0 = vpop.f32.mrf.mxu2  ;;  %v2684_v4 = vsel %vm11264_vm0, %v9314_v25, %v2683_v62  ;;  %v1980_v62 = vld [vmem:[#allocation2 + $0xb4] sm:$0xe]  ;;  %v3077_v48 = vpack.c.b16 %v3052_v8, %v3051_v3  ;;  %v1754_v8 = vshll.u32 %v1548_v19, 16  ;;  %v1760_v52 = vshll.u32 %v10540_v51, 16 }
 0x1cb   : > { %14352 = vst [vmem:[#allocation16_spill] sm:$0xff] %v11803_v21  ;;  %v11809_v55 = vpop.f32.mrf.mxu0  ;;  %v3323_v14 = vunpack.c.l.b16 %v2684_v4  ;;  %v11834_v4 = vld [vmem:[#allocation2 + $0xb8] sm:$0xf]  ;;  %v2487_v58 = vrot.slane %v2486_v13, 4  ;;  %v9306_v21 = vrot.slane %v1980_v62, 9  ;;  %v1766_v38 = vrot.slane %v1764_v39, 4 }
 0x1cc   : > { %4089 = vmatmul.bf16.gmra.mxu1 %v3458_v15  ;;  %14353 = vst [vmem:[#allocation17_spill] sm:$0xff] %v11811_v0  ;;  %v11817_v15 = vld [vmem:[#allocation2 + $0xac] sm:$0xf]  ;;  %v2130_v3 = vrot.slane %v11834_v4, 5  ;;  %v1365_v62 = vld [vmem:[#allocation2 + $0x78] sm:$0xe] }
 0x1cd   : > { %v2489_v32 = vshll.u32 %v11817_v15, 16  ;;  %v2493_v28 = vshrl.u32 %v11817_v15, 16  ;;  %v3349_v10 = vpack.c.b16 %v3324_v46, %v3323_v14  ;;  %v1756_v13 = vrot.slane %v1754_v8, 5 }
 0x1ce   : > { %v2131_v44 = vsel %vm11264_vm0, %v9306_v21, %v2130_v3  ;;  %v9315_v8 = vrot.slane %v2582_v23, 9  ;;  %v11872_v23 = vld [vmem:[#allocation2 + $0xb8] sm:$0xf] }
 0x1cf   : > { %v2491_v53 = vrot.slane %v2489_v32, 5  ;;  %v2495_v35 = vrot.slane %v2493_v28, 4  ;;  %v3514_v32 = vsel %vm3359_vm1, %v3077_v48, %v3148_v9  ;;  %9666 = vmatmul.msk.bf16.gmra.mxu0 %vm3359_vm1, %v3349_v10  ;;  %v1751_v28 = vshrl.u32 %v1548_v19, 16 }
 0x1d0   : > { %v2132_v9 = vrot.slane %v2130_v3, 4  ;;  %v3115_v48 = vunpack.c.l.b16 %v2131_v44  ;;  %v9286_v3 = vrot.slane %v1365_v62, 9 }
 0x1d1   : > { %v11827_v31 = vpop.f32.mrf.mxu1  ;;  %v2492_v14 = vsel %vm10993_vm13, %v2487_v58, %v2491_v53  ;;  %v1753_v46 = vrot.slane %v1751_v28, 4 }
 0x1d2   : > { %v11832_v25 = vpop.f32.mrf.mxu3  ;;  %v3255_v45 = vunpack.c.l.b16 %v2492_v14  ;;  %v2134_v21 = vsel %vm11264_vm0, %v2132_v9, %v2133_v18  ;;  %v10129_v9 = vld [vmem:[#allocation2 + $0x60] sm:$0xff] }
 0x1d3   : > { %14354 = vst [vmem:[#allocation18_spill] sm:$0xff] %v11832_v25  ;;  %v11838_v5 = vpop.f32.mrf.mxu0  ;;  %v2496_v25 = vor.u32 %v2495_v35, %v2491_v53  ;;  %v1762_v35 = vrot.slane %v1760_v52, 5  ;;  %v10542_v53 = vld [vmem:[#allocation2 + $0x74] sm:$0x1]  ;;  %v3116_v10 = vunpack.c.l.b16 %v2134_v21 }
 0x1d5   : > { %4168 = vmatmul.bf16.gmra.mxu2 %v3514_v32  ;;  %v2497_v6 = vrot.slane %v2496_v25, 4  ;;  %v2693_v25 = vrot.slane %v10542_v53, 5  ;;  %v1757_v32 = vor.u32 %v1756_v13, %v1753_v46  ;;  %v1767_v58 = vor.u32 %v1766_v38, %v1762_v35 }
 0x1d6   : > { %v11843_v56 = vpop.f32.mrf.mxu2  ;;  %v752_v53 = vrot.slane %v11751_v42, 4 }
 0x1d7   : > { %4252 = vmatmul.bf16.gmra.mxu3 %v3574_v12  ;;  %14355 = vst [vmem:[#allocation19_spill] sm:$0xff] %v11843_v56  ;;  %v2502_v19 = vsel %vm10993_vm13, %v2497_v6, %v2501_v43  ;;  %v1772_v12 = vrot.slane %v1770_v30, 5  ;;  %v10543_v43 = vld [vmem:[#allocation2 + $0x7c] sm:$0xf]  ;;  %v10544_v6 = vld [vmem:[#allocation2 + $0x70] sm:$0xf] }
 0x1d8   : > { %v3256_v39 = vunpack.c.l.b16 %v2502_v19  ;;  %v1494_v14 = vrot.slane %v10543_v43, 5  ;;  %v2690_v52 = vrot.slane %v10544_v6, 5  ;;  %v3133_v19 = vpack.c.b16 %v3116_v10, %v3115_v48  ;;  %v11880_v43 = vld [vmem:[#allocation2 + $0xbc] sm:$0x1] }
 0x1d9   : > { %v11849_v1 = vpop.f32.mrf.mxu1  ;;  %v1768_v20 = vrot.slane %v1767_v58, 4 }
 0x1da   : > { %v11853_v51 = vpop.f32.mrf.mxu3  ;;  %v3275_v28 = vpack.c.b16 %v3256_v39, %v3255_v45  ;;  %v1495_v30 = vsel %vm11264_vm0, %v9286_v3, %v1494_v14  ;;  %v1496_v18 = vrot.slane %v1494_v14, 4  ;;  %v2692_v38 = vrot.slane %v2690_v52, 4  ;;  %v2169_v45 = vld [vmem:[#allocation2 + $0xb4] sm:$0xf]  ;;  %3163 = vrot.lane.b32.xlu1 %v3133_v19, %s10706_s18  ;;  %v3292_v39 = vpop.permute.xlu2 %3291  ;;  %v10545_v14 = vld [vmem:[#allocation2 + $0x70] sm:$0xf] }
 0x1db   : > { %14356 = vst [vmem:[#allocation20_spill] sm:$0xff] %v11853_v51  ;;  %v11857_v44 = vpop.f32.mrf.mxu0  ;;  %v1758_v51 = vrot.slane %v1757_v32, 4  ;;  %v1773_v62 = vsel %vm10993_vm13, %v1768_v20, %v1772_v12  ;;  %v2915_v48 = vunpack.c.l.b16 %v1495_v30  ;;  %v14359_v32 = vrot.slane %v11797_v33, 5 }
 0x1dc   : > { %4094 = vmatmul.bf16.gmra.mxu1 %v3462_v26  ;;  %14357 = vst [vmem:[#allocation21_spill] sm:$0xff] %v11857_v44  ;;  %3303 = vrot.lane.b32.xlu2 %v3275_v28, %s10706_s18  ;;  %v2691_v26 = vsel %vm11264_vm0, %v9315_v8, %v2690_v52  ;;  %v3054_v10 = vunpack.c.l.b16 %v1773_v62  ;;  %v2694_v3 = vsel %vm11264_vm0, %v2692_v38, %v2693_v25  ;;  %v3150_v28 = vpop.permute.xlu1 %3149  ;;  %v2504_v20 = vshrl.u32 %v2169_v45, 16  ;;  %v1981_v62 = vld [vmem:[#allocation2 + $0xc0] sm:$0xe] }
 0x1dd   : > { %v1763_v42 = vsel %vm10993_vm13, %v1758_v51, %v1762_v35  ;;  %v3325_v13 = vunpack.c.l.b16 %v2691_v26  ;;  %v1498_v58 = vsel %vm11264_vm0, %v1496_v18, %v14359_v32  ;;  %v3326_v51 = vunpack.c.l.b16 %v2694_v3  ;;  %v917_v18 = vld [vmem:[#allocation2 + $0xc8] sm:$0x1] }
 0x1de   : > { %v11865_v46 = vpop.f32.mrf.mxu2  ;;  %v3053_v21 = vunpack.c.l.b16 %v1763_v42  ;;  %v2916_v35 = vunpack.c.l.b16 %v1498_v58  ;;  %v2507_v12 = vshll.u32 %v2169_v45, 16  ;;  %v1788_v8 = vshrl.u32 %v10545_v14, 16 }
 0x1df   : > { %14358 = vst [vmem:[#allocation22_spill] sm:$0xff] %v11865_v46  ;;  %v2513_v19 = vshll.u32 %v11872_v23, 16  ;;  %v2517_v30 = vshrl.u32 %v11872_v23, 16  ;;  %v3578_v25 = vsel %vm3359_vm1, %v10129_v9, %v3292_v39  ;;  %v3350_v26 = vpack.c.b16 %v3326_v51, %v3325_v13  ;;  %v11893_v46 = vld [vmem:[#allocation2 + $0xc4] sm:$0xf]  ;;  %v3028_v39 = vpop.permute.xlu0 %3027 }
 0x1e0   : > { %v3078_v33 = vpack.c.b16 %v3054_v10, %v3053_v21  ;;  %v2506_v38 = vrot.slane %v2504_v20, 4  ;;  %v2509_v42 = vrot.slane %v2507_v12, 5  ;;  %v2523_v3 = vshll.u32 %v11880_v43, 16  ;;  %14361 = vst [vmem:[#allocation24_spill] sm:$0xff] %v11893_v46  ;;  %v11895_v9 = vld [vmem:[#allocation2 + $0x7c] sm:$0xf] }
 0x1e1   : > { %v11884_v52 = vpop.f32.mrf.mxu1  ;;  %v2515_v32 = vrot.slane %v2513_v19, 5  ;;  %v2519_v58 = vrot.slane %v2517_v30, 4  ;;  %v1794_v21 = vshll.u32 %v10546_v7, 16  ;;  %v2937_v10 = vpack.c.b16 %v2916_v35, %v2915_v48  ;;  %9667 = vmatmul.msk.bf16.gmra.mxu0 %vm3359_vm1, %v3350_v26  ;;  %v11901_v48 = vld [vmem:[#allocation2 + $0x80] sm:$0x1] }
 0x1e2   : > { %v11882_v6 = vpop.f32.mrf.mxu3  ;;  %v3518_v45 = vsel %vm3359_vm1, %v3078_v33, %v3150_v28  ;;  %v2510_v61 = vor.u32 %v2509_v42, %v2506_v38  ;;  %v918_v63 = vsel %vm10938_vm10, %v752_v53, %v917_v18  ;;  %v2525_v51 = vrot.slane %v2523_v3, 5  ;;  %v11904_v33 = vld [vmem:[#allocation2 + $0x80] sm:$0x1]  ;;  %v1366_v38 = vld [vmem:[#allocation2 + $0x84] sm:$0xe] }
 0x1e3   : > { %14360 = vst [vmem:[#allocation23_spill] sm:$0xff] %v11882_v6  ;;  %v1550_v6 = vld [vmem:[#allocation2 + $0x6c] sm:$0xf]  ;;  %v2520_v28 = vor.u32 %v2519_v58, %v2515_v32  ;;  %v9307_v20 = vrot.slane %v1981_v62, 9  ;;  %v11899_v7 = vpop.f32.mrf.mxu0  ;;  %v2700_v19 = vrot.slane %v11904_v33, 5  ;;  %v1784_v26 = vshll.u32 %v10545_v14, 16 }
 0x1e4   : > { %919 = vst [vmem:[#allocation2 + $0xc8] sm:$0x1] %v918_v63  ;;  %v2511_v53 = vrot.slane %v2510_v61, 4  ;;  %v1775_v35 = vshrl.u32 %v1550_v6, 16  ;;  %v1778_v12 = vshll.u32 %v1550_v6, 16  ;;  %v2137_v63 = vrot.slane %v11893_v46, 5 }
 0x1e5   : > { %4173 = vmatmul.bf16.gmra.mxu2 %v3518_v45  ;;  %v2521_v18 = vrot.slane %v2520_v28, 4  ;;  %v3466_v42 = vsel %vm3359_vm1, %v2937_v10, %v3028_v39  ;;  %v1790_v61 = vrot.slane %v1788_v8, 4  ;;  %v2583_v45 = vld [vmem:[#allocation2 + $0x78] sm:$0xe]  ;;  %v1796_v33 = vrot.slane %v1794_v21, 5 }
 0x1e6   : > { %v2516_v62 = vsel %vm10993_vm13, %v2511_v53, %v2515_v32  ;;  %v2138_v28 = vsel %vm11264_vm0, %v9307_v20, %v2137_v63  ;;  %v1780_v22 = vrot.slane %v1778_v12, 5  ;;  %v1786_v13 = vrot.slane %v1784_v26, 5  ;;  %v2171_v39 = vld [vmem:[#allocation2 + $0xc0] sm:$0xf]  ;;  %v10550_v32 = vld [vmem:[#allocation2 + $0x88] sm:$0xf] }
 0x1e7   : > { %4257 = vmatmul.bf16.gmra.mxu3 %v3578_v25  ;;  %v1777_v25 = vrot.slane %v1775_v35, 4  ;;  %v2526_v58 = vsel %vm10993_vm13, %v2521_v18, %v2525_v51  ;;  %v3257_v3 = vunpack.c.l.b16 %v2516_v62  ;;  %v9287_v10 = vrot.slane %v1366_v38, 9 }
 0x1e8   : > { %v11907_v30 = vpop.f32.mrf.mxu2  ;;  %v3258_v14 = vunpack.c.l.b16 %v2526_v58  ;;  %v2139_v8 = vrot.slane %v2137_v63, 4  ;;  %v1501_v53 = vrot.slane %v10550_v32, 5  ;;  %v9316_v35 = vrot.slane %v2583_v45, 9  ;;  %v10130_v58 = vld [vmem:[#allocation2 + $0x6c] sm:$0xff]  ;;  %v3294_v32 = vpop.permute.xlu2 %3293 }
 0x1e9   : > { %14362 = vst [vmem:[#allocation25_spill] sm:$0xff] %v11907_v30  ;;  %v11919_v30 = vpop.f32.mrf.mxu1  ;;  %v3117_v62 = vunpack.c.l.b16 %v2138_v28  ;;  %v1781_v20 = vor.u32 %v1780_v22, %v1777_v25  ;;  %v1791_v21 = vor.u32 %v1790_v61, %v1786_v13  ;;  %v14366_v25 = vrot.slane %v11800_v36, 5 }
 0x1ea   : > { %v11913_v6 = vpop.f32.mrf.mxu3  ;;  %v3276_v51 = vpack.c.b16 %v3258_v14, %v3257_v3  ;;  %v1502_v26 = vsel %vm11264_vm0, %v9287_v10, %v1501_v53  ;;  %v1503_v38 = vrot.slane %v1501_v53, 4  ;;  %v2531_v14 = vshll.u32 %v2171_v39, 16 }
 0x1eb   : > { %14363 = vst [vmem:[#allocation26_spill] sm:$0xff] %v11913_v6  ;;  %v10551_v6 = vld [vmem:[#allocation2 + $0x7c] sm:$0xf]  ;;  %v11921_v18 = vld [vmem:[#allocation2 + $0xc8] sm:$0x1]  ;;  %v11926_v63 = vpop.f32.mrf.mxu0  ;;  %v1782_v45 = vrot.slane %v1781_v20, 4  ;;  %v2917_v3 = vunpack.c.l.b16 %v1502_v26  ;;  %v3582_v36 = vsel %vm3359_vm1, %v10130_v58, %v3294_v32 }
 0x1ec   : > { %4099 = vmatmul.bf16.gmra.mxu1 %v3466_v42  ;;  %v2697_v56 = vrot.slane %v10551_v6, 5  ;;  %14364 = vst [vmem:[#allocation27_spill] sm:$0xff] %v11921_v18  ;;  %v2140_v12 = vrot.slane %v11921_v18, 5  ;;  %v2528_v42 = vshrl.u32 %v2171_v39, 16  ;;  %3305 = vrot.lane.b32.xlu2 %v3276_v51, %s10706_s18  ;;  %v1792_v6 = vrot.slane %v1791_v21, 4 }
 0x1ed   : > { %v1505_v61 = vsel %vm11264_vm0, %v1503_v38, %v14366_v25  ;;  %v1787_v51 = vsel %vm10993_vm13, %v1782_v45, %v1786_v13  ;;  %v11943_v21 = vld [vmem:[#allocation2 + $0xc4] sm:$0xf] }
 0x1ee   : > { %v2141_v22 = vsel %vm11264_vm0, %v2139_v8, %v2140_v12  ;;  %v2698_v10 = vsel %vm11264_vm0, %v9316_v35, %v2697_v56  ;;  %v2699_v53 = vrot.slane %v2697_v56, 4  ;;  %v1797_v39 = vsel %vm10993_vm13, %v1792_v6, %v1796_v33  ;;  %v11950_v56 = vld [vmem:[#allocation2 + $0xc8] sm:$0x1] }
 0x1ef   : > { %v3118_v0 = vunpack.c.l.b16 %v2141_v22  ;;  %v2918_v20 = vunpack.c.l.b16 %v1505_v61  ;;  %v3055_v12 = vunpack.c.l.b16 %v1787_v51  ;;  %v3056_v26 = vunpack.c.l.b16 %v1797_v39  ;;  %14368 = vst [vmem:[#allocation30_spill] sm:$0xff] %v11950_v56  ;;  %v3152_v22 = vpop.permute.xlu1 %3151 }
 0x1f0   : > { %v11929_v28 = vpop.f32.mrf.mxu2  ;;  %v2701_v35 = vsel %vm11264_vm0, %v2699_v53, %v2700_v19  ;;  %v3327_v45 = vunpack.c.l.b16 %v2698_v10  ;;  %v2530_v6 = vrot.slane %v2528_v42, 4  ;;  %v2533_v61 = vrot.slane %v2531_v14, 5  ;;  %v3030_v19 = vpop.permute.xlu0 %3029 }
 0x1f1   : > { %14365 = vst [vmem:[#allocation28_spill] sm:$0xff] %v11929_v28  ;;  %v3134_v38 = vpack.c.b16 %v3118_v0, %v3117_v62  ;;  %v2938_v13 = vpack.c.b16 %v2918_v20, %v2917_v3  ;;  %v3328_v25 = vunpack.c.l.b16 %v2701_v35  ;;  %v3079_v33 = vpack.c.b16 %v3056_v26, %v3055_v12  ;;  %v11959_v3 = vld [vmem:[#allocation2 + $0x8c] sm:$0x1]  ;;  %v11962_v14 = vpop.f32.mrf.mxu1 }
 0x1f2   : > { %v11945_v8 = vpop.f32.mrf.mxu3  ;;  %v2537_v28 = vshll.u32 %v11943_v21, 16  ;;  %v2541_v0 = vshrl.u32 %v11943_v21, 16  ;;  %v2547_v62 = vshll.u32 %v11950_v56, 16  ;;  %v2534_v53 = vor.u32 %v2533_v61, %v2530_v6  ;;  %v11967_v20 = vld [vmem:[#allocation2 + $0x8c] sm:$0x1] }
 0x1f3   : > { %14367 = vst [vmem:[#allocation29_spill] sm:$0xff] %v11945_v8  ;;  %v1552_v8 = vld [vmem:[#allocation2 + $0x78] sm:$0xf]  ;;  %3165 = vrot.lane.b32.xlu1 %v3134_v38, %s10706_s18  ;;  %v3351_v32 = vpack.c.b16 %v3328_v25, %v3327_v45  ;;  %v3522_v10 = vsel %vm3359_vm1, %v3079_v33, %v3152_v22  ;;  %v11965_v39 = vpop.f32.mrf.mxu0  ;;  %v1367_v45 = vld [vmem:[#allocation2 + $0x90] sm:$0xe]  ;;  %v3470_v42 = vsel %vm3359_vm1, %v2938_v13, %v3030_v19  ;;  %v14369_v33 = vshrl.u32 %v11895_v9, 16 }
 0x1f4   : > { %v2539_v51 = vrot.slane %v2537_v28, 5  ;;  %v2543_v26 = vrot.slane %v2541_v0, 4  ;;  %v1799_v35 = vshrl.u32 %v1552_v8, 16  ;;  %v1802_v38 = vshll.u32 %v1552_v8, 16  ;;  %v2584_v0 = vld [vmem:[#allocation2 + $0x84] sm:$0xe] }
 0x1f5   : > { %4178 = vmatmul.bf16.gmra.mxu2 %v3522_v10  ;;  %9668 = vmatmul.msk.bf16.gmra.mxu0 %vm3359_vm1, %v3351_v32  ;;  %v2535_v22 = vrot.slane %v2534_v53, 4  ;;  %v1808_v28 = vshll.u32 %v11895_v9, 16  ;;  %v1814_v6 = vrot.slane %v14369_v33, 4  ;;  %v2549_v58 = vrot.slane %v2547_v62, 5  ;;  %v10555_v9 = vld [vmem:[#allocation2 + $0x94] sm:$0xf] }
 0x1f6   : > { %v2544_v61 = vor.u32 %v2543_v26, %v2539_v51  ;;  %v1804_v10 = vrot.slane %v1802_v38, 5  ;;  %v14371_v13 = vshll.u32 %v11901_v48, 16  ;;  %v9288_v32 = vrot.slane %v1367_v45, 9  ;;  %v10556_v26 = vld [vmem:[#allocation2 + $0x98] sm:$0x1] }
 0x1f7   : > { %4262 = vmatmul.bf16.gmra.mxu3 %v3582_v36  ;;  %v1801_v36 = vrot.slane %v1799_v35, 4  ;;  %v2540_v8 = vsel %vm10993_vm13, %v2535_v22, %v2539_v51  ;;  %v1810_v29 = vrot.slane %v1808_v28, 5  ;;  %v1508_v33 = vrot.slane %v10555_v9, 5  ;;  %v10131_v28 = vld [vmem:[#allocation2 + $0x78] sm:$0xff] }
 0x1f8   : > { %v11970_v25 = vpop.f32.mrf.mxu2  ;;  %v1820_v19 = vrot.slane %v14371_v13, 5  ;;  %v2545_v53 = vrot.slane %v2544_v61, 4  ;;  %v3259_v49 = vunpack.c.l.b16 %v2540_v8  ;;  %v1511_v35 = vrot.slane %v10556_v26, 5  ;;  %v2173_v13 = vld [vmem:[#allocation2 + $0xcc] sm:$0xf] }
 0x1f9   : > { %v1805_v34 = vor.u32 %v1804_v10, %v1801_v36  ;;  %v1815_v62 = vor.u32 %v1814_v6, %v1810_v29  ;;  %v9317_v38 = vrot.slane %v2584_v0, 9  ;;  %v1509_v48 = vsel %vm11264_vm0, %v9288_v32, %v1508_v33  ;;  %v3296_v0 = vpop.permute.xlu2 %3295  ;;  %v11995_v32 = vpop.f32.mrf.mxu1  ;;  %v1368_v56 = vld [vmem:[#allocation2 + $0x9c] sm:$0xe] }
 0x1fa   : > { %v11977_v12 = vpop.f32.mrf.mxu3  ;;  %v2550_v51 = vsel %vm10993_vm13, %v2545_v53, %v2549_v58  ;;  %v1510_v45 = vrot.slane %v1508_v33, 4  ;;  %v2919_v10 = vunpack.c.l.b16 %v1509_v48  ;;  %v14372_v48 = vrot.slane %v11967_v20, 5 }
 0x1fb   : > { %14370 = vst [vmem:[#allocation31_spill] sm:$0xff] %v11977_v12  ;;  %v2704_v12 = vrot.slane %v10557_v17, 5  ;;  %v1806_v22 = vrot.slane %v1805_v34, 4  ;;  %v3260_v61 = vunpack.c.l.b16 %v2550_v51  ;;  %v1816_v36 = vrot.slane %v1815_v62, 4  ;;  %v11989_v6 = vpop.f32.mrf.mxu0  ;;  %v12003_v51 = vld [vmem:[#allocation2 + $0x94] sm:$0xf] }
 0x1fc   : > { %4104 = vmatmul.bf16.gmra.mxu1 %v3470_v42  ;;  %v1512_v34 = vsel %vm11264_vm0, %v1510_v45, %v1511_v35  ;;  %v12006_v35 = vld [vmem:[#allocation2 + $0x98] sm:$0x1]  ;;  %v12013_v45 = vld [vmem:[#allocation2 + $0xd4] sm:$0x1] }
 0x1fd   : > { %v2705_v42 = vsel %vm11264_vm0, %v9317_v38, %v2704_v12  ;;  %v1811_v17 = vsel %vm10993_vm13, %v1806_v22, %v1810_v29  ;;  %v2706_v58 = vrot.slane %v2704_v12, 4  ;;  %v3277_v9 = vpack.c.b16 %v3260_v61, %v3259_v49  ;;  %v12001_v38 = vld [vmem:[#allocation2 + $0xd0] sm:$0xf] }
 0x1fe   : > { %v3329_v8 = vunpack.c.l.b16 %v2705_v42  ;;  %v1821_v33 = vsel %vm10993_vm13, %v1816_v36, %v1820_v19  ;;  %v3057_v62 = vunpack.c.l.b16 %v1811_v17  ;;  %v2920_v26 = vunpack.c.l.b16 %v1512_v34  ;;  %v3154_v42 = vpop.permute.xlu1 %3153 }
 0x1ff   : > { %v3058_v22 = vunpack.c.l.b16 %v1821_v33  ;;  %v2708_v49 = vsel %vm11264_vm0, %v2706_v58, %v14372_v48  ;;  %v3586_v36 = vsel %vm3359_vm1, %v10131_v28, %v3296_v0  ;;  %3307 = vrot.lane.b32.xlu2 %v3277_v9, %s10706_s18  ;;  %v2552_v34 = vshrl.u32 %v2173_v13, 16  ;;  %v1554_v58 = vld [vmem:[#allocation2 + $0x84] sm:$0xf]  ;;  %v3032_v28 = vpop.permute.xlu0 %3031 }
 0x200   : > { %v11997_v53 = vpop.f32.mrf.mxu2  ;;  %v3330_v17 = vunpack.c.l.b16 %v2708_v49  ;;  %v2555_v33 = vshll.u32 %v2173_v13, 16  ;;  %v2561_v20 = vshll.u32 %v12001_v38, 16  ;;  %v2565_v29 = vshrl.u32 %v12001_v38, 16 }
 0x201   : > { %v3080_v12 = vpack.c.b16 %v3058_v22, %v3057_v62  ;;  %v2939_v48 = vpack.c.b16 %v2920_v26, %v2919_v10  ;;  %v2554_v44 = vrot.slane %v2552_v34, 4  ;;  %v2571_v19 = vshll.u32 %v12013_v45, 16 }
 0x202   : > { %v12016_v61 = vpop.f32.mrf.mxu3  ;;  %v3352_v18 = vpack.c.b16 %v3330_v17, %v3329_v8  ;;  %v2557_v0 = vrot.slane %v2555_v33, 5  ;;  %v2563_v9 = vrot.slane %v2561_v20, 5  ;;  %v2567_v46 = vrot.slane %v2565_v29, 4 }
 0x203   : > { %14373 = vst [vmem:[#allocation32_spill] sm:$0xff] %v12016_v61  ;;  %v3526_v61 = vsel %vm3359_vm1, %v3080_v12, %v3154_v42  ;;  %v4051_v62 = vadd.f32 %v11795_v41, %v11647_v37  ;;  %v2573_v13 = vrot.slane %v2571_v19, 5  ;;  %v1823_v22 = vshrl.u32 %v1554_v58, 16  ;;  %v12034_v19 = vpop.f32.mrf.mxu0 }
 0x204   : > { %v1826_v49 = vshll.u32 %v1554_v58, 16  ;;  %v2558_v10 = vor.u32 %v2557_v0, %v2554_v44  ;;  %v2568_v8 = vor.u32 %v2567_v46, %v2563_v9  ;;  %v1832_v26 = vshll.u32 %v11953_v11, 16  ;;  %v10560_v0 = vld [vmem:[#allocation2 + $0xa0] sm:$0xf] }
 0x205   : > { %4183 = vmatmul.bf16.gmra.mxu2 %v3526_v61  ;;  %v14374_v17 = vshrl.u32 %v11953_v11, 16  ;;  %v4140_v42 = vadd.f32 %v11970_v25, %v4051_v62  ;;  %v3474_v29 = vsel %vm3359_vm1, %v2939_v48, %v3032_v28  ;;  %9669 = vmatmul.msk.bf16.gmra.mxu0 %vm3359_vm1, %v3352_v18  ;;  %v1825_v37 = vrot.slane %v1823_v22, 4  ;;  %v12036_v11 = vpop.f32.mrf.mxu1  ;;  %v10561_v28 = vld [vmem:[#allocation2 + $0xa4] sm:$0x1] }
 0x206   : > { %v1828_v41 = vrot.slane %v1826_v49, 5  ;;  %v2559_v44 = vrot.slane %v2558_v10, 4  ;;  %v2569_v46 = vrot.slane %v2568_v8, 4  ;;  %v1834_v61 = vrot.slane %v1832_v26, 5  ;;  %v2585_v10 = vld [vmem:[#allocation2 + $0x90] sm:$0xe] }
 0x207   : > { %4267 = vmatmul.bf16.gmra.mxu3 %v3586_v36  ;;  %v1838_v12 = vrot.slane %v14374_v17, 4  ;;  %v9289_v36 = vrot.slane %v1368_v56, 9  ;;  %v14375_v25 = vshll.u32 %v11959_v3, 16  ;;  %v1515_v48 = vrot.slane %v10560_v0, 5 }
 0x208   : > { %v12030_v34 = vpop.f32.mrf.mxu2  ;;  %v1829_v20 = vor.u32 %v1828_v41, %v1825_v37  ;;  %v1518_v18 = vrot.slane %v10561_v28, 5  ;;  %v2564_v22 = vsel %vm10993_vm13, %v2559_v44, %v2563_v9  ;;  %v2574_v49 = vsel %vm10993_vm13, %v2569_v46, %v2573_v13  ;;  %v10562_v46 = vld [vmem:[#allocation2 + $0x94] sm:$0xf] }
 0x209   : > { %v1844_v58 = vrot.slane %v14375_v25, 5  ;;  %v1839_v56 = vor.u32 %v1838_v12, %v1834_v61  ;;  %v4053_v8 = vadd.f32 %v11827_v31, %v11679_v24  ;;  %v3261_v3 = vunpack.c.l.b16 %v2564_v22  ;;  %v1556_v31 = vld [vmem:[#allocation2 + $0x90] sm:$0xf]  ;;  %v10132_v25 = vld [vmem:[#allocation2 + $0x84] sm:$0xff] }
 0x20a   : > { %v4228_v33 = vpop.f32.mrf.mxu3  ;;  %v3262_v26 = vunpack.c.l.b16 %v2574_v49  ;;  %v1830_v17 = vrot.slane %v1829_v20, 4  ;;  %v1516_v41 = vsel %vm11264_vm0, %v9289_v36, %v1515_v48  ;;  %v1517_v9 = vrot.slane %v1515_v48, 4 }
 0x20b   : > { %v4229_v62 = vadd.f32 %v4228_v33, %v4140_v42  ;;  %v1840_v42 = vrot.slane %v1839_v56, 4  ;;  %v9318_v12 = vrot.slane %v2585_v10, 9  ;;  %v2711_v24 = vrot.slane %v10562_v46, 5 }
 0x20c   : > { %4109 = vmatmul.bf16.gmra.mxu1 %v3474_v29  ;;  %v3278_v44 = vpack.c.b16 %v3262_v26, %v3261_v3  ;;  %v1835_v13 = vsel %vm10993_vm13, %v1830_v17, %v1834_v61  ;;  %v1519_v36 = vsel %vm11264_vm0, %v1517_v9, %v1518_v18  ;;  %v4142_v20 = vadd.f32 %v11997_v53, %v4053_v8  ;;  %v3156_v53 = vpop.permute.xlu1 %3155 }
 0x20d   : > { %v12048_v37 = vadd.f32 %v11899_v7, %v4229_v62  ;;  %v1845_v7 = vsel %vm10993_vm13, %v1840_v42, %v1844_v58  ;;  %v3059_v33 = vunpack.c.l.b16 %v1835_v13  ;;  %v2712_v48 = vsel %vm11264_vm0, %v9318_v12, %v2711_v24  ;;  %v12066_v62 = vpop.f32.mrf.mxu0  ;;  %v3298_v58 = vpop.permute.xlu2 %3297 }
 0x20e   : > { %3309 = vrot.lane.b32.xlu2 %v3278_v44, %s10706_s18  ;;  %v3060_v61 = vunpack.c.l.b16 %v1845_v7  ;;  %v2713_v28 = vrot.slane %v2711_v24, 4  ;;  %v2921_v18 = vunpack.c.l.b16 %v1516_v41  ;;  %v2922_v22 = vunpack.c.l.b16 %v1519_v36  ;;  %v12081_v41 = vpop.f32.mrf.mxu1 }
 0x20f   : > { %v4516_v29 = vpack.c.bf16 %v12048_v37, %v12048_v37  ;;  %v1847_v49 = vshrl.u32 %v1556_v31, 16  ;;  %v1850_v56 = vshll.u32 %v1556_v31, 16  ;;  %v2721_v10 = vrot.slane %v11771_v60, 5 }
 0x210   : > { %v12061_v0 = vpop.f32.mrf.mxu2  ;;  %v4056_v8 = vadd.f32 %v11849_v1, %v11697_v27  ;;  %v3081_v26 = vpack.c.b16 %v3060_v61, %v3059_v33  ;;  %v3331_v17 = vunpack.c.l.b16 %v2712_v48  ;;  %v14376_v9 = vrot.slane %v11710_v50, 5  ;;  %v1369_v1 = vld [vmem:[#allocation2 + $0xa8] sm:$0xe]  ;;  %v3034_v61 = vpop.permute.xlu0 %3033 }
 0x211   : > { %4551 = vst.msk [vmem:[%s12070_s11] sm:$0xf] %vm802_vm5, %v4516_v29  ;;  %v1849_v13 = vrot.slane %v1847_v49, 4  ;;  %v1852_v12 = vrot.slane %v1850_v56, 5  ;;  %v3590_v46 = vsel %vm3359_vm1, %v10132_v25, %v3298_v58  ;;  %v1856_v27 = vshll.u32 %v12003_v51, 16 }
 0x212   : > { %v4230_v3 = vpop.f32.mrf.mxu3  ;;  %v2715_v44 = vsel %vm11264_vm0, %v2713_v28, %v14376_v9  ;;  %v3530_v24 = vsel %vm3359_vm1, %v3081_v26, %v3156_v53  ;;  %v2940_v7 = vpack.c.b16 %v2922_v22, %v2921_v18  ;;  %v14377_v33 = vshrl.u32 %v12003_v51, 16  ;;  %v10563_v53 = vld [vmem:[#allocation2 + $0xac] sm:$0xf]  ;;  %v1558_v56 = vld [vmem:[#allocation2 + $0x9c] sm:$0xf] }
 0x213   : > { %v4231_v42 = vadd.f32 %v4230_v3, %v4142_v20  ;;  %v3332_v31 = vunpack.c.l.b16 %v2715_v44  ;;  %v1853_v50 = vor.u32 %v1852_v12, %v1849_v13  ;;  %v2586_v20 = vld [vmem:[#allocation2 + $0x9c] sm:$0xe]  ;;  %v1858_v28 = vrot.slane %v1856_v27, 5  ;;  %v10564_v51 = vld [vmem:[#allocation2 + $0xb0] sm:$0x1] }
 0x214   : > { %v1862_v36 = vrot.slane %v14377_v33, 4  ;;  %v14378_v25 = vshll.u32 %v12006_v35, 16  ;;  %v1522_v49 = vrot.slane %v10563_v53, 5  ;;  %v9290_v22 = vrot.slane %v1369_v1, 9  ;;  %v10565_v9 = vld [vmem:[#allocation2 + $0xa0] sm:$0xf] }
 0x215   : > { %v12087_v29 = vadd.f32 %v11926_v63, %v4231_v42  ;;  %v3353_v48 = vpack.c.b16 %v3332_v31, %v3331_v17  ;;  %4188 = vmatmul.bf16.gmra.mxu2 %v3530_v24  ;;  %v1854_v18 = vrot.slane %v1853_v50, 4  ;;  %v1525_v3 = vrot.slane %v10564_v51, 5  ;;  %v10566_v31 = vld [vmem:[#allocation2 + $0xa0] sm:$0xf]  ;;  %v12104_v33 = vpop.f32.mrf.mxu0 }
 0x216   : > { %v1868_v58 = vrot.slane %v14378_v25, 5  ;;  %v1863_v17 = vor.u32 %v1862_v36, %v1858_v28  ;;  %v1524_v35 = vrot.slane %v1522_v49, 4  ;;  %v9319_v42 = vrot.slane %v2586_v20, 9 }
 0x217   : > { %v4517_v63 = vpack.c.bf16 %v12087_v29, %v12087_v29  ;;  %4272 = vmatmul.bf16.gmra.mxu3 %v3590_v46  ;;  %9670 = vmatmul.msk.bf16.gmra.mxu0 %vm3359_vm1, %v3353_v48  ;;  %v2718_v44 = vrot.slane %v10565_v9, 5  ;;  %v4145_v13 = vadd.f32 %v12030_v34, %v4056_v8  ;;  %v3478_v12 = vsel %vm3359_vm1, %v2940_v7, %v3034_v61  ;;  %v3300_v9 = vpop.permute.xlu2 %3299 }
 0x218   : > { %v12095_v26 = vpop.f32.mrf.mxu2  ;;  %v1859_v46 = vsel %vm10993_vm13, %v1854_v18, %v1858_v28  ;;  %v1871_v24 = vshrl.u32 %v1558_v56, 16  ;;  %v1884_v27 = vshrl.u32 %v10566_v31, 16  ;;  %v1864_v50 = vrot.slane %v1863_v17, 4  ;;  %v10567_v18 = vld [vmem:[#allocation2 + $0xa4] sm:$0x1] }
 0x219   : > { %4552 = vst.msk [vmem:[%s12070_s11 + $0x4] sm:$0xf] %vm802_vm5, %v4517_v63  ;;  %v3061_v20 = vunpack.c.l.b16 %v1859_v46  ;;  %v1523_v48 = vsel %vm11264_vm0, %v9290_v22, %v1522_v49  ;;  %v2720_v34 = vrot.slane %v2718_v44, 4  ;;  %v1526_v7 = vsel %vm11264_vm0, %v1524_v35, %v1525_v3  ;;  %v10133_v35 = vld [vmem:[#allocation2 + $0x90] sm:$0xff] }
 0x21a   : > { %v4233_v1 = vpop.f32.mrf.mxu3  ;;  %v1869_v8 = vsel %vm10993_vm13, %v1864_v50, %v1868_v58  ;;  %v2719_v61 = vsel %vm11264_vm0, %v9319_v42, %v2718_v44  ;;  %v1874_v28 = vshll.u32 %v1558_v56, 16  ;;  %v1873_v63 = vrot.slane %v1871_v24, 4  ;;  %v12121_v58 = vpop.f32.mrf.mxu1 }
 0x21b   : > { %v4234_v36 = vadd.f32 %v4233_v1, %v4145_v13  ;;  %v3062_v53 = vunpack.c.l.b16 %v1869_v8  ;;  %v2722_v49 = vsel %vm11264_vm0, %v2720_v34, %v2721_v10  ;;  %v1890_v22 = vshll.u32 %v10567_v18, 16 }
 0x21c   : > { %4114 = vmatmul.bf16.gmra.mxu1 %v3478_v12  ;;  %v1876_v51 = vrot.slane %v1874_v28, 5  ;;  %v1880_v3 = vshll.u32 %v10566_v31, 16  ;;  %v1886_v17 = vrot.slane %v1884_v27, 4  ;;  %v4058_v56 = vadd.f32 %v11884_v52, %v11725_v40  ;;  %v3158_v31 = vpop.permute.xlu1 %3157 }
 0x21d   : > { %v12115_v25 = vadd.f32 %v11965_v39, %v4234_v36  ;;  %v2923_v60 = vunpack.c.l.b16 %v1523_v48  ;;  %v2924_v42 = vunpack.c.l.b16 %v1526_v7  ;;  %v3082_v44 = vpack.c.b16 %v3062_v53, %v3061_v20  ;;  %v12134_v8 = vpop.f32.mrf.mxu0  ;;  %v1560_v7 = vld [vmem:[#allocation2 + $0xa8] sm:$0xf] }
 0x21e   : > { %v3333_v13 = vunpack.c.l.b16 %v2719_v61  ;;  %v3334_v12 = vunpack.c.l.b16 %v2722_v49  ;;  %v1882_v46 = vrot.slane %v1880_v3, 5  ;;  %v4147_v24 = vadd.f32 %v12061_v0, %v4058_v56  ;;  %v3036_v0 = vpop.permute.xlu0 %3035  ;;  %v2587_v3 = vld [vmem:[#allocation2 + $0xa8] sm:$0xe]  ;;  %v10569_v56 = vld [vmem:[#allocation2 + $0xb8] sm:$0xf] }
 0x21f   : > { %v4518_v39 = vpack.c.bf16 %v12115_v25, %v12115_v25  ;;  %v1877_v27 = vor.u32 %v1876_v51, %v1873_v63  ;;  %v3594_v50 = vsel %vm3359_vm1, %v10133_v35, %v3300_v9  ;;  %v3534_v36 = vsel %vm3359_vm1, %v3082_v44, %v3158_v31  ;;  %v10568_v63 = vld [vmem:[#allocation2 + $0xac] sm:$0xf]  ;;  %v10570_v31 = vld [vmem:[#allocation2 + $0xbc] sm:$0x1] }
 0x220   : > { %v12127_v10 = vpop.f32.mrf.mxu2  ;;  %v1887_v52 = vor.u32 %v1886_v17, %v1882_v46  ;;  %v2941_v48 = vpack.c.b16 %v2924_v42, %v2923_v60  ;;  %v3354_v34 = vpack.c.b16 %v3334_v12, %v3333_v13  ;;  %v1892_v20 = vrot.slane %v1890_v22, 5 }
 0x221   : > { %4553 = vst.msk [vmem:[%s12070_s11 + $0x8] sm:$0xf] %vm802_vm5, %v4518_v39  ;;  %v1878_v28 = vrot.slane %v1877_v27, 4  ;;  %v2725_v49 = vrot.slane %v11817_v15, 5  ;;  %v1908_v18 = vshrl.u32 %v10568_v63, 16  ;;  %v4061_v51 = vadd.f32 %v11919_v30, %v11741_v2 }
 0x222   : > { %v4235_v40 = vpop.f32.mrf.mxu3  ;;  %v1888_v53 = vrot.slane %v1887_v52, 4  ;;  %v2728_v17 = vrot.slane %v11821_v57, 5  ;;  %v1529_v39 = vrot.slane %v10569_v56, 5  ;;  %v1895_v35 = vshrl.u32 %v1560_v7, 16  ;;  %v12146_v60 = vpop.f32.mrf.mxu1 }
 0x223   : > { %v4236_v1 = vadd.f32 %v4235_v40, %v4147_v24  ;;  %v4150_v15 = vadd.f32 %v12095_v26, %v4061_v51  ;;  %v3482_v2 = vsel %vm3359_vm1, %v2941_v48, %v3036_v0  ;;  %v1898_v57 = vshll.u32 %v1560_v7, 16 }
 0x224   : > { %v1904_v30 = vshll.u32 %v10568_v63, 16  ;;  %v1883_v9 = vsel %vm10993_vm13, %v1878_v28, %v1882_v46  ;;  %v1893_v44 = vsel %vm10993_vm13, %v1888_v53, %v1892_v20  ;;  %v9320_v13 = vrot.slane %v2587_v3, 9  ;;  %v10571_v28 = vld [vmem:[#allocation2 + $0xb0] sm:$0x1]  ;;  %v10134_v3 = vld [vmem:[#allocation2 + $0x9c] sm:$0xff] }
 0x225   : > { %v12137_v61 = vadd.f32 %v11989_v6, %v4236_v1  ;;  %4193 = vmatmul.bf16.gmra.mxu2 %v3534_v36  ;;  %v1370_v6 = vld [vmem:[#allocation2 + $0xb4] sm:$0xe]  ;;  %v2727_v26 = vrot.slane %v2725_v49, 4  ;;  %v1532_v27 = vrot.slane %v10570_v31, 5  ;;  %v1531_v52 = vrot.slane %v1529_v39, 4  ;;  %v12167_v51 = vpop.f32.mrf.mxu0 }
 0x226   : > { %v9291_v24 = vrot.slane %v1370_v6, 9  ;;  %v1897_v1 = vrot.slane %v1895_v35, 4  ;;  %v3063_v36 = vunpack.c.l.b16 %v1883_v9  ;;  %v3064_v48 = vunpack.c.l.b16 %v1893_v44 }
 0x227   : > { %v4519_v22 = vpack.c.bf16 %v12137_v61, %v12137_v61  ;;  %4277 = vmatmul.bf16.gmra.mxu3 %v3594_v50  ;;  %9671 = vmatmul.msk.bf16.gmra.mxu0 %vm3359_vm1, %v3354_v34  ;;  %v1900_v50 = vrot.slane %v1898_v57, 5  ;;  %v1906_v34 = vrot.slane %v1904_v30, 5  ;;  %v1910_v7 = vrot.slane %v1908_v18, 4 }
 0x228   : > { %v12148_v42 = vpop.f32.mrf.mxu2  ;;  %v2726_v20 = vsel %vm11264_vm0, %v9320_v13, %v2725_v49  ;;  %v2729_v0 = vsel %vm11264_vm0, %v2727_v26, %v2728_v17  ;;  %v1914_v53 = vshll.u32 %v10571_v28, 16  ;;  %v4063_v63 = vadd.f32 %v11962_v14, %v11766_v54  ;;  %v3302_v17 = vpop.permute.xlu2 %3301 }
 0x229   : > { %4554 = vst.msk [vmem:[%s12070_s11 + $0xc] sm:$0xf] %vm802_vm5, %v4519_v22  ;;  %v1533_v49 = vsel %vm11264_vm0, %v1531_v52, %v1532_v27  ;;  %v1901_v22 = vor.u32 %v1900_v50, %v1897_v1  ;;  %v3083_v56 = vpack.c.b16 %v3064_v48, %v3063_v36  ;;  %v3335_v35 = vunpack.c.l.b16 %v2726_v20  ;;  %v1562_v1 = vld [vmem:[#allocation2 + $0xb4] sm:$0xf] }
 0x22a   : > { %v4238_v12 = vpop.f32.mrf.mxu3  ;;  %v1911_v54 = vor.u32 %v1910_v7, %v1906_v34  ;;  %v4152_v14 = vadd.f32 %v12127_v10, %v4063_v63  ;;  %v12180_v57 = vpop.f32.mrf.mxu1  ;;  %v2926_v9 = vunpack.c.l.b16 %v1533_v49  ;;  %v3598_v13 = vsel %vm3359_vm1, %v10134_v3, %v3302_v17  ;;  %v2588_v10 = vld [vmem:[#allocation2 + $0xb4] sm:$0xe] }
 0x22b   : > { %v4239_v40 = vadd.f32 %v4238_v12, %v4150_v15  ;;  %v3336_v15 = vunpack.c.l.b16 %v2729_v0  ;;  %v1902_v26 = vrot.slane %v1901_v22, 4  ;;  %v2732_v12 = vrot.slane %v11872_v23, 5 }
 0x22c   : > { %4119 = vmatmul.bf16.gmra.mxu1 %v3482_v2  ;;  %v3160_v2 = vpop.permute.xlu1 %3159  ;;  %v1912_v27 = vrot.slane %v1911_v54, 4  ;;  %v1932_v50 = vshrl.u32 %v11834_v4, 16  ;;  %v2735_v36 = vrot.slane %v11880_v43, 5  ;;  %v4066_v48 = vadd.f32 %v11995_v32, %v11783_v59 }
 0x22d   : > { %v12159_v46 = vadd.f32 %v12034_v19, %v4239_v40  ;;  %v1530_v19 = vsel %vm11264_vm0, %v9291_v24, %v1529_v39  ;;  %v3538_v24 = vsel %vm3359_vm1, %v3083_v56, %v3160_v2  ;;  %v3355_v31 = vpack.c.b16 %v3336_v15, %v3335_v35  ;;  %v12199_v4 = vpop.f32.mrf.mxu0 }
 0x22e   : > { %v2925_v39 = vunpack.c.l.b16 %v1530_v19  ;;  %v1916_v40 = vrot.slane %v1914_v53, 5  ;;  %v1907_v20 = vsel %vm10993_vm13, %v1902_v26, %v1906_v34  ;;  %v2734_v0 = vrot.slane %v2732_v12, 4  ;;  %v10572_v53 = vld [vmem:[#allocation2 + $0xb8] sm:$0xf] }
 0x22f   : > { %v4520_v18 = vpack.c.bf16 %v12159_v46, %v12159_v46  ;;  %v1919_v43 = vshrl.u32 %v1562_v1, 16  ;;  %v1922_v32 = vshll.u32 %v1562_v1, 16  ;;  %v1928_v63 = vshll.u32 %v10572_v53, 16 }
 0x230   : > { %v12175_v6 = vpop.f32.mrf.mxu2  ;;  %v2942_v7 = vpack.c.b16 %v2926_v9, %v2925_v39  ;;  %v1917_v59 = vsel %vm10993_vm13, %v1912_v27, %v1916_v40  ;;  %v3065_v49 = vunpack.c.l.b16 %v1907_v20  ;;  %v2736_v35 = vsel %vm11264_vm0, %v2734_v0, %v2735_v36  ;;  %v10573_v39 = vld [vmem:[#allocation2 + $0xbc] sm:$0x1] }
 0x231   : > { %4555 = vst.msk [vmem:[%s12070_s11 + $0x10] sm:$0xf] %vm802_vm5, %v4520_v18  ;;  %v4155_v18 = vadd.f32 %v12148_v42, %v4066_v48  ;;  %v3066_v17 = vunpack.c.l.b16 %v1917_v59  ;;  %v1921_v54 = vrot.slane %v1919_v43, 4  ;;  %v1924_v42 = vrot.slane %v1922_v32, 5  ;;  %v2589_v32 = vld [vmem:[#allocation2 + $0xc0] sm:$0xe] }
 0x232   : > { %v4240_v30 = vpop.f32.mrf.mxu3  ;;  %v12211_v15 = vpop.f32.mrf.mxu1  ;;  %v1934_v2 = vrot.slane %v1932_v50, 4  ;;  %v1938_v9 = vshll.u32 %v10573_v39, 16  ;;  %v4071_v53 = vadd.f32 %v12081_v41, %v11838_v5  ;;  %v9322_v5 = vrot.slane %v2589_v32, 9 }
 0x233   : > { %v4241_v44 = vadd.f32 %v4240_v30, %v4152_v14  ;;  %v3038_v34 = vpop.permute.xlu0 %3037  ;;  %v1930_v14 = vrot.slane %v1928_v63, 5  ;;  %v3084_v27 = vpack.c.b16 %v3066_v17, %v3065_v49  ;;  %v1925_v40 = vor.u32 %v1924_v42, %v1921_v54  ;;  %v1564_v49 = vld [vmem:[#allocation2 + $0xc0] sm:$0xf]  ;;  %v14380_v42 = vld [vmem:[#allocation24_spill] sm:$0xff] }
 0x234   : > { %v3486_v19 = vsel %vm3359_vm1, %v2942_v7, %v3038_v34  ;;  %v1940_v7 = vrot.slane %v1938_v9, 5  ;;  %v1943_v39 = vshrl.u32 %v1564_v49, 16 }
 0x235   : > { %v12186_v52 = vadd.f32 %v12066_v62, %v4241_v44  ;;  %4198 = vmatmul.bf16.gmra.mxu2 %v3538_v24  ;;  %v9321_v62 = vrot.slane %v2588_v10, 9  ;;  %v4068_v44 = vadd.f32 %v12036_v11, %v11809_v55  ;;  %v10135_v24 = vld [vmem:[#allocation2 + $0xa8] sm:$0xff]  ;;  %v1935_v10 = vor.u32 %v1934_v2, %v1930_v14 }
 0x236   : > { %v3162_v50 = vpop.permute.xlu1 %3161  ;;  %v1956_v2 = vshrl.u32 %v14380_v42, 16 }
 0x237   : > { %v4521_v23 = vpack.c.bf16 %v12186_v52, %v12186_v52  ;;  %4282 = vmatmul.bf16.gmra.mxu3 %v3598_v13  ;;  %9672 = vmatmul.msk.bf16.gmra.mxu0 %vm3359_vm1, %v3355_v31  ;;  %v2733_v56 = vsel %vm11264_vm0, %v9321_v62, %v2732_v12  ;;  %v3338_v12 = vunpack.c.l.b16 %v2736_v35  ;;  %v4157_v1 = vadd.f32 %v12175_v6, %v4068_v44 }
 0x238   : > { %v12196_v28 = vpop.f32.mrf.mxu2  ;;  %v3337_v26 = vunpack.c.l.b16 %v2733_v56  ;;  %v3542_v20 = vsel %vm3359_vm1, %v3084_v27, %v3162_v50  ;;  %v1926_v62 = vrot.slane %v1925_v40, 4  ;;  %v1936_v0 = vrot.slane %v1935_v10, 4  ;;  %v10136_v10 = vld [vmem:[#allocation2 + $0xb4] sm:$0xff] }
 0x239   : > { %4556 = vst.msk [vmem:[%s12070_s11 + $0x14] sm:$0xf] %vm802_vm5, %v4521_v23  ;;  %v2739_v6 = vrot.slane %v11943_v21, 5  ;;  %v1945_v50 = vrot.slane %v1943_v39, 4 }
 0x23a   : > { %v4243_v3 = vpop.f32.mrf.mxu3  ;;  %v3356_v11 = vpack.c.b16 %v3338_v12, %v3337_v26  ;;  %v12231_v43 = vpop.f32.mrf.mxu1  ;;  %v1941_v21 = vsel %vm10993_vm13, %v1936_v0, %v1940_v7  ;;  %v14381_v26 = vld [vmem:[#allocation21_spill] sm:$0xff] }
 0x23b   : > { %v4244_v22 = vadd.f32 %v4243_v3, %v4155_v18  ;;  %v12223_v48 = vpop.f32.mrf.mxu0  ;;  %v14379_v18 = vld [vmem:[#allocation30_spill] sm:$0xff]  ;;  %v2741_v41 = vrot.slane %v2739_v6, 4  ;;  %v3068_v54 = vunpack.c.l.b16 %v1941_v21  ;;  %v4073_v12 = vadd.f32 %v12121_v58, %v14381_v26 }
 0x23c   : > { %4124 = vmatmul.bf16.gmra.mxu1 %v3486_v19  ;;  %v2742_v34 = vrot.slane %v14379_v18, 5  ;;  %v4160_v19 = vadd.f32 %v12196_v28, %v4071_v53  ;;  %v2740_v28 = vsel %vm11264_vm0, %v9322_v5, %v2739_v6  ;;  %v2746_v21 = vrot.slane %v12001_v38, 5  ;;  %v14383_v5 = vld [vmem:[#allocation7_spill] sm:$0xff] }
 0x23d   : > { %v12214_v30 = vadd.f32 %v12104_v33, %v4244_v22  ;;  %v3304_v33 = vpop.permute.xlu2 %3303 }
 0x23e   : > { %v3602_v23 = vsel %vm3359_vm1, %v10135_v24, %v3304_v33  ;;  %v2743_v44 = vsel %vm11264_vm0, %v2741_v41, %v2742_v34  ;;  %v4076_v41 = vadd.f32 %v12146_v60, %v14383_v5 }
 0x23f   : > { %v4522_v13 = vpack.c.bf16 %v12214_v30, %v12214_v30  ;;  %v3340_v33 = vunpack.c.l.b16 %v2743_v44 }
 0x240   : > { %v4161_v31 = vpop.f32.mrf.mxu2 }
 0x241   : > { %4557 = vst.msk [vmem:[%s12070_s11 + $0x18] sm:$0xf] %vm802_vm5, %v4522_v13  ;;  %v1952_v13 = vshll.u32 %v14380_v42, 16 }
 0x242   : > { %v4245_v36 = vpop.f32.mrf.mxu3  ;;  %v12261_v40 = vpop.f32.mrf.mxu1 }
 0x243   : > { %v4246_v55 = vadd.f32 %v4245_v36, %v4157_v1  ;;  %v12246_v17 = vpop.f32.mrf.mxu0  ;;  %v3339_v1 = vunpack.c.l.b16 %v2740_v28 }
 0x245   : > { %v12228_v59 = vadd.f32 %v12134_v8, %v4246_v55  ;;  %4203 = vmatmul.bf16.gmra.mxu2 %v3542_v20  ;;  %v1931_v8 = vsel %vm10993_vm13, %v1926_v62, %v1930_v14  ;;  %v1946_v14 = vshll.u32 %v1564_v49, 16  ;;  %v4162_v55 = vadd.f32 %v4161_v31, %v4073_v12  ;;  %v14382_v62 = vld [vmem:[#allocation27_spill] sm:$0xff]  ;;  %v14384_v12 = vld [vmem:[#allocation9_spill] sm:$0xff] }
 0x246   : > { %v3067_v35 = vunpack.c.l.b16 %v1931_v8  ;;  %v1958_v20 = vrot.slane %v1956_v2, 4  ;;  %v1962_v0 = vshll.u32 %v14382_v62, 16  ;;  %v3357_v18 = vpack.c.b16 %v3340_v33, %v3339_v1 }
 0x247   : > { %v4523_v63 = vpack.c.bf16 %v12228_v59, %v12228_v59  ;;  %4287 = vmatmul.bf16.gmra.mxu3 %v3602_v23  ;;  %9673 = vmatmul.msk.bf16.gmra.mxu0 %vm3359_vm1, %v3356_v11  ;;  %v1948_v36 = vrot.slane %v1946_v14, 5  ;;  %v3306_v11 = vpop.permute.xlu2 %3305  ;;  %v1954_v23 = vrot.slane %v1952_v13, 5  ;;  %v2748_v2 = vrot.slane %v2746_v21, 4 }
 0x248   : > { %v4164_v3 = vpop.f32.mrf.mxu2  ;;  %v3085_v27 = vpack.c.b16 %v3068_v54, %v3067_v35  ;;  %v3606_v53 = vsel %vm3359_vm1, %v10136_v10, %v3306_v11  ;;  %v1964_v35 = vrot.slane %v1962_v0, 5  ;;  %v10137_v10 = vld [vmem:[#allocation2 + $0xc0] sm:$0xff] }
 0x249   : > { %4558 = vst.msk [vmem:[%s12070_s11 + $0x1c] sm:$0xf] %vm802_vm5, %v4523_v63  ;;  %v1949_v34 = vor.u32 %v1948_v36, %v1945_v50  ;;  %v1959_v8 = vor.u32 %v1958_v20, %v1954_v23  ;;  %v14385_v0 = vld [vmem:[#allocation11_spill] sm:$0xff] }
 0x24a   : > { %v4248_v22 = vpop.f32.mrf.mxu3  ;;  %v12282_v60 = vpop.f32.mrf.mxu1 }
 0x24b   : > { %v4249_v56 = vadd.f32 %v4248_v22, %v4160_v19  ;;  %v2590_v19 = vld [vmem:[#allocation2 + $0xcc] sm:$0xe]  ;;  %v2749_v22 = vrot.slane %v12013_v45, 5  ;;  %v1960_v38 = vrot.slane %v1959_v8, 4 }
 0x24c   : > { %v3164_v7 = vpop.permute.xlu1 %3163  ;;  %v12266_v32 = vpop.f32.mrf.mxu0  ;;  %v9323_v42 = vrot.slane %v2590_v19, 9  ;;  %v14386_v19 = vld [vmem:[#allocation13_spill] sm:$0xff] }
 0x24d   : > { %v12250_v9 = vadd.f32 %v12167_v51, %v4249_v56  ;;  %v3546_v63 = vsel %vm3359_vm1, %v3085_v27, %v3164_v7  ;;  %v1950_v56 = vrot.slane %v1949_v34, 4  ;;  %v2750_v26 = vsel %vm11264_vm0, %v2748_v2, %v2749_v22  ;;  %v10138_v22 = vld [vmem:[#allocation2 + $0xcc] sm:$0xff] }
 0x24e   : > { %v2747_v13 = vsel %vm11264_vm0, %v9323_v42, %v2746_v21  ;;  %v3342_v50 = vunpack.c.l.b16 %v2750_v26  ;;  %v4083_v5 = vadd.f32 %v12231_v43, %v14386_v19  ;;  %v14387_v43 = vld [vmem:[#allocation15_spill] sm:$0xff] }
 0x24f   : > { %v4524_v24 = vpack.c.bf16 %v12250_v9, %v12250_v9  ;;  %v1955_v45 = vsel %vm10993_vm13, %v1950_v56, %v1954_v23 }
 0x250   : > { %v4166_v51 = vpop.f32.mrf.mxu2  ;;  %v3069_v1 = vunpack.c.l.b16 %v1955_v45 }
 0x251   : > { %4559 = vst.msk [vmem:[%s12070_s11 + $0x20] sm:$0xf] %vm802_vm5, %v4524_v24  ;;  %v4078_v24 = vadd.f32 %v12180_v57, %v14384_v12 }
 0x252   : > { %v4250_v58 = vpop.f32.mrf.mxu3 }
 0x253   : > { %v4251_v6 = vadd.f32 %v4250_v58, %v4162_v55  ;;  %v4167_v36 = vadd.f32 %v4166_v51, %v4078_v24  ;;  %v4090_v58 = vpop.f32.mrf.mxu1 }
 0x254   : > { %v4349_v28 = vpop.f32.mrf.mxu0 }
 0x255   : > { %v12271_v31 = vadd.f32 %v12199_v4, %v4251_v6  ;;  %4208 = vmatmul.bf16.gmra.mxu2 %v3546_v63  ;;  %v4165_v4 = vadd.f32 %v4164_v3, %v4076_v41  ;;  %v1965_v3 = vsel %vm10993_vm13, %v1960_v38, %v1964_v35  ;;  %v4081_v6 = vadd.f32 %v12211_v15, %v14385_v0 }
 0x256   : > { %v3070_v33 = vunpack.c.l.b16 %v1965_v3 }
 0x257   : > { %v4525_v49 = vpack.c.bf16 %v12271_v31, %v12271_v31  ;;  %4292 = vmatmul.bf16.gmra.mxu3 %v3606_v53  ;;  %9674 = vmatmul.msk.bf16.gmra.mxu0 %vm3359_vm1, %v3357_v18 }
 0x258   : > { %v4169_v54 = vpop.f32.mrf.mxu2  ;;  %v3086_v57 = vpack.c.b16 %v3070_v33, %v3069_v1 }
 0x259   : > { %4560 = vst.msk [vmem:[%s12070_s11 + $0x24] sm:$0xf] %vm802_vm5, %v4525_v49  ;;  %v3308_v47 = vpop.permute.xlu2 %3307  ;;  %v4170_v18 = vadd.f32 %v4169_v54, %v4081_v6 }
 0x25a   : > { %v4253_v39 = vpop.f32.mrf.mxu3  ;;  %v3610_v23 = vsel %vm3359_vm1, %v10137_v10, %v3308_v47 }
 0x25b   : > { %v4254_v14 = vadd.f32 %v4253_v39, %v4165_v4  ;;  %v4092_v41 = vpop.f32.mrf.mxu1  ;;  %v4086_v39 = vadd.f32 %v12261_v40, %v14387_v43 }
 0x25d   : > { %v12287_v44 = vadd.f32 %v12223_v48, %v4254_v14  ;;  %v3341_v48 = vunpack.c.l.b16 %v2747_v13 }
 0x25e   : > { %v4352_v7 = vpop.f32.mrf.mxu0 }
 0x25f   : > { %v4526_v27 = vpack.c.bf16 %v12287_v44, %v12287_v44  ;;  %v3358_v20 = vpack.c.b16 %v3342_v50, %v3341_v48 }
 0x260   : > { %v4171_v55 = vpop.f32.mrf.mxu2 }
 0x261   : > { %4561 = vst.msk [vmem:[%s12070_s11 + $0x28] sm:$0xf] %vm802_vm5, %v4526_v27  ;;  %v4172_v56 = vadd.f32 %v4171_v55, %v4083_v5  ;;  %v14388_v27 = vld [vmem:[#allocation17_spill] sm:$0xff] }
 0x262   : > { %v4255_v11 = vpop.f32.mrf.mxu3  ;;  %v4088_v10 = vadd.f32 %v12282_v60, %v14388_v27  ;;  %v14391_v5 = vld [vmem:[#allocation25_spill] sm:$0xff] }
 0x263   : > { %v4256_v16 = vadd.f32 %v4255_v11, %v4167_v36  ;;  %v4095_v45 = vpop.f32.mrf.mxu1  ;;  %v14389_v11 = vld [vmem:[#allocation19_spill] sm:$0xff] }
 0x265   : > { %v12303_v62 = vadd.f32 %v12246_v17, %v4256_v16  ;;  %v3166_v53 = vpop.permute.xlu1 %3165  ;;  %v4091_v16 = vadd.f32 %v4090_v58, %v14389_v11  ;;  %v14390_v58 = vld [vmem:[#allocation22_spill] sm:$0xff] }
 0x266   : > { %v3550_v63 = vsel %vm3359_vm1, %v3086_v57, %v3166_v53  ;;  %v4354_v21 = vpop.f32.mrf.mxu0  ;;  %v4093_v53 = vadd.f32 %v4092_v41, %v14390_v58  ;;  %v4096_v41 = vadd.f32 %v4095_v45, %v14391_v5  ;;  %v4449_v58 = vmul.f32 %v12228_v59, %v12228_v59 }
 0x267   : > { %v4527_v51 = vpack.c.bf16 %v12303_v62, %v12303_v62  ;;  %4297 = vmatmul.bf16.gmra.mxu3 %v3610_v23  ;;  %9675 = vmatmul.msk.bf16.gmra.mxu0 %vm3359_vm1, %v3358_v20  ;;  %v4446_v5 = vmul.f32 %v12159_v46, %v12159_v46 }
 0x268   : > { %4213 = vmatmul.bf16.gmra.mxu2 %v3550_v63  ;;  %v4174_v34 = vpop.f32.mrf.mxu2  ;;  %v3310_v35 = vpop.permute.xlu2 %3309 }
 0x269   : > { %4562 = vst.msk [vmem:[%s12070_s11 + $0x2c] sm:$0xf] %vm802_vm5, %v4527_v51  ;;  %v3614_v42 = vsel %vm3359_vm1, %v10138_v22, %v3310_v35  ;;  %v4175_v3 = vadd.f32 %v4174_v34, %v4086_v39 }
 0x26a   : > { %v4258_v17 = vpop.f32.mrf.mxu3 }
 0x26b   : > { %v4259_v8 = vadd.f32 %v4258_v17, %v4170_v18  ;;  %v4097_v50 = vpop.f32.mrf.mxu1 }
 0x26d   : > { %v12314_v15 = vadd.f32 %v12266_v32, %v4259_v8 }
 0x26f   : > { %v4528_v49 = vpack.c.bf16 %v12314_v15, %v12314_v15 }
 0x270   : > { %v4176_v4 = vpop.f32.mrf.mxu2 }
 0x271   : > { %4563 = vst.msk [vmem:[%s12070_s11 + $0x30] sm:$0xf] %vm802_vm5, %v4528_v49  ;;  %v4177_v1 = vadd.f32 %v4176_v4, %v4088_v10  ;;  %v14393_v10 = vld [vmem:[#allocation8_spill] sm:$0xff] }
 0x272   : > { %v4260_v54 = vpop.f32.mrf.mxu3  ;;  %v4357_v2 = vpop.f32.mrf.mxu0 }
 0x273   : > { %v4261_v38 = vadd.f32 %v4260_v54, %v4172_v56  ;;  %v4100_v0 = vpop.f32.mrf.mxu1 }
 0x275   : > { %v12323_v32 = vadd.f32 %v4349_v28, %v4261_v38 }
 0x277   : > { %v4529_v14 = vpack.c.bf16 %v12323_v32, %v12323_v32  ;;  %4302 = vmatmul.bf16.gmra.mxu3 %v3614_v42  ;;  %v14392_v42 = vld [vmem:[#allocation28_spill] sm:$0xff] }
 0x278   : > { %v4179_v26 = vpop.f32.mrf.mxu2 }
 0x279   : > { %4564 = vst.msk [vmem:[%s12070_s11 + $0x34] sm:$0xf] %vm802_vm5, %v4529_v14  ;;  %v4180_v23 = vadd.f32 %v4179_v26, %v4091_v16  ;;  %v4453_v16 = vmul.f32 %v12303_v62, %v12303_v62 }
 0x27a   : > { %v4263_v13 = vpop.f32.mrf.mxu3  ;;  %v4359_v28 = vpop.f32.mrf.mxu0 }
 0x27b   : > { %v4264_v12 = vadd.f32 %v4263_v13, %v4175_v3  ;;  %v4102_v49 = vpop.f32.mrf.mxu1 }
 0x27d   : > { %v12331_v24 = vadd.f32 %v4352_v7, %v4264_v12 }
 0x27f   : > { %v4530_v40 = vpack.c.bf16 %v12331_v24, %v12331_v24  ;;  %v4456_v27 = vmul.f32 %v12331_v24, %v12331_v24 }
 0x280   : > { %v4181_v48 = vpop.f32.mrf.mxu2 }
 0x281   : > { %4565 = vst.msk [vmem:[%s12070_s11 + $0x38] sm:$0xf] %vm802_vm5, %v4530_v40  ;;  %v4182_v18 = vadd.f32 %v4181_v48, %v4093_v53  ;;  %v4101_v40 = vadd.f32 %v4100_v0, %v14393_v10 }
 0x282   : > { %v4265_v33 = vpop.f32.mrf.mxu3  ;;  %v4362_v55 = vpop.f32.mrf.mxu0 }
 0x283   : > { %v4266_v36 = vadd.f32 %v4265_v33, %v4177_v1  ;;  %v4105_v14 = vpop.f32.mrf.mxu1  ;;  %v4455_v33 = vmul.f32 %v12323_v32, %v12323_v32 }
 0x285   : > { %v4355_v47 = vadd.f32 %v4354_v21, %v4266_v36 }
 0x287   : > { %v4531_v7 = vpack.c.bf16 %v4355_v47, %v4355_v47  ;;  %4398 = vmatpush.msrb.mxu1 %v4355_v47  ;;  %v4457_v12 = vmul.f32 %v4355_v47, %v4355_v47  ;;  %v4454_v47 = vmul.f32 %v12314_v15, %v12314_v15 }
 0x288   : > { %v4184_v57 = vpop.f32.mrf.mxu2 }
 0x289   : > { %4566 = vst.msk [vmem:[%s12070_s11 + $0x3c] sm:$0xf] %vm802_vm5, %v4531_v7  ;;  %4399 = vmatpush.msrb.mxu1 %v12331_v24  ;;  %v4185_v56 = vadd.f32 %v4184_v57, %v4096_v41 }
 0x28a   : > { %v4268_v60 = vpop.f32.mrf.mxu3  ;;  %v4364_v51 = vpop.f32.mrf.mxu0 }
 0x28b   : > { %v4269_v20 = vadd.f32 %v4268_v60, %v4180_v23  ;;  %4400 = vmatpush.msrb.mxu1 %v12323_v32  ;;  %v4107_v11 = vpop.f32.mrf.mxu1  ;;  %v4452_v32 = vmul.f32 %v12287_v44, %v12287_v44  ;;  %v14394_v23 = vld [vmem:[#allocation10_spill] sm:$0xff] }
 0x28c   : > { %v4103_v60 = vadd.f32 %v4102_v49, %v14394_v23  ;;  %v4445_v49 = vmul.f32 %v12137_v61, %v12137_v61 }
 0x28d   : > { %v12344_v6 = vadd.f32 %v4357_v2, %v4269_v20  ;;  %4401 = vmatpush.msrb.mxu1 %v12314_v15  ;;  %v4098_v2 = vadd.f32 %v4097_v50, %v14392_v42  ;;  %v4451_v15 = vmul.f32 %v12271_v31, %v12271_v31 }
 0x28f   : > { %v4532_v63 = vpack.c.bf16 %v12344_v6, %v12344_v6  ;;  %4402 = vmatpush.msrb.mxu1 %v12303_v62  ;;  %v4450_v62 = vmul.f32 %v12250_v9, %v12250_v9 }
 0x290   : > { %v4186_v17 = vpop.f32.mrf.mxu2 }
 0x291   : > { %4567 = vst.msk [vmem:[%s12070_s11 + $0x40] sm:$0xf] %vm802_vm5, %v4532_v63  ;;  %4403 = vmatpush.msrb.mxu1 %v12287_v44  ;;  %v4187_v45 = vadd.f32 %v4186_v17, %v4098_v2 }
 0x292   : > { %v4270_v34 = vpop.f32.mrf.mxu3 }
 0x293   : > { %v4271_v8 = vadd.f32 %v4270_v34, %v4182_v18  ;;  %4404 = vmatpush.msrb.mxu1 %v12271_v31  ;;  %v4110_v18 = vpop.f32.mrf.mxu1  ;;  %v4448_v31 = vmul.f32 %v12214_v30, %v12214_v30  ;;  %v14395_v34 = vld [vmem:[#allocation12_spill] sm:$0xff] }
 0x294   : > { %v4367_v19 = vpop.f32.mrf.mxu0  ;;  %v4106_v17 = vadd.f32 %v4105_v14, %v14395_v34 }
 0x295   : > { %v12355_v21 = vadd.f32 %v4359_v28, %v4271_v8  ;;  %4405 = vmatpush.msrb.mxu1 %v12250_v9  ;;  %v4447_v9 = vmul.f32 %v12186_v52, %v12186_v52 }
 0x297   : > { %v4533_v22 = vpack.c.bf16 %v12355_v21, %v12355_v21  ;;  %4406 = vmatpush.msrb.mxu1 %v12228_v59 }
 0x298   : > { %v4189_v4 = vpop.f32.mrf.mxu2 }
 0x299   : > { %4568 = vst.msk [vmem:[%s12070_s11 + $0x44] sm:$0xf] %vm802_vm5, %v4533_v22  ;;  %4407 = vmatpush.msrb.mxu1 %v12214_v30  ;;  %v4190_v48 = vadd.f32 %v4189_v4, %v4101_v40 }
 0x29a   : > { %v4273_v35 = vpop.f32.mrf.mxu3 }
 0x29b   : > { %v4274_v54 = vadd.f32 %v4273_v35, %v4185_v56  ;;  %4408 = vmatpush.msrb.mxu1 %v12186_v52  ;;  %v4444_v52 = vmul.f32 %v12115_v25, %v12115_v25  ;;  %v14396_v35 = vld [vmem:[#allocation14_spill] sm:$0xff]  ;;  %v4112_v42 = vpop.f32.mrf.mxu1 }
 0x29c   : > { %v4369_v39 = vpop.f32.mrf.mxu0  ;;  %v4108_v4 = vadd.f32 %v4107_v11, %v14396_v35 }
 0x29d   : > { %v12366_v38 = vadd.f32 %v4362_v55, %v4274_v54  ;;  %4409 = vmatpush.msrb.mxu1 %v12159_v46  ;;  %v4443_v46 = vmul.f32 %v12087_v29, %v12087_v29 }
 0x29f   : > { %v4534_v43 = vpack.c.bf16 %v12366_v38, %v12366_v38  ;;  %4410 = vmatpush.msrb.mxu1 %v12137_v61 }
 0x2a0   : > { %v4191_v13 = vpop.f32.mrf.mxu2 }
 0x2a1   : > { %4569 = vst.msk [vmem:[%s12070_s11 + $0x48] sm:$0xf] %vm802_vm5, %v4534_v43  ;;  %4411 = vmatpush.msrb.mxu1 %v12115_v25  ;;  %v4192_v20 = vadd.f32 %v4191_v13, %v4103_v60  ;;  %v4442_v25 = vmul.f32 %v12048_v37, %v12048_v37 }
 0x2a2   : > { %v4275_v3 = vpop.f32.mrf.mxu3 }
 0x2a3   : > { %v4276_v26 = vadd.f32 %v4275_v3, %v4187_v45  ;;  %4412 = vmatpush.msrb.mxu1 %v12087_v29  ;;  %v14397_v45 = vld [vmem:[#allocation16_spill] sm:$0xff] }
 0x2a4   : > { %v4372_v50 = vpop.f32.mrf.mxu0  ;;  %v4111_v3 = vadd.f32 %v4110_v18, %v14397_v45 }
 0x2a5   : > { %v12377_v28 = vadd.f32 %v4364_v51, %v4276_v26  ;;  %4413 = vmatpush.msrb.mxu1 %v12048_v37 }
 0x2a7   : > { %4474 = vmatpush.msra.mxu1 %v4457_v12  ;;  %v4535_v1 = vpack.c.bf16 %v12377_v28, %v12377_v28  ;;  %v4115_v12 = vpop.f32.mrf.mxu1 }
 0x2a8   : > { %v4194_v24 = vpop.f32.mrf.mxu2 }
 0x2a9   : > { %4475 = vmatpush.msra.mxu1 %v4456_v27  ;;  %4570 = vst.msk [vmem:[%s12070_s11 + $0x4c] sm:$0xf] %vm802_vm5, %v4535_v1  ;;  %v14398_v1 = vld [vmem:[#allocation18_spill] sm:$0xff] }
 0x2aa   : > { %v4278_v36 = vpop.f32.mrf.mxu3 }
 0x2ab   : > { %4476 = vmatpush.msra.mxu1 %v4455_v33  ;;  %v4279_v55 = vadd.f32 %v4278_v36, %v4190_v48  ;;  %v4113_v33 = vadd.f32 %v4112_v42, %v14398_v1 }
 0x2ac   : > { %v4374_v53 = vpop.f32.mrf.mxu0 }
 0x2ad   : > { %4477 = vmatpush.msra.mxu1 %v4454_v47  ;;  %v12393_v7 = vadd.f32 %v4367_v19, %v4279_v55  ;;  %v4195_v19 = vadd.f32 %v4194_v24, %v4106_v17 }
 0x2af   : > { %4478 = vmatpush.msra.mxu1 %v4453_v16  ;;  %v4536_v57 = vpack.c.bf16 %v12393_v7, %v12393_v7  ;;  %v4117_v55 = vpop.f32.mrf.mxu1 }
 0x2b0   : > { %v4196_v51 = vpop.f32.mrf.mxu2 }
 0x2b1   : > { %4479 = vmatpush.msra.mxu1 %v4452_v32  ;;  %4571 = vst.msk [vmem:[%s12070_s11 + $0x50] sm:$0xf] %vm802_vm5, %v4536_v57  ;;  %v4197_v2 = vadd.f32 %v4196_v51, %v4108_v4  ;;  %v14399_v32 = vld [vmem:[#allocation20_spill] sm:$0xff] }
 0x2b2   : > { %v4280_v0 = vpop.f32.mrf.mxu3  ;;  %v4116_v23 = vadd.f32 %v4115_v12, %v14399_v32 }
 0x2b3   : > { %4480 = vmatpush.msra.mxu1 %v4451_v15  ;;  %v4281_v44 = vadd.f32 %v4280_v0, %v4192_v20 }
 0x2b4   : > { %v4377_v56 = vpop.f32.mrf.mxu0 }
 0x2b5   : > { %4481 = vmatpush.msra.mxu1 %v4450_v62  ;;  %v12408_v63 = vadd.f32 %v4369_v39, %v4281_v44  ;;  %v14400_v44 = vld [vmem:[#allocation23_spill] sm:$0xff] }
 0x2b7   : > { %4482 = vmatpush.msra.mxu1 %v4449_v58  ;;  %v4537_v8 = vpack.c.bf16 %v12408_v63, %v12408_v63  ;;  %v4120_v51 = vpop.f32.mrf.mxu1  ;;  %v4118_v58 = vadd.f32 %v4117_v55, %v14400_v44 }
 0x2b8   : > { %v4199_v41 = vpop.f32.mrf.mxu2 }
 0x2b9   : > { %4483 = vmatpush.msra.mxu1 %v4448_v31  ;;  %4572 = vst.msk [vmem:[%s12070_s11 + $0x54] sm:$0xf] %vm802_vm5, %v4537_v8  ;;  %v4200_v26 = vadd.f32 %v4199_v41, %v4111_v3 }
 0x2ba   : > { %v4283_v59 = vpop.f32.mrf.mxu3 }
 0x2bb   : > { %4484 = vmatpush.msra.mxu1 %v4447_v9  ;;  %v4284_v30 = vadd.f32 %v4283_v59, %v4195_v19  ;;  %v14401_v19 = vld [vmem:[#allocation26_spill] sm:$0xff] }
 0x2bc   : > { %v4379_v29 = vpop.f32.mrf.mxu0  ;;  %v4121_v59 = vadd.f32 %v4120_v51, %v14401_v19 }
 0x2bd   : > { %4485 = vmatpush.msra.mxu1 %v4446_v5  ;;  %v12423_v22 = vadd.f32 %v4372_v50, %v4284_v30 }
 0x2bf   : > { %4486 = vmatpush.msra.mxu1 %v4445_v49  ;;  %v4538_v54 = vpack.c.bf16 %v12423_v22, %v12423_v22  ;;  %v4122_v41 = vpop.f32.mrf.mxu1 }
 0x2c0   : > { %v4201_v43 = vpop.f32.mrf.mxu2 }
 0x2c1   : > { %4487 = vmatpush.msra.mxu1 %v4444_v52  ;;  %4573 = vst.msk [vmem:[%s12070_s11 + $0x58] sm:$0xf] %vm802_vm5, %v4538_v54  ;;  %v4202_v50 = vadd.f32 %v4201_v43, %v4113_v33  ;;  %v14402_v54 = vld [vmem:[#allocation29_spill] sm:$0xff] }
 0x2c2   : > { %v4285_v61 = vpop.f32.mrf.mxu3  ;;  %v4123_v42 = vadd.f32 %v4122_v41, %v14402_v54 }
 0x2c3   : > { %4488 = vmatpush.msra.mxu1 %v4443_v46  ;;  %v4286_v39 = vadd.f32 %v4285_v61, %v4197_v2 }
 0x2c4   : > { %v4382_v47 = vpop.f32.mrf.mxu0 }
 0x2c5   : > { %4489 = vmatpush.msra.mxu1 %v4442_v25  ;;  %v12436_v14 = vadd.f32 %v4374_v53, %v4286_v39 }
 0x2c7   : > { %v4539_v13 = vpack.c.bf16 %v12436_v14, %v12436_v14  ;;  %v4125_v25 = vpop.f32.mrf.mxu1 }
 0x2c8   : > { %v4204_v37 = vpop.f32.mrf.mxu2 }
 0x2c9   : > { %4574 = vst.msk [vmem:[%s12070_s11 + $0x5c] sm:$0xf] %vm802_vm5, %v4539_v13  ;;  %v4205_v57 = vadd.f32 %v4204_v37, %v4116_v23  ;;  %v14403_v13 = vld [vmem:[#allocation31_spill] sm:$0xff] }
 0x2ca   : > { %v4288_v27 = vpop.f32.mrf.mxu3 }
 0x2cb   : > { %v4289_v10 = vadd.f32 %v4288_v27, %v4200_v26 }
 0x2cc   : > { %v4384_v0 = vpop.f32.mrf.mxu0 }
 0x2cd   : > { %v12443_v40 = vadd.f32 %v4377_v56, %v4289_v10  ;;  %v10707_v56 = vmov 1.0  }
 0x2ce   : > { %4414 = vmatmul.f32.vlgmr.msrb.gmra.mxu1 %v10707_v56 }
 0x2cf   : > { %v4540_v48 = vpack.c.bf16 %v12443_v40, %v12443_v40  ;;  %v4127_v1 = vpop.f32.mrf.mxu1 }
 0x2d0   : > { %v4206_v16 = vpop.f32.mrf.mxu2 }
 0x2d1   : > { %4575 = vst.msk [vmem:[%s12070_s11 + $0x60] sm:$0xf] %vm802_vm5, %v4540_v48  ;;  %v4207_v31 = vadd.f32 %v4206_v16, %v4118_v58 }
 0x2d2   : > { %v4290_v36 = vpop.f32.mrf.mxu3 }
 0x2d3   : > { %v4291_v24 = vadd.f32 %v4290_v36, %v4202_v50  ;;  %v14404_v50 = vld [vmem:[#allocation32_spill] sm:$0xff] }
 0x2d4   : > { %v4387_v9 = vpop.f32.mrf.mxu0  ;;  %v4128_v36 = vadd.f32 %v4127_v1, %v14404_v50 }
 0x2d5   : > { %v12450_v11 = vadd.f32 %v4379_v29, %v4291_v24  ;;  %v4126_v29 = vadd.f32 %v4125_v25, %v14403_v13 }
 0x2d6   : > { %4490 = vmatmul.f32.vlgmr.msra.gmra.mxu1 %v10707_v56 }
 0x2d7   : > { %v4541_v60 = vpack.c.bf16 %v12450_v11, %v12450_v11  ;;  %v4467_v58 = vmul.f32 %v12450_v11, %v12450_v11 }
 0x2d8   : > { %v4209_v18 = vpop.f32.mrf.mxu2 }
 0x2d9   : > { %4576 = vst.msk [vmem:[%s12070_s11 + $0x64] sm:$0xf] %vm802_vm5, %v4541_v60  ;;  %v4210_v30 = vadd.f32 %v4209_v18, %v4121_v59  ;;  %v4465_v18 = vmul.f32 %v12436_v14, %v12436_v14 }
 0x2da   : > { %v4293_v15 = vpop.f32.mrf.mxu3 }
 0x2db   : > { %v4294_v20 = vadd.f32 %v4293_v15, %v4205_v57 }
 0x2dc   : > { %v4389_v2 = vpop.f32.mrf.mxu0 }
 0x2dd   : > { %v12457_v62 = vadd.f32 %v4382_v47, %v4294_v20 }
 0x2df   : > { %v4542_v53 = vpack.c.bf16 %v12457_v62, %v12457_v62  ;;  %v4468_v44 = vmul.f32 %v12457_v62, %v12457_v62 }
 0x2e0   : > { %v4211_v49 = vpop.f32.mrf.mxu2 }
 0x2e1   : > { %4577 = vst.msk [vmem:[%s12070_s11 + $0x68] sm:$0xf] %vm802_vm5, %v4542_v53  ;;  %v4212_v61 = vadd.f32 %v4211_v49, %v4123_v42  ;;  %v4466_v53 = vmul.f32 %v12443_v40, %v12443_v40 }
 0x2e2   : > { %v4295_v34 = vpop.f32.mrf.mxu3 }
 0x2e3   : > { %v4296_v17 = vadd.f32 %v4295_v34, %v4207_v31 }
 0x2e4   : > { %v4392_v27 = vpop.f32.mrf.mxu0 }
 0x2e5   : > { %v4385_v8 = vadd.f32 %v4384_v0, %v4296_v17 }
 0x2e7   : > { %v4543_v5 = vpack.c.bf16 %v4385_v8, %v4385_v8  ;;  %v4469_v51 = vmul.f32 %v4385_v8, %v4385_v8 }
 0x2e9   : > { %4578 = vst.msk [vmem:[%s12070_s11 + $0x6c] sm:$0xf] %vm802_vm5, %v4543_v5 }
 0x2ea   : > { %v4298_v52 = vpop.f32.mrf.mxu3 }
 0x2eb   : > { %v4299_v35 = vadd.f32 %v4298_v52, %v4210_v30  ;;  %v4214_v45 = vpop.f32.mrf.mxu2 }
 0x2ec   : > { %v4215_v12 = vadd.f32 %v4214_v45, %v4126_v29  ;;  %v4394_v32 = vpop.f32.mrf.mxu0 }
 0x2ed   : > { %v4388_v4 = vadd.f32 %v4387_v9, %v4299_v35  ;;  %v4397_v9 = vld [vmem:[#allocation5] sm:$0x1] }
 0x2ef   : > { %v4544_v46 = vpack.c.bf16 %v4388_v4, %v4388_v4  ;;  %v4470_v0 = vmul.f32 %v4388_v4, %v4388_v4 }
 0x2f1   : > { %4579 = vst.msk [vmem:[%s12070_s11 + $0x70] sm:$0xf] %vm802_vm5, %v4544_v46 }
 0x2f2   : > { %v4300_v43 = vpop.f32.mrf.mxu3 }
 0x2f3   : > { %v4301_v39 = vadd.f32 %v4300_v43, %v4212_v61  ;;  %v4216_v48 = vpop.f32.mrf.mxu2 }
 0x2f4   : > { %v4217_v24 = vadd.f32 %v4216_v48, %v4128_v36 }
 0x2f5   : > { %v4390_v3 = vadd.f32 %v4389_v2, %v4301_v39 }
 0x2f7   : > { %v4545_v26 = vpack.c.bf16 %v4390_v3, %v4390_v3  ;;  %v4471_v20 = vmul.f32 %v4390_v3, %v4390_v3 }
 0x2f9   : > { %4580 = vst.msk [vmem:[%s12070_s11 + $0x74] sm:$0xf] %vm802_vm5, %v4545_v26 }
 0x2fa   : > { %v4303_v10 = vpop.f32.mrf.mxu3 }
 0x2fb   : > { %v4304_v37 = vadd.f32 %v4303_v10, %v4215_v12 }
 0x2fd   : > { %v4393_v33 = vadd.f32 %v4392_v27, %v4304_v37 }
 0x2ff   : > { %v4546_v47 = vpack.c.bf16 %v4393_v33, %v4393_v33  ;;  %v4472_v15 = vmul.f32 %v4393_v33, %v4393_v33 }
 0x301   : > { %4581 = vst.msk [vmem:[%s12070_s11 + $0x78] sm:$0xf] %vm802_vm5, %v4546_v47 }
 0x302   : > { %v4305_v55 = vpop.f32.mrf.mxu3 }
 0x303   : > { %v4306_v16 = vadd.f32 %v4305_v55, %v4217_v24 }
 0x305   : > { %v4395_v23 = vadd.f32 %v4394_v32, %v4306_v16 }
 0x307   : > { %v4473_v60 = vmul.f32 %v4395_v23, %v4395_v23  ;;  %v4547_v57 = vpack.c.bf16 %v4395_v23, %v4395_v23  ;;  %4418 = vmatpush.msra.mxu2 %v4395_v23 }
 0x309   : > { %4582 = vst.msk [vmem:[%s12070_s11 + $0x7c] sm:$0xf] %vm802_vm5, %v4547_v57  ;;  %4419 = vmatpush.msra.mxu2 %v4393_v33  ;;  %4494 = vmatpush.msrb.mxu1 %v4473_v60 }
 0x30b   : > { %4420 = vmatpush.msra.mxu2 %v4390_v3  ;;  %4495 = vmatpush.msrb.mxu1 %v4472_v15 }
 0x30d   : > { %4421 = vmatpush.msra.mxu2 %v4388_v4  ;;  %4496 = vmatpush.msrb.mxu1 %v4471_v20 }
 0x30f   : > { %4422 = vmatpush.msra.mxu2 %v4385_v8  ;;  %4497 = vmatpush.msrb.mxu1 %v4470_v0 }
 0x311   : > { %4423 = vmatpush.msra.mxu2 %v12457_v62  ;;  %4498 = vmatpush.msrb.mxu1 %v4469_v51  ;;  %v4464_v62 = vmul.f32 %v12423_v22, %v12423_v22 }
 0x313   : > { %4424 = vmatpush.msra.mxu2 %v12450_v11  ;;  %4499 = vmatpush.msrb.mxu1 %v4468_v44  ;;  %v4463_v11 = vmul.f32 %v12408_v63, %v12408_v63 }
 0x315   : > { %4425 = vmatpush.msra.mxu2 %v12443_v40  ;;  %4500 = vmatpush.msrb.mxu1 %v4467_v58  ;;  %v4462_v40 = vmul.f32 %v12393_v7, %v12393_v7 }
 0x317   : > { %4426 = vmatpush.msra.mxu2 %v12436_v14  ;;  %4501 = vmatpush.msrb.mxu1 %v4466_v53  ;;  %v4461_v14 = vmul.f32 %v12377_v28, %v12377_v28 }
 0x319   : > { %4427 = vmatpush.msra.mxu2 %v12423_v22  ;;  %4502 = vmatpush.msrb.mxu1 %v4465_v18  ;;  %v4460_v22 = vmul.f32 %v12366_v38, %v12366_v38 }
 0x31b   : > { %4428 = vmatpush.msra.mxu2 %v12408_v63  ;;  %4503 = vmatpush.msrb.mxu1 %v4464_v62  ;;  %v4459_v63 = vmul.f32 %v12355_v21, %v12355_v21 }
 0x31d   : > { %4429 = vmatpush.msra.mxu2 %v12393_v7  ;;  %4504 = vmatpush.msrb.mxu1 %v4463_v11  ;;  %v4458_v7 = vmul.f32 %v12344_v6, %v12344_v6 }
 0x31f   : > { %4430 = vmatpush.msra.mxu2 %v12377_v28  ;;  %4505 = vmatpush.msrb.mxu1 %v4462_v40 }
 0x321   : > { %4431 = vmatpush.msra.mxu2 %v12366_v38  ;;  %4506 = vmatpush.msrb.mxu1 %v4461_v14  ;;  %v4441_v38 = vld [vmem:[#allocation5 + $0x1] sm:$0x1] }
 0x323   : > { %4432 = vmatpush.msra.mxu2 %v12355_v21  ;;  %4507 = vmatpush.msrb.mxu1 %v4460_v22 }
 0x325   : > { %4433 = vmatpush.msra.mxu2 %v12344_v6  ;;  %4508 = vmatpush.msrb.mxu1 %v4459_v63 }
 0x326   : > { %4434 = vmatmul.f32.vlgmr.msra.gmra.mxu2 %v10707_v56 }
 0x327   : > { %4509 = vmatpush.msrb.mxu1 %v4458_v7 }
 0x328   : > { %4510 = vmatmul.f32.vlgmr.msrb.gmra.mxu1 %v10707_v56 }
 0x34b   : > { %v4415_v28 = vpop.f32.mrf.mxu1 }
 0x353   : > { %v4491_v31 = vpop.f32.mrf.mxu1 }
 0x3a5   : > { %v4511_v34 = vpop.f32.mrf.mxu1 }
 0x3a6   : > { %v4512_v17 = vadd.f32 %v4511_v34, %v4491_v31 }
 0x3a8   : > { %v4514_v8 = vadd.f32 %v4512_v17, %v4441_v38 }
 0x3a9   : > { %v4435_v19 = vpop.f32.mrf.mxu2 }
 0x3aa   : > { %v4436_v21 = vadd.f32 %v4435_v19, %v4415_v28  ;;  %4515 = vst.msk [vmem:[#allocation5 + $0x1] sm:$0x1] %vm810_vm7, %v4514_v8 }
 0x3ac   : > { %v4438_v59 = vadd.f32 %v4436_v21, %v4397_v9 }
 0x3ae   : > { %4440 = vst.msk [vmem:[#allocation5] sm:$0x1] %vm810_vm7, %v4438_v59 }
 0x3af PF: > { %p9678_p11 = scmp.ne.s32.totalorder %s10690_s25, 1 }
 0x3b1   : > { %4586 = sbr.rel (%p9678_p11) target bundleno = 1844 (0x734), region = 60 }
 0x3b6   : > { %p9679_p12 = scmp.ne.s32.totalorder %s10686_s24, 0 }
 0x3b8   : > { %4590 = sbr.rel (%p9679_p12) target bundleno = 991 (0x3df), region = 64 }
 0x3bd   : > { %v4591_v6 = vld [vmem:[#allocation5] sm:$0x1]  ;;  %v4593_v5 = vld [vmem:[#allocation5 + $0x1] sm:$0x1]  ;;  %v4597_v2 = vld [vmem:[%s14320_s3] sm:$0x1] }
 0x3be   : > { %v4592_v41 = vmul.f32 0.001953125, %v4591_v6  ;;  %v4594_v30 = vmul.f32 0.001953125, %v4593_v5  ;;  %vm4610_vm5 = vcmask 516096   ;;  %v4612_v39 = vld [vmem:[%s14321_s4] sm:$0x1] }
 0x3c0   : > { %v4595_v49 = vmul.f32 %v4592_v41, %v4592_v41 }
 0x3c2   : > { %v4596_v52 = vsub.f32 %v4594_v30, %v4595_v49 }
 0x3c4   : > { %v4598_v56 = vadd.f32 1e-05, %v4596_v52 }
 0x3c6   : > { %10574 = vrsqrt.f32 %v4598_v56  ;;  %vm4605_vm2 = vweird.f32 %v4598_v56 }
 0x3cc   : > { %v10575_v35 = vpop.eup %10574 }
 0x3cd   : > { %v4600_v4 = vmul.f32 %v10575_v35, %v4598_v56  ;;  %vm4606_vm3 = vweird.f32 %v10575_v35 }
 0x3ce   : > { %vm4607_vm4 = vmor %vm4605_vm2, %vm4606_vm3 }
 0x3cf   : > { %v4601_v54 = vmul.f32 %v10575_v35, %v4600_v4 }
 0x3d1   : > { %v4602_v42 = vmul.f32 0.5, %v4601_v54 }
 0x3d3   : > { %v4603_v46 = vsub.f32 1.5, %v4602_v42 }
 0x3d5   : > { %v4604_v61 = vmul.f32 %v10575_v35, %v4603_v46 }
 0x3d7   : > { %v4608_v25 = vsel %vm4607_vm4, %v10575_v35, %v4604_v61 }
 0x3d8   : > { %v4609_v43 = vmul.f32 %v4608_v25, %v4597_v2 }
 0x3da   : > { %4611 = vst.msk [vmem:[#allocation6] sm:$0x1] %vm4610_vm5, %v4609_v43  ;;  %v4613_v45 = vmul.f32 %v4609_v43, %v4592_v41 }
 0x3dc   : > { %v4614_v3 = vsub.f32 %v4612_v39, %v4613_v45 }
 0x3de   : > { %4615 = vst.msk [vmem:[#allocation6 + $0x1] sm:$0x1] %vm4610_vm5, %v4614_v3 }
 0x3df PF: > { %s10176_s16 = sshll.u32 %s10686_s24, 7  ;;  %vm4815_vm6 = vsmask.f32 256  ;;  %vm5139_vm7 = vcmask 519168   ;;  %vm4816_vm8 = vsmask.f32 4368 }
 0x3e0   : > { %s12530_s19 = scalar_lea.vmem [#allocation3], %s10176_s16  ;;  %vm5140_vm9 = vsmask.f32 7938  ;;  %vm5147_vm10 = vcmask 516096   ;;  %vm12560_vm11 = vmor %vm4815_vm6, %vm4816_vm8  ;;  %v5257_v6 = vld [vmem:[#allocation2] sm:$0xf] }
 0x3e1   : > { %v12526_v13 = vld [vmem:[#allocation6] ss:$0 sm:$0xff]  ;;  %v10399_v29 = vld [vmem:[%s12530_s19 + $0x48] sm:$0xff]   ;;  %v10400_v10 = vld [vmem:[%s12530_s19 + $0x50] sm:$0xff]   ;;  %v5309_v52 = vshrl.u32 %v5257_v6, 16  ;;  %v5312_v56 = vshll.u32 %v5257_v6, 16 }
 0x3e2   : > { %v10301_v26 = vunpack.c.l.bf16 %v10399_v29  ;;  %v10302_v12 = vunpack.c.h.bf16 %v10399_v29  ;;  %v10305_v33 = vunpack.c.l.bf16 %v10400_v10  ;;  %v10306_v48 = vunpack.c.h.bf16 %v10400_v10  ;;  %v10394_v50 = vld [vmem:[%s12530_s19 + $0x20] sm:$0xff]   ;;  %vm12566_vm12 = vmand %vm5139_vm7, %vm5140_vm9  ;;  %v5208_v49 = vld [vmem:[#allocation2 + $0x78] sm:$0xf]  ;;  %s10708_s20 = smov 64  }
 0x3e3   : > { %v10264_v16 = vld [vmem:[%s12530_s19] sm:$0xff]   ;;  %v10281_v32 = vunpack.c.l.bf16 %v10394_v50  ;;  %v10282_v23 = vunpack.c.h.bf16 %v10394_v50  ;;  %vm12572_vm13 = vmand %vm5147_vm10, %vm4815_vm6  ;;  %vm5305_vm14 = vsmask.f32 3328  ;;  %vm5306_vm15 = vsmask.f32 7440 }
 0x3e4   : > { %v4704_v37 = vmul.f32 %v12526_v13, %v10301_v26  ;;  %v4705_v1 = vmul.f32 %v12526_v13, %v10302_v12  ;;  %v4706_v24 = vmul.f32 %v12526_v13, %v10305_v33  ;;  %v4707_v55 = vmul.f32 %v12526_v13, %v10306_v48  ;;  %v5212_v4 = vld [vmem:[#allocation2 + $0x80] sm:$0x1]  ;;  %v5215_v29 = vld [vmem:[#allocation2 + $0x84] sm:$0xf]  ;;  %v5219_v33 = vld [vmem:[#allocation2 + $0x8c] sm:$0x1] }
 0x3e5   : > { %v12533_v27 = vld [vmem:[#allocation6 + $0x1] ss:$0 sm:$0xff]  ;;  %v10265_v60 = vunpack.c.l.bf16 %v10264_v16  ;;  %v10266_v57 = vunpack.c.h.bf16 %v10264_v16  ;;  %v4694_v44 = vmul.f32 %v12526_v13, %v10281_v32  ;;  %v4695_v58 = vmul.f32 %v12526_v13, %v10282_v23  ;;  %v5258_v48 = vld [vmem:[#allocation2 + $0x4] sm:$0xf]  ;;  %v5289_v16 = vld [vmem:[#allocation2 + $0x8] sm:$0x1] }
 0x3e6   : > { %v4737_v36 = vadd.f32 %v12533_v27, %v4704_v37  ;;  %v4738_v47 = vadd.f32 %v12533_v27, %v4705_v1  ;;  %v4739_v0 = vadd.f32 %v12533_v27, %v4706_v24  ;;  %v4740_v51 = vadd.f32 %v12533_v27, %v4707_v55  ;;  %vm12593_vm0 = vmor %vm5305_vm14, %vm5306_vm15 }
 0x3e7   : > { %v4686_v53 = vmul.f32 %v12526_v13, %v10265_v60  ;;  %v4687_v18 = vmul.f32 %v12526_v13, %v10266_v57  ;;  %v4727_v22 = vadd.f32 %v12533_v27, %v4694_v44  ;;  %v4728_v63 = vadd.f32 %v12533_v27, %v4695_v58 }
 0x3e8   : > { %v4769_v15 = vmax.f32 %v4737_v36, 0.0  ;;  %v4770_v20 = vmax.f32 %v4738_v47, 0.0  ;;  %v4771_v40 = vmax.f32 %v4739_v0, 0.0  ;;  %v4772_v14 = vmax.f32 %v4740_v51, 0.0 }
 0x3e9   : > { %v12553_v7 = vadd.f32 %v12533_v27, %v4686_v53  ;;  %v12556_v28 = vadd.f32 %v12533_v27, %v4687_v18  ;;  %v4759_v21 = vmax.f32 %v4727_v22, 0.0  ;;  %v4760_v59 = vmax.f32 %v4728_v63, 0.0 }
 0x3ea   : > { %v4801_v62 = vpack.c.bf16 %v4769_v15, %v4769_v15  ;;  %v4802_v11 = vpack.c.bf16 %v4770_v20, %v4770_v20  ;;  %v4803_v9 = vpack.c.bf16 %v4771_v40, %v4771_v40  ;;  %v4804_v19 = vpack.c.bf16 %v4772_v14, %v4772_v14 }
 0x3eb   : > { %v4791_v26 = vpack.c.bf16 %v4759_v21, %v4759_v21  ;;  %v4792_v12 = vpack.c.bf16 %v4760_v59, %v4760_v59  ;;  %v5311_v50 = vrot.slane %v5309_v52, 4  ;;  %v5314_v51 = vrot.slane %v5312_v56, 5 }
 0x3ec   : > { %v4972_v31 = vshrl.u32 %v4801_v62, 16  ;;  %v4975_v38 = vshll.u32 %v4801_v62, 16  ;;  %v4980_v34 = vshrl.u32 %v4802_v11, 16  ;;  %v4983_v17 = vshll.u32 %v4802_v11, 16  ;;  %v5173_v62 = vld [vmem:[#allocation2 + $0x3c] sm:$0xf] }
 0x3ed   : > { %v4989_v54 = vshrl.u32 %v4803_v9, 16  ;;  %v4992_v42 = vshll.u32 %v4803_v9, 16  ;;  %v4997_v46 = vshrl.u32 %v4804_v19, 16  ;;  %v5000_v2 = vshll.u32 %v4804_v19, 16 }
 0x3ee   : > { %v4974_v5 = vrot.slane %v4972_v31, 7  ;;  %v4982_v41 = vrot.slane %v4980_v34, 7  ;;  %v4887_v32 = vshrl.u32 %v4791_v26, 16  ;;  %v4890_v23 = vshll.u32 %v4791_v26, 16  ;;  %v5177_v34 = vld [vmem:[#allocation2 + $0x44] sm:$0x1] }
 0x3ef   : > { %v4991_v45 = vrot.slane %v4989_v54, 7  ;;  %v4999_v3 = vrot.slane %v4997_v46, 7  ;;  %v4895_v60 = vshrl.u32 %v4792_v12, 16  ;;  %v4898_v57 = vshll.u32 %v4792_v12, 16 }
 0x3f0   : > { %v4977_v61 = vor.u32 %v4975_v38, %v4974_v5  ;;  %v4978_v25 = vrot.slane %v4974_v5, 4  ;;  %v4985_v43 = vor.u32 %v4983_v17, %v4982_v41  ;;  %v4987_v39 = vrot.slane %v4982_v41, 4 }
 0x3f1   : > { %v4994_v36 = vor.u32 %v4992_v42, %v4991_v45  ;;  %v4995_v47 = vrot.slane %v4991_v45, 4  ;;  %v5002_v24 = vor.u32 %v5000_v2, %v4999_v3  ;;  %v5004_v55 = vrot.slane %v4999_v3, 4 }
 0x3f2   : > { %v4986_v10 = vsel %vm12560_vm11, %v4978_v25, %v4985_v43  ;;  %v5209_v37 = vsel %vm12566_vm12, %v4977_v61, %v5208_v49  ;;  %v5213_v1 = vsel %vm12572_vm13, %v4987_v39, %v5212_v4  ;;  %v4889_v44 = vrot.slane %v4887_v32, 7 }
 0x3f3   : > { %5210 = vst [vmem:[#allocation2 + $0x78] sm:$0xf] %v5209_v37  ;;  %v5003_v15 = vsel %vm12560_vm11, %v4995_v47, %v5002_v24  ;;  %v5216_v20 = vsel %vm12566_vm12, %v4994_v36, %v5215_v29  ;;  %v5220_v0 = vsel %vm12572_vm13, %v5004_v55, %v5219_v33  ;;  %v4897_v58 = vrot.slane %v4895_v60, 7 }
 0x3f4   : > { %5211 = vst.msk [vmem:[#allocation2 + $0x7c] sm:$0xf] %vm5139_vm7, %v4986_v10  ;;  %v5318_v53 = vshll.u32 %v5258_v48, 16  ;;  %v5322_v18 = vshrl.u32 %v5258_v48, 16  ;;  %v5315_v11 = vor.u32 %v5314_v51, %v5311_v50  ;;  %v5328_v40 = vshll.u32 %v5289_v16, 16 }
 0x3f5   : > { %5214 = vst [vmem:[#allocation2 + $0x80] sm:$0x1] %v5213_v1  ;;  %v4751_v14 = vmax.f32 %v12553_v7, 0.0  ;;  %v4892_v22 = vor.u32 %v4890_v23, %v4889_v44  ;;  %v4893_v63 = vrot.slane %v4889_v44, 4  ;;  %v4900_v31 = vor.u32 %v4898_v57, %v4897_v58 }
 0x3f6   : > { %5217 = vst [vmem:[#allocation2 + $0x84] sm:$0xf] %v5216_v20  ;;  %v4902_v38 = vrot.slane %v4897_v58, 4  ;;  %v5316_v17 = vrot.slane %v5315_v11, 4  ;;  %v5320_v9 = vrot.slane %v5318_v53, 5  ;;  %v5324_v19 = vrot.slane %v5322_v18, 4 }
 0x3f7   : > { %5218 = vst.msk [vmem:[#allocation2 + $0x88] sm:$0xf] %vm5139_vm7, %v5003_v15  ;;  %v4901_v6 = vsel %vm12560_vm11, %v4893_v63, %v4900_v31  ;;  %v5174_v7 = vsel %vm12566_vm12, %v4892_v22, %v5173_v62  ;;  %v12601_v5 = vrot.slane %v5328_v40, 5  ;;  %v4752_v41 = vmax.f32 %v12556_v28, 0.0 }
 0x3f8   : > { %5221 = vst [vmem:[#allocation2 + $0x8c] sm:$0x1] %v5220_v0  ;;  %v5178_v4 = vsel %vm12572_vm13, %v4902_v38, %v5177_v34  ;;  %v5321_v54 = vsel %vm12593_vm0, %v5316_v17, %v5320_v9  ;;  %v5325_v61 = vor.u32 %v5324_v19, %v5320_v9  ;;  %v12609_v25 = vpack.c.bf16 %v4751_v14, %v4751_v14 }
 0x3f9   : > { %5175 = vst [vmem:[#allocation2 + $0x3c] sm:$0xf] %v5174_v7  ;;  %v12611_v3 = vunpack.c.l.b16 %v5321_v54  ;;  %v4784_v57 = vpack.c.bf16 %v4752_v41, %v4752_v41  ;;  %vm5756_vm1 = vcmask 1042432   ;;  %vm5757_vm2 = vcmask 1046532  }
 0x3fa   : > { %v5277_v21 = vld [vmem:[#allocation2 + $0x78] sm:$0xf]  ;;  %5176 = vst.msk [vmem:[#allocation2 + $0x40] sm:$0xf] %vm5139_vm7, %v4901_v6  ;;  %v5326_v44 = vrot.slane %v5325_v61, 4  ;;  %v4819_v61 = vshrl.u32 %v12609_v25, 16  ;;  %vm12832_vm3 = vmor %vm5756_vm1, %vm5757_vm2 }
 0x3fb   : > { %v5278_v49 = vld [vmem:[#allocation2 + $0x7c] sm:$0xf]  ;;  %v5549_v52 = vshrl.u32 %v5277_v21, 16  ;;  %v5552_v56 = vshll.u32 %v5277_v21, 16  ;;  %5179 = vst [vmem:[#allocation2 + $0x44] sm:$0x1] %v5178_v4 }
 0x3fc   : > { %v5299_v42 = vld [vmem:[#allocation2 + $0x80] sm:$0x1]  ;;  %v5558_v46 = vshll.u32 %v5278_v49, 16  ;;  %v5562_v2 = vshrl.u32 %v5278_v49, 16  ;;  %v5331_v6 = vsel %vm12593_vm0, %v5326_v44, %v12601_v5  ;;  %v4822_v5 = vshll.u32 %v12609_v25, 16 }
 0x3fd   : > { %v5551_v43 = vrot.slane %v5549_v52, 4  ;;  %v5554_v28 = vrot.slane %v5552_v56, 5  ;;  %v5568_v39 = vshll.u32 %v5299_v42, 16  ;;  %v5279_v45 = vld [vmem:[#allocation2 + $0x84] sm:$0xf]  ;;  %vm7696_vm4 = vcmask 523264  }
 0x3fe   : > { %v5560_v29 = vrot.slane %v5558_v46, 5  ;;  %v5564_v26 = vrot.slane %v5562_v2, 4  ;;  %v5280_v12 = vld [vmem:[#allocation2 + $0x88] sm:$0xf]  ;;  %v5573_v10 = vshrl.u32 %v5279_v45, 16  ;;  %v5576_v37 = vshll.u32 %v5279_v45, 16 }
 0x3ff   : > { %v5555_v1 = vor.u32 %v5554_v28, %v5551_v43  ;;  %v5570_v33 = vrot.slane %v5568_v39, 5  ;;  %v5300_v48 = vld [vmem:[#allocation2 + $0x8c] sm:$0x1]  ;;  %v5582_v50 = vshll.u32 %v5280_v12, 16  ;;  %v5586_v36 = vshrl.u32 %v5280_v12, 16 }
 0x400   : > { %v5565_v47 = vor.u32 %v5564_v26, %v5560_v29  ;;  %v5575_v24 = vrot.slane %v5573_v10, 4  ;;  %v5578_v55 = vrot.slane %v5576_v37, 5  ;;  %v5592_v16 = vshll.u32 %v5300_v48, 16  ;;  %v5267_v51 = vld [vmem:[#allocation2 + $0x3c] sm:$0xf]  ;;  %v10391_v28 = vld [vmem:[%s12530_s19 + $0x8] sm:$0xff]  }
 0x401   : > { %v5556_v32 = vrot.slane %v5555_v1, 4  ;;  %v5584_v23 = vrot.slane %v5582_v50, 5  ;;  %v5588_v60 = vrot.slane %v5586_v36, 4  ;;  %v5268_v18 = vld [vmem:[#allocation2 + $0x40] sm:$0xf]  ;;  %v5429_v62 = vshrl.u32 %v5267_v51, 16 }
 0x402   : > { %v5566_v15 = vrot.slane %v5565_v47, 4  ;;  %v5579_v20 = vor.u32 %v5578_v55, %v5575_v24  ;;  %v5594_v0 = vrot.slane %v5592_v16, 5  ;;  %v5432_v11 = vshll.u32 %v5267_v51, 16  ;;  %v5294_v52 = vld [vmem:[#allocation2 + $0x44] sm:$0x1] }
 0x403   : > { %v5561_v58 = vsel %vm12593_vm0, %v5556_v32, %v5560_v29  ;;  %v5589_v53 = vor.u32 %v5588_v60, %v5584_v23  ;;  %v5438_v63 = vshll.u32 %v5268_v18, 16  ;;  %v5431_v34 = vrot.slane %v5429_v62, 4  ;;  %v5142_v50 = vld [vmem:[#allocation2 + $0xc] sm:$0xf]  ;;  %v5149_v36 = vld [vmem:[#allocation2 + $0x14] sm:$0x1] }
 0x404   : > { %v5571_v40 = vsel %vm12593_vm0, %v5566_v15, %v5570_v33  ;;  %v7172_v14 = vunpack.c.l.b16 %v5561_v58  ;;  %v5580_v22 = vrot.slane %v5579_v20, 4  ;;  %v5434_v17 = vrot.slane %v5432_v11, 5  ;;  %v10392_v33 = vld [vmem:[%s12530_s19 + $0x10] sm:$0xff]  }
 0x405   : > { %v7173_v31 = vunpack.c.l.b16 %v5571_v40  ;;  %v5590_v38 = vrot.slane %v5589_v53, 4  ;;  %v5440_v19 = vrot.slane %v5438_v63, 5  ;;  %v5442_v21 = vshrl.u32 %v5268_v18, 16  ;;  %v10396_v20 = vld [vmem:[%s12530_s19 + $0x30] sm:$0xff]  }
 0x406   : > { %v5585_v9 = vsel %vm12593_vm0, %v5580_v22, %v5584_v23  ;;  %v5435_v56 = vor.u32 %v5434_v17, %v5431_v34  ;;  %v5448_v42 = vshll.u32 %v5294_v52, 16  ;;  %v7153_v46 = vunpack.c.l.b16 %v5331_v6 }
 0x407   : > { %v7194_v7 = vpack.c.b16 %v7173_v31, %v7172_v14  ;;  %v5595_v41 = vsel %vm12593_vm0, %v5590_v38, %v5594_v0  ;;  %v7174_v49 = vunpack.c.l.b16 %v5585_v9  ;;  %v5444_v54 = vrot.slane %v5442_v21, 4  ;;  %v10393_v0 = vld [vmem:[%s12530_s19 + $0x18] sm:$0xff]  }
 0x408   : > { %v7175_v4 = vunpack.c.l.b16 %v5595_v41  ;;  %v5436_v2 = vrot.slane %v5435_v56, 4  ;;  %v4827_v43 = vshrl.u32 %v4784_v57, 16  ;;  %v5450_v29 = vrot.slane %v5448_v42, 5 }
 0x409   : > { %7220 = vrot.lane.b32.xlu0 %v7194_v7, %s10708_s20  ;;  %v5445_v45 = vor.u32 %v5444_v54, %v5440_v19  ;;  %v7184_v26 = vpack.c.b16 %v7153_v46, %v12611_v3  ;;  %v4821_v10 = vrot.slane %v4819_v61, 7  ;;  %v4830_v1 = vshll.u32 %v4784_v57, 16 }
 0x40a   : > { %v7195_v39 = vpack.c.b16 %v7175_v4, %v7174_v49  ;;  %v5441_v12 = vsel %vm12593_vm0, %v5436_v2, %v5440_v19  ;;  %v4829_v37 = vrot.slane %v4827_v43, 7  ;;  %v10269_v47 = vunpack.c.l.bf16 %v10391_v28 }
 0x40b   : > { %v5446_v48 = vrot.slane %v5445_v45, 4  ;;  %v7162_v25 = vunpack.c.l.b16 %v5441_v12  ;;  %v10270_v24 = vunpack.c.h.bf16 %v10391_v28  ;;  %v4824_v55 = vor.u32 %v4822_v5, %v4821_v10 }
 0x40c   : > { %7222 = vrot.lane.b32.xlu1 %v7195_v39, %s10708_s20  ;;  %v4825_v16 = vrot.slane %v4821_v10, 4  ;;  %v4832_v3 = vor.u32 %v4830_v1, %v4829_v37  ;;  %v4834_v32 = vrot.slane %v4829_v37, 4  ;;  %v4688_v60 = vmul.f32 %v12526_v13, %v10269_v47  ;;  %v5152_v39 = vld [vmem:[#allocation2 + $0x18] sm:$0xf] }
 0x40d   : > { %v5451_v23 = vsel %vm12593_vm0, %v5446_v48, %v5450_v29  ;;  %v4689_v57 = vmul.f32 %v12526_v13, %v10270_v24  ;;  %v10273_v15 = vunpack.c.l.bf16 %v10392_v33  ;;  %v5143_v58 = vsel %vm12566_vm12, %v4824_v55, %v5142_v50 }
 0x40e   : > { %v7163_v51 = vunpack.c.l.b16 %v5451_v23  ;;  %v4833_v44 = vsel %vm12560_vm11, %v4825_v16, %v4832_v3  ;;  %v5150_v53 = vsel %vm12572_vm13, %v4834_v32, %v5149_v36  ;;  %5144 = vst [vmem:[#allocation2 + $0xc] sm:$0xf] %v5143_v58  ;;  %v4721_v18 = vadd.f32 %v12533_v27, %v4688_v60 }
 0x40f   : > { %v4722_v62 = vadd.f32 %v12533_v27, %v4689_v57  ;;  %v10274_v11 = vunpack.c.h.bf16 %v10392_v33  ;;  %v4690_v40 = vmul.f32 %v12526_v13, %v10273_v15  ;;  %5146 = vst.msk [vmem:[#allocation2 + $0x10] sm:$0xf] %vm5139_vm7, %v4833_v44  ;;  %v10289_v22 = vunpack.c.l.bf16 %v10396_v20 }
 0x410   : > { %v7189_v14 = vpack.c.b16 %v7163_v51, %v7162_v25  ;;  %v10290_v63 = vunpack.c.h.bf16 %v10396_v20  ;;  %v10277_v31 = vunpack.c.l.bf16 %v10393_v0  ;;  %5151 = vst [vmem:[#allocation2 + $0x14] sm:$0x1] %v5150_v53  ;;  %v4753_v38 = vmax.f32 %v4721_v18, 0.0  ;;  %v5156_v20 = vld [vmem:[#allocation2 + $0x20] sm:$0x1] }
 0x411   : > { %v4754_v34 = vmax.f32 %v4722_v62, 0.0  ;;  %v4691_v17 = vmul.f32 %v12526_v13, %v10274_v11  ;;  %v4723_v9 = vadd.f32 %v12533_v27, %v4690_v40  ;;  %v4698_v19 = vmul.f32 %v12526_v13, %v10289_v22  ;;  %v5159_v40 = vld [vmem:[#allocation2 + $0x24] sm:$0xf] }
 0x412   : > { %7210 = vrot.lane.b32.xlu0 %v7189_v14, %s10708_s20  ;;  %v4699_v21 = vmul.f32 %v12526_v13, %v10290_v63  ;;  %v10278_v6 = vunpack.c.h.bf16 %v10393_v0  ;;  %v4692_v7 = vmul.f32 %v12526_v13, %v10277_v31  ;;  %v4785_v41 = vpack.c.bf16 %v4753_v38, %v4753_v38 }
 0x413   : > { %v4786_v49 = vpack.c.bf16 %v4754_v34, %v4754_v34  ;;  %v4724_v52 = vadd.f32 %v12533_v27, %v4691_v17  ;;  %v4755_v56 = vmax.f32 %v4723_v9, 0.0  ;;  %v4731_v4 = vadd.f32 %v12533_v27, %v4698_v19 }
 0x414   : > { %7200 = vrot.lane.b32.xlu1 %v7184_v26, %s10708_s20  ;;  %v4732_v54 = vadd.f32 %v12533_v27, %v4699_v21  ;;  %v4693_v42 = vmul.f32 %v12526_v13, %v10278_v6  ;;  %v12661_v46 = vadd.f32 %v12533_v27, %v4692_v7  ;;  %v4836_v2 = vshrl.u32 %v4785_v41, 16 }
 0x415   : > { %v4839_v61 = vshll.u32 %v4785_v41, 16  ;;  %v4844_v5 = vshrl.u32 %v4786_v49, 16  ;;  %v4847_v43 = vshll.u32 %v4786_v49, 16  ;;  %v5259_v28 = vld [vmem:[#allocation2 + $0xc] sm:$0xf]  ;;  %v4756_v45 = vmax.f32 %v4724_v52, 0.0 }
 0x416   : > { %v4787_v29 = vpack.c.bf16 %v4755_v56, %v4755_v56  ;;  %v4763_v26 = vmax.f32 %v4731_v4, 0.0  ;;  %v4764_v12 = vmax.f32 %v4732_v54, 0.0  ;;  %v5260_v10 = vld [vmem:[#allocation2 + $0x10] sm:$0xf]  ;;  %v5333_v37 = vshrl.u32 %v5259_v28, 16 }
 0x417   : > { %v5336_v1 = vshll.u32 %v5259_v28, 16  ;;  %v4838_v33 = vrot.slane %v4836_v2, 7  ;;  %v4846_v48 = vrot.slane %v4844_v5, 7  ;;  %v5290_v25 = vld [vmem:[#allocation2 + $0x14] sm:$0x1]  ;;  %v5342_v50 = vshll.u32 %v5260_v10, 16 }
 0x418   : > { %v5346_v36 = vshrl.u32 %v5260_v10, 16  ;;  %v4788_v47 = vpack.c.bf16 %v4756_v45, %v4756_v45  ;;  %v4853_v24 = vshrl.u32 %v4787_v29, 16  ;;  %v5335_v55 = vrot.slane %v5333_v37, 4  ;;  %v5163_v56 = vld [vmem:[#allocation2 + $0x2c] sm:$0x1] }
 0x419   : > { %v5338_v16 = vrot.slane %v5336_v1, 5  ;;  %v5352_v3 = vshll.u32 %v5290_v25, 16  ;;  %v4841_v32 = vor.u32 %v4839_v61, %v4838_v33  ;;  %v5344_v23 = vrot.slane %v5342_v50, 5  ;;  %v5187_v37 = vld [vmem:[#allocation2 + $0x54] sm:$0xf] }
 0x41a   : > { %v5348_v60 = vrot.slane %v5346_v36, 4  ;;  %v4842_v57 = vrot.slane %v4838_v33, 4  ;;  %v4849_v15 = vor.u32 %v4847_v43, %v4846_v48  ;;  %v4851_v44 = vrot.slane %v4846_v48, 4 }
 0x41b   : > { %v5339_v0 = vor.u32 %v5338_v16, %v5335_v55  ;;  %v5354_v51 = vrot.slane %v5352_v3, 5  ;;  %v5153_v58 = vsel %vm12566_vm12, %v4841_v32, %v5152_v39  ;;  %v4855_v62 = vrot.slane %v4853_v24, 7 }
 0x41c   : > { %v5349_v53 = vor.u32 %v5348_v60, %v5344_v23  ;;  %v4850_v18 = vsel %vm12560_vm11, %v4842_v57, %v4849_v15  ;;  %5154 = vst [vmem:[#allocation2 + $0x18] sm:$0xf] %v5153_v58  ;;  %v4856_v11 = vshll.u32 %v4787_v29, 16  ;;  %v5157_v22 = vsel %vm12572_vm13, %v4851_v44, %v5156_v20 }
 0x41d   : > { %v5340_v14 = vrot.slane %v5339_v0, 4  ;;  %5155 = vst.msk [vmem:[#allocation2 + $0x1c] sm:$0xf] %vm5139_vm7, %v4850_v18  ;;  %v4861_v63 = vshrl.u32 %v4788_v47, 16  ;;  %v4864_v31 = vshll.u32 %v4788_v47, 16  ;;  %v4859_v17 = vrot.slane %v4855_v62, 4 }
 0x41e   : > { %v5350_v38 = vrot.slane %v5349_v53, 4  ;;  %5158 = vst [vmem:[#allocation2 + $0x20] sm:$0x1] %v5157_v22  ;;  %v4858_v34 = vor.u32 %v4856_v11, %v4855_v62  ;;  %v4795_v9 = vpack.c.bf16 %v4763_v26, %v4763_v26  ;;  %v4796_v6 = vpack.c.bf16 %v4764_v12, %v4764_v12  ;;  %v5191_v22 = vld [vmem:[#allocation2 + $0x5c] sm:$0x1] }
 0x41f   : > { %v5345_v19 = vsel %vm12593_vm0, %v5340_v14, %v5344_v23  ;;  %v4863_v21 = vrot.slane %v4861_v63, 7  ;;  %v4726_v7 = vadd.f32 %v12533_v27, %v4693_v42  ;;  %v4757_v45 = vmax.f32 %v12661_v46, 0.0  ;;  %v12679_v42 = vld [vmem:[%s12530_s19 + $0x28] sm:$0xff]  }
 0x420   : > { %v5355_v41 = vsel %vm12593_vm0, %v5350_v38, %v5354_v51  ;;  %v7154_v49 = vunpack.c.l.b16 %v5345_v19  ;;  %v5160_v52 = vsel %vm12566_vm12, %v4858_v34, %v5159_v40  ;;  %v4921_v4 = vshrl.u32 %v4795_v9, 16 }
 0x421   : > { %v7155_v54 = vunpack.c.l.b16 %v5355_v41  ;;  %v4866_v2 = vor.u32 %v4864_v31, %v4863_v21  ;;  %v4868_v61 = vrot.slane %v4863_v21, 4  ;;  %5161 = vst [vmem:[#allocation2 + $0x24] sm:$0xf] %v5160_v52  ;;  %v4924_v5 = vshll.u32 %v4795_v9, 16 }
 0x422   : > { %v4923_v43 = vrot.slane %v4921_v4, 7  ;;  %v4929_v28 = vshrl.u32 %v4796_v6, 16  ;;  %v4932_v39 = vshll.u32 %v4796_v6, 16  ;;  %v4758_v1 = vmax.f32 %v4726_v7, 0.0 }
 0x423   : > { %v7185_v29 = vpack.c.b16 %v7155_v54, %v7154_v49  ;;  %v5261_v26 = vld [vmem:[#allocation2 + $0x18] sm:$0xf]  ;;  %v4867_v12 = vsel %vm12560_vm11, %v4859_v17, %v4866_v2  ;;  %v5164_v10 = vsel %vm12572_vm13, %v4868_v61, %v5163_v56  ;;  %v4789_v36 = vpack.c.bf16 %v4757_v45, %v4757_v45  ;;  %v5166_v45 = vld [vmem:[#allocation2 + $0x30] sm:$0xf] }
 0x424   : > { %v5262_v33 = vld [vmem:[#allocation2 + $0x1c] sm:$0xf]  ;;  %v5357_v48 = vshrl.u32 %v5261_v26, 16  ;;  %v5360_v25 = vshll.u32 %v5261_v26, 16  ;;  %5162 = vst.msk [vmem:[#allocation2 + $0x28] sm:$0xf] %vm5139_vm7, %v4867_v12  ;;  %v4926_v50 = vor.u32 %v4924_v5, %v4923_v43  ;;  %v12687_v55 = vpack.c.bf16 %v4758_v1, %v4758_v1 }
 0x425   : > { %7202 = vrot.lane.b32.xlu0 %v7185_v29, %s10708_s20  ;;  %v5291_v46 = vld [vmem:[#allocation2 + $0x20] sm:$0x1]  ;;  %v5366_v47 = vshll.u32 %v5262_v33, 16  ;;  %v5370_v24 = vshrl.u32 %v5262_v33, 16  ;;  %5165 = vst [vmem:[#allocation2 + $0x2c] sm:$0x1] %v5164_v10  ;;  %v10285_v16 = vunpack.c.l.bf16 %v12679_v42  ;;  %v10286_v18 = vunpack.c.h.bf16 %v12679_v42 }
 0x426   : > { %v5359_v3 = vrot.slane %v5357_v48, 4  ;;  %v5362_v32 = vrot.slane %v5360_v25, 5  ;;  %v5376_v23 = vshll.u32 %v5291_v46, 16  ;;  %v4927_v60 = vrot.slane %v4923_v43, 4 }
 0x427   : > { %v5368_v57 = vrot.slane %v5366_v47, 5  ;;  %v5372_v15 = vrot.slane %v5370_v24, 4  ;;  %v4931_v20 = vrot.slane %v4929_v28, 7  ;;  %v5188_v0 = vsel %vm12566_vm12, %v4926_v50, %v5187_v37  ;;  %v5170_v24 = vld [vmem:[#allocation2 + $0x38] sm:$0x1] }
 0x428   : > { %v5363_v51 = vor.u32 %v5362_v32, %v5359_v3  ;;  %v5378_v44 = vrot.slane %v5376_v23, 5  ;;  %v5263_v58 = vld [vmem:[#allocation2 + $0x24] sm:$0xf]  ;;  %5189 = vst [vmem:[#allocation2 + $0x54] sm:$0xf] %v5188_v0  ;;  %v4870_v53 = vshrl.u32 %v4789_v36, 16  ;;  %v4696_v0 = vmul.f32 %v12526_v13, %v10285_v16 }
 0x429   : > { %v5373_v62 = vor.u32 %v5372_v15, %v5368_v57  ;;  %v5381_v11 = vshrl.u32 %v5263_v58, 16  ;;  %v5384_v40 = vshll.u32 %v5263_v58, 16  ;;  %v4934_v14 = vor.u32 %v4932_v39, %v4931_v20 }
 0x42a   : > { %v5364_v63 = vrot.slane %v5363_v51, 4  ;;  %v4936_v31 = vrot.slane %v4931_v20, 4  ;;  %v4872_v38 = vrot.slane %v4870_v53, 7  ;;  %v4873_v34 = vshll.u32 %v4789_v36, 16 }
 0x42b   : > { %v5374_v17 = vrot.slane %v5373_v62, 4  ;;  %v5264_v9 = vld [vmem:[#allocation2 + $0x28] sm:$0xf]  ;;  %v5383_v19 = vrot.slane %v5381_v11, 4  ;;  %v5386_v21 = vrot.slane %v5384_v40, 5  ;;  %v4935_v6 = vsel %vm12560_vm11, %v4927_v60, %v4934_v14  ;;  %v10397_v11 = vld [vmem:[%s12530_s19 + $0x38] sm:$0xff]  }
 0x42c   : > { %v5369_v7 = vsel %vm12593_vm0, %v5364_v63, %v5368_v57  ;;  %v5292_v41 = vld [vmem:[#allocation2 + $0x2c] sm:$0x1]  ;;  %v5390_v49 = vshll.u32 %v5264_v9, 16  ;;  %v5394_v52 = vshrl.u32 %v5264_v9, 16  ;;  %5190 = vst.msk [vmem:[#allocation2 + $0x58] sm:$0xf] %vm5139_vm7, %v4935_v6  ;;  %v5192_v56 = vsel %vm12572_vm13, %v4936_v31, %v5191_v22 }
 0x42d   : > { %v5379_v4 = vsel %vm12593_vm0, %v5374_v17, %v5378_v44  ;;  %v7156_v54 = vunpack.c.l.b16 %v5369_v7  ;;  %v5387_v2 = vor.u32 %v5386_v21, %v5383_v19  ;;  %v5400_v61 = vshll.u32 %v5292_v41, 16  ;;  %5193 = vst [vmem:[#allocation2 + $0x5c] sm:$0x1] %v5192_v56 }
 0x42e   : > { %v7157_v5 = vunpack.c.l.b16 %v5379_v4  ;;  %v5392_v43 = vrot.slane %v5390_v49, 5  ;;  %v5396_v28 = vrot.slane %v5394_v52, 4  ;;  %v4875_v39 = vor.u32 %v4873_v34, %v4872_v38 }
 0x42f   : > { %v5388_v29 = vrot.slane %v5387_v2, 4  ;;  %v5402_v26 = vrot.slane %v5400_v61, 5  ;;  %v5271_v12 = vld [vmem:[#allocation2 + $0x54] sm:$0xf]  ;;  %v4876_v10 = vrot.slane %v4872_v38, 4  ;;  %v4878_v37 = vshrl.u32 %v12687_v55, 16 }
 0x430   : > { %v7186_v1 = vpack.c.b16 %v7157_v5, %v7156_v54  ;;  %v5397_v33 = vor.u32 %v5396_v28, %v5392_v43  ;;  %v5477_v48 = vshrl.u32 %v5271_v12, 16  ;;  %v5480_v25 = vshll.u32 %v5271_v12, 16  ;;  %v12723_v38 = vld [vmem:[%s12530_s19 + $0x58] sm:$0xff]  }
 0x431   : > { %v5393_v50 = vsel %vm12593_vm0, %v5388_v29, %v5392_v43  ;;  %v4880_v36 = vrot.slane %v4878_v37, 7  ;;  %v4881_v46 = vshll.u32 %v12687_v55, 16  ;;  %v5167_v47 = vsel %vm12566_vm12, %v4875_v39, %v5166_v45 }
 0x432   : > { %7204 = vrot.lane.b32.xlu0 %v7186_v1, %s10708_s20  ;;  %v5398_v3 = vrot.slane %v5397_v33, 4  ;;  %v7158_v32 = vunpack.c.l.b16 %v5393_v50  ;;  %v5479_v23 = vrot.slane %v5477_v48, 4  ;;  %v5482_v60 = vrot.slane %v5480_v25, 5  ;;  %5168 = vst [vmem:[#allocation2 + $0x30] sm:$0xf] %v5167_v47 }
 0x433   : > { %v5272_v57 = vld [vmem:[#allocation2 + $0x58] sm:$0xf]  ;;  %v4883_v15 = vor.u32 %v4881_v46, %v4880_v36  ;;  %v4885_v20 = vrot.slane %v4880_v36, 4  ;;  %v4697_v55 = vmul.f32 %v12526_v13, %v10286_v18  ;;  %v4729_v31 = vadd.f32 %v12533_v27, %v4696_v0 }
 0x434   : > { %v5403_v51 = vsel %vm12593_vm0, %v5398_v3, %v5402_v26  ;;  %v5296_v44 = vld [vmem:[#allocation2 + $0x5c] sm:$0x1]  ;;  %v5483_v58 = vor.u32 %v5482_v60, %v5479_v23  ;;  %v5486_v53 = vshll.u32 %v5272_v57, 16  ;;  %v5490_v62 = vshrl.u32 %v5272_v57, 16  ;;  %v5180_v57 = vld [vmem:[#allocation2 + $0x48] sm:$0xf] }
 0x435   : > { %v7159_v40 = vunpack.c.l.b16 %v5403_v51  ;;  %v5496_v14 = vshll.u32 %v5296_v44, 16  ;;  %v4884_v22 = vsel %vm12560_vm11, %v4876_v10, %v4883_v15  ;;  %v5171_v42 = vsel %vm12572_vm13, %v4885_v20, %v5170_v24  ;;  %v5184_v44 = vld [vmem:[#allocation2 + $0x50] sm:$0x1] }
 0x436   : > { %v5484_v16 = vrot.slane %v5483_v58, 4  ;;  %v5488_v63 = vrot.slane %v5486_v53, 5  ;;  %v5492_v18 = vrot.slane %v5490_v62, 4  ;;  %5169 = vst.msk [vmem:[#allocation2 + $0x34] sm:$0xf] %vm5139_vm7, %v4884_v22  ;;  %v4730_v9 = vadd.f32 %v12533_v27, %v4697_v55 }
 0x437   : > { %v7187_v34 = vpack.c.b16 %v7159_v40, %v7158_v32  ;;  %v5498_v17 = vrot.slane %v5496_v14, 5  ;;  %5172 = vst [vmem:[#allocation2 + $0x38] sm:$0x1] %v5171_v42  ;;  %v10293_v19 = vunpack.c.l.bf16 %v10397_v11  ;;  %v4761_v7 = vmax.f32 %v4729_v31, 0.0 }
 0x438   : > { %v5489_v21 = vsel %vm12593_vm0, %v5484_v16, %v5488_v63  ;;  %v5493_v6 = vor.u32 %v5492_v18, %v5488_v63  ;;  %v10294_v41 = vunpack.c.h.bf16 %v10397_v11  ;;  %v4762_v56 = vmax.f32 %v4730_v9, 0.0  ;;  %v10398_v16 = vld [vmem:[%s12530_s19 + $0x40] sm:$0xff]  }
 0x439   : > { %v7166_v49 = vunpack.c.l.b16 %v5489_v21  ;;  %v5265_v52 = vld [vmem:[#allocation2 + $0x30] sm:$0xf]  ;;  %v4700_v4 = vmul.f32 %v12526_v13, %v10293_v19  ;;  %v10309_v54 = vunpack.c.l.bf16 %v12723_v38  ;;  %v4793_v43 = vpack.c.bf16 %v4761_v7, %v4761_v7 }
 0x43a   : > { %7206 = vrot.lane.b32.xlu0 %v7187_v34, %s10708_s20  ;;  %v5494_v2 = vrot.slane %v5493_v6, 4  ;;  %v5405_v61 = vshrl.u32 %v5265_v52, 16  ;;  %v5408_v5 = vshll.u32 %v5265_v52, 16  ;;  %v4794_v28 = vpack.c.bf16 %v4762_v56, %v4762_v56 }
 0x43b   : > { %v4701_v39 = vmul.f32 %v12526_v13, %v10294_v41  ;;  %v4733_v45 = vadd.f32 %v12533_v27, %v4700_v4  ;;  %v10310_v29 = vunpack.c.h.bf16 %v12723_v38  ;;  %v4904_v37 = vshrl.u32 %v4793_v43, 16  ;;  %v12751_v41 = vld [vmem:[%s12530_s19 + $0x60] sm:$0xff]  }
 0x43c   : > { %v5499_v26 = vsel %vm12593_vm0, %v5494_v2, %v5498_v17  ;;  %v5407_v12 = vrot.slane %v5405_v61, 4  ;;  %v5410_v10 = vrot.slane %v5408_v5, 5  ;;  %v4907_v48 = vshll.u32 %v4793_v43, 16 }
 0x43d   : > { %v7167_v1 = vunpack.c.l.b16 %v5499_v26  ;;  %v5266_v33 = vld [vmem:[#allocation2 + $0x34] sm:$0xf]  ;;  %v4912_v25 = vshrl.u32 %v4794_v28, 16  ;;  %v4915_v50 = vshll.u32 %v4794_v28, 16  ;;  %v4906_v3 = vrot.slane %v4904_v37, 7 }
 0x43e   : > { %v5293_v36 = vld [vmem:[#allocation2 + $0x38] sm:$0x1]  ;;  %v5411_v46 = vor.u32 %v5410_v10, %v5407_v12  ;;  %v5414_v47 = vshll.u32 %v5266_v33, 16  ;;  %v5418_v24 = vshrl.u32 %v5266_v33, 16  ;;  %v4734_v15 = vadd.f32 %v12533_v27, %v4701_v39  ;;  %v5194_v12 = vld [vmem:[#allocation2 + $0x60] sm:$0xf] }
 0x43f   : > { %v7191_v32 = vpack.c.b16 %v7167_v1, %v7166_v49  ;;  %v5424_v23 = vshll.u32 %v5293_v36, 16  ;;  %v4914_v60 = vrot.slane %v4912_v25, 7  ;;  %v4909_v51 = vor.u32 %v4907_v48, %v4906_v3  ;;  %v12759_v37 = vld [vmem:[#allocation6] ss:$0 sm:$0xff] }
 0x440   : > { %v5412_v20 = vrot.slane %v5411_v46, 4  ;;  %v5416_v0 = vrot.slane %v5414_v47, 5  ;;  %v5420_v55 = vrot.slane %v5418_v24, 4  ;;  %v4910_v53 = vrot.slane %v4906_v3, 4 }
 0x441   : > { %7214 = vrot.lane.b32.xlu1 %v7191_v32, %s10708_s20  ;;  %v5426_v58 = vrot.slane %v5424_v23, 5  ;;  %v4917_v62 = vor.u32 %v4915_v50, %v4914_v60  ;;  %v4919_v11 = vrot.slane %v4914_v60, 4  ;;  %v5181_v22 = vsel %vm12566_vm12, %v4909_v51, %v5180_v57  ;;  %v5198_v50 = vld [vmem:[#allocation2 + $0x68] sm:$0x1]  ;;  %v12766_v51 = vld [vmem:[#allocation6 + $0x1] ss:$0 sm:$0xff] }
 0x442   : > { %v5417_v40 = vsel %vm12593_vm0, %v5412_v20, %v5416_v0  ;;  %v5421_v14 = vor.u32 %v5420_v55, %v5416_v0  ;;  %v4765_v42 = vmax.f32 %v4733_v45, 0.0  ;;  %5182 = vst [vmem:[#allocation2 + $0x48] sm:$0xf] %v5181_v22  ;;  %v4766_v31 = vmax.f32 %v4734_v15, 0.0  ;;  %v10193_v22 = vld [vmem:[#allocation2 + $0xc] sm:$0xff] }
 0x443   : > { %v4918_v63 = vsel %vm12560_vm11, %v4910_v53, %v4917_v62  ;;  %v5185_v18 = vsel %vm12572_vm13, %v4919_v11, %v5184_v44  ;;  %v4708_v17 = vmul.f32 %v12526_v13, %v10309_v54  ;;  %v4709_v9 = vmul.f32 %v12526_v13, %v10310_v29 }
 0x444   : > { %v5422_v38 = vrot.slane %v5421_v14, 4  ;;  %5183 = vst.msk [vmem:[#allocation2 + $0x4c] sm:$0xf] %vm5139_vm7, %v4918_v63  ;;  %v4797_v34 = vpack.c.bf16 %v4765_v42, %v4765_v42  ;;  %v7160_v19 = vunpack.c.l.b16 %v5417_v40  ;;  %v4798_v21 = vpack.c.bf16 %v4766_v31, %v4766_v31 }
 0x445   : > { %5186 = vst [vmem:[#allocation2 + $0x50] sm:$0x1] %v5185_v18  ;;  %v10297_v6 = vunpack.c.l.bf16 %v10398_v16  ;;  %v10298_v7 = vunpack.c.h.bf16 %v10398_v16  ;;  %v4741_v4 = vadd.f32 %v12533_v27, %v4708_v17  ;;  %v4742_v54 = vadd.f32 %v12533_v27, %v4709_v9 }
 0x446   : > { %v5427_v49 = vsel %vm12593_vm0, %v5422_v38, %v5426_v58  ;;  %v4938_v52 = vshrl.u32 %v4797_v34, 16  ;;  %v4941_v56 = vshll.u32 %v4797_v34, 16  ;;  %v4946_v61 = vshrl.u32 %v4798_v21, 16 }
 0x447   : > { %v7161_v2 = vunpack.c.l.b16 %v5427_v49  ;;  %v4949_v5 = vshll.u32 %v4798_v21, 16  ;;  %v4773_v28 = vmax.f32 %v4741_v4, 0.0  ;;  %v4702_v39 = vmul.f32 %v12526_v13, %v10297_v6 }
 0x448   : > { %v4940_v43 = vrot.slane %v4938_v52, 7  ;;  %v10313_v45 = vunpack.c.l.bf16 %v12751_v41  ;;  %v4948_v26 = vrot.slane %v4946_v61, 7  ;;  %v4774_v10 = vmax.f32 %v4742_v54, 0.0 }
 0x449   : > { %v7188_v29 = vpack.c.b16 %v7161_v2, %v7160_v19  ;;  %v4703_v1 = vmul.f32 %v12759_v37, %v10298_v7  ;;  %v5269_v33 = vld [vmem:[#allocation2 + $0x48] sm:$0xf]  ;;  %v4805_v36 = vpack.c.bf16 %v4773_v28, %v4773_v28  ;;  %v10314_v27 = vunpack.c.h.bf16 %v12751_v41  ;;  %v5222_v7 = vld [vmem:[#allocation2 + $0x90] sm:$0xf]  ;;  %v5226_v2 = vld [vmem:[#allocation2 + $0x98] sm:$0x1] }
 0x44a   : > { %v4943_v48 = vor.u32 %v4941_v56, %v4940_v43  ;;  %v4944_v25 = vrot.slane %v4940_v43, 4  ;;  %v5453_v46 = vshrl.u32 %v5269_v33, 16  ;;  %v5456_v47 = vshll.u32 %v5269_v33, 16 }
 0x44b   : > { %7208 = vrot.lane.b32.xlu0 %v7188_v29, %s10708_s20  ;;  %v5270_v13 = vld [vmem:[#allocation2 + $0x4c] sm:$0xf]  ;;  %v4951_v24 = vor.u32 %v4949_v5, %v4948_v26  ;;  %v4953_v3 = vrot.slane %v4948_v26, 4  ;;  %v4806_v15 = vpack.c.bf16 %v4774_v10, %v4774_v10  ;;  %v4735_v44 = vadd.f32 %v12766_v51, %v4702_v39 }
 0x44c   : > { %v5295_v32 = vld [vmem:[#allocation2 + $0x50] sm:$0x1]  ;;  %v5462_v23 = vshll.u32 %v5270_v13, 16  ;;  %v5466_v60 = vshrl.u32 %v5270_v13, 16  ;;  %v5195_v57 = vsel %vm12566_vm12, %v4943_v48, %v5194_v12  ;;  %v5455_v20 = vrot.slane %v5453_v46, 4 }
 0x44d   : > { %v5458_v0 = vrot.slane %v5456_v47, 5  ;;  %v5472_v55 = vshll.u32 %v5295_v32, 16  ;;  %5196 = vst [vmem:[#allocation2 + $0x60] sm:$0xf] %v5195_v57  ;;  %v4952_v62 = vsel %vm12560_vm11, %v4944_v25, %v4951_v24  ;;  %v5199_v11 = vsel %vm12572_vm13, %v4953_v3, %v5198_v50  ;;  %v10194_v47 = vld [vmem:[#allocation2 + $0x18] sm:$0xff] }
 0x44e   : > { %v5464_v58 = vrot.slane %v5462_v23, 5  ;;  %v5468_v53 = vrot.slane %v5466_v60, 4  ;;  %5197 = vst.msk [vmem:[#allocation2 + $0x64] sm:$0xf] %vm5139_vm7, %v4952_v62  ;;  %v5006_v42 = vshrl.u32 %v4805_v36, 16  ;;  %v5009_v16 = vshll.u32 %v4805_v36, 16 }
 0x44f   : > { %v5459_v40 = vor.u32 %v5458_v0, %v5455_v20  ;;  %v5474_v14 = vrot.slane %v5472_v55, 5  ;;  %5200 = vst [vmem:[#allocation2 + $0x68] sm:$0x1] %v5199_v11  ;;  %v5014_v18 = vshrl.u32 %v4806_v15, 16  ;;  %v5017_v31 = vshll.u32 %v4806_v15, 16  ;;  %v12791_v55 = vld [vmem:[%s12530_s19 + $0x68] sm:$0xff]  }
 0x450   : > { %v5469_v63 = vor.u32 %v5468_v53, %v5464_v58  ;;  %v4736_v38 = vadd.f32 %v12766_v51, %v4703_v1  ;;  %v5008_v17 = vrot.slane %v5006_v42, 7  ;;  %v4767_v9 = vmax.f32 %v4735_v44, 0.0  ;;  %v5201_v24 = vld [vmem:[#allocation2 + $0x6c] sm:$0xf] }
 0x451   : > { %v5460_v34 = vrot.slane %v5459_v40, 4  ;;  %v4710_v19 = vmul.f32 %v12759_v37, %v10313_v45  ;;  %v5016_v6 = vrot.slane %v5014_v18, 7  ;;  %v4711_v49 = vmul.f32 %v12759_v37, %v10314_v27 }
 0x452   : > { %v5470_v21 = vrot.slane %v5469_v63, 4  ;;  %v4768_v41 = vmax.f32 %v4736_v38, 0.0  ;;  %v5011_v56 = vor.u32 %v5009_v16, %v5008_v17  ;;  %v5012_v4 = vrot.slane %v5008_v17, 4  ;;  %v5205_v63 = vld [vmem:[#allocation2 + $0x74] sm:$0x1] }
 0x453   : > { %v5465_v52 = vsel %vm12593_vm0, %v5460_v34, %v5464_v58  ;;  %7344 = vrot.lane.b32.xlu0 %v10193_v22, %s10708_s20  ;;  %v4799_v61 = vpack.c.bf16 %v4767_v9, %v4767_v9  ;;  %v5019_v28 = vor.u32 %v5017_v31, %v5016_v6  ;;  %v5021_v39 = vrot.slane %v5016_v6, 4 }
 0x454   : > { %v5475_v5 = vsel %vm12593_vm0, %v5470_v21, %v5474_v14  ;;  %v7164_v54 = vunpack.c.l.b16 %v5465_v52  ;;  %v5273_v43 = vld [vmem:[#allocation2 + $0x60] sm:$0xf]  ;;  %v5223_v12 = vsel %vm12566_vm12, %v5011_v56, %v5222_v7  ;;  %v4800_v48 = vpack.c.bf16 %v4768_v41, %v4768_v41 }
 0x455   : > { %v7165_v45 = vunpack.c.l.b16 %v5475_v5  ;;  %v5501_v29 = vshrl.u32 %v5273_v43, 16  ;;  %v5504_v26 = vshll.u32 %v5273_v43, 16  ;;  %v5274_v10 = vld [vmem:[#allocation2 + $0x64] sm:$0xf]  ;;  %v5020_v1 = vsel %vm12560_vm11, %v5012_v4, %v5019_v28  ;;  %5224 = vst [vmem:[#allocation2 + $0x90] sm:$0xf] %v5223_v12 }
 0x456   : > { %v5227_v33 = vsel %vm12572_vm13, %v5021_v39, %v5226_v2  ;;  %v4955_v25 = vshrl.u32 %v4799_v61, 16  ;;  %v5297_v36 = vld [vmem:[#allocation2 + $0x68] sm:$0x1]  ;;  %v5510_v46 = vshll.u32 %v5274_v10, 16  ;;  %v5514_v3 = vshrl.u32 %v5274_v10, 16  ;;  %v10232_v10 = vld [vmem:[%s14319_s2 + $0x38] sm:$0xff] }
 0x457   : > { %v7190_v50 = vpack.c.b16 %v7165_v45, %v7164_v54  ;;  %v5503_v27 = vrot.slane %v5501_v29, 4  ;;  %v5506_v13 = vrot.slane %v5504_v26, 5  ;;  %v5520_v32 = vshll.u32 %v5297_v36, 16  ;;  %5225 = vst.msk [vmem:[#allocation2 + $0x94] sm:$0xf] %vm5139_vm7, %v5020_v1  ;;  %v10195_v39 = vld [vmem:[#allocation2 + $0x24] sm:$0xff]  ;;  %10438 = vmatpush.bf16.msra.mxu3 %v10232_v10  ;;  %10437 = vmatpush.bf16.msra.mxu2 %v10232_v10 }
 0x458   : > { %v4957_v23 = vrot.slane %v4955_v25, 7  ;;  %v4958_v60 = vshll.u32 %v4799_v61, 16  ;;  %v5512_v15 = vrot.slane %v5510_v46, 5  ;;  %5228 = vst [vmem:[#allocation2 + $0x98] sm:$0x1] %v5227_v33  ;;  %v4963_v20 = vshrl.u32 %v4800_v48, 16  ;;  %8289 = vmatpush.bf16.msra.mxu0 %v10232_v10 }
 0x459   : > { %7212 = vrot.lane.b32.xlu2 %v7190_v50, %s10708_s20  ;;  %v5507_v57 = vor.u32 %v5506_v13, %v5503_v27  ;;  %v4966_v0 = vshll.u32 %v4800_v48, 16  ;;  %v5516_v44 = vrot.slane %v5514_v3, 4  ;;  %v5522_v58 = vrot.slane %v5520_v32, 5 }
 0x45a   : > { %v4960_v53 = vor.u32 %v4958_v60, %v4957_v23  ;;  %v4961_v62 = vrot.slane %v4957_v23, 4  ;;  %v4965_v40 = vrot.slane %v4963_v20, 7  ;;  %v4743_v14 = vadd.f32 %v12766_v51, %v4710_v19  ;;  %v5229_v20 = vld [vmem:[#allocation2 + $0x9c] sm:$0xf] }
 0x45b   : > { %v5508_v11 = vrot.slane %v5507_v57, 4  ;;  %7346 = vrot.lane.b32.xlu0 %v10194_v47, %s10708_s20  ;;  %v4744_v22 = vadd.f32 %v12766_v51, %v4711_v49  ;;  %v5517_v42 = vor.u32 %v5516_v44, %v5512_v15  ;;  %v10317_v18 = vunpack.c.l.bf16 %v12791_v55 }
 0x45c   : > { %v5202_v16 = vsel %vm12566_vm12, %v4960_v53, %v5201_v24  ;;  %v10318_v31 = vunpack.c.h.bf16 %v12791_v55  ;;  %v5281_v34 = vld [vmem:[#allocation2 + $0x90] sm:$0xf]  ;;  %v4968_v17 = vor.u32 %v4966_v0, %v4965_v40  ;;  %v4970_v9 = vrot.slane %v4965_v40, 4 }
 0x45d   : > { %v5513_v38 = vsel %vm12593_vm0, %v5508_v11, %v5512_v15  ;;  %5203 = vst [vmem:[#allocation2 + $0x6c] sm:$0xf] %v5202_v16  ;;  %v4775_v21 = vmax.f32 %v4743_v14, 0.0  ;;  %v5518_v19 = vrot.slane %v5517_v42, 4  ;;  %v5597_v7 = vshrl.u32 %v5281_v34, 16 }
 0x45e   : > { %v7168_v6 = vunpack.c.l.b16 %v5513_v38  ;;  %v5600_v41 = vshll.u32 %v5281_v34, 16  ;;  %v5282_v49 = vld [vmem:[#allocation2 + $0x94] sm:$0xf]  ;;  %v4969_v52 = vsel %vm12560_vm11, %v4961_v62, %v4968_v17  ;;  %v5206_v56 = vsel %vm12572_vm13, %v4970_v9, %v5205_v63  ;;  %v5233_v14 = vld [vmem:[#allocation2 + $0xa4] sm:$0x1] }
 0x45f   : > { %v4776_v4 = vmax.f32 %v4744_v22, 0.0  ;;  %v4807_v2 = vpack.c.bf16 %v4775_v21, %v4775_v21  ;;  %v5523_v61 = vsel %vm12593_vm0, %v5518_v19, %v5522_v58  ;;  %v5301_v5 = vld [vmem:[#allocation2 + $0x98] sm:$0x1]  ;;  %v5599_v54 = vrot.slane %v5597_v7, 4  ;;  %5204 = vst.msk [vmem:[#allocation2 + $0x70] sm:$0xf] %vm5139_vm7, %v4969_v52 }
 0x460   : > { %v5602_v43 = vrot.slane %v5600_v41, 5  ;;  %v5606_v28 = vshll.u32 %v5282_v49, 16  ;;  %v7169_v45 = vunpack.c.l.b16 %v5523_v61  ;;  %v5610_v29 = vshrl.u32 %v5282_v49, 16  ;;  %5207 = vst [vmem:[#allocation2 + $0x74] sm:$0x1] %v5206_v56 }
 0x461   : > { %v5616_v26 = vshll.u32 %v5301_v5, 16  ;;  %v4808_v12 = vpack.c.bf16 %v4776_v4, %v4776_v4  ;;  %v5023_v48 = vshrl.u32 %v4807_v2, 16  ;;  %v5026_v25 = vshll.u32 %v4807_v2, 16  ;;  %v5872_v41 = vld [vmem:[#allocation2 + $0x10] sm:$0xf] }
 0x462   : > { %v5603_v1 = vor.u32 %v5602_v43, %v5599_v54  ;;  %v5608_v33 = vrot.slane %v5606_v28, 5  ;;  %v7192_v50 = vpack.c.b16 %v7169_v45, %v7168_v6  ;;  %v5612_v36 = vrot.slane %v5610_v29, 4  ;;  %v6303_v49 = vld [vmem:[#allocation2 + $0xc] sm:$0xe] }
 0x463   : > { %v5618_v27 = vrot.slane %v5616_v26, 5  ;;  %v5031_v13 = vshrl.u32 %v4808_v12, 16  ;;  %7348 = vrot.lane.b32.xlu0 %v10195_v39, %s10708_s20  ;;  %v5025_v24 = vrot.slane %v5023_v48, 7  ;;  %v5034_v3 = vshll.u32 %v4808_v12, 16  ;;  %v5903_v48 = vld [vmem:[#allocation2 + $0x14] sm:$0x1] }
 0x464   : > { %v5604_v46 = vrot.slane %v5603_v1, 4  ;;  %v5275_v47 = vld [vmem:[#allocation2 + $0x6c] sm:$0xf]  ;;  %v4712_v32 = vmul.f32 %v12759_v37, %v10317_v18  ;;  %7216 = vrot.lane.b32.xlu1 %v7192_v50, %s10708_s20  ;;  %v5613_v23 = vor.u32 %v5612_v36, %v5608_v33  ;;  %v4713_v58 = vmul.f32 %v12759_v37, %v10318_v31  ;;  %v10196_v50 = vld [vmem:[#allocation2 + $0x30] sm:$0xff] }
 0x465   : > { %v5525_v60 = vshrl.u32 %v5275_v47, 16  ;;  %v5528_v57 = vshll.u32 %v5275_v47, 16  ;;  %v5033_v15 = vrot.slane %v5031_v13, 7  ;;  %v5028_v55 = vor.u32 %v5026_v25, %v5025_v24  ;;  %v10231_v25 = vld [vmem:[%s14319_s2 + $0x30] sm:$0xff] }
 0x466   : > { %v5609_v0 = vsel %vm12593_vm0, %v5604_v46, %v5608_v33  ;;  %v5029_v44 = vrot.slane %v5025_v24, 4  ;;  %v5614_v53 = vrot.slane %v5613_v23, 4  ;;  %v5276_v22 = vld [vmem:[#allocation2 + $0x70] sm:$0xf]  ;;  %v4745_v18 = vadd.f32 %v12766_v51, %v4712_v32  ;;  %10440 = vmatpush.bf16.msra.mxu3 %v10231_v25  ;;  %10439 = vmatpush.bf16.msra.mxu2 %v10231_v25 }
 0x467   : > { %v7176_v62 = vunpack.c.l.b16 %v5609_v0  ;;  %v5527_v11 = vrot.slane %v5525_v60, 4  ;;  %v5530_v40 = vrot.slane %v5528_v57, 5  ;;  %v5036_v42 = vor.u32 %v5034_v3, %v5033_v15  ;;  %v5298_v34 = vld [vmem:[#allocation2 + $0x74] sm:$0x1]  ;;  %v5236_v60 = vld [vmem:[#allocation2 + $0xa8] sm:$0xf]  ;;  %8290 = vmatpush.bf16.msra.mxu0 %v10231_v25 }
 0x468   : > { %v5038_v16 = vrot.slane %v5033_v15, 4  ;;  %v5230_v63 = vsel %vm12566_vm12, %v5028_v55, %v5229_v20  ;;  %v5619_v38 = vsel %vm12593_vm0, %v5614_v53, %v5618_v27  ;;  %v5534_v9 = vshll.u32 %v5276_v22, 16  ;;  %v10230_v57 = vld [vmem:[%s14319_s2 + $0x28] sm:$0xff]  ;;  %v13409_v30 = vld [vmem:[#allocation2 + $0x70] sm:$0xf] }
 0x469   : > { %v5531_v17 = vor.u32 %v5530_v40, %v5527_v11  ;;  %v5538_v31 = vshrl.u32 %v5276_v22, 16  ;;  %5231 = vst [vmem:[#allocation2 + $0x9c] sm:$0xf] %v5230_v63  ;;  %v7177_v21 = vunpack.c.l.b16 %v5619_v38  ;;  %v5544_v19 = vshll.u32 %v5298_v34, 16 }
 0x46a   : > { %v5037_v6 = vsel %vm12560_vm11, %v5029_v44, %v5036_v42  ;;  %v5234_v7 = vsel %vm12572_vm13, %v5038_v16, %v5233_v14  ;;  %v5536_v56 = vrot.slane %v5534_v9, 5  ;;  %v4746_v2 = vadd.f32 %v12766_v51, %v4713_v58  ;;  %10442 = vmatpush.bf16.msra.mxu3 %v10230_v57  ;;  %v10404_v9 = vld [vmem:[%s12530_s19 + $0x70] sm:$0xff]   ;;  %10441 = vmatpush.bf16.msra.mxu2 %v10230_v57 }
 0x46b   : > { %v5532_v52 = vrot.slane %v5531_v17, 4  ;;  %v5540_v4 = vrot.slane %v5538_v31, 4  ;;  %5232 = vst.msk [vmem:[#allocation2 + $0xa0] sm:$0xf] %vm5139_vm7, %v5037_v6  ;;  %v7196_v61 = vpack.c.b16 %v7177_v21, %v7176_v62  ;;  %v5546_v5 = vrot.slane %v5544_v19, 5  ;;  %7350 = vrot.lane.b32.xlu0 %v10196_v50, %s10708_s20  ;;  %v10229_v17 = vld [vmem:[%s14319_s2 + $0x20] sm:$0xff]  ;;  %8291 = vmatpush.bf16.msra.mxu0 %v10230_v57 }
 0x46c   : > { %5235 = vst [vmem:[#allocation2 + $0xa4] sm:$0x1] %v5234_v7  ;;  %v4777_v54 = vmax.f32 %v4745_v18, 0.0  ;;  %v4778_v39 = vmax.f32 %v4746_v2, 0.0  ;;  %v9698_v26 = vrot.slane %v6303_v49, 9  ;;  %v6369_v12 = vrot.slane %v5872_v41, 5 }
 0x46d   : > { %v5537_v43 = vsel %vm12593_vm0, %v5532_v52, %v5536_v56  ;;  %v5541_v28 = vor.u32 %v5540_v4, %v5536_v56  ;;  %7224 = vrot.lane.b32.xlu2 %v7196_v61, %s10708_s20  ;;  %v6372_v44 = vrot.slane %v5903_v48, 5  ;;  %v5240_v19 = vld [vmem:[#allocation2 + $0xb0] sm:$0x1]  ;;  %v5874_v41 = vld [vmem:[#allocation2 + $0x1c] sm:$0xf]  ;;  %v10321_v61 = vunpack.c.l.bf16 %v10404_v9 }
 0x46e   : > { %v4809_v45 = vpack.c.bf16 %v4777_v54, %v4777_v54  ;;  %v7170_v1 = vunpack.c.l.b16 %v5537_v43  ;;  %v4810_v33 = vpack.c.bf16 %v4778_v39, %v4778_v39  ;;  %v6370_v46 = vsel %vm12832_vm3, %v9698_v26, %v6369_v12  ;;  %v5904_v54 = vld [vmem:[#allocation2 + $0x20] sm:$0x1]  ;;  %v6304_v43 = vld [vmem:[#allocation2 + $0x18] sm:$0xe]  ;;  %10444 = vmatpush.bf16.msra.mxu3 %v10229_v17  ;;  %10443 = vmatpush.bf16.msra.mxu2 %v10229_v17 }
 0x46f   : > { %v5542_v10 = vrot.slane %v5541_v28, 4  ;;  %v6371_v47 = vrot.slane %v6369_v12, 4  ;;  %v7424_v7 = vunpack.c.l.b16 %v6370_v46  ;;  %v6376_v28 = vrot.slane %v5874_v41, 5  ;;  %8292 = vmatpush.bf16.msra.mxu0 %v10229_v17 }
 0x470   : > { %v5283_v36 = vld [vmem:[#allocation2 + $0x9c] sm:$0xf]  ;;  %v5040_v27 = vshrl.u32 %v4809_v45, 16  ;;  %v5043_v13 = vshll.u32 %v4809_v45, 16  ;;  %v5048_v23 = vshrl.u32 %v4810_v33, 16  ;;  %v5051_v55 = vshll.u32 %v4810_v33, 16 }
 0x471   : > { %v5547_v24 = vsel %vm12593_vm0, %v5542_v10, %v5546_v5  ;;  %v5621_v3 = vshrl.u32 %v5283_v36, 16  ;;  %v5624_v32 = vshll.u32 %v5283_v36, 16  ;;  %v6373_v6 = vsel %vm12832_vm3, %v6371_v47, %v6372_v44  ;;  %v10228_v10 = vld [vmem:[%s14319_s2 + $0x18] sm:$0xff] }
 0x472   : > { %v7171_v15 = vunpack.c.l.b16 %v5547_v24  ;;  %v5284_v20 = vld [vmem:[#allocation2 + $0xa0] sm:$0xf]  ;;  %v5042_v0 = vrot.slane %v5040_v27, 7  ;;  %v5050_v34 = vrot.slane %v5048_v23, 7  ;;  %v7425_v2 = vunpack.c.l.b16 %v6373_v6  ;;  %10446 = vmatpush.bf16.msra.mxu3 %v10228_v10  ;;  %10445 = vmatpush.bf16.msra.mxu2 %v10228_v10 }
 0x473   : > { %v5302_v58 = vld [vmem:[#allocation2 + $0xa4] sm:$0x1]  ;;  %v5623_v53 = vrot.slane %v5621_v3, 4  ;;  %v5626_v62 = vrot.slane %v5624_v32, 5  ;;  %v5630_v11 = vshll.u32 %v5284_v20, 16  ;;  %v5634_v40 = vshrl.u32 %v5284_v20, 16  ;;  %8293 = vmatpush.bf16.msra.mxu0 %v10228_v10 }
 0x474   : > { %v7193_v14 = vpack.c.b16 %v7171_v15, %v7170_v1  ;;  %v5640_v22 = vshll.u32 %v5302_v58, 16  ;;  %v5045_v42 = vor.u32 %v5043_v13, %v5042_v0  ;;  %v5046_v16 = vrot.slane %v5042_v0, 4  ;;  %v10197_v44 = vld [vmem:[#allocation2 + $0x3c] sm:$0xff] }
 0x475   : > { %v5627_v63 = vor.u32 %v5626_v62, %v5623_v53  ;;  %v5632_v18 = vrot.slane %v5630_v11, 5  ;;  %v5636_v38 = vrot.slane %v5634_v40, 4  ;;  %v5053_v56 = vor.u32 %v5051_v55, %v5050_v34  ;;  %v10226_v62 = vld [vmem:[%s14319_s2 + $0x8] sm:$0xff]  ;;  %7352 = vrot.lane.b32.xlu0 %v10197_v44, %s10708_s20 }
 0x476   : > { %7218 = vrot.lane.b32.xlu1 %v7193_v14, %s10708_s20  ;;  %v5642_v31 = vrot.slane %v5640_v22, 5  ;;  %v5237_v21 = vsel %vm12566_vm12, %v5045_v42, %v5236_v60  ;;  %v5055_v4 = vrot.slane %v5050_v34, 4  ;;  %v10322_v5 = vunpack.c.h.bf16 %v10404_v9 }
 0x477   : > { %v5628_v49 = vrot.slane %v5627_v63, 4  ;;  %v5637_v52 = vor.u32 %v5636_v38, %v5632_v18  ;;  %5238 = vst [vmem:[#allocation2 + $0xa8] sm:$0xf] %v5237_v21  ;;  %v5054_v26 = vsel %vm12560_vm11, %v5046_v16, %v5053_v56  ;;  %v7456_v33 = vpack.c.b16 %v7425_v2, %v7424_v7  ;;  %v6480_v16 = vld [vmem:[#allocation2 + $0x18] sm:$0xf]  ;;  %v10225_v2 = vld [vmem:[%s14319_s2] sm:$0xff] }
 0x478   : > { %v5241_v12 = vsel %vm12572_vm13, %v5055_v4, %v5240_v19  ;;  %5239 = vst.msk [vmem:[#allocation2 + $0xac] sm:$0xf] %vm5139_vm7, %v5054_v26  ;;  %v4714_v48 = vmul.f32 %v12759_v37, %v10321_v61  ;;  %v4715_v25 = vmul.f32 %v12759_v37, %v10322_v5  ;;  %v9699_v36 = vrot.slane %v6304_v43, 9  ;;  %v10187_v61 = vld [vmem:[#allocation2 + $0x78] sm:$0xff] }
 0x479   : > { %v5633_v39 = vsel %vm12593_vm0, %v5628_v49, %v5632_v18  ;;  %v5638_v45 = vrot.slane %v5637_v52, 4  ;;  %5242 = vst [vmem:[#allocation2 + $0xb0] sm:$0x1] %v5241_v12  ;;  %v6378_v27 = vrot.slane %v6376_v28, 4  ;;  %v6379_v13 = vrot.slane %v5904_v54, 5 }
 0x47a   : > { %v7178_v1 = vunpack.c.l.b16 %v5633_v39  ;;  %v4747_v47 = vadd.f32 %v12766_v51, %v4714_v48  ;;  %v4748_v24 = vadd.f32 %v12766_v51, %v4715_v25  ;;  %v6377_v3 = vsel %vm12832_vm3, %v9699_v36, %v6376_v28  ;;  %v10227_v51 = vld [vmem:[%s14319_s2 + $0x10] sm:$0xff]  ;;  %v5247_v39 = vld [vmem:[#allocation2 + $0xbc] sm:$0x1]  ;;  %v5876_v25 = vld [vmem:[#allocation2 + $0x28] sm:$0xf] }
 0x47b   : > { %v5643_v50 = vsel %vm12593_vm0, %v5638_v45, %v5642_v31  ;;  %v6380_v37 = vsel %vm12832_vm3, %v6378_v27, %v6379_v13  ;;  %v7426_v15 = vunpack.c.l.b16 %v6377_v3  ;;  %v7221_v11 = vpop.permute.xlu0 %7220  ;;  %10448 = vmatpush.bf16.msra.mxu3 %v10227_v51  ;;  %10447 = vmatpush.bf16.msra.mxu2 %v10227_v51  ;;  %v5243_v49 = vld [vmem:[#allocation2 + $0xb4] sm:$0xf]  ;;  %v6529_v5 = vshrl.u32 %v6480_v16, 16  ;;  %v12889_v45 = vld [vmem:[#allocation2 + $0x1c] sm:$0xf] }
 0x47c   : > { %v7179_v46 = vunpack.c.l.b16 %v5643_v50  ;;  %v4779_v60 = vmax.f32 %v4747_v47, 0.0  ;;  %v4780_v57 = vmax.f32 %v4748_v24, 0.0  ;;  %v7427_v55 = vunpack.c.l.b16 %v6380_v37  ;;  %8294 = vmatpush.bf16.msra.mxu0 %v10227_v51  ;;  %v10198_v47 = vld [vmem:[#allocation2 + $0x48] sm:$0xff] }
 0x47d   : > { %v6532_v26 = vshll.u32 %v6480_v16, 16  ;;  %v6531_v48 = vrot.slane %v6529_v5, 4  ;;  %7354 = vrot.lane.b32.xlu0 %v10198_v47, %s10708_s20 }
 0x47e   : > { %v7197_v32 = vpack.c.b16 %v7179_v46, %v7178_v1  ;;  %v5285_v23 = vld [vmem:[#allocation2 + $0xa8] sm:$0xf]  ;;  %7472 = vrot.lane.b32.xlu1 %v7456_v33, %s10708_s20  ;;  %v4811_v58 = vpack.c.bf16 %v4779_v60, %v4779_v60  ;;  %v4812_v53 = vpack.c.bf16 %v4780_v57, %v4780_v57  ;;  %v7457_v42 = vpack.c.b16 %v7427_v55, %v7426_v15  ;;  %v12893_v33 = vld [vmem:[#allocation2 + $0x20] sm:$0x1]  ;;  %v12895_v50 = vpop.permute.xlu1 %7222  ;;  %v6305_v46 = vld [vmem:[#allocation2 + $0x24] sm:$0xe] }
 0x47f   : > { %v5645_v20 = vshrl.u32 %v5285_v23, 16  ;;  %v5648_v0 = vshll.u32 %v5285_v23, 16  ;;  %v5286_v40 = vld [vmem:[#allocation2 + $0xac] sm:$0xf]  ;;  %10450 = vmatpush.bf16.msra.mxu3 %v10226_v62  ;;  %10449 = vmatpush.bf16.msra.mxu2 %v10226_v62  ;;  %v6534_v13 = vrot.slane %v6532_v26, 5  ;;  %v10182_v60 = vld [vmem:[#allocation2 + $0x3c] sm:$0xff] }
 0x480   : > { %7226 = vrot.lane.b32.xlu2 %v7197_v32, %s10708_s20  ;;  %v5303_v63 = vld [vmem:[#allocation2 + $0xb0] sm:$0x1]  ;;  %v5654_v18 = vshll.u32 %v5286_v40, 16  ;;  %v5658_v38 = vshrl.u32 %v5286_v40, 16  ;;  %v5057_v34 = vshrl.u32 %v4811_v58, 16  ;;  %v5060_v17 = vshll.u32 %v4811_v58, 16  ;;  %8295 = vmatpush.bf16.msra.mxu0 %v10226_v62 }
 0x481   : > { %v5647_v14 = vrot.slane %v5645_v20, 4  ;;  %v5650_v22 = vrot.slane %v5648_v0, 5  ;;  %v5664_v31 = vshll.u32 %v5303_v63, 16  ;;  %v5065_v21 = vshrl.u32 %v4812_v53, 16  ;;  %v5905_v23 = vld [vmem:[#allocation2 + $0x2c] sm:$0x1] }
 0x482   : > { %v5068_v19 = vshll.u32 %v4812_v53, 16  ;;  %v5656_v6 = vrot.slane %v5654_v18, 5  ;;  %v5660_v7 = vrot.slane %v5658_v38, 4  ;;  %v5059_v41 = vrot.slane %v5057_v34, 7  ;;  %v10240_v57 = vld [vmem:[%s14319_s2 + $0x78] sm:$0xff]  ;;  %v10177_v40 = vld [vmem:[#allocation2] sm:$0xff] }
 0x483   : > { %v5651_v9 = vor.u32 %v5650_v22, %v5647_v14  ;;  %v5666_v56 = vrot.slane %v5664_v31, 5  ;;  %v5067_v4 = vrot.slane %v5065_v21, 7  ;;  %10452 = vmatpush.bf16.msra.mxu3 %v10225_v2  ;;  %v7739_v32 = vsel %vm7696_vm4, %v10187_v61, %v7221_v11  ;;  %10451 = vmatpush.bf16.msra.mxu2 %v10225_v2  ;;  %v12922_v31 = vld [vmem:[#allocation2 + $0x28] sm:$0xf]  ;;  %v10239_v61 = vld [vmem:[%s14319_s2 + $0x70] sm:$0xff] }
 0x484   : > { %v5661_v54 = vor.u32 %v5660_v7, %v5656_v6  ;;  %v5062_v43 = vor.u32 %v5060_v17, %v5059_v41  ;;  %v5063_v28 = vrot.slane %v5059_v41, 4  ;;  %v6538_v20 = vshll.u32 %v12889_v45, 16  ;;  %v7211_v55 = vpop.permute.xlu0 %7210  ;;  %8296 = vmatpush.bf16.msra.mxu0 %v10225_v2  ;;  %8378 = vmatpush.bf16.msra.mxu1 %v10240_v57 }
 0x485   : > { %v5652_v52 = vrot.slane %v5651_v9, 4  ;;  %v5070_v10 = vor.u32 %v5068_v19, %v5067_v4  ;;  %v5072_v1 = vrot.slane %v5067_v4, 4  ;;  %v6542_v0 = vshrl.u32 %v12889_v45, 16 }
 0x486   : > { %7474 = vrot.lane.b32.xlu1 %v7457_v42, %s10708_s20  ;;  %v5662_v36 = vrot.slane %v5661_v54, 4  ;;  %v5244_v27 = vsel %vm12566_vm12, %v5062_v43, %v5243_v49  ;;  %v6535_v44 = vor.u32 %v6534_v13, %v6531_v48  ;;  %v9700_v58 = vrot.slane %v6305_v46, 9  ;;  %8347 = vmatmul.bf16.vlgmr.msra.gmra.mxu3 %v7739_v32  ;;  %v6482_v42 = vld [vmem:[#allocation2 + $0x24] sm:$0xf]  ;;  %v7201_v9 = vpop.permute.xlu1 %7200  ;;  %v5878_v13 = vld [vmem:[#allocation2 + $0x34] sm:$0xf] }
 0x487   : > { %v5657_v12 = vsel %vm12593_vm0, %v5652_v52, %v5656_v6  ;;  %v5071_v3 = vsel %vm12560_vm11, %v5063_v28, %v5070_v10  ;;  %5245 = vst [vmem:[#allocation2 + $0xb4] sm:$0xf] %v5244_v27  ;;  %v5248_v37 = vsel %vm12572_vm13, %v5072_v1, %v5247_v39  ;;  %v6548_v53 = vshll.u32 %v12893_v33, 16  ;;  %v10188_v48 = vld [vmem:[#allocation2 + $0x84] sm:$0xff]  ;;  %v5906_v46 = vld [vmem:[#allocation2 + $0x38] sm:$0x1] }
 0x488   : > { %v7180_v24 = vunpack.c.l.b16 %v5657_v12  ;;  %v5667_v15 = vsel %vm12593_vm0, %v5662_v36, %v5666_v56  ;;  %5246 = vst.msk [vmem:[#allocation2 + $0xb8] sm:$0xf] %vm5139_vm7, %v5071_v3  ;;  %v6383_v62 = vrot.slane %v5876_v25, 5  ;;  %v6386_v11 = vrot.slane %v5905_v23, 5  ;;  %v6306_v25 = vld [vmem:[#allocation2 + $0x30] sm:$0xe]  ;;  %8379 = vmatpush.bf16.msra.mxu1 %v10239_v61 }
 0x489   : > { %v7181_v51 = vunpack.c.l.b16 %v5667_v15  ;;  %5249 = vst [vmem:[#allocation2 + $0xbc] sm:$0x1] %v5248_v37  ;;  %v7719_v22 = vsel %vm7696_vm4, %v10182_v60, %v7211_v55  ;;  %v12915_v16 = vrot.slane %v6538_v20, 5  ;;  %v6544_v63 = vrot.slane %v6542_v0, 4  ;;  %v10238_v32 = vld [vmem:[%s14319_s2 + $0x68] sm:$0xff]  ;;  %v10199_v23 = vld [vmem:[#allocation2 + $0x54] sm:$0xff] }
 0x48a   : > { %v6384_v18 = vsel %vm12832_vm3, %v9700_v58, %v6383_v62  ;;  %v6385_v38 = vrot.slane %v6383_v62, 4  ;;  %8322 = vmatmul.bf16.vlgmr.msra.gmra.mxu2 %v7719_v22  ;;  %v12920_v34 = vrot.slane %v6535_v44, 4  ;;  %v12924_v19 = vrot.slane %v6548_v53, 5  ;;  %v12939_v15 = vld [vmem:[#allocation2 + $0x2c] sm:$0x1]  ;;  %7356 = vrot.lane.b32.xlu0 %v10199_v23, %s10708_s20  ;;  %v10237_v53 = vld [vmem:[%s14319_s2 + $0x60] sm:$0xff] }
 0x48b   : > { %v7198_v14 = vpack.c.b16 %v7181_v51, %v7180_v24  ;;  %v7428_v17 = vunpack.c.l.b16 %v6384_v18  ;;  %v7699_v7 = vsel %vm7696_vm4, %v10177_v40, %v7201_v9  ;;  %v6553_v41 = vshrl.u32 %v6482_v42, 16 }
 0x48c   : > { %v6387_v6 = vsel %vm12832_vm3, %v6385_v38, %v6386_v11  ;;  %8297 = vmatmul.bf16.vlgmr.msra.gmra.mxu0 %v7699_v7  ;;  %v6556_v2 = vshll.u32 %v6482_v42, 16  ;;  %v6545_v28 = vor.u32 %v6544_v63, %v12915_v16  ;;  %v6562_v39 = vshll.u32 %v12922_v31, 16  ;;  %8380 = vmatpush.bf16.msra.mxu1 %v10238_v32 }
 0x48d   : > { %7228 = vrot.lane.b32.xlu2 %v7198_v14, %s10708_s20  ;;  %v7429_v4 = vunpack.c.l.b16 %v6387_v6  ;;  %v6555_v24 = vrot.slane %v6553_v41, 4  ;;  %v6566_v37 = vshrl.u32 %v12922_v31, 16  ;;  %v9701_v0 = vrot.slane %v6306_v25, 9 }
 0x48e   : > { %v5287_v21 = vld [vmem:[#allocation2 + $0xb4] sm:$0xf]  ;;  %v6558_v3 = vrot.slane %v6556_v2, 5  ;;  %v6564_v20 = vrot.slane %v6562_v39, 5  ;;  %v6546_v51 = vrot.slane %v6545_v28, 4  ;;  %v6390_v58 = vrot.slane %v5878_v13, 5 }
 0x48f   : > { %v5288_v49 = vld [vmem:[#allocation2 + $0xb8] sm:$0xf]  ;;  %v5669_v52 = vshrl.u32 %v5287_v21, 16  ;;  %v5672_v56 = vshll.u32 %v5287_v21, 16  ;;  %v7458_v1 = vpack.c.b16 %v7429_v4, %v7428_v17  ;;  %v6568_v44 = vrot.slane %v6566_v37, 4 }
 0x490   : > { %v5304_v5 = vld [vmem:[#allocation2 + $0xbc] sm:$0x1]  ;;  %v5678_v54 = vshll.u32 %v5288_v49, 16  ;;  %v5682_v43 = vshrl.u32 %v5288_v49, 16  ;;  %v6541_v11 = vsel %vm12593_vm0, %v12920_v34, %v12915_v16  ;;  %v7743_v40 = vsel %vm7696_vm4, %v10188_v48, %v12895_v50  ;;  %8381 = vmatpush.bf16.msra.mxu1 %v10237_v53  ;;  %v6484_v28 = vld [vmem:[#allocation2 + $0x30] sm:$0xf] }
 0x491   : > { %v5671_v26 = vrot.slane %v5669_v52, 4  ;;  %v5674_v12 = vrot.slane %v5672_v56, 5  ;;  %v5688_v10 = vshll.u32 %v5304_v5, 16  ;;  %7476 = vrot.lane.b32.xlu1 %v7458_v1, %s10708_s20  ;;  %v6393_v14 = vrot.slane %v5906_v46, 5  ;;  %v12969_v39 = vld [vmem:[#allocation2 + $0x34] sm:$0xf] }
 0x492   : > { %v5680_v36 = vrot.slane %v5678_v54, 5  ;;  %v5684_v27 = vrot.slane %v5682_v43, 4  ;;  %v6559_v42 = vor.u32 %v6558_v3, %v6555_v24  ;;  %v6572_v63 = vshll.u32 %v12939_v15, 16  ;;  %v5880_v24 = vld [vmem:[#allocation2 + $0x40] sm:$0xf] }
 0x493   : > { %v5675_v47 = vor.u32 %v5674_v12, %v5671_v26  ;;  %v5690_v57 = vrot.slane %v5688_v10, 5  ;;  %v6391_v18 = vsel %vm12832_vm3, %v9701_v0, %v6390_v58  ;;  %v6569_v9 = vor.u32 %v6568_v44, %v6564_v20  ;;  %v6307_v44 = vld [vmem:[#allocation2 + $0x3c] sm:$0xe] }
 0x494   : > { %v5685_v60 = vor.u32 %v5684_v27, %v5680_v36  ;;  %v6392_v21 = vrot.slane %v6390_v58, 4  ;;  %v6551_v50 = vsel %vm12593_vm0, %v6546_v51, %v12924_v19  ;;  %v7430_v34 = vunpack.c.l.b16 %v6391_v18 }
 0x495   : > { %v5676_v55 = vrot.slane %v5675_v47, 4  ;;  %v7568_v41 = vunpack.c.l.b16 %v6541_v11  ;;  %v7569_v52 = vunpack.c.l.b16 %v6551_v50  ;;  %v6560_v56 = vrot.slane %v6559_v42, 4  ;;  %v12973_v47 = vld [vmem:[#allocation2 + $0x38] sm:$0x1] }
 0x496   : > { %v5686_v62 = vrot.slane %v5685_v60, 4  ;;  %8352 = vmatmul.bf16.gmra.mxu3 %v7743_v40  ;;  %v6394_v6 = vsel %vm12832_vm3, %v6392_v21, %v6393_v14  ;;  %v6570_v4 = vrot.slane %v6569_v9, 4  ;;  %v6574_v2 = vrot.slane %v6572_v63, 5  ;;  %v10178_v60 = vld [vmem:[#allocation2 + $0xc] sm:$0xff]  ;;  %v10200_v63 = vld [vmem:[#allocation2 + $0x60] sm:$0xff] }
 0x497   : > { %v5681_v22 = vsel %vm12593_vm0, %v5676_v55, %v5680_v36  ;;  %v7431_v49 = vunpack.c.l.b16 %v6394_v6  ;;  %v7203_v61 = vpop.permute.xlu0 %7202  ;;  %v7600_v19 = vpack.c.b16 %v7569_v52, %v7568_v41  ;;  %v6565_v54 = vsel %vm12593_vm0, %v6560_v56, %v6564_v20  ;;  %7358 = vrot.lane.b32.xlu0 %v10200_v63, %s10708_s20  ;;  %v10183_v6 = vld [vmem:[#allocation2 + $0x48] sm:$0xff]  ;;  %v6486_v56 = vld [vmem:[#allocation2 + $0x3c] sm:$0xf] }
 0x498   : > { %v5691_v38 = vsel %vm12593_vm0, %v5686_v62, %v5690_v57  ;;  %v7182_v17 = vunpack.c.l.b16 %v5681_v22  ;;  %v6575_v43 = vsel %vm12593_vm0, %v6570_v4, %v6574_v2  ;;  %v6577_v26 = vshrl.u32 %v6484_v28, 16  ;;  %v5907_v57 = vld [vmem:[#allocation2 + $0x44] sm:$0x1]  ;;  %v10236_v62 = vld [vmem:[%s14319_s2 + $0x58] sm:$0xff]  ;;  %v6487_v4 = vld [vmem:[#allocation2 + $0x40] sm:$0xf] }
 0x499   : > { %v7183_v16 = vunpack.c.l.b16 %v5691_v38  ;;  %v7459_v5 = vpack.c.b16 %v7431_v49, %v7430_v34  ;;  %v6580_v12 = vshll.u32 %v6484_v28, 16  ;;  %v6586_v10 = vshll.u32 %v12969_v39, 16  ;;  %8382 = vmatpush.bf16.msra.mxu1 %v10236_v62  ;;  %v10580_v49 = vld [vmem:[#allocation2 + $0x4] sm:$0xf] }
 0x49a   : > { %v6590_v1 = vshrl.u32 %v12969_v39, 16  ;;  %v6579_v48 = vrot.slane %v6577_v26, 4  ;;  %v7570_v13 = vunpack.c.l.b16 %v6565_v54  ;;  %v7571_v46 = vunpack.c.l.b16 %v6575_v43 }
 0x49b   : > { %v7199_v7 = vpack.c.b16 %v7183_v16, %v7182_v17  ;;  %7478 = vrot.lane.b32.xlu1 %v7459_v5, %s10708_s20  ;;  %v6582_v25 = vrot.slane %v6580_v12, 5  ;;  %v6588_v36 = vrot.slane %v6586_v10, 5  ;;  %v6596_v32 = vshll.u32 %v12973_v47, 16  ;;  %v10235_v17 = vld [vmem:[%s14319_s2 + $0x50] sm:$0xff]  ;;  %v5692_v5 = vld [vmem:[#allocation2] sm:$0xe] }
 0x49c   : > { %v6592_v27 = vrot.slane %v6590_v1, 4  ;;  %v6397_v23 = vrot.slane %v5880_v24, 5  ;;  %v7703_v53 = vsel %vm7696_vm4, %v10178_v60, %v7203_v61  ;;  %v9702_v11 = vrot.slane %v6307_v44, 9  ;;  %v10233_v12 = vld [vmem:[%s14319_s2 + $0x40] sm:$0xff]  ;;  %v10581_v24 = vld [vmem:[#allocation2 + $0x8] sm:$0x1] }
 0x49d   : > { %7230 = vrot.lane.b32.xlu2 %v7199_v7, %s10708_s20  ;;  %v6583_v3 = vor.u32 %v6582_v25, %v6579_v48  ;;  %v6598_v51 = vrot.slane %v6596_v32, 5  ;;  %v6400_v40 = vrot.slane %v5907_v57, 5  ;;  %v7601_v14 = vpack.c.b16 %v7571_v46, %v7570_v13  ;;  %8302 = vmatmul.bf16.gmra.mxu0 %v7703_v53  ;;  %v10234_v7 = vld [vmem:[%s14319_s2 + $0x48] sm:$0xff]  ;;  %v5908_v60 = vld [vmem:[#allocation2 + $0x50] sm:$0x1] }
 0x49e   : > { %v6593_v37 = vor.u32 %v6592_v27, %v6588_v36  ;;  %v6399_v58 = vrot.slane %v6397_v23, 4  ;;  %v6398_v18 = vsel %vm12832_vm3, %v9702_v11, %v6397_v23  ;;  %8383 = vmatpush.bf16.msra.mxu1 %v10235_v17  ;;  %v5761_v52 = vrot.slane %v10580_v49, 5  ;;  %v5882_v13 = vld [vmem:[#allocation2 + $0x4c] sm:$0xf]  ;;  %v6308_v57 = vld [vmem:[#allocation2 + $0x48] sm:$0xe] }
 0x49f   : > { %v6584_v0 = vrot.slane %v6583_v3, 4  ;;  %v7432_v9 = vunpack.c.l.b16 %v6398_v18  ;;  %v6604_v54 = vshll.u32 %v6486_v56, 16  ;;  %v6610_v43 = vshll.u32 %v6487_v4, 16  ;;  %v10247_v49 = vld [vmem:[%s14319_s2 + $0xb0] sm:$0xff] }
 0x4a0   : > { %v6594_v55 = vrot.slane %v6593_v37, 4  ;;  %v6401_v38 = vsel %vm12832_vm3, %v6399_v58, %v6400_v40  ;;  %v6614_v28 = vshrl.u32 %v6487_v4, 16  ;;  %v9682_v25 = vrot.slane %v5692_v5, 9 }
 0x4a1   : > { %v6589_v22 = vsel %vm12593_vm0, %v6584_v0, %v6588_v36  ;;  %v7433_v21 = vunpack.c.l.b16 %v6401_v38  ;;  %v6606_v1 = vrot.slane %v6604_v54, 5  ;;  %v6612_v48 = vrot.slane %v6610_v43, 5  ;;  %v6515_v36 = vld [vmem:[#allocation2 + $0x44] sm:$0x1]  ;;  %v6488_v43 = vld [vmem:[#allocation2 + $0x48] sm:$0xf] }
 0x4a2   : > { %v6599_v42 = vsel %vm12593_vm0, %v6594_v55, %v6598_v51  ;;  %v7572_v16 = vunpack.c.l.b16 %v6589_v22  ;;  %8384 = vmatpush.bf16.msra.mxu1 %v10234_v7  ;;  %v6616_v27 = vrot.slane %v6614_v28, 4  ;;  %v5763_v46 = vrot.slane %v5761_v52, 4  ;;  %v10179_v55 = vld [vmem:[#allocation2 + $0x18] sm:$0xff]  ;;  %v6489_v28 = vld [vmem:[#allocation2 + $0x4c] sm:$0xf] }
 0x4a3   : > { %v7573_v50 = vunpack.c.l.b16 %v6599_v42  ;;  %v7460_v34 = vpack.c.b16 %v7433_v21, %v7432_v9  ;;  %v5764_v3 = vrot.slane %v10581_v24, 5  ;;  %v6620_v32 = vshll.u32 %v6515_v36, 16  ;;  %v10201_v21 = vld [vmem:[#allocation2 + $0x6c] sm:$0xff] }
 0x4a4   : > { %v12977_v20 = vpop.permute.xlu0 %7204  ;;  %v6617_v23 = vor.u32 %v6616_v27, %v6612_v48  ;;  %v6404_v0 = vrot.slane %v5882_v13, 5  ;;  %v9703_v58 = vrot.slane %v6308_v57, 9  ;;  %v6407_v53 = vrot.slane %v5908_v60, 5  ;;  %7360 = vrot.lane.b32.xlu0 %v10201_v21, %s10708_s20  ;;  %v10583_v27 = vld [vmem:[#allocation2 + $0x14] sm:$0x1] }
 0x4a5   : > { %7616 = vrot.lane.b32.xlu2 %v7600_v19, %s10708_s20  ;;  %7480 = vrot.lane.b32.xlu1 %v7460_v34, %s10708_s20  ;;  %v7602_v41 = vpack.c.b16 %v7573_v50, %v7572_v16  ;;  %v6601_v19 = vshrl.u32 %v6486_v56, 16  ;;  %v6622_v44 = vrot.slane %v6620_v32, 5  ;;  %v5762_v62 = vsel %vm12832_vm3, %v9682_v25, %v5761_v52  ;;  %v6516_v57 = vld [vmem:[#allocation2 + $0x50] sm:$0x1] }
 0x4a6   : > { %8385 = vmatpush.bf16.msra.mxu1 %v10233_v12  ;;  %v6618_v11 = vrot.slane %v6617_v23, 4  ;;  %v6406_v40 = vrot.slane %v6404_v0, 4  ;;  %v5765_v22 = vsel %vm12832_vm3, %v5763_v46, %v5764_v3  ;;  %v6405_v63 = vsel %vm12832_vm3, %v9703_v58, %v6404_v0  ;;  %v10189_v46 = vld [vmem:[#allocation2 + $0x90] sm:$0xff]  ;;  %v5884_v0 = vld [vmem:[#allocation2 + $0x58] sm:$0xf] }
 0x4a7   : > { %v6603_v10 = vrot.slane %v6601_v19, 4  ;;  %v7434_v9 = vunpack.c.l.b16 %v6405_v63  ;;  %v7232_v7 = vunpack.c.l.b16 %v5762_v62  ;;  %v10582_v19 = vld [vmem:[#allocation2 + $0x10] sm:$0xf]  ;;  %v6625_v12 = vshrl.u32 %v6488_v43, 16 }
 0x4a8   : > { %v6623_v18 = vsel %vm12593_vm0, %v6618_v11, %v6622_v44  ;;  %v6408_v17 = vsel %vm12832_vm3, %v6406_v40, %v6407_v53  ;;  %v5768_v54 = vrot.slane %v10582_v19, 5  ;;  %v5771_v13 = vrot.slane %v10583_v27, 5  ;;  %v5909_v11 = vld [vmem:[#allocation2 + $0x5c] sm:$0x1]  ;;  %v6309_v40 = vld [vmem:[#allocation2 + $0x54] sm:$0xe] }
 0x4a9   : > { %v6607_v37 = vor.u32 %v6606_v1, %v6603_v10  ;;  %v7575_v50 = vunpack.c.l.b16 %v6623_v18  ;;  %v7435_v34 = vunpack.c.l.b16 %v6408_v17  ;;  %v6628_v10 = vshll.u32 %v6488_v43, 16  ;;  %v10202_v19 = vld [vmem:[#allocation2 + $0x78] sm:$0xff]  ;;  %v10255_v43 = vld [vmem:[%s14319_s2 + $0xf0] sm:$0xff] }
 0x4aa   : > { %v6634_v1 = vshll.u32 %v6489_v28, 16  ;;  %v5770_v36 = vrot.slane %v5768_v54, 4  ;;  %v6627_v3 = vrot.slane %v6625_v12, 4  ;;  %v6644_v62 = vshll.u32 %v6516_v57, 16  ;;  %v6490_v27 = vld [vmem:[#allocation2 + $0x54] sm:$0xf] }
 0x4ab   : > { %v6608_v51 = vrot.slane %v6607_v37, 4  ;;  %v7461_v4 = vpack.c.b16 %v7435_v34, %v7434_v9  ;;  %v6630_v37 = vrot.slane %v6628_v10, 5  ;;  %v9704_v17 = vrot.slane %v6309_v40, 9  ;;  %v10243_v57 = vld [vmem:[%s14319_s2 + $0x90] sm:$0xff]  ;;  %v5871_v40 = vld [vmem:[#allocation2 + $0xc] sm:$0xf] }
 0x4ac   : > { %v13000_v61 = vpop.permute.xlu0 %7206  ;;  %v6636_v32 = vrot.slane %v6634_v1, 5  ;;  %v5772_v53 = vsel %vm12832_vm3, %v5770_v36, %v5771_v13  ;;  %7362 = vrot.lane.b32.xlu0 %v10202_v19, %s10708_s20  ;;  %v10244_v1 = vld [vmem:[%s14319_s2 + $0x98] sm:$0xff]  ;;  %v10586_v19 = vld [vmem:[#allocation2 + $0x10] sm:$0xf] }
 0x4ad   : > { %7618 = vrot.lane.b32.xlu2 %v7601_v14, %s10708_s20  ;;  %v7707_v14 = vsel %vm7696_vm4, %v10179_v55, %v12977_v20  ;;  %v6613_v42 = vsel %vm12593_vm0, %v6608_v51, %v6612_v48  ;;  %v10248_v20 = vld [vmem:[%s14319_s2 + $0xb8] sm:$0xff]  ;;  %7482 = vrot.lane.b32.xlu1 %v7461_v4, %s10708_s20  ;;  %v6638_v48 = vshrl.u32 %v6489_v28, 16  ;;  %v6631_v55 = vor.u32 %v6630_v37, %v6627_v3 }
 0x4ae   : > { %8307 = vmatmul.bf16.gmra.mxu0 %v7707_v14  ;;  %v7574_v38 = vunpack.c.l.b16 %v6613_v42  ;;  %8467 = vmatpush.bf16.msrb.mxu2 %v10248_v20  ;;  %v6411_v14 = vrot.slane %v5884_v0, 5  ;;  %v10180_v42 = vld [vmem:[#allocation2 + $0x24] sm:$0xff]  ;;  %v6414_v20 = vrot.slane %v5909_v11, 5  ;;  %v7235_v34 = vunpack.c.l.b16 %v5772_v53  ;;  %v6491_v13 = vld [vmem:[#allocation2 + $0x58] sm:$0xf] }
 0x4af   : > { %v6640_v23 = vrot.slane %v6638_v48, 4  ;;  %v6632_v63 = vrot.slane %v6631_v55, 4  ;;  %v7711_v21 = vsel %vm7696_vm4, %v10180_v42, %v13000_v61  ;;  %v10254_v48 = vld [vmem:[%s14319_s2 + $0xe8] sm:$0xff]  ;;  %v6652_v3 = vshll.u32 %v6490_v27, 16 }
 0x4b0   : > { %v7603_v56 = vpack.c.b16 %v7575_v50, %v7574_v38  ;;  %v6646_v38 = vrot.slane %v6644_v62, 5  ;;  %v6413_v9 = vrot.slane %v6411_v14, 4  ;;  %v6412_v61 = vsel %vm12832_vm3, %v9704_v17, %v6411_v14  ;;  %v10253_v14 = vld [vmem:[%s14319_s2 + $0xe0] sm:$0xff] }
 0x4b1   : > { %v6641_v51 = vor.u32 %v6640_v23, %v6636_v32  ;;  %v6658_v37 = vshll.u32 %v6491_v13, 16  ;;  %v10185_v23 = vld [vmem:[#allocation2 + $0x60] sm:$0xff]  ;;  %v6654_v53 = vrot.slane %v6652_v3, 5 }
 0x4b2   : > { %8468 = vmatpush.bf16.msrb.mxu2 %v10247_v49 }
 0x4b3   : > { %v7213_v2 = vpop.permute.xlu2 %7212  ;;  %v7215_v52 = vpop.permute.xlu1 %7214  ;;  %v6642_v18 = vrot.slane %v6641_v51, 4  ;;  %v10585_v51 = vld [vmem:[#allocation2 + $0x20] sm:$0x1]  ;;  %v6660_v62 = vrot.slane %v6658_v37, 5 }
 0x4b4   : > { %v7723_v26 = vsel %vm7696_vm4, %v10183_v6, %v7213_v2  ;;  %v10184_v6 = vld [vmem:[#allocation2 + $0x54] sm:$0xff] }
 0x4b5   : > { %8327 = vmatmul.bf16.gmra.mxu2 %v7723_v26  ;;  %7620 = vrot.lane.b32.xlu2 %v7602_v41, %s10708_s20  ;;  %v7233_v41 = vunpack.c.l.b16 %v5765_v22  ;;  %v7727_v2 = vsel %vm7696_vm4, %v10184_v6, %v7215_v52  ;;  %v5693_v26 = vld [vmem:[#allocation2 + $0xc] sm:$0xe]  ;;  %v6647_v49 = vsel %vm12593_vm0, %v6642_v18, %v6646_v38  ;;  %v5886_v18 = vld [vmem:[#allocation2 + $0x64] sm:$0xf]  ;;  %v10190_v38 = vld [vmem:[#allocation2 + $0x9c] sm:$0xff] }
 0x4b6   : > { %v9683_v25 = vrot.slane %v5693_v26, 9  ;;  %v10246_v6 = vld [vmem:[%s14319_s2 + $0xa8] sm:$0xff]  ;;  %v7577_v4 = vunpack.c.l.b16 %v6647_v49  ;;  %v6310_v49 = vld [vmem:[#allocation2 + $0x60] sm:$0xe] }
 0x4b7   : > { %v7264_v5 = vpack.c.b16 %v7233_v41, %v7232_v7  ;;  %v10256_v7 = vld [vmem:[%s14319_s2 + $0xf8] sm:$0xff]  ;;  %v6637_v41 = vsel %vm12593_vm0, %v6632_v63, %v6636_v32  ;;  %8469 = vmatpush.bf16.msrb.mxu2 %v10246_v6  ;;  %v6662_v32 = vshrl.u32 %v6491_v13, 16 }
 0x4b8   : > { %v5769_v58 = vsel %vm12832_vm3, %v9683_v25, %v5768_v54  ;;  %v7576_v52 = vunpack.c.l.b16 %v6637_v41  ;;  %8556 = vmatpush.bf16.msrb.mxu3 %v10256_v7  ;;  %v10245_v54 = vld [vmem:[%s14319_s2 + $0xa0] sm:$0xff]  ;;  %v10584_v25 = vld [vmem:[#allocation2 + $0x1c] sm:$0xf]  ;;  %v5910_v41 = vld [vmem:[#allocation2 + $0x68] sm:$0x1] }
 0x4b9   : > { %v7234_v50 = vunpack.c.l.b16 %v5769_v58  ;;  %v5775_v36 = vrot.slane %v10584_v25, 5  ;;  %v6664_v11 = vrot.slane %v6662_v32, 4  ;;  %v6517_v63 = vld [vmem:[#allocation2 + $0x5c] sm:$0x1] }
 0x4ba   : > { %v7604_v28 = vpack.c.b16 %v7577_v4, %v7576_v52  ;;  %v6668_v7 = vshll.u32 %v6517_v63, 16  ;;  %v6418_v52 = vrot.slane %v5886_v18, 5  ;;  %v10252_v25 = vld [vmem:[%s14319_s2 + $0xd8] sm:$0xff] }
 0x4bb   : > { %v7265_v12 = vpack.c.b16 %v7235_v34, %v7234_v50  ;;  %8470 = vmatpush.bf16.msrb.mxu2 %v10245_v54  ;;  %v5777_v55 = vrot.slane %v5775_v36, 4  ;;  %v5920_v50 = vshrl.u32 %v5871_v40, 16  ;;  %v5933_v54 = vshrl.u32 %v10586_v19, 16 }
 0x4bc   : > { %8557 = vmatpush.bf16.msrb.mxu3 %v10255_v43 }
 0x4bd   : > { %v13024_v16 = vpop.permute.xlu0 %7208  ;;  %7622 = vrot.lane.b32.xlu2 %v7603_v56, %s10708_s20  ;;  %v6415_v56 = vsel %vm12832_vm3, %v6413_v9, %v6414_v20  ;;  %v5922_v13 = vrot.slane %v5920_v50, 4  ;;  %v10589_v50 = vld [vmem:[#allocation2 + $0x2c] sm:$0x1] }
 0x4be   : > { %8312 = vmatmul.bf16.gmra.mxu0 %v7711_v21  ;;  %v6665_v21 = vor.u32 %v6664_v11, %v6660_v62 }
 0x4bf   : > { %8471 = vmatpush.bf16.msrb.mxu2 %v10244_v1 }
 0x4c0   : > { %8558 = vmatpush.bf16.msrb.mxu3 %v10254_v48  ;;  %v6666_v4 = vrot.slane %v6665_v21, 4  ;;  %v10242_v48 = vld [vmem:[%s14319_s2 + $0x88] sm:$0xff] }
 0x4c3   : > { %8472 = vmatpush.bf16.msrb.mxu2 %v10243_v57  ;;  %v10259_v57 = vld [vmem:[%s14319_s2 + $0x110] sm:$0xff] }
 0x4c4   : > { %8559 = vmatpush.bf16.msrb.mxu3 %v10253_v14  ;;  %v10251_v14 = vld [vmem:[%s14319_s2 + $0xd0] sm:$0xff] }
 0x4c5   : > { %8332 = vmatmul.bf16.gmra.mxu2 %v7727_v2  ;;  %v7345_v24 = vpop.permute.xlu0 %7344  ;;  %v7436_v2 = vunpack.c.l.b16 %v6412_v61  ;;  %7624 = vrot.lane.b32.xlu2 %v7604_v28, %s10708_s20  ;;  %v10181_v61 = vld [vmem:[#allocation2 + $0x30] sm:$0xff]  ;;  %v6670_v28 = vrot.slane %v6668_v7, 5 }
 0x4c6   : > { %v7763_v60 = vsel %vm7696_vm4, %v7264_v5, %v7345_v24  ;;  %v7437_v5 = vunpack.c.l.b16 %v6415_v56  ;;  %v6649_v24 = vshrl.u32 %v6490_v27, 16  ;;  %v7715_v1 = vsel %vm7696_vm4, %v10181_v61, %v13024_v16  ;;  %v10250_v61 = vld [vmem:[%s14319_s2 + $0xc8] sm:$0xff] }
 0x4c7   : > { %8386 = vmatmul.bf16.vlgmr.msra.gmra.mxu1 %v7763_v60  ;;  %v7225_v44 = vpop.permute.xlu2 %7224  ;;  %v6671_v3 = vsel %vm12593_vm0, %v6666_v4, %v6670_v28  ;;  %8473 = vmatpush.bf16.msrb.mxu2 %v10242_v48  ;;  %v6978_v4 = vrot.slane %v12889_v45, 5  ;;  %v6493_v28 = vld [vmem:[#allocation2 + $0x64] sm:$0xf] }
 0x4c8   : > { %v7747_v22 = vsel %vm7696_vm4, %v10189_v46, %v7225_v44  ;;  %v7462_v26 = vpack.c.b16 %v7437_v5, %v7436_v2  ;;  %v5694_v46 = vld [vmem:[#allocation2 + $0x18] sm:$0xe]  ;;  %v5778_v44 = vrot.slane %v10585_v51, 5  ;;  %v6651_v58 = vrot.slane %v6649_v24, 4  ;;  %8560 = vmatpush.bf16.msrb.mxu3 %v10252_v25 }
 0x4c9   : > { %8357 = vmatmul.bf16.gmra.mxu3 %v7747_v22  ;;  %v9684_v0 = vrot.slane %v5694_v46, 9  ;;  %v9705_v2 = vrot.slane %v6310_v49, 9  ;;  %v5923_v5 = vshll.u32 %v5871_v40, 16  ;;  %v10587_v46 = vld [vmem:[#allocation2 + $0x14] sm:$0x1]  ;;  %v7579_v32 = vunpack.c.l.b16 %v6671_v3  ;;  %v10249_v3 = vld [vmem:[%s14319_s2 + $0xc0] sm:$0xff] }
 0x4ca   : > { %7484 = vrot.lane.b32.xlu1 %v7462_v26, %s10708_s20  ;;  %v5779_v42 = vsel %vm12832_vm3, %v5777_v55, %v5778_v44  ;;  %v6655_v20 = vor.u32 %v6654_v53, %v6651_v58  ;;  %v6420_v26 = vrot.slane %v6418_v52, 4  ;;  %v5939_v24 = vshll.u32 %v10587_v46, 16  ;;  %v10203_v55 = vld [vmem:[#allocation2 + $0x84] sm:$0xff]  ;;  %v6492_v49 = vld [vmem:[#allocation2 + $0x60] sm:$0xf] }
 0x4cb   : > { %v5776_v22 = vsel %vm12832_vm3, %v9684_v0, %v5775_v36  ;;  %v7237_v6 = vunpack.c.l.b16 %v5779_v42  ;;  %v10260_v36 = vld [vmem:[%s14319_s2 + $0x118] sm:$0xff]  ;;  %v5925_v0 = vrot.slane %v5923_v5, 5  ;;  %v10241_v58 = vld [vmem:[%s14319_s2 + $0x80] sm:$0xff]  ;;  %v5929_v53 = vshll.u32 %v10586_v19, 16  ;;  %7364 = vrot.lane.b32.xlu0 %v10203_v55, %s10708_s20 }
 0x4cc   : > { %v7236_v9 = vunpack.c.l.b16 %v5776_v22  ;;  %v6656_v56 = vrot.slane %v6655_v20, 4  ;;  %8649 = vmatpush.bf16.msrb.mxu0 %v10260_v36  ;;  %v6981_v42 = vrot.slane %v12893_v33, 5  ;;  %v10588_v20 = vld [vmem:[#allocation2 + $0x28] sm:$0xf]  ;;  %8474 = vmatpush.bf16.msrb.mxu2 %v10241_v58  ;;  %v5941_v7 = vrot.slane %v5939_v24, 5 }
 0x4cd   : > { %v7347_v10 = vpop.permute.xlu0 %7346  ;;  %v5926_v22 = vor.u32 %v5925_v0, %v5922_v13  ;;  %v5931_v18 = vrot.slane %v5929_v53, 5  ;;  %v5782_v21 = vrot.slane %v10588_v20, 5  ;;  %8561 = vmatpush.bf16.msrb.mxu3 %v10251_v14  ;;  %v6980_v25 = vrot.slane %v6978_v4, 4  ;;  %v10191_v36 = vld [vmem:[#allocation2 + $0xa8] sm:$0xff]  ;;  %v5888_v58 = vld [vmem:[#allocation2 + $0x70] sm:$0xf] }
 0x4ce   : > { %v7767_v60 = vsel %vm7696_vm4, %v7265_v12, %v7347_v10  ;;  %v6421_v12 = vrot.slane %v5910_v41, 5  ;;  %v6661_v27 = vsel %vm12593_vm0, %v6656_v56, %v6660_v62  ;;  %8317 = vmatmul.bf16.gmra.mxu0 %v7715_v1  ;;  %v7266_v16 = vpack.c.b16 %v7237_v6, %v7236_v9  ;;  %v5695_v9 = vld [vmem:[#allocation2 + $0x24] sm:$0xe]  ;;  %v6311_v53 = vld [vmem:[#allocation2 + $0x6c] sm:$0xe] }
 0x4cf   : > { %v7578_v37 = vunpack.c.l.b16 %v6661_v27  ;;  %v5935_v62 = vrot.slane %v5933_v54, 4  ;;  %v9685_v41 = vrot.slane %v5695_v9, 9  ;;  %v5784_v56 = vrot.slane %v5782_v21, 4 }
 0x4d0   : > { %8650 = vmatpush.bf16.msrb.mxu0 %v10259_v57  ;;  %v9706_v20 = vrot.slane %v6311_v53, 9 }
 0x4d1   : > { %v7605_v40 = vpack.c.b16 %v7579_v32, %v7578_v37  ;;  %v5936_v33 = vor.u32 %v5935_v62, %v5931_v18  ;;  %v5783_v54 = vsel %vm12832_vm3, %v9685_v41, %v5782_v21  ;;  %8562 = vmatpush.bf16.msrb.mxu3 %v10250_v61  ;;  %v6982_v32 = vsel %vm12832_vm3, %v6980_v25, %v6981_v42  ;;  %v10204_v41 = vld [vmem:[#allocation2 + $0x90] sm:$0xff] }
 0x4d2   : > { %v7238_v45 = vunpack.c.l.b16 %v5783_v54  ;;  %v7649_v55 = vunpack.c.l.b16 %v6982_v32  ;;  %v6425_v21 = vrot.slane %v5888_v58, 5  ;;  %v6985_v58 = vrot.slane %v12922_v31, 5 }
 0x4d3   : > { %7626 = vrot.lane.b32.xlu2 %v7605_v40, %s10708_s20  ;;  %v5937_v5 = vrot.slane %v5936_v33, 4  ;;  %7366 = vrot.lane.b32.xlu0 %v10204_v41, %s10708_s20 }
 0x4d5   : > { %v7349_v11 = vpop.permute.xlu0 %7348  ;;  %v5942_v27 = vsel %vm12593_vm0, %v5937_v5, %v5941_v7  ;;  %8563 = vmatpush.bf16.msrb.mxu3 %v10249_v3 }
 0x4d6   : > { %v7217_v17 = vpop.permute.xlu1 %7216  ;;  %v7771_v6 = vsel %vm7696_vm4, %v7266_v16, %v7349_v11  ;;  %v7377_v16 = vunpack.c.l.b16 %v5942_v27 }
 0x4d7   : > { %8391 = vmatmul.bf16.gmra.mxu1 %v7767_v60  ;;  %v7731_v34 = vsel %vm7696_vm4, %v10185_v23, %v7217_v17  ;;  %v6419_v23 = vsel %vm12832_vm3, %v9705_v2, %v6418_v52  ;;  %v6422_v60 = vsel %vm12832_vm3, %v6420_v26, %v6421_v12  ;;  %v10258_v17 = vld [vmem:[%s14319_s2 + $0x108] sm:$0xff]  ;;  %v6673_v2 = vshrl.u32 %v6492_v49, 16 }
 0x4d8   : > { %8337 = vmatmul.bf16.gmra.mxu2 %v7731_v34  ;;  %v7438_v51 = vunpack.c.l.b16 %v6419_v23  ;;  %v7439_v44 = vunpack.c.l.b16 %v6422_v60  ;;  %v5785_v34 = vrot.slane %v10589_v50, 5  ;;  %v6676_v26 = vshll.u32 %v6492_v49, 16  ;;  %v10186_v12 = vld [vmem:[#allocation2 + $0x6c] sm:$0xff]  ;;  %8651 = vmatpush.bf16.msrb.mxu0 %v10258_v17  ;;  %v5873_v50 = vld [vmem:[#allocation2 + $0x18] sm:$0xf] }
 0x4d9   : > { %v6675_v46 = vrot.slane %v6673_v2, 4  ;;  %v6682_v23 = vshll.u32 %v6493_v28, 16  ;;  %v6427_v2 = vrot.slane %v6425_v21, 4  ;;  %v5944_v54 = vshrl.u32 %v5873_v50, 16 }
 0x4da   : > { %v7227_v43 = vpop.permute.xlu2 %7226  ;;  %v7463_v63 = vpack.c.b16 %v7439_v44, %v7438_v51  ;;  %v5786_v1 = vsel %vm12832_vm3, %v5784_v56, %v5785_v34  ;;  %v6678_v24 = vrot.slane %v6676_v26, 5  ;;  %v6518_v51 = vld [vmem:[#allocation2 + $0x68] sm:$0x1]  ;;  %v6426_v56 = vsel %vm12832_vm3, %v9706_v20, %v6425_v21  ;;  %v6495_v21 = vld [vmem:[#allocation2 + $0x70] sm:$0xf] }
 0x4db   : > { %v7751_v10 = vsel %vm7696_vm4, %v10190_v38, %v7227_v43  ;;  %v5927_v38 = vrot.slane %v5926_v22, 4  ;;  %v6912_v43 = vld [vmem:[#allocation2 + $0x18] sm:$0xe]  ;;  %v7239_v13 = vunpack.c.l.b16 %v5786_v1  ;;  %v6684_v14 = vrot.slane %v6682_v23, 5 }
 0x4dc   : > { %8362 = vmatmul.bf16.gmra.mxu3 %v7751_v10  ;;  %7486 = vrot.lane.b32.xlu1 %v7463_v63, %s10708_s20  ;;  %v10257_v10 = vld [vmem:[%s14319_s2 + $0x100] sm:$0xff]  ;;  %v9714_v48 = vrot.slane %v6912_v43, 9  ;;  %v6679_v44 = vor.u32 %v6678_v24, %v6675_v46  ;;  %v6686_v22 = vshrl.u32 %v6493_v28, 16  ;;  %v5911_v63 = vld [vmem:[#allocation2 + $0x74] sm:$0x1]  ;;  %v6692_v9 = vshll.u32 %v6518_v51, 16 }
 0x4dd   : > { %v5932_v52 = vsel %vm12593_vm0, %v5927_v38, %v5931_v18  ;;  %v7267_v57 = vpack.c.b16 %v7239_v13, %v7238_v45  ;;  %8652 = vmatpush.bf16.msrb.mxu0 %v10257_v10  ;;  %v7351_v40 = vpop.permute.xlu0 %7350  ;;  %v6428_v7 = vrot.slane %v5911_v63, 5  ;;  %v7440_v5 = vunpack.c.l.b16 %v6426_v56  ;;  %v10590_v28 = vld [vmem:[#allocation2 + $0x1c] sm:$0xf]  ;;  %v10591_v10 = vld [vmem:[#allocation2 + $0x20] sm:$0x1] }
 0x4de   : > { %v13125_v19 = vunpack.c.l.b16 %v5932_v52  ;;  %v6979_v37 = vsel %vm12832_vm3, %v9714_v48, %v6978_v4  ;;  %v6680_v38 = vrot.slane %v6679_v44, 4  ;;  %v6688_v17 = vrot.slane %v6686_v22, 4  ;;  %v5696_v4 = vld [vmem:[#allocation2 + $0x30] sm:$0xe]  ;;  %v10593_v51 = vld [vmem:[#allocation2 + $0x38] sm:$0x1] }
 0x4df   : > { %v7648_v0 = vunpack.c.l.b16 %v6979_v37  ;;  %v6694_v52 = vrot.slane %v6692_v9, 5  ;;  %v5953_v26 = vshll.u32 %v10590_v28, 16  ;;  %v5963_v1 = vshll.u32 %v10591_v10, 16  ;;  %v5890_v10 = vld [vmem:[#allocation2 + $0x7c] sm:$0xf] }
 0x4e0   : > { %v7408_v34 = vpack.c.b16 %v7377_v16, %v13125_v19  ;;  %v6685_v33 = vsel %vm12593_vm0, %v6680_v38, %v6684_v14  ;;  %v6689_v49 = vor.u32 %v6688_v17, %v6684_v14  ;;  %v5947_v19 = vshll.u32 %v5873_v50, 16  ;;  %v10192_v38 = vld [vmem:[#allocation2 + $0xb4] sm:$0xff] }
 0x4e1   : > { %v7680_v42 = vpack.c.b16 %v7649_v55, %v7648_v0  ;;  %v7580_v61 = vunpack.c.l.b16 %v6685_v33  ;;  %v6429_v48 = vsel %vm12832_vm3, %v6427_v2, %v6428_v7  ;;  %v5946_v25 = vrot.slane %v5944_v54, 4  ;;  %v10592_v0 = vld [vmem:[#allocation2 + $0x34] sm:$0xf] }
 0x4e2   : > { %v6690_v43 = vrot.slane %v6689_v49, 4  ;;  %v9686_v27 = vrot.slane %v5696_v4, 9  ;;  %v7441_v24 = vunpack.c.l.b16 %v6429_v48  ;;  %v5955_v16 = vrot.slane %v5953_v26, 5  ;;  %v6519_v7 = vld [vmem:[#allocation2 + $0x74] sm:$0x1] }
 0x4e3   : > { %10066 = vmatmul.msk.bf16.vlgmr.msrb.gmra.mxu0 %vm7696_vm4, %v7680_v42  ;;  %v5965_v23 = vrot.slane %v5963_v1, 5  ;;  %v5789_v55 = vrot.slane %v10592_v0, 5  ;;  %v5792_v44 = vrot.slane %v10593_v51, 5  ;;  %v6987_v42 = vrot.slane %v6985_v58, 4 }
 0x4e4   : > { %v6695_v46 = vsel %vm12593_vm0, %v6690_v43, %v6694_v52  ;;  %v6988_v20 = vrot.slane %v12939_v15, 5  ;;  %v6710_v26 = vshrl.u32 %v6495_v21, 16  ;;  %v6432_v0 = vrot.slane %v5890_v10, 5 }
 0x4e5   : > { %v7581_v3 = vunpack.c.l.b16 %v6695_v46  ;;  %v5790_v22 = vsel %vm12832_vm3, %v9686_v27, %v5789_v55  ;;  %v5791_v63 = vrot.slane %v5789_v55, 4  ;;  %v6312_v27 = vld [vmem:[#allocation2 + $0x78] sm:$0xe] }
 0x4e6   : > { %v7240_v9 = vunpack.c.l.b16 %v5790_v22  ;;  %v6712_v46 = vrot.slane %v6710_v26, 4 }
 0x4e7   : > { %8396 = vmatmul.bf16.gmra.mxu1 %v7771_v6  ;;  %v7229_v62 = vpop.permute.xlu2 %7228  ;;  %v7775_v6 = vsel %vm7696_vm4, %v7267_v57, %v7351_v40  ;;  %v7464_v57 = vpack.c.b16 %v7441_v24, %v7440_v5  ;;  %v7606_v53 = vpack.c.b16 %v7581_v3, %v7580_v61  ;;  %v6913_v40 = vld [vmem:[#allocation2 + $0x24] sm:$0xe]  ;;  %v6989_v61 = vsel %vm12832_vm3, %v6987_v42, %v6988_v20  ;;  %v7353_v43 = vpop.permute.xlu0 %7352 }
 0x4e8   : > { %v7219_v60 = vpop.permute.xlu1 %7218  ;;  %v7755_v18 = vsel %vm7696_vm4, %v10191_v36, %v7229_v62  ;;  %v5949_v36 = vrot.slane %v5947_v19, 5  ;;  %v6706_v5 = vshll.u32 %v6495_v21, 16  ;;  %v5875_v24 = vld [vmem:[#allocation2 + $0x24] sm:$0xf] }
 0x4e9   : > { %v7735_v11 = vsel %vm7696_vm4, %v10186_v12, %v7219_v60  ;;  %v5957_v12 = vshrl.u32 %v10590_v28, 16  ;;  %v6494_v60 = vld [vmem:[#allocation2 + $0x6c] sm:$0xf]  ;;  %7488 = vrot.lane.b32.xlu1 %v7464_v57, %s10708_s20  ;;  %7628 = vrot.lane.b32.xlu2 %v7606_v53, %s10708_s20  ;;  %v9707_v57 = vrot.slane %v6312_v27, 9  ;;  %v10594_v53 = vld [vmem:[#allocation2 + $0x28] sm:$0xf] }
 0x4ea   : > { %8342 = vmatmul.bf16.gmra.mxu2 %v7735_v11  ;;  %v5950_v37 = vor.u32 %v5949_v36, %v5946_v25  ;;  %v6697_v14 = vshrl.u32 %v6494_v60, 16  ;;  %v6700_v2 = vshll.u32 %v6494_v60, 16  ;;  %v6708_v25 = vrot.slane %v6706_v5, 5  ;;  %v5912_v36 = vld [vmem:[#allocation2 + $0x80] sm:$0x1] }
 0x4eb   : > { %v5959_v32 = vrot.slane %v5957_v12, 4  ;;  %v6716_v12 = vshll.u32 %v6519_v7, 16  ;;  %v6435_v55 = vrot.slane %v5912_v36, 5  ;;  %v5981_v22 = vshrl.u32 %v10594_v53, 16 }
 0x4ec   : > { %8367 = vmatmul.bf16.gmra.mxu3 %v7755_v18  ;;  %v5951_v62 = vrot.slane %v5950_v37, 4  ;;  %v9715_v18 = vrot.slane %v6913_v40, 9  ;;  %v6699_v41 = vrot.slane %v6697_v14, 4  ;;  %v6702_v48 = vrot.slane %v6700_v2, 5 }
 0x4ed   : > { %v5960_v11 = vor.u32 %v5959_v32, %v5955_v16  ;;  %v6718_v32 = vrot.slane %v6716_v12, 5  ;;  %v6713_v60 = vor.u32 %v6712_v46, %v6708_v25  ;;  %v6433_v40 = vsel %vm12832_vm3, %v9707_v57, %v6432_v0 }
 0x4ee   : > { %v5956_v17 = vsel %vm12593_vm0, %v5951_v62, %v5955_v16  ;;  %v6986_v33 = vsel %vm12832_vm3, %v9715_v18, %v6985_v58  ;;  %v10205_v16 = vld [vmem:[#allocation2 + $0x9c] sm:$0xff]  ;;  %v6703_v37 = vor.u32 %v6702_v48, %v6699_v41  ;;  %v5971_v58 = vshll.u32 %v5875_v24, 16 }
 0x4ef   : > { %v5961_v31 = vrot.slane %v5960_v11, 4  ;;  %v7378_v50 = vunpack.c.l.b16 %v5956_v17  ;;  %v7650_v56 = vunpack.c.l.b16 %v6986_v33  ;;  %7368 = vrot.lane.b32.xlu0 %v10205_v16, %s10708_s20  ;;  %v5977_v62 = vshll.u32 %v10594_v53, 16 }
 0x4f0   : > { %v7473_v45 = vpop.permute.xlu1 %7472  ;;  %v6704_v51 = vrot.slane %v6703_v37, 4  ;;  %v6714_v11 = vrot.slane %v6713_v60, 4  ;;  %v6434_v14 = vrot.slane %v6432_v0, 4  ;;  %v7442_v42 = vunpack.c.l.b16 %v6433_v40  ;;  %v6520_v0 = vld [vmem:[#allocation2 + $0x80] sm:$0x1] }
 0x4f1   : > { %v7827_v13 = vsel %vm7696_vm4, %v7408_v34, %v7473_v45  ;;  %v5793_v34 = vsel %vm12832_vm3, %v5791_v63, %v5792_v44  ;;  %v5966_v49 = vsel %vm12593_vm0, %v5961_v31, %v5965_v23  ;;  %v10209_v23 = vld [vmem:[#allocation2 + $0x18] sm:$0xff]  ;;  %v5968_v44 = vshrl.u32 %v5875_v24, 16 }
 0x4f2   : > { %v7241_v52 = vunpack.c.l.b16 %v5793_v34  ;;  %v7379_v4 = vunpack.c.l.b16 %v5966_v49  ;;  %v6709_v18 = vsel %vm12593_vm0, %v6704_v51, %v6708_v25  ;;  %v5973_v17 = vrot.slane %v5971_v58, 5  ;;  %v5697_v31 = vld [vmem:[#allocation2 + $0x3c] sm:$0xe]  ;;  %v10210_v51 = vld [vmem:[#allocation2 + $0x24] sm:$0xff] }
 0x4f3   : > { %v6719_v20 = vsel %vm12593_vm0, %v6714_v11, %v6718_v32  ;;  %v7582_v21 = vunpack.c.l.b16 %v6709_v18  ;;  %v5979_v41 = vrot.slane %v5977_v62, 5  ;;  %v5983_v49 = vrot.slane %v5981_v22, 4  ;;  %v7355_v11 = vpop.permute.xlu0 %7354 }
 0x4f4   : > { %v7268_v28 = vpack.c.b16 %v7241_v52, %v7240_v9  ;;  %v7409_v1 = vpack.c.b16 %v7379_v4, %v7378_v50  ;;  %v6436_v50 = vsel %vm12832_vm3, %v6434_v14, %v6435_v55  ;;  %v7583_v34 = vunpack.c.l.b16 %v6719_v20  ;;  %v10595_v52 = vld [vmem:[#allocation2 + $0x2c] sm:$0x1] }
 0x4f5   : > { %v7443_v33 = vunpack.c.l.b16 %v6436_v50  ;;  %v6992_v36 = vrot.slane %v12969_v39, 5  ;;  %v6995_v16 = vrot.slane %v12973_v47, 5 }
 0x4f6   : > { %v7607_v2 = vpack.c.b16 %v7583_v34, %v7582_v21  ;;  %v5913_v34 = vld [vmem:[#allocation2 + $0x8c] sm:$0x1] }
 0x4f7   : > { %8401 = vmatmul.bf16.gmra.mxu1 %v7775_v6  ;;  %v7231_v15 = vpop.permute.xlu2 %7230  ;;  %v7651_v6 = vunpack.c.l.b16 %v6989_v61  ;;  %v5987_v61 = vshll.u32 %v10595_v52, 16  ;;  %v7465_v5 = vpack.c.b16 %v7443_v33, %v7442_v42  ;;  %v6994_v32 = vrot.slane %v6992_v36, 4  ;;  %v5877_v33 = vld [vmem:[#allocation2 + $0x30] sm:$0xf] }
 0x4f8   : > { %v7759_v54 = vsel %vm7696_vm4, %v10192_v38, %v7231_v15  ;;  %v7475_v19 = vpop.permute.xlu1 %7474  ;;  %v5970_v38 = vrot.slane %v5968_v44, 4  ;;  %v10596_v15 = vld [vmem:[#allocation2 + $0x40] sm:$0xf]  ;;  %7630 = vrot.lane.b32.xlu2 %v7607_v2, %s10708_s20  ;;  %v6740_v42 = vshll.u32 %v6520_v0, 16  ;;  %v6442_v2 = vrot.slane %v5913_v34, 5 }
 0x4f9   : > { %v7681_v45 = vpack.c.b16 %v7651_v6, %v7650_v56  ;;  %v13176_v3 = vsel %vm7696_vm4, %v7409_v1, %v7475_v19  ;;  %v9687_v56 = vrot.slane %v5697_v31, 9  ;;  %v5796_v4 = vrot.slane %v10596_v15, 5  ;;  %v6914_v6 = vld [vmem:[#allocation2 + $0x30] sm:$0xe]  ;;  %v10597_v19 = vld [vmem:[#allocation2 + $0x44] sm:$0x1]  ;;  %7490 = vrot.lane.b32.xlu1 %v7465_v5, %s10708_s20 }
 0x4fa   : > { %8475 = vmatmul.bf16.vlgmr.msrb.gmra.mxu2 %v7827_v13  ;;  %v7779_v13 = vsel %vm7696_vm4, %v7268_v28, %v7353_v43  ;;  %v5974_v7 = vor.u32 %v5973_v17, %v5970_v38  ;;  %v5799_v43 = vrot.slane %v10597_v19, 5  ;;  %v5984_v28 = vor.u32 %v5983_v49, %v5979_v41  ;;  %v6496_v1 = vld [vmem:[#allocation2 + $0x78] sm:$0xf]  ;;  %v5892_v38 = vld [vmem:[#allocation2 + $0x88] sm:$0xf] }
 0x4fb   : > { %10067 = vmatmul.msk.bf16.gmra.mxu0 %vm7696_vm4, %v7681_v45  ;;  %v5989_v26 = vrot.slane %v5987_v61, 5  ;;  %v5797_v12 = vsel %vm12832_vm3, %v9687_v56, %v5796_v4  ;;  %v5798_v10 = vrot.slane %v5796_v4, 4  ;;  %v9716_v25 = vrot.slane %v6914_v6, 9  ;;  %v6313_v17 = vld [vmem:[#allocation2 + $0x84] sm:$0xe] }
 0x4fc   : > { %8372 = vmatmul.bf16.gmra.mxu3 %v7759_v54  ;;  %v5975_v54 = vrot.slane %v5974_v7, 4  ;;  %v7242_v48 = vunpack.c.l.b16 %v5797_v12  ;;  %v5985_v27 = vrot.slane %v5984_v28, 4  ;;  %v6721_v60 = vshrl.u32 %v6496_v1, 16  ;;  %v10599_v19 = vld [vmem:[#allocation2 + $0x34] sm:$0xf] }
 0x4fd   : > { %v5800_v24 = vsel %vm12832_vm3, %v5798_v10, %v5799_v43  ;;  %v6724_v55 = vshll.u32 %v6496_v1, 16  ;;  %v6996_v47 = vsel %vm12832_vm3, %v6994_v32, %v6995_v16  ;;  %v6742_v61 = vrot.slane %v6740_v42, 5  ;;  %v5698_v1 = vld [vmem:[#allocation2 + $0x48] sm:$0xe] }
 0x4fe   : > { %v5980_v45 = vsel %vm12593_vm0, %v5975_v54, %v5979_v41  ;;  %v7243_v37 = vunpack.c.l.b16 %v5800_v24  ;;  %v5990_v39 = vsel %vm12593_vm0, %v5985_v27, %v5989_v26  ;;  %v6723_v53 = vrot.slane %v6721_v60, 4  ;;  %v10600_v60 = vld [vmem:[#allocation2 + $0x38] sm:$0x1] }
 0x4ff   : > { %v7617_v63 = vpop.permute.xlu2 %7616  ;;  %v7380_v46 = vunpack.c.l.b16 %v5980_v45  ;;  %v7381_v44 = vunpack.c.l.b16 %v5990_v39  ;;  %v7653_v40 = vunpack.c.l.b16 %v6996_v47  ;;  %v6726_v14 = vrot.slane %v6724_v55, 5 }
 0x500   : > { %v7891_v9 = vsel %vm7696_vm4, %v10209_v23, %v7617_v63  ;;  %v6497_v23 = vld [vmem:[#allocation2 + $0x7c] sm:$0xf]  ;;  %v7269_v58 = vpack.c.b16 %v7243_v37, %v7242_v48  ;;  %v10206_v63 = vld [vmem:[#allocation2 + $0xa8] sm:$0xff]  ;;  %v9708_v4 = vrot.slane %v6313_v17, 9  ;;  %v6439_v6 = vrot.slane %v5892_v38, 5 }
 0x501   : > { %v6730_v22 = vshll.u32 %v6497_v23, 16  ;;  %v7410_v18 = vpack.c.b16 %v7381_v44, %v7380_v46  ;;  %v6727_v20 = vor.u32 %v6726_v14, %v6723_v53  ;;  %7370 = vrot.lane.b32.xlu0 %v10206_v63, %s10708_s20  ;;  %v5992_v5 = vshrl.u32 %v5877_v33, 16  ;;  %v10601_v44 = vld [vmem:[#allocation2 + $0x4c] sm:$0xf] }
 0x502   : > { %v7783_v52 = vsel %vm7696_vm4, %v7269_v58, %v7355_v11  ;;  %v5995_v54 = vshll.u32 %v5877_v33, 16  ;;  %v6001_v43 = vshll.u32 %v10599_v19, 16  ;;  %v6440_v10 = vsel %vm12832_vm3, %v9708_v4, %v6439_v6  ;;  %v10602_v11 = vld [vmem:[#allocation2 + $0x40] sm:$0xf] }
 0x503   : > { %v6732_v21 = vrot.slane %v6730_v22, 5  ;;  %v7477_v49 = vpop.permute.xlu1 %7476  ;;  %v6728_v56 = vrot.slane %v6727_v20, 4  ;;  %v6441_v48 = vrot.slane %v6439_v6, 4  ;;  %v6005_v16 = vshrl.u32 %v10599_v19, 16  ;;  %v10211_v6 = vld [vmem:[#allocation2 + $0x30] sm:$0xff] }
 0x504   : > { %v7835_v28 = vsel %vm7696_vm4, %v7410_v18, %v7477_v49  ;;  %v5997_v46 = vrot.slane %v5995_v54, 5  ;;  %v6003_v24 = vrot.slane %v6001_v43, 5  ;;  %v6011_v39 = vshll.u32 %v10600_v60, 16  ;;  %v6498_v18 = vld [vmem:[#allocation2 + $0x84] sm:$0xf]  ;;  %v10207_v19 = vld [vmem:[#allocation2 + $0xb4] sm:$0xff] }
 0x505   : > { %v6733_v26 = vsel %vm12593_vm0, %v6728_v56, %v6732_v21  ;;  %v5803_v58 = vrot.slane %v10601_v44, 5  ;;  %v6521_v56 = vld [vmem:[#allocation2 + $0x8c] sm:$0x1]  ;;  %v6748_v4 = vshll.u32 %v6498_v18, 16 }
 0x506   : > { %v7584_v45 = vunpack.c.l.b16 %v6733_v26  ;;  %v6013_v53 = vrot.slane %v6011_v39, 5  ;;  %v5879_v39 = vld [vmem:[#allocation2 + $0x3c] sm:$0xf] }
 0x507   : > { %8406 = vmatmul.bf16.gmra.mxu1 %v7779_v13  ;;  %v6993_v13 = vsel %vm12832_vm3, %v9716_v25, %v6992_v36  ;;  %v7619_v62 = vpop.permute.xlu2 %7618  ;;  %v7444_v25 = vunpack.c.l.b16 %v6440_v10  ;;  %v5994_v36 = vrot.slane %v5992_v5, 4  ;;  %v5805_v42 = vrot.slane %v5803_v58, 4 }
 0x508   : > { %v7652_v57 = vunpack.c.l.b16 %v6993_v13  ;;  %v13212_v41 = vsel %vm7696_vm4, %v10210_v51, %v7619_v62  ;;  %v6915_v13 = vld [vmem:[#allocation2 + $0x3c] sm:$0xe]  ;;  %v6007_v51 = vrot.slane %v6005_v16, 4  ;;  %v5914_v16 = vld [vmem:[#allocation2 + $0x98] sm:$0x1] }
 0x509   : > { %v13223_v37 = vpop.f32.mrf.mxu0  ;;  %v5998_v55 = vor.u32 %v5997_v46, %v5994_v36  ;;  %v9717_v62 = vrot.slane %v6915_v13, 9  ;;  %7372 = vrot.lane.b32.xlu0 %v10207_v19, %s10708_s20  ;;  %v6314_v13 = vld [vmem:[#allocation2 + $0x90] sm:$0xe] }
 0x50a   : > { %8480 = vmatmul.bf16.gmra.mxu2 %v13176_v3  ;;  %v6734_v3 = vshrl.u32 %v6497_v23, 16  ;;  %v7682_v31 = vpack.c.b16 %v7653_v40, %v7652_v57  ;;  %v6443_v23 = vsel %vm12832_vm3, %v6441_v48, %v6442_v2  ;;  %v9688_v57 = vrot.slane %v5698_v1, 9 }
 0x50b   : > { %v7445_v0 = vunpack.c.l.b16 %v6443_v23  ;;  %v6999_v40 = vrot.slane %v10602_v11, 5  ;;  %v5999_v22 = vrot.slane %v5998_v55, 4  ;;  %v6016_v11 = vshrl.u32 %v5879_v39, 16 }
 0x50c   : > { %8564 = vmatmul.bf16.vlgmr.msrb.gmra.mxu3 %v7891_v9  ;;  %v6736_v50 = vrot.slane %v6734_v3, 4  ;;  %v13208_v9 = vld [vmem:[#allocation2 + $0x50] sm:$0x1]  ;;  %10068 = vmatmul.msk.bf16.gmra.mxu0 %vm7696_vm4, %v7682_v31  ;;  %v6008_v3 = vor.u32 %v6007_v51, %v6003_v24  ;;  %v5804_v63 = vsel %vm12832_vm3, %v9688_v57, %v5803_v58  ;;  %v9709_v58 = vrot.slane %v6314_v13, 9 }
 0x50d   : > { %v5806_v7 = vrot.slane %v13208_v9, 5  ;;  %v7466_v14 = vpack.c.b16 %v7445_v0, %v7444_v25  ;;  %v7244_v38 = vunpack.c.l.b16 %v5804_v63  ;;  %v7000_v17 = vsel %vm12832_vm3, %v9717_v62, %v6999_v40  ;;  %v7479_v10 = vpop.permute.xlu1 %7478  ;;  %v13257_v63 = vpop.f32.mrf.mxu2 }
 0x50e   : > { %v6737_v15 = vor.u32 %v6736_v50, %v6732_v21  ;;  %v7001_v31 = vrot.slane %v6999_v40, 4  ;;  %v6004_v20 = vsel %vm12593_vm0, %v5999_v22, %v6003_v24  ;;  %v6009_v21 = vrot.slane %v6008_v3, 4  ;;  %v10603_v50 = vld [vmem:[#allocation2 + $0x44] sm:$0x1]  ;;  %v5894_v24 = vld [vmem:[#allocation2 + $0x94] sm:$0xf]  ;;  %v13255_v3 = vpop.f32.mrf.mxu3 }
 0x50f   : > { %7492 = vrot.lane.b32.xlu1 %v7466_v14, %s10708_s20  ;;  %v7002_v34 = vrot.slane %v10603_v50, 5  ;;  %v7654_v33 = vunpack.c.l.b16 %v7000_v17  ;;  %v7382_v49 = vunpack.c.l.b16 %v6004_v20  ;;  %v7621_v43 = vpop.permute.xlu2 %7620  ;;  %v6019_v40 = vshll.u32 %v5879_v39, 16  ;;  %v10604_v14 = vld [vmem:[#allocation2 + $0x40] sm:$0xf]  ;;  %14415 = vst [vmem:[#allocation33_spill] sm:$0xff] %v13255_v3 }
 0x510   : > { %v6738_v12 = vrot.slane %v6737_v15, 4  ;;  %v6745_v15 = vshrl.u32 %v6498_v18, 16  ;;  %v6014_v2 = vsel %vm12593_vm0, %v6009_v21, %v6013_v53  ;;  %v6449_v53 = vrot.slane %v5914_v16, 5  ;;  %14416 = vst [vmem:[#allocation34_spill] sm:$0xff] %v13257_v63  ;;  %v6501_v39 = vld [vmem:[#allocation2 + $0x94] sm:$0xf] }
 0x511   : > { %v7003_v54 = vsel %vm12832_vm3, %v7001_v31, %v7002_v34  ;;  %v7383_v9 = vunpack.c.l.b16 %v6014_v2  ;;  %v13244_v25 = vpop.f32.mrf.mxu0  ;;  %v6025_v22 = vshll.u32 %v10604_v14, 16  ;;  %v5699_v31 = vld [vmem:[#allocation2 + $0x54] sm:$0xe]  ;;  %v6018_v21 = vrot.slane %v6016_v11, 4 }
 0x512   : > { %v6743_v27 = vsel %vm12593_vm0, %v6738_v12, %v6742_v61  ;;  %v6499_v61 = vld [vmem:[#allocation2 + $0x88] sm:$0xf]  ;;  %v7655_v26 = vunpack.c.l.b16 %v7003_v54  ;;  %v6750_v12 = vrot.slane %v6748_v4, 5  ;;  %v6021_v50 = vrot.slane %v6019_v40, 5  ;;  %v10212_v40 = vld [vmem:[#allocation2 + $0x3c] sm:$0xff] }
 0x513   : > { %v7585_v32 = vunpack.c.l.b16 %v6743_v27  ;;  %v6758_v48 = vshrl.u32 %v6499_v61, 16  ;;  %v7411_v36 = vpack.c.b16 %v7383_v9, %v7382_v49  ;;  %v6027_v34 = vrot.slane %v6025_v22, 5  ;;  %v10606_v9 = vld [vmem:[#allocation2 + $0x58] sm:$0xf] }
 0x514   : > { %v7683_v27 = vpack.c.b16 %v7655_v26, %v7654_v33  ;;  %v6022_v2 = vor.u32 %v6021_v50, %v6018_v21  ;;  %v10607_v26 = vld [vmem:[#allocation2 + $0x5c] sm:$0x1]  ;;  %v6782_v50 = vshrl.u32 %v6501_v39, 16 }
 0x515   : > { %v7608_v47 = vpack.c.b16 %v7585_v32, %v7584_v45  ;;  %v6754_v45 = vshll.u32 %v6499_v61, 16  ;;  %v13248_v32 = vsel %vm7696_vm4, %v10211_v6, %v7621_v43  ;;  %v6760_v60 = vrot.slane %v6758_v48, 4  ;;  %v10605_v61 = vld [vmem:[#allocation2 + $0x44] sm:$0x1] }
 0x516   : > { %v7839_v57 = vsel %vm7696_vm4, %v7411_v36, %v7479_v10  ;;  %v13280_v11 = vpop.f32.mrf.mxu3 }
 0x517   : > { %8411 = vmatmul.bf16.gmra.mxu1 %v7783_v52  ;;  %7632 = vrot.lane.b32.xlu2 %v7608_v47, %s10708_s20  ;;  %v5807_v52 = vsel %vm12832_vm3, %v5805_v42, %v5806_v7  ;;  %v6747_v7 = vrot.slane %v6745_v15, 4  ;;  %v6756_v23 = vrot.slane %v6754_v45, 5  ;;  %v6446_v47 = vrot.slane %v5894_v24, 5  ;;  %v6916_v15 = vld [vmem:[#allocation2 + $0x48] sm:$0xe]  ;;  %14417 = vst [vmem:[#allocation35_spill] sm:$0xff] %v13280_v11 }
 0x518   : > { %v7245_v5 = vunpack.c.l.b16 %v5807_v52  ;;  %v6029_v52 = vshrl.u32 %v10604_v14, 16  ;;  %v6023_v45 = vrot.slane %v6022_v2, 4  ;;  %v9718_v48 = vrot.slane %v6916_v15, 9  ;;  %v13282_v14 = vpop.f32.mrf.mxu2  ;;  %v6315_v15 = vld [vmem:[#allocation2 + $0x9c] sm:$0xe] }
 0x519   : > { %v6751_v46 = vor.u32 %v6750_v12, %v6747_v7  ;;  %v6761_v44 = vor.u32 %v6760_v60, %v6756_v23  ;;  %v6448_v17 = vrot.slane %v6446_v47, 4  ;;  %v5813_v7 = vrot.slane %v10607_v26, 5  ;;  %v6500_v12 = vld [vmem:[#allocation2 + $0x90] sm:$0xf]  ;;  %14418 = vst [vmem:[#allocation36_spill] sm:$0xff] %v13282_v14 }
 0x51a   : > { %8485 = vmatmul.bf16.gmra.mxu2 %v7835_v28  ;;  %v7357_v28 = vpop.permute.xlu0 %7356  ;;  %v7270_v1 = vpack.c.b16 %v7245_v5, %v7244_v38  ;;  %v6447_v38 = vsel %vm12832_vm3, %v9709_v58, %v6446_v47  ;;  %v9689_v5 = vrot.slane %v5699_v31, 9  ;;  %v6031_v54 = vrot.slane %v6029_v52, 4  ;;  %v13265_v43 = vpop.f32.mrf.mxu0 }
 0x51b   : > { %v6752_v55 = vrot.slane %v6751_v46, 4  ;;  %v6762_v18 = vrot.slane %v6761_v44, 4  ;;  %v7446_v20 = vunpack.c.l.b16 %v6447_v38  ;;  %v6450_v49 = vsel %vm12832_vm3, %v6448_v17, %v6449_v53  ;;  %v10608_v46 = vld [vmem:[#allocation2 + $0x4c] sm:$0xf]  ;;  %v13278_v53 = vld [vmem:[#allocation2 + $0x98] sm:$0x1]  ;;  %v7623_v38 = vpop.permute.xlu2 %7622 }
 0x51c   : > { %8569 = vmatmul.bf16.gmra.mxu3 %v13212_v41  ;;  %v6764_v41 = vshll.u32 %v6521_v56, 16  ;;  %v7787_v0 = vsel %vm7696_vm4, %v7270_v1, %v7357_v28  ;;  %10069 = vmatmul.msk.bf16.gmra.mxu0 %vm7696_vm4, %v7683_v27  ;;  %v6035_v56 = vshll.u32 %v10605_v61, 16  ;;  %v7447_v6 = vunpack.c.l.b16 %v6450_v49 }
 0x51d   : > { %v6757_v62 = vsel %vm12593_vm0, %v6752_v55, %v6756_v23  ;;  %v5810_v28 = vrot.slane %v10606_v9, 5  ;;  %v7006_v24 = vrot.slane %v10608_v46, 5  ;;  %v6028_v16 = vsel %vm12593_vm0, %v6023_v45, %v6027_v34  ;;  %v10609_v23 = vld [vmem:[#allocation2 + $0x50] sm:$0x1] }
 0x51e   : > { %v6766_v51 = vrot.slane %v6764_v41, 5  ;;  %v7586_v42 = vunpack.c.l.b16 %v6757_v62  ;;  %v6037_v19 = vrot.slane %v6035_v56, 5  ;;  %v7467_v1 = vpack.c.b16 %v7447_v6, %v7446_v20 }
 0x51f   : > { %v6032_v41 = vor.u32 %v6031_v54, %v6027_v34  ;;  %v5811_v36 = vsel %vm12832_vm3, %v9689_v5, %v5810_v28  ;;  %v5812_v27 = vrot.slane %v5810_v28, 4  ;;  %v7009_v60 = vrot.slane %v10609_v23, 5  ;;  %v5881_v34 = vld [vmem:[#allocation2 + $0x48] sm:$0xf]  ;;  %v13291_v5 = vld [vmem:[#allocation2 + $0xa0] sm:$0xf] }
 0x520   : > { %v6767_v33 = vsel %vm12593_vm0, %v6762_v18, %v6766_v51  ;;  %7494 = vrot.lane.b32.xlu1 %v7467_v1, %s10708_s20  ;;  %v7246_v13 = vunpack.c.l.b16 %v5811_v36  ;;  %v7384_v55 = vunpack.c.l.b16 %v6028_v16  ;;  %v7007_v58 = vsel %vm12832_vm3, %v9718_v48, %v7006_v24  ;;  %v5915_v54 = vld [vmem:[#allocation2 + $0xa4] sm:$0x1] }
 0x521   : > { %v7587_v4 = vunpack.c.l.b16 %v6767_v33  ;;  %v5814_v51 = vsel %vm12832_vm3, %v5812_v27, %v5813_v7  ;;  %v7008_v47 = vrot.slane %v7006_v24, 4  ;;  %v7656_v22 = vunpack.c.l.b16 %v7007_v58  ;;  %v7481_v33 = vpop.permute.xlu1 %7480  ;;  %v10610_v24 = vld [vmem:[#allocation2 + $0x4c] sm:$0xf] }
 0x522   : > { %v7247_v44 = vunpack.c.l.b16 %v5814_v51  ;;  %v6772_v18 = vshll.u32 %v6500_v12, 16  ;;  %v7359_v31 = vpop.permute.xlu0 %7358  ;;  %v6788_v56 = vshll.u32 %v13278_v53, 16  ;;  %v6784_v2 = vrot.slane %v6782_v50, 4 }
 0x523   : > { %v7609_v10 = vpack.c.b16 %v7587_v4, %v7586_v42  ;;  %v6778_v42 = vshll.u32 %v6501_v39, 16  ;;  %v7010_v21 = vsel %vm12832_vm3, %v7008_v47, %v7009_v60  ;;  %v13289_v4 = vpop.f32.mrf.mxu0  ;;  %v9710_v1 = vrot.slane %v6315_v15, 9  ;;  %v5700_v47 = vld [vmem:[#allocation2 + $0x60] sm:$0xe] }
 0x524   : > { %v7271_v20 = vpack.c.b16 %v7247_v44, %v7246_v13  ;;  %v7657_v49 = vunpack.c.l.b16 %v7010_v21  ;;  %v6774_v52 = vrot.slane %v6772_v18, 5  ;;  %v6453_v48 = vrot.slane %v13291_v5, 5 }
 0x525   : > { %7634 = vrot.lane.b32.xlu2 %v7609_v10, %s10708_s20  ;;  %v6780_v61 = vrot.slane %v6778_v42, 5  ;;  %v6790_v10 = vrot.slane %v6788_v56, 5  ;;  %v6040_v36 = vshrl.u32 %v5881_v34, 16  ;;  %v6043_v46 = vshll.u32 %v5881_v34, 16  ;;  %v13309_v42 = vpop.f32.mrf.mxu3 }
 0x526   : > { %v7791_v9 = vsel %vm7696_vm4, %v7271_v20, %v7359_v31  ;;  %v7684_v28 = vpack.c.b16 %v7657_v49, %v7656_v22  ;;  %v6049_v16 = vshll.u32 %v10610_v24, 16  ;;  %v6053_v13 = vshrl.u32 %v10610_v24, 16  ;;  %14420 = vst [vmem:[#allocation38_spill] sm:$0xff] %v13309_v42  ;;  %v10611_v31 = vld [vmem:[#allocation2 + $0x50] sm:$0x1] }
 0x527   : > { %8416 = vmatmul.bf16.gmra.mxu1 %v7787_v0  ;;  %v6769_v0 = vshrl.u32 %v6500_v12, 16  ;;  %v6785_v12 = vor.u32 %v6784_v2, %v6780_v61  ;;  %v6454_v60 = vsel %vm12832_vm3, %v9710_v1, %v6453_v48  ;;  %v6455_v39 = vrot.slane %v6453_v48, 4  ;;  %v10612_v2 = vld [vmem:[#allocation6] ss:$0 sm:$0xff] }
 0x528   : > { %v7448_v44 = vunpack.c.l.b16 %v6454_v60  ;;  %v6045_v58 = vrot.slane %v6043_v46, 5  ;;  %v6051_v22 = vrot.slane %v6049_v16, 5  ;;  %v6055_v18 = vrot.slane %v6053_v13, 4 }
 0x529   : > { %v6771_v62 = vrot.slane %v6769_v0, 4  ;;  %v6786_v27 = vrot.slane %v6785_v12, 4  ;;  %v6042_v0 = vrot.slane %v6040_v36, 4  ;;  %v6059_v20 = vshll.u32 %v10611_v31, 16  ;;  %v6502_v36 = vld [vmem:[#allocation2 + $0x9c] sm:$0xf] }
 0x52a   : > { %8490 = vmatmul.bf16.gmra.mxu2 %v7839_v57  ;;  %v6033_v57 = vrot.slane %v6032_v41, 4  ;;  %v6456_v41 = vrot.slane %v5915_v54, 5 }
 0x52b   : > { %v6775_v26 = vor.u32 %v6774_v52, %v6771_v62  ;;  %v13311_v50 = vpop.f32.mrf.mxu0  ;;  %v9690_v52 = vrot.slane %v5700_v47, 9 }
 0x52c   : > { %8574 = vmatmul.bf16.gmra.mxu3 %v13248_v32  ;;  %v6038_v32 = vsel %vm12593_vm0, %v6033_v57, %v6037_v19  ;;  %v7903_v19 = vsel %vm7696_vm4, %v10212_v40, %v7623_v38  ;;  %10070 = vmatmul.msk.bf16.gmra.mxu0 %vm7696_vm4, %v7684_v28  ;;  %v10405_v57 = vld [vmem:[%s12530_s19 + $0x78] sm:$0xff]   ;;  %s13658_s19 = scalar_lea.vmem [#allocation4], %s10176_s16 }
 0x52d   : > { %v7385_v17 = vunpack.c.l.b16 %v6038_v32  ;;  %v6776_v45 = vrot.slane %v6775_v26, 4  ;;  %v6457_v32 = vsel %vm12832_vm3, %v6455_v39, %v6456_v41  ;;  %v10325_v21 = vunpack.c.l.bf16 %v10405_v57  ;;  %v10613_v26 = vld [vmem:[#allocation2 + $0x64] sm:$0xf] }
 0x52e   : > { %v7449_v38 = vunpack.c.l.b16 %v6457_v32  ;;  %v10326_v49 = vunpack.c.h.bf16 %v10405_v57  ;;  %v5817_v12 = vrot.slane %v10613_v26, 5  ;;  %v10616_v57 = vld [vmem:[#allocation2 + $0x58] sm:$0xf] }
 0x52f   : > { %v7412_v6 = vpack.c.b16 %v7385_v17, %v7384_v55  ;;  %v6781_v23 = vsel %vm12593_vm0, %v6776_v45, %v6780_v61  ;;  %v6791_v55 = vsel %vm12593_vm0, %v6786_v27, %v6790_v10  ;;  %v6046_v17 = vor.u32 %v6045_v58, %v6042_v0  ;;  %v6917_v61 = vld [vmem:[#allocation2 + $0x54] sm:$0xe]  ;;  %v10614_v10 = vld [vmem:[#allocation6 + $0x1] ss:$0 sm:$0xff]  ;;  %v10615_v45 = vld [vmem:[#allocation2 + $0x68] sm:$0x1] }
 0x530   : > { %v7588_v51 = vunpack.c.l.b16 %v6781_v23  ;;  %v7589_v40 = vunpack.c.l.b16 %v6791_v55  ;;  %v7468_v56 = vpack.c.b16 %v7449_v38, %v7448_v44  ;;  %v4716_v54 = vmul.f32 %v10612_v2, %v10325_v21  ;;  %v7483_v38 = vpop.permute.xlu1 %7482 }
 0x531   : > { %v7843_v7 = vsel %vm7696_vm4, %v7412_v6, %v7481_v33  ;;  %v6056_v33 = vor.u32 %v6055_v18, %v6051_v22  ;;  %v6047_v15 = vrot.slane %v6046_v17, 4  ;;  %v6061_v6 = vrot.slane %v6059_v20, 5 }
 0x532   : > { %v7610_v34 = vpack.c.b16 %v7589_v40, %v7588_v51  ;;  %v4717_v28 = vmul.f32 %v10612_v2, %v10326_v49  ;;  %7496 = vrot.lane.b32.xlu1 %v7468_v56, %s10708_s20  ;;  %v4749_v1 = vadd.f32 %v10614_v10, %v4716_v54  ;;  %v5820_v48 = vrot.slane %v10615_v45, 5  ;;  %v10617_v51 = vld [vmem:[#allocation2 + $0x5c] sm:$0x1]  ;;  %v6503_v56 = vld [vmem:[#allocation2 + $0xa0] sm:$0xf] }
 0x533   : > { %v9719_v41 = vrot.slane %v6917_v61, 9  ;;  %v5818_v24 = vsel %vm12832_vm3, %v9690_v52, %v5817_v12  ;;  %v5819_v23 = vrot.slane %v5817_v12, 4  ;;  %v7013_v55 = vrot.slane %v10616_v57, 5  ;;  %v13325_v18 = vpop.f32.mrf.mxu0  ;;  %v7361_v52 = vpop.permute.xlu0 %7360  ;;  %v5250_v12 = vld [vmem:[#allocation2 + $0xc0] sm:$0xf] }
 0x534   : > { %7636 = vrot.lane.b32.xlu2 %v7610_v34, %s10708_s20  ;;  %v4750_v46 = vadd.f32 %v10614_v10, %v4717_v28  ;;  %v4781_v13 = vmax.f32 %v4749_v1, 0.0  ;;  %v7248_v60 = vunpack.c.l.b16 %v5818_v24  ;;  %v7016_v44 = vrot.slane %v10617_v51, 5  ;;  %v13329_v34 = vpop.f32.mrf.mxu3  ;;  %v7625_v1 = vpop.permute.xlu2 %7624  ;;  %v5898_v57 = vld [vmem:[#allocation2 + $0xac] sm:$0xf] }
 0x535   : > { %v6793_v58 = vshrl.u32 %v6502_v36, 16  ;;  %v5821_v32 = vsel %vm12832_vm3, %v5819_v23, %v5820_v48  ;;  %v7014_v20 = vsel %vm12832_vm3, %v9719_v41, %v7013_v55  ;;  %v7015_v21 = vrot.slane %v7013_v55, 4  ;;  %14422 = vst [vmem:[#allocation40_spill] sm:$0xff] %v13329_v34  ;;  %v13337_v41 = vld [vmem:[#allocation2 + $0xa4] sm:$0x1] }
 0x536   : > { %v4782_v0 = vmax.f32 %v4750_v46, 0.0  ;;  %v4813_v40 = vpack.c.bf16 %v4781_v13, %v4781_v13  ;;  %v7249_v31 = vunpack.c.l.b16 %v5821_v32  ;;  %v7658_v61 = vunpack.c.l.b16 %v7014_v20  ;;  %v6316_v55 = vld [vmem:[#allocation2 + $0xa8] sm:$0xe]  ;;  %v5916_v32 = vld [vmem:[#allocation2 + $0xb0] sm:$0x1] }
 0x537   : > { %8421 = vmatmul.bf16.gmra.mxu1 %v7791_v9  ;;  %v6057_v9 = vrot.slane %v6056_v33, 4  ;;  %v7017_v54 = vsel %vm12832_vm3, %v7015_v21, %v7016_v44  ;;  %v6795_v10 = vrot.slane %v6793_v58, 4  ;;  %v13354_v20 = vld [vmem:[#allocation2 + $0x8c] sm:$0x1] }
 0x538   : > { %v13305_v62 = vpop.f32.mrf.mxu2  ;;  %v4814_v17 = vpack.c.bf16 %v4782_v0, %v4782_v0  ;;  %v5074_v33 = vshrl.u32 %v4813_v40, 16  ;;  %v5077_v49 = vshll.u32 %v4813_v40, 16  ;;  %v7272_v2 = vpack.c.b16 %v7249_v31, %v7248_v60 }
 0x539   : > { %14419 = vst [vmem:[#allocation37_spill] sm:$0xff] %v13305_v62  ;;  %v6812_v40 = vshll.u32 %v13337_v41, 16  ;;  %v10638_v62 = vld [vmem:[#allocation2 + $0x88] sm:$0xf] }
 0x53a   : > { %8495 = vmatmul.bf16.gmra.mxu2 %v7843_v7  ;;  %v6052_v7 = vsel %vm12593_vm0, %v6047_v15, %v6051_v22  ;;  %v6796_v22 = vshll.u32 %v6502_v36, 16  ;;  %v5082_v15 = vshrl.u32 %v4814_v17, 16  ;;  %v5076_v26 = vrot.slane %v5074_v33, 7 }
 0x53b   : > { %v7386_v27 = vunpack.c.l.b16 %v6052_v7  ;;  %v7659_v7 = vunpack.c.l.b16 %v7017_v54  ;;  %v7795_v48 = vsel %vm7696_vm4, %v7272_v2, %v7361_v52  ;;  %v6814_v52 = vrot.slane %v6812_v40, 5 }
 0x53c   : > { %8579 = vmatmul.bf16.gmra.mxu3 %v7903_v19  ;;  %v6062_v19 = vsel %vm12593_vm0, %v6057_v9, %v6061_v6  ;;  %v5085_v6 = vshll.u32 %v4814_v17, 16  ;;  %v10213_v9 = vld [vmem:[#allocation2 + $0x48] sm:$0xff]  ;;  %v13334_v45 = vrot.slane %v5082_v15, 7  ;;  %v6798_v36 = vrot.slane %v6796_v22, 5  ;;  %v5883_v22 = vld [vmem:[#allocation2 + $0x54] sm:$0xf] }
 0x53d   : > { %v7387_v16 = vunpack.c.l.b16 %v6062_v19  ;;  %v6802_v19 = vshll.u32 %v6503_v56, 16  ;;  %v5080_v46 = vrot.slane %v5076_v26, 4  ;;  %v7685_v24 = vpack.c.b16 %v7659_v7, %v7658_v61  ;;  %v13351_v17 = vld [vmem:[#allocation2 + $0x80] sm:$0x1] }
 0x53e   : > { %v5087_v23 = vor.u32 %v5085_v6, %v13334_v45  ;;  %v6799_v60 = vor.u32 %v6798_v36, %v6795_v10  ;;  %v7907_v51 = vsel %vm7696_vm4, %v10213_v9, %v7625_v1  ;;  %v9711_v61 = vrot.slane %v6316_v55, 9  ;;  %v13362_v9 = vld [vmem:[#allocation2 + $0x64] sm:$0xf] }
 0x53f   : > { %v7413_v47 = vpack.c.b16 %v7387_v16, %v7386_v27  ;;  %v5079_v27 = vor.u32 %v5077_v49, %v5076_v26  ;;  %v6806_v16 = vshrl.u32 %v6503_v56, 16  ;;  %v6804_v0 = vrot.slane %v6802_v19, 5  ;;  %10071 = vmatmul.msk.bf16.gmra.mxu0 %vm7696_vm4, %v7685_v24  ;;  %v5701_v19 = vld [vmem:[#allocation2 + $0x6c] sm:$0xe]  ;;  %v10621_v24 = vld [vmem:[#allocation2 + $0x58] sm:$0xf] }
 0x540   : > { %v13321_v39 = vpop.f32.mrf.mxu2  ;;  %v5088_v21 = vsel %vm12560_vm11, %v5080_v46, %v5087_v23  ;;  %v6800_v33 = vrot.slane %v6799_v60, 4  ;;  %v6460_v56 = vrot.slane %v5898_v57, 5  ;;  %v6463_v6 = vrot.slane %v5916_v32, 5  ;;  %v10214_v60 = vld [vmem:[#allocation2 + $0x54] sm:$0xff] }
 0x541   : > { %14421 = vst [vmem:[#allocation39_spill] sm:$0xff] %v13321_v39  ;;  %v7847_v28 = vsel %vm7696_vm4, %v7413_v47, %v7483_v38  ;;  %v5251_v44 = vsel %vm12566_vm12, %v5079_v27, %v5250_v12  ;;  %v6808_v47 = vrot.slane %v6806_v16, 4  ;;  %v13349_v38 = vpop.f32.mrf.mxu0  ;;  %v6064_v2 = vshrl.u32 %v5883_v22, 16 }
 0x542   : > { %5252 = vst [vmem:[#allocation2 + $0xc0] sm:$0xf] %v5251_v44  ;;  %v6805_v15 = vsel %vm12593_vm0, %v6800_v33, %v6804_v0  ;;  %v6067_v54 = vshll.u32 %v5883_v22, 16  ;;  %v6461_v12 = vsel %vm12832_vm3, %v9711_v61, %v6460_v56  ;;  %v6462_v7 = vrot.slane %v6460_v56, 4  ;;  %v10623_v22 = vld [vmem:[#allocation2 + $0x70] sm:$0xf]  ;;  %v7627_v61 = vpop.permute.xlu2 %7626 }
 0x543   : > { %5253 = vst.msk [vmem:[#allocation2 + $0xc4] sm:$0xf] %vm5139_vm7, %v5088_v21  ;;  %v6809_v49 = vor.u32 %v6808_v47, %v6804_v0  ;;  %v7590_v10 = vunpack.c.l.b16 %v6805_v15  ;;  %v7450_v1 = vunpack.c.l.b16 %v6461_v12  ;;  %v6073_v16 = vshll.u32 %v10621_v24, 16  ;;  %v6918_v33 = vld [vmem:[#allocation2 + $0x60] sm:$0xe] }
 0x544   : > { %v13345_v58 = vpop.f32.mrf.mxu1  ;;  %v6069_v36 = vrot.slane %v6067_v54, 5  ;;  %v6464_v46 = vsel %vm12832_vm3, %v6462_v7, %v6463_v6  ;;  %v6077_v23 = vshrl.u32 %v10621_v24, 16  ;;  %v9691_v32 = vrot.slane %v5701_v19, 9  ;;  %v13426_v24 = vld [vmem:[#allocation2 + $0x7c] sm:$0xf] }
 0x545   : > { %v6810_v26 = vrot.slane %v6809_v49, 4  ;;  %v7451_v57 = vunpack.c.l.b16 %v6464_v46  ;;  %v6075_v47 = vrot.slane %v6073_v16, 5  ;;  %v5824_v21 = vrot.slane %v10623_v22, 5  ;;  %v13381_v46 = vld [vmem:[#allocation2 + $0x68] sm:$0x1] }
 0x546   : > { %v6079_v40 = vrot.slane %v6077_v23, 4  ;;  %v9720_v16 = vrot.slane %v6918_v33, 9  ;;  %v13388_v23 = vld [vmem:[#allocation2 + $0xac] sm:$0xf]  ;;  %v14432_v11 = vshll.u32 %v13381_v46, 16  ;;  %v5838_v14 = vrot.slane %v10638_v62, 5 }
 0x547   : > { %8426 = vmatmul.bf16.gmra.mxu1 %v7795_v48  ;;  %v6066_v48 = vrot.slane %v6064_v2, 4  ;;  %v6815_v27 = vsel %vm12593_vm0, %v6810_v26, %v6814_v52  ;;  %v7469_v6 = vpack.c.b16 %v7451_v57, %v7450_v1  ;;  %v5825_v7 = vsel %vm12832_vm3, %v9691_v32, %v5824_v21  ;;  %v10626_v32 = vld [vmem:[#allocation2 + $0x64] sm:$0xf] }
 0x548   : > { %v13339_v13 = vpop.f32.mrf.mxu2  ;;  %v7591_v0 = vunpack.c.l.b16 %v6815_v27  ;;  %v6080_v12 = vor.u32 %v6079_v40, %v6075_v47  ;;  %v6504_v27 = vld [vmem:[#allocation2 + $0xa8] sm:$0xf]  ;;  %v7250_v1 = vunpack.c.l.b16 %v5825_v7  ;;  %v7911_v57 = vsel %vm7696_vm4, %v10214_v60, %v7627_v61 }
 0x549   : > { %14423 = vst [vmem:[#allocation41_spill] sm:$0xff] %v13339_v13  ;;  %v6070_v55 = vor.u32 %v6069_v36, %v6066_v48  ;;  %v13373_v49 = vpop.f32.mrf.mxu0  ;;  %v5826_v48 = vrot.slane %v5824_v21, 4  ;;  %v10624_v36 = vld [vmem:[#allocation2 + $0x74] sm:$0x1]  ;;  %7498 = vrot.lane.b32.xlu1 %v7469_v6, %s10708_s20  ;;  %v7020_v22 = vrot.slane %v10626_v32, 5  ;;  %v6826_v60 = vshll.u32 %v13388_v23, 16 }
 0x54a   : > { %8500 = vmatmul.bf16.gmra.mxu2 %v7847_v28  ;;  %v10208_v52 = vld [vmem:[#allocation2 + $0xc0] sm:$0xff]  ;;  %v7611_v15 = vpack.c.b16 %v7591_v0, %v7590_v10  ;;  %v5827_v19 = vrot.slane %v10624_v36, 5  ;;  %v10627_v21 = vld [vmem:[#allocation2 + $0x68] sm:$0x1]  ;;  %v6830_v61 = vshrl.u32 %v13388_v23, 16  ;;  %v6109_v3 = vrot.slane %v14432_v11, 5 }
 0x54b   : > { %v6071_v2 = vrot.slane %v6070_v55, 4  ;;  %7374 = vrot.lane.b32.xlu0 %v10208_v52, %s10708_s20  ;;  %v6081_v55 = vrot.slane %v6080_v12, 4  ;;  %v6817_v52 = vshrl.u32 %v6504_v27, 16  ;;  %v7021_v7 = vsel %vm12832_vm3, %v9720_v16, %v7020_v22  ;;  %v13402_v36 = vld [vmem:[#allocation2 + $0xb0] sm:$0x1] }
 0x54c   : > { %8584 = vmatmul.bf16.gmra.mxu3 %v7907_v51  ;;  %v13365_v28 = vpop.f32.mrf.mxu3  ;;  %v10622_v51 = vld [vmem:[#allocation2 + $0x5c] sm:$0x1]  ;;  %v13377_v26 = vpop.f32.mrf.mxu1  ;;  %7638 = vrot.lane.b32.xlu2 %v7611_v15, %s10708_s20 }
 0x54d   : > { %14424 = vst [vmem:[#allocation42_spill] sm:$0xff] %v13365_v28  ;;  %v6083_v44 = vshll.u32 %v10622_v51, 16  ;;  %v6076_v10 = vsel %vm12593_vm0, %v6071_v2, %v6075_v47  ;;  %v7023_v47 = vrot.slane %v10627_v21, 5  ;;  %v7363_v15 = vpop.permute.xlu0 %7362  ;;  %v6820_v2 = vshll.u32 %v6504_v27, 16  ;;  %v6919_v28 = vld [vmem:[#allocation2 + $0x6c] sm:$0xe] }
 0x54e   : > { %v7388_v51 = vunpack.c.l.b16 %v6076_v10  ;;  %v7660_v10 = vunpack.c.l.b16 %v7021_v7  ;;  %v6828_v21 = vrot.slane %v6826_v60, 5  ;;  %v5917_v60 = vld [vmem:[#allocation2 + $0xbc] sm:$0x1] }
 0x54f   : > { %v6085_v54 = vrot.slane %v6083_v44, 5  ;;  %v5828_v44 = vsel %vm12832_vm3, %v5826_v48, %v5827_v19  ;;  %v7022_v48 = vrot.slane %v7020_v22, 4  ;;  %v7485_v19 = vpop.permute.xlu1 %7484  ;;  %v6822_v32 = vrot.slane %v6820_v2, 5  ;;  %v13413_v2 = vld [vmem:[#allocation2 + $0xb8] sm:$0xf] }
 0x550   : > { %v13375_v56 = vpop.f32.mrf.mxu2  ;;  %v7251_v40 = vunpack.c.l.b16 %v5828_v44  ;;  %v6819_v44 = vrot.slane %v6817_v52, 4  ;;  %v6836_v52 = vshll.u32 %v13402_v36, 16 }
 0x551   : > { %14425 = vst [vmem:[#allocation43_spill] sm:$0xff] %v13375_v56  ;;  %v6086_v33 = vsel %vm12593_vm0, %v6081_v55, %v6085_v54  ;;  %v13404_v54 = vpop.f32.mrf.mxu0  ;;  %v9721_v56 = vrot.slane %v6919_v28, 9 }
 0x552   : > { %v7389_v6 = vunpack.c.l.b16 %v6086_v33  ;;  %v7273_v12 = vpack.c.b16 %v7251_v40, %v7250_v1  ;;  %v7024_v33 = vsel %vm12832_vm3, %v7022_v48, %v7023_v47  ;;  %v6832_v1 = vrot.slane %v6830_v61, 4  ;;  %v6317_v40 = vld [vmem:[#allocation2 + $0xb4] sm:$0xe] }
 0x553   : > { %v7661_v22 = vunpack.c.l.b16 %v7024_v33  ;;  %v6823_v7 = vor.u32 %v6822_v32, %v6819_v44  ;;  %v5885_v44 = vld [vmem:[#allocation2 + $0x60] sm:$0xf]  ;;  %v6838_v16 = vrot.slane %v6836_v52, 5  ;;  %v9712_v31 = vrot.slane %v6317_v40, 9 }
 0x554   : > { %v13390_v0 = vpop.f32.mrf.mxu3  ;;  %v7414_v27 = vpack.c.b16 %v7389_v6, %v7388_v51  ;;  %v7799_v55 = vsel %vm7696_vm4, %v7273_v12, %v7363_v15  ;;  %v13415_v51 = vld [vmem:[#allocation2 + $0x74] sm:$0x1]  ;;  %v6833_v48 = vor.u32 %v6832_v1, %v6828_v21  ;;  %v13424_v32 = vpop.f32.mrf.mxu1  ;;  %v6470_v47 = vrot.slane %v5917_v60, 5  ;;  %v5702_v60 = vld [vmem:[#allocation2 + $0x78] sm:$0xe] }
 0x555   : > { %14426 = vst [vmem:[#allocation44_spill] sm:$0xff] %v13390_v0  ;;  %v13418_v6 = vld [vmem:[#allocation2 + $0x74] sm:$0x1]  ;;  %v6824_v33 = vrot.slane %v6823_v7, 4  ;;  %v6088_v1 = vshrl.u32 %v5885_v44, 16 }
 0x556   : > { %v7851_v61 = vsel %vm7696_vm4, %v7414_v27, %v7485_v19  ;;  %v6834_v8 = vrot.slane %v6833_v48, 4  ;;  %v10215_v48 = vld [vmem:[#allocation2 + $0x60] sm:$0xff] }
 0x557   : > { %8431 = vmatmul.bf16.gmra.mxu1 %v7799_v55  ;;  %v7686_v55 = vpack.c.b16 %v7661_v22, %v7660_v10  ;;  %v6829_v27 = vsel %vm12593_vm0, %v6824_v33, %v6828_v21  ;;  %v6091_v10 = vshll.u32 %v5885_v44, 16  ;;  %v6097_v22 = vshll.u32 %v13362_v9, 16  ;;  %v7629_v33 = vpop.permute.xlu2 %7628  ;;  %v10632_v44 = vld [vmem:[#allocation2 + $0x7c] sm:$0xf] }
 0x558   : > { %v6839_v40 = vsel %vm12593_vm0, %v6834_v8, %v6838_v16  ;;  %v7592_v7 = vunpack.c.l.b16 %v6829_v27  ;;  %v14430_v27 = vshrl.u32 %v13362_v9, 16 }
 0x559   : > { %10072 = vmatmul.msk.bf16.gmra.mxu0 %vm7696_vm4, %v7686_v55  ;;  %v7593_v15 = vunpack.c.l.b16 %v6839_v40  ;;  %v6090_v55 = vrot.slane %v6088_v1, 4  ;;  %v6093_v0 = vrot.slane %v6091_v10, 5  ;;  %v13440_v21 = vpop.f32.mrf.mxu0  ;;  %v6099_v16 = vrot.slane %v6097_v22, 5 }
 0x55a   : > { %8505 = vmatmul.bf16.gmra.mxu2 %v7851_v61  ;;  %14429 = vst [vmem:[#allocation47_spill] sm:$0xff] %v13440_v21  ;;  %v9692_v40 = vrot.slane %v5702_v60, 9 }
 0x55b   : > { %v13422_v12 = vpop.f32.mrf.mxu2  ;;  %v6094_v42 = vor.u32 %v6093_v0, %v6090_v55 }
 0x55c   : > { %8589 = vmatmul.bf16.gmra.mxu3 %v7911_v57  ;;  %14427 = vst [vmem:[#allocation45_spill] sm:$0xff] %v13422_v12  ;;  %v6467_v57 = vrot.slane %v13413_v2, 5  ;;  %v5831_v12 = vrot.slane %v10632_v44, 5  ;;  %v13458_v11 = vpop.f32.mrf.mxu1  ;;  %v14434_v44 = vrot.slane %v13351_v17, 5 }
 0x55d   : > { %v6095_v22 = vrot.slane %v6094_v42, 4 }
 0x55e   : > { %v6468_v52 = vsel %vm12832_vm3, %v9712_v31, %v6467_v57  ;;  %v6469_v61 = vrot.slane %v6467_v57, 4  ;;  %v6103_v31 = vrot.slane %v14430_v27, 4  ;;  %v7612_v57 = vpack.c.b16 %v7593_v15, %v7592_v7  ;;  %v10633_v15 = vld [vmem:[#allocation2 + $0x70] sm:$0xf] }
 0x55f   : > { %v13430_v19 = vpop.f32.mrf.mxu3  ;;  %v7027_v7 = vrot.slane %v10633_v15, 5  ;;  %v5833_v60 = vrot.slane %v5831_v12, 4  ;;  %v6100_v28 = vsel %vm12593_vm0, %v6095_v22, %v6099_v16  ;;  %v7365_v22 = vpop.permute.xlu0 %7364 }
 0x560   : > { %14428 = vst [vmem:[#allocation46_spill] sm:$0xff] %v13430_v19  ;;  %v7452_v19 = vunpack.c.l.b16 %v6468_v52  ;;  %v6471_v8 = vsel %vm12832_vm3, %v6469_v61, %v6470_v47  ;;  %v6506_v52 = vld [vmem:[#allocation2 + $0xb4] sm:$0xf]  ;;  %v6104_v10 = vor.u32 %v6103_v31, %v6099_v16  ;;  %v7915_v47 = vsel %vm7696_vm4, %v10215_v48, %v7629_v33  ;;  %7640 = vrot.lane.b32.xlu2 %v7612_v57, %s10708_s20  ;;  %v13472_v31 = vld [vmem:[#allocation2 + $0xbc] sm:$0x1] }
 0x561   : > { %v7453_v34 = vunpack.c.l.b16 %v6471_v8  ;;  %v5832_v61 = vsel %vm12832_vm3, %v9692_v40, %v5831_v12  ;;  %v6841_v55 = vshrl.u32 %v6506_v52, 16  ;;  %v7028_v42 = vsel %vm12832_vm3, %v9721_v56, %v7027_v7 }
 0x562   : > { %v6105_v0 = vrot.slane %v6104_v10, 4  ;;  %v7252_v46 = vunpack.c.l.b16 %v5832_v61  ;;  %v7390_v48 = vunpack.c.l.b16 %v6100_v28  ;;  %v5835_v33 = vsel %vm12832_vm3, %v5833_v60, %v14434_v44  ;;  %v5254_v61 = vld [vmem:[#allocation2 + $0xc8] sm:$0x1]  ;;  %v13482_v60 = vld [vmem:[#allocation2 + $0x80] sm:$0x1] }
 0x563   : > { %v13447_v1 = vpop.f32.mrf.mxu2  ;;  %v7470_v9 = vpack.c.b16 %v7453_v34, %v7452_v19  ;;  %v7029_v34 = vrot.slane %v7027_v7, 4  ;;  %v13464_v19 = vld [vmem:[#allocation2 + $0xb8] sm:$0xf]  ;;  %v7662_v27 = vunpack.c.l.b16 %v7028_v42  ;;  %v7253_v57 = vunpack.c.l.b16 %v5835_v33 }
 0x564   : > { %14431 = vst [vmem:[#allocation48_spill] sm:$0xff] %v13447_v1  ;;  %v6110_v12 = vsel %vm12593_vm0, %v6105_v0, %v6109_v3  ;;  %v14435_v40 = vrot.slane %v13418_v6, 5  ;;  %v6843_v10 = vrot.slane %v6841_v55, 4  ;;  %v7487_v3 = vpop.permute.xlu1 %7486  ;;  %v6844_v17 = vshll.u32 %v6506_v52, 16  ;;  %v6318_v55 = vld [vmem:[#allocation2 + $0xc0] sm:$0xe] }
 0x565   : > { %7500 = vrot.lane.b32.xlu1 %v7470_v9, %s10708_s20  ;;  %v7391_v16 = vunpack.c.l.b16 %v6110_v12  ;;  %v13478_v9 = vpop.f32.mrf.mxu0  ;;  %v6850_v7 = vshll.u32 %v13464_v19, 16  ;;  %v6854_v0 = vshrl.u32 %v13464_v19, 16  ;;  %v7274_v42 = vpack.c.b16 %v7253_v57, %v7252_v46  ;;  %v5887_v12 = vld [vmem:[#allocation2 + $0x6c] sm:$0xf] }
 0x566   : > { %v7031_v56 = vsel %vm12832_vm3, %v7029_v34, %v14435_v40  ;;  %v6860_v34 = vshll.u32 %v13472_v31, 16  ;;  %v6846_v33 = vrot.slane %v6844_v17, 5  ;;  %v13499_v17 = vld [vmem:[#allocation2 + $0x88] sm:$0xf]  ;;  %v6115_v35 = vshll.u32 %v5887_v12, 16 }
 0x567   : > { %v13455_v8 = vpop.f32.mrf.mxu3  ;;  %v7663_v15 = vunpack.c.l.b16 %v7031_v56  ;;  %v7415_v6 = vpack.c.b16 %v7391_v16, %v7390_v48  ;;  %v6852_v40 = vrot.slane %v6850_v7, 5  ;;  %v6856_v52 = vrot.slane %v6854_v0, 4  ;;  %v13486_v56 = vld [vmem:[#allocation2 + $0xc4] sm:$0xf] }
 0x568   : > { %14433 = vst [vmem:[#allocation49_spill] sm:$0xff] %v13455_v8  ;;  %v13488_v8 = vld [vmem:[#allocation2 + $0x80] sm:$0x1]  ;;  %v7803_v46 = vsel %vm7696_vm4, %v7274_v42, %v7365_v22  ;;  %v14438_v48 = vrot.slane %v13334_v45, 4  ;;  %v6862_v57 = vrot.slane %v6860_v34, 5  ;;  %v6474_v45 = vrot.slane %v13486_v56, 5 }
 0x569   : > { %v7687_v44 = vpack.c.b16 %v7663_v15, %v7662_v27  ;;  %14436 = vst [vmem:[#allocation50_spill] sm:$0xff] %v13486_v56  ;;  %v7855_v13 = vsel %vm7696_vm4, %v7415_v6, %v7487_v3  ;;  %8436 = vmatmul.bf16.gmra.mxu1 %v7803_v46  ;;  %v6847_v27 = vor.u32 %v6846_v33, %v6843_v10  ;;  %v9713_v15 = vrot.slane %v6318_v55, 9  ;;  %v13509_v42 = vld [vmem:[#allocation2 + $0x8c] sm:$0x1]  ;;  %v13512_v55 = vpop.f32.mrf.mxu1  ;;  %v5703_v46 = vld [vmem:[#allocation2 + $0x84] sm:$0xe] }
 0x56a   : > { %8510 = vmatmul.bf16.gmra.mxu2 %v7855_v13  ;;  %v6857_v16 = vor.u32 %v6856_v52, %v6852_v40  ;;  %v6112_v22 = vshrl.u32 %v5887_v12, 16  ;;  %v6121_v10 = vshll.u32 %v13409_v30, 16  ;;  %v10216_v33 = vld [vmem:[#allocation2 + $0x6c] sm:$0xff]  ;;  %v7631_v12 = vpop.permute.xlu2 %7630  ;;  %v6476_v1 = vrot.slane %v6474_v45, 4 }
 0x56b   : > { %10073 = vmatmul.msk.bf16.gmra.mxu0 %vm7696_vm4, %v7687_v44  ;;  %v6848_v0 = vrot.slane %v6847_v27, 4  ;;  %v6117_v44 = vrot.slane %v6115_v35, 5  ;;  %v6475_v27 = vsel %vm12832_vm3, %v9713_v15, %v6474_v45  ;;  %v9693_v39 = vrot.slane %v5703_v46, 9 }
 0x56c   : > { %8594 = vmatmul.bf16.gmra.mxu3 %v7915_v47  ;;  %v5255_v47 = vsel %vm12572_vm13, %v14438_v48, %v5254_v61  ;;  %v6858_v13 = vrot.slane %v6857_v16, 4  ;;  %v14440_v61 = vshrl.u32 %v13409_v30, 16  ;;  %v6114_v52 = vrot.slane %v6112_v22, 4 }
 0x56d   : > { %v13492_v28 = vpop.f32.mrf.mxu2  ;;  %5256 = vst [vmem:[#allocation2 + $0xc8] sm:$0x1] %v5255_v47  ;;  %v13514_v48 = vpop.f32.mrf.mxu0  ;;  %v6853_v47 = vsel %vm12593_vm0, %v6848_v0, %v6852_v40  ;;  %v6123_v16 = vrot.slane %v6121_v10, 5  ;;  %v7919_v40 = vsel %vm7696_vm4, %v10216_v33, %v7631_v12  ;;  %v10639_v33 = vld [vmem:[#allocation2 + $0x7c] sm:$0xf] }
 0x56e   : > { %14437 = vst [vmem:[#allocation51_spill] sm:$0xff] %v13492_v28  ;;  %v6127_v6 = vrot.slane %v14440_v61, 4  ;;  %v6863_v30 = vsel %vm12593_vm0, %v6858_v13, %v6862_v57  ;;  %v6920_v61 = vld [vmem:[#allocation2 + $0x78] sm:$0xe]  ;;  %v7594_v34 = vunpack.c.l.b16 %v6853_v47  ;;  %v6118_v22 = vor.u32 %v6117_v44, %v6114_v52  ;;  %v6508_v47 = vld [vmem:[#allocation2 + $0xc0] sm:$0xf] }
 0x56f   : > { %v13502_v7 = vpop.f32.mrf.mxu3  ;;  %v7595_v3 = vunpack.c.l.b16 %v6863_v30  ;;  %v9722_v10 = vrot.slane %v6920_v61, 9  ;;  %v7454_v52 = vunpack.c.l.b16 %v6475_v27  ;;  %v7034_v44 = vrot.slane %v10639_v33, 5  ;;  %v13541_v27 = vld [vmem:[#allocation2 + $0xc4] sm:$0xf] }
 0x570   : > { %14439 = vst [vmem:[#allocation52_spill] sm:$0xff] %v13502_v7  ;;  %v6128_v35 = vor.u32 %v6127_v6, %v6123_v16  ;;  %v14441_v7 = vshll.u32 %v13415_v51, 16  ;;  %v6119_v15 = vrot.slane %v6118_v22, 4  ;;  %v5839_v51 = vsel %vm12832_vm3, %v9693_v39, %v5838_v14 }
 0x571   : > { %v7613_v57 = vpack.c.b16 %v7595_v3, %v7594_v34  ;;  %v5840_v3 = vrot.slane %v5838_v14, 4  ;;  %v7254_v34 = vunpack.c.l.b16 %v5839_v51  ;;  %v6865_v39 = vshrl.u32 %v6508_v47, 16  ;;  %v13553_v33 = vpop.f32.mrf.mxu1 }
 0x572   : > { %v6133_v28 = vrot.slane %v14441_v7, 5  ;;  %v6129_v6 = vrot.slane %v6128_v35, 4  ;;  %v6124_v62 = vsel %vm12593_vm0, %v6119_v15, %v6123_v16  ;;  %v14445_v35 = vrot.slane %v13354_v20, 5  ;;  %v7367_v20 = vpop.permute.xlu0 %7366 }
 0x573   : > { %7642 = vrot.lane.b32.xlu2 %v7613_v57, %s10708_s20  ;;  %v7392_v30 = vunpack.c.l.b16 %v6124_v62  ;;  %v7035_v16 = vsel %vm12832_vm3, %v9722_v10, %v7034_v44  ;;  %v14447_v10 = vrot.slane %v13488_v8, 5 }
 0x574   : > { %v13527_v13 = vld [vmem:[#allocation2 + $0xc8] sm:$0x1]  ;;  %v6134_v12 = vsel %vm12593_vm0, %v6129_v6, %v6133_v28  ;;  %v5842_v14 = vsel %vm12832_vm3, %v5840_v3, %v14445_v35  ;;  %v7664_v28 = vunpack.c.l.b16 %v7035_v16  ;;  %v6867_v6 = vrot.slane %v6865_v39, 4  ;;  %v13569_v16 = vld [vmem:[#allocation2 + $0x94] sm:$0xf] }
 0x575   : > { %v13525_v0 = vpop.f32.mrf.mxu2  ;;  %14443 = vst [vmem:[#allocation54_spill] sm:$0xff] %v13527_v13  ;;  %v6477_v45 = vrot.slane %v13527_v13, 5  ;;  %v7393_v22 = vunpack.c.l.b16 %v6134_v12  ;;  %v13549_v57 = vld [vmem:[#allocation2 + $0xc8] sm:$0x1]  ;;  %v7255_v15 = vunpack.c.l.b16 %v5842_v14  ;;  %v6868_v12 = vshll.u32 %v6508_v47, 16 }
 0x576   : > { %14442 = vst [vmem:[#allocation53_spill] sm:$0xff] %v13525_v0  ;;  %v6874_v3 = vshll.u32 %v13541_v27, 16  ;;  %v6884_v39 = vshll.u32 %v13549_v57, 16 }
 0x577   : > { %v13532_v7 = vpop.f32.mrf.mxu3  ;;  %v6478_v46 = vsel %vm12832_vm3, %v6476_v1, %v6477_v45  ;;  %14446 = vst [vmem:[#allocation56_spill] sm:$0xff] %v13549_v57  ;;  %v7489_v1 = vpop.permute.xlu1 %7488  ;;  %v7036_v45 = vrot.slane %v7034_v44, 4  ;;  %v7275_v35 = vpack.c.b16 %v7255_v15, %v7254_v34  ;;  %v6878_v44 = vshrl.u32 %v13541_v27, 16  ;;  %v13566_v34 = vld [vmem:[#allocation2 + $0x8c] sm:$0x1] }
 0x578   : > { %14444 = vst [vmem:[#allocation55_spill] sm:$0xff] %v13532_v7  ;;  %v7455_v61 = vunpack.c.l.b16 %v6478_v46  ;;  %v13551_v51 = vpop.f32.mrf.mxu0  ;;  %v7416_v46 = vpack.c.b16 %v7393_v22, %v7392_v30  ;;  %v6876_v22 = vrot.slane %v6874_v3, 5  ;;  %v6886_v7 = vrot.slane %v6884_v39, 5  ;;  %v10217_v39 = vld [vmem:[#allocation2 + $0x78] sm:$0xff] }
 0x579   : > { %v7038_v14 = vsel %vm12832_vm3, %v7036_v45, %v14447_v10  ;;  %v7807_v45 = vsel %vm7696_vm4, %v7275_v35, %v7367_v20  ;;  %v5704_v10 = vld [vmem:[#allocation2 + $0x90] sm:$0xe]  ;;  %v6145_v15 = vshll.u32 %v13426_v24, 16  ;;  %v14449_v35 = vshrl.u32 %v13426_v24, 16  ;;  %v7633_v24 = vpop.permute.xlu2 %7632 }
 0x57a   : > { %v7471_v62 = vpack.c.b16 %v7455_v61, %v7454_v52  ;;  %v7859_v52 = vsel %vm7696_vm4, %v7416_v46, %v7489_v1  ;;  %v7665_v47 = vunpack.c.l.b16 %v7038_v14  ;;  %v6870_v61 = vrot.slane %v6868_v12, 5  ;;  %v13573_v1 = vld [vmem:[#allocation2 + $0x98] sm:$0x1]  ;;  %8441 = vmatmul.bf16.gmra.mxu1 %v7807_v45 }
 0x57b   : > { %8515 = vmatmul.bf16.gmra.mxu2 %v7859_v52  ;;  %v9694_v46 = vrot.slane %v5704_v10, 9  ;;  %v13591_v10 = vpop.f32.mrf.mxu1 }
 0x57c   : > { %8599 = vmatmul.bf16.gmra.mxu3 %v7919_v40  ;;  %7502 = vrot.lane.b32.xlu1 %v7471_v62, %s10708_s20  ;;  %v5889_v40 = vld [vmem:[#allocation2 + $0x78] sm:$0xf]  ;;  %v6880_v62 = vrot.slane %v6878_v44, 4  ;;  %v7688_v3 = vpack.c.b16 %v7665_v47, %v7664_v28  ;;  %v6871_v14 = vor.u32 %v6870_v61, %v6867_v6  ;;  %v6151_v44 = vrot.slane %v14449_v35, 4  ;;  %v6921_v6 = vld [vmem:[#allocation2 + $0x84] sm:$0xe] }
 0x57d   : > { %v13564_v30 = vpop.f32.mrf.mxu2  ;;  %v6136_v0 = vshrl.u32 %v5889_v40, 16  ;;  %v6139_v13 = vshll.u32 %v5889_v40, 16  ;;  %v6147_v28 = vrot.slane %v6145_v15, 5  ;;  %v14450_v61 = vshll.u32 %v13482_v60, 16 }
 0x57e   : > { %v6881_v8 = vor.u32 %v6880_v62, %v6876_v22  ;;  %10074 = vmatmul.msk.bf16.gmra.mxu0 %vm7696_vm4, %v7688_v3  ;;  %v6872_v20 = vrot.slane %v6871_v14, 4  ;;  %v10643_v62 = vld [vmem:[#allocation2 + $0x94] sm:$0xf]  ;;  %v10644_v3 = vld [vmem:[#allocation2 + $0x98] sm:$0x1] }
 0x57f   : > { %v13576_v12 = vpop.f32.mrf.mxu3  ;;  %v6141_v45 = vrot.slane %v6139_v13, 5  ;;  %v6157_v40 = vrot.slane %v14450_v61, 5  ;;  %v5845_v52 = vrot.slane %v10643_v62, 5  ;;  %v5848_v14 = vrot.slane %v10644_v3, 5  ;;  %v6510_v62 = vld [vmem:[#allocation2 + $0xcc] sm:$0xf] }
 0x580   : > { %14448 = vst [vmem:[#allocation57_spill] sm:$0xff] %v13576_v12  ;;  %v6882_v63 = vrot.slane %v6881_v8, 4  ;;  %v6138_v12 = vrot.slane %v6136_v0, 4  ;;  %v6877_v47 = vsel %vm12593_vm0, %v6872_v20, %v6876_v22  ;;  %v13587_v56 = vpop.f32.mrf.mxu0  ;;  %v6152_v15 = vor.u32 %v6151_v44, %v6147_v28 }
 0x581   : > { %v7596_v13 = vunpack.c.l.b16 %v6877_v47  ;;  %v5846_v60 = vsel %vm12832_vm3, %v9694_v46, %v5845_v52  ;;  %v5847_v20 = vrot.slane %v5845_v52, 4  ;;  %v9723_v61 = vrot.slane %v6921_v6, 9  ;;  %v10645_v47 = vld [vmem:[#allocation2 + $0x88] sm:$0xf] }
 0x582   : > { %v6887_v0 = vsel %vm12593_vm0, %v6882_v63, %v6886_v7  ;;  %v6142_v8 = vor.u32 %v6141_v45, %v6138_v12  ;;  %v8388_v3 = vadd.f32 %v13345_v58, %v13223_v37  ;;  %v6153_v57 = vrot.slane %v6152_v15, 4  ;;  %v13608_v58 = vld [vmem:[#allocation2 + $0xd0] sm:$0xf]  ;;  %v13613_v15 = vld [vmem:[#allocation2 + $0xd4] sm:$0x1] }
 0x583   : > { %v7597_v22 = vunpack.c.l.b16 %v6887_v0  ;;  %v7256_v63 = vunpack.c.l.b16 %v5846_v60  ;;  %v7923_v12 = vsel %vm7696_vm4, %v10217_v39, %v7633_v24  ;;  %v5849_v45 = vsel %vm12832_vm3, %v5847_v20, %v5848_v14  ;;  %v7369_v24 = vpop.permute.xlu0 %7368 }
 0x584   : > { %v6143_v21 = vrot.slane %v6142_v8, 4  ;;  %v7041_v0 = vrot.slane %v10645_v47, 5  ;;  %v6158_v52 = vsel %vm12593_vm0, %v6153_v57, %v6157_v40  ;;  %v7257_v37 = vunpack.c.l.b16 %v5849_v45 }
 0x585   : > { %v13593_v35 = vpop.f32.mrf.mxu2  ;;  %v7614_v44 = vpack.c.b16 %v7597_v22, %v7596_v13  ;;  %v6889_v6 = vshrl.u32 %v6510_v62, 16  ;;  %v7395_v39 = vunpack.c.l.b16 %v6158_v52  ;;  %v7491_v22 = vpop.permute.xlu1 %7490  ;;  %v6892_v57 = vshll.u32 %v6510_v62, 16  ;;  %v5891_v52 = vld [vmem:[#allocation2 + $0x84] sm:$0xf] }
 0x586   : > { %v6148_v46 = vsel %vm12593_vm0, %v6143_v21, %v6147_v28  ;;  %v7042_v14 = vsel %vm12832_vm3, %v9723_v61, %v7041_v0  ;;  %v7043_v13 = vrot.slane %v7041_v0, 4  ;;  %v7276_v21 = vpack.c.b16 %v7257_v37, %v7256_v63 }
 0x587   : > { %v13599_v7 = vpop.f32.mrf.mxu3  ;;  %7644 = vrot.lane.b32.xlu2 %v7614_v44, %s10708_s20  ;;  %v7394_v8 = vunpack.c.l.b16 %v6148_v46  ;;  %v7666_v28 = vunpack.c.l.b16 %v7042_v14  ;;  %v6891_v60 = vrot.slane %v6889_v6, 4  ;;  %v14452_v20 = vrot.slane %v13566_v34, 5 }
 0x588   : > { %14451 = vst [vmem:[#allocation58_spill] sm:$0xff] %v13599_v7  ;;  %v6898_v45 = vshll.u32 %v13608_v58, 16  ;;  %v6902_v47 = vshrl.u32 %v13608_v58, 16  ;;  %v7811_v61 = vsel %vm7696_vm4, %v7276_v21, %v7369_v24  ;;  %v6894_v46 = vrot.slane %v6892_v57, 5  ;;  %v13632_v57 = vpop.f32.mrf.mxu1 }
 0x589   : > { %v7417_v40 = vpack.c.b16 %v7395_v39, %v7394_v8  ;;  %v7045_v44 = vsel %vm12832_vm3, %v7043_v13, %v14452_v20  ;;  %v6908_v63 = vshll.u32 %v13613_v15, 16  ;;  %v13627_v39 = vpop.f32.mrf.mxu0  ;;  %v8477_v24 = vadd.f32 %v13564_v30, %v8388_v3 }
 0x58a   : > { %v7667_v0 = vunpack.c.l.b16 %v7045_v44  ;;  %v6900_v6 = vrot.slane %v6898_v45, 5  ;;  %v6904_v8 = vrot.slane %v6902_v47, 4  ;;  %v6895_v13 = vor.u32 %v6894_v46, %v6891_v60  ;;  %8446 = vmatmul.bf16.gmra.mxu1 %v7811_v61  ;;  %v5705_v45 = vld [vmem:[#allocation2 + $0x9c] sm:$0xe] }
 0x58b   : > { %v7863_v37 = vsel %vm7696_vm4, %v7417_v40, %v7491_v22  ;;  %v6910_v22 = vrot.slane %v6908_v63, 5  ;;  %v6160_v40 = vshrl.u32 %v5891_v52, 16  ;;  %v6163_v44 = vshll.u32 %v5891_v52, 16 }
 0x58c   : > { %8604 = vmatmul.bf16.gmra.mxu3 %v7923_v12  ;;  %v8390_v12 = vadd.f32 %v13377_v26, %v13244_v25  ;;  %8520 = vmatmul.bf16.gmra.mxu2 %v7863_v37  ;;  %v7689_v14 = vpack.c.b16 %v7667_v0, %v7666_v28  ;;  %v6905_v20 = vor.u32 %v6904_v8, %v6900_v6  ;;  %v6896_v62 = vrot.slane %v6895_v13, 4  ;;  %v10218_v37 = vld [vmem:[#allocation2 + $0x84] sm:$0xff] }
 0x58d   : > { %v13625_v34 = vpop.f32.mrf.mxu2  ;;  %v6169_v7 = vshll.u32 %v13499_v17, 16  ;;  %v14453_v25 = vshrl.u32 %v13499_v17, 16  ;;  %v6162_v3 = vrot.slane %v6160_v40, 4  ;;  %v6165_v28 = vrot.slane %v6163_v44, 5  ;;  %v10647_v40 = vld [vmem:[#allocation2 + $0xa4] sm:$0x1] }
 0x58e   : > { %10075 = vmatmul.msk.bf16.gmra.mxu0 %vm7696_vm4, %v7689_v14  ;;  %v6906_v30 = vrot.slane %v6905_v20, 4  ;;  %v14454_v60 = vshll.u32 %v13509_v42, 16  ;;  %v6901_v46 = vsel %vm12593_vm0, %v6896_v62, %v6900_v6  ;;  %v9695_v52 = vrot.slane %v5705_v45, 9  ;;  %v10646_v14 = vld [vmem:[#allocation2 + $0xa0] sm:$0xf] }
 0x58f   : > { %v8565_v21 = vpop.f32.mrf.mxu3  ;;  %v6175_v26 = vrot.slane %v14453_v25, 4  ;;  %v6171_v63 = vrot.slane %v6169_v7, 5  ;;  %v7598_v8 = vunpack.c.l.b16 %v6901_v46  ;;  %v5852_v13 = vrot.slane %v10646_v14, 5  ;;  %v6922_v62 = vld [vmem:[#allocation2 + $0x90] sm:$0xe] }
 0x590   : > { %v8566_v47 = vadd.f32 %v8565_v21, %v8477_v24  ;;  %v6181_v61 = vrot.slane %v14454_v60, 5  ;;  %v6911_v17 = vsel %vm12593_vm0, %v6906_v30, %v6910_v22  ;;  %v6166_v24 = vor.u32 %v6165_v28, %v6162_v3  ;;  %v7635_v21 = vpop.permute.xlu2 %7634  ;;  %v13672_v14 = vpop.f32.mrf.mxu1 }
 0x591   : > { %v6176_v20 = vor.u32 %v6175_v26, %v6171_v63  ;;  %v5855_v44 = vrot.slane %v10647_v40, 5  ;;  %v8393_v7 = vadd.f32 %v13424_v32, %v13265_v43  ;;  %v5853_v45 = vsel %vm12832_vm3, %v9695_v52, %v5852_v13  ;;  %v13662_v28 = vpop.f32.mrf.mxu0  ;;  %v5893_v43 = vld [vmem:[#allocation2 + $0x90] sm:$0xf]  ;;  %v7493_v40 = vpop.permute.xlu1 %7492 }
 0x592   : > { %v13641_v0 = vadd.f32 %v13478_v9, %v8566_v47  ;;  %v7599_v9 = vunpack.c.l.b16 %v6911_v17  ;;  %v6167_v22 = vrot.slane %v6166_v24, 4  ;;  %v5854_v47 = vrot.slane %v5852_v13, 4 }
 0x593   : > { %v8479_v25 = vadd.f32 %v13593_v35, %v8390_v12  ;;  %v6177_v30 = vrot.slane %v6176_v20, 4  ;;  %v7258_v3 = vunpack.c.l.b16 %v5853_v45  ;;  %v7927_v60 = vsel %vm7696_vm4, %v10218_v37, %v7635_v21  ;;  %v10648_v37 = vld [vmem:[#allocation2 + $0x94] sm:$0xf] }
 0x594   : > { %v8853_v42 = vpack.c.bf16 %v13641_v0, %v13641_v0  ;;  %v7615_v26 = vpack.c.b16 %v7599_v9, %v7598_v8  ;;  %v6172_v46 = vsel %vm12593_vm0, %v6167_v22, %v6171_v63  ;;  %v5856_v35 = vsel %vm12832_vm3, %v5854_v47, %v5855_v44 }
 0x595   : > { %v13651_v6 = vpop.f32.mrf.mxu2  ;;  %v9724_v12 = vrot.slane %v6922_v62, 9  ;;  %v6182_v17 = vsel %vm12593_vm0, %v6177_v30, %v6181_v61  ;;  %v7396_v8 = vunpack.c.l.b16 %v6172_v46  ;;  %v7259_v24 = vunpack.c.l.b16 %v5856_v35 }
 0x596   : > { %8887 = vst.msk [vmem:[%s13658_s19] sm:$0xf] %vm5139_vm7, %v8853_v42  ;;  %7646 = vrot.lane.b32.xlu2 %v7615_v26, %s10708_s20  ;;  %v7397_v13 = vunpack.c.l.b16 %v6182_v17  ;;  %v7371_v42 = vpop.permute.xlu0 %7370  ;;  %v7048_v21 = vrot.slane %v10648_v37, 5  ;;  %v6184_v9 = vshrl.u32 %v5893_v43, 16  ;;  %v6187_v63 = vshll.u32 %v5893_v43, 16 }
 0x597   : > { %v8567_v32 = vpop.f32.mrf.mxu3  ;;  %v7277_v44 = vpack.c.b16 %v7259_v24, %v7258_v3  ;;  %v6193_v62 = vshll.u32 %v13569_v16, 16  ;;  %v14455_v22 = vshrl.u32 %v13569_v16, 16  ;;  %v7058_v46 = vrot.slane %v13337_v41, 5 }
 0x598   : > { %v8568_v52 = vadd.f32 %v8567_v32, %v8479_v25  ;;  %v7418_v45 = vpack.c.b16 %v7397_v13, %v7396_v8  ;;  %v7049_v47 = vsel %vm12832_vm3, %v9724_v12, %v7048_v21  ;;  %v7050_v25 = vrot.slane %v7048_v21, 4  ;;  %v5706_v32 = vld [vmem:[#allocation2 + $0xa8] sm:$0xe] }
 0x599   : > { %v6199_v61 = vrot.slane %v14455_v22, 4  ;;  %v6186_v26 = vrot.slane %v6184_v9, 4  ;;  %v7668_v43 = vunpack.c.l.b16 %v7049_v47  ;;  %v6189_v3 = vrot.slane %v6187_v63, 5  ;;  %v13700_v47 = vpop.f32.mrf.mxu0 }
 0x59a   : > { %v13675_v20 = vadd.f32 %v13514_v48, %v8568_v52  ;;  %v7815_v48 = vsel %vm7696_vm4, %v7277_v44, %v7371_v42  ;;  %v7867_v16 = vsel %vm7696_vm4, %v7418_v45, %v7493_v40  ;;  %v14456_v52 = vrot.slane %v13278_v53, 5  ;;  %v6923_v42 = vld [vmem:[#allocation2 + $0x9c] sm:$0xe]  ;;  %v10649_v53 = vld [vmem:[#allocation2 + $0xac] sm:$0xf] }
 0x59b   : > { %v6195_v17 = vrot.slane %v6193_v62, 5  ;;  %v8482_v8 = vadd.f32 %v13625_v34, %v8393_v7  ;;  %v6190_v24 = vor.u32 %v6189_v3, %v6186_v26  ;;  %v14457_v13 = vshll.u32 %v13573_v1, 16  ;;  %8451 = vmatmul.bf16.gmra.mxu1 %v7815_v48  ;;  %v10650_v40 = vld [vmem:[#allocation2 + $0xb0] sm:$0x1]  ;;  %v5895_v62 = vld [vmem:[#allocation2 + $0x9c] sm:$0xf]  ;;  %v13710_v3 = vpop.f32.mrf.mxu1 }
 0x59c   : > { %v8854_v30 = vpack.c.bf16 %v13675_v20, %v13675_v20  ;;  %8609 = vmatmul.bf16.gmra.mxu3 %v7927_v60  ;;  %v7052_v12 = vsel %vm12832_vm3, %v7050_v25, %v14456_v52  ;;  %8525 = vmatmul.bf16.gmra.mxu2 %v7867_v16  ;;  %v9696_v9 = vrot.slane %v5706_v32, 9  ;;  %v5859_v63 = vrot.slane %v10649_v53, 5 }
 0x59d   : > { %v13687_v35 = vpop.f32.mrf.mxu2  ;;  %v7669_v60 = vunpack.c.l.b16 %v7052_v12  ;;  %v6205_v41 = vrot.slane %v14457_v13, 5  ;;  %v6200_v21 = vor.u32 %v6199_v61, %v6195_v17  ;;  %v5862_v44 = vrot.slane %v10650_v40, 5  ;;  %v10651_v61 = vld [vmem:[#allocation2 + $0xa0] sm:$0xf] }
 0x59e   : > { %8888 = vst.msk [vmem:[%s13658_s19 + $0x4] sm:$0xf] %vm5139_vm7, %v8854_v30  ;;  %v8395_v34 = vadd.f32 %v13458_v11, %v13289_v4  ;;  %v6191_v45 = vrot.slane %v6190_v24, 4  ;;  %v5860_v25 = vsel %vm12832_vm3, %v9696_v9, %v5859_v63  ;;  %v5861_v26 = vrot.slane %v5859_v63, 4 }
 0x59f   : > { %v8570_v37 = vpop.f32.mrf.mxu3  ;;  %v7690_v22 = vpack.c.b16 %v7669_v60, %v7668_v43  ;;  %v6201_v1 = vrot.slane %v6200_v21, 4  ;;  %v7055_v30 = vrot.slane %v10651_v61, 5  ;;  %v9725_v11 = vrot.slane %v6923_v42, 9 }
 0x5a0   : > { %v8571_v7 = vadd.f32 %v8570_v37, %v8482_v8  ;;  %v6196_v4 = vsel %vm12593_vm0, %v6191_v45, %v6195_v17  ;;  %v6208_v43 = vshrl.u32 %v5895_v62, 16  ;;  %v5863_v52 = vsel %vm12832_vm3, %v5861_v26, %v5862_v44  ;;  %v10219_v17 = vld [vmem:[#allocation2 + $0x90] sm:$0xff] }
 0x5a1   : > { %10076 = vmatmul.msk.bf16.gmra.mxu0 %vm7696_vm4, %v7690_v22  ;;  %v6206_v32 = vsel %vm12593_vm0, %v6201_v1, %v6205_v41  ;;  %v7398_v16 = vunpack.c.l.b16 %v6196_v4  ;;  %v7260_v12 = vunpack.c.l.b16 %v5860_v25  ;;  %v7261_v60 = vunpack.c.l.b16 %v5863_v52  ;;  %v7637_v41 = vpop.permute.xlu2 %7636  ;;  %v7373_v4 = vpop.permute.xlu0 %7372 }
 0x5a2   : > { %v13705_v48 = vadd.f32 %v13551_v51, %v8571_v7  ;;  %v7399_v8 = vunpack.c.l.b16 %v6206_v32  ;;  %v7057_v24 = vrot.slane %v7055_v30, 4  ;;  %v6210_v42 = vrot.slane %v6208_v43, 4  ;;  %v10652_v7 = vld [vmem:[#allocation2 + $0xa0] sm:$0xf] }
 0x5a3   : > { %v6211_v37 = vshll.u32 %v5895_v62, 16  ;;  %v8484_v21 = vadd.f32 %v13651_v6, %v8395_v34  ;;  %v7056_v53 = vsel %vm12832_vm3, %v9725_v11, %v7055_v30  ;;  %v6217_v22 = vshll.u32 %v10652_v7, 16  ;;  %v10653_v62 = vld [vmem:[#allocation2 + $0xa4] sm:$0x1]  ;;  %v7495_v34 = vpop.permute.xlu1 %7494 }
 0x5a4   : > { %v8855_v51 = vpack.c.bf16 %v13705_v48, %v13705_v48  ;;  %v7419_v9 = vpack.c.b16 %v7399_v8, %v7398_v16  ;;  %v7059_v40 = vsel %vm12832_vm3, %v7057_v24, %v7058_v46  ;;  %v14458_v45 = vshrl.u32 %v13291_v5, 16  ;;  %v13733_v16 = vpop.f32.mrf.mxu0  ;;  %v5897_v24 = vld [vmem:[#allocation2 + $0xa8] sm:$0xf] }
 0x5a5   : > { %v13718_v13 = vpop.f32.mrf.mxu2  ;;  %v6213_v44 = vrot.slane %v6211_v37, 5  ;;  %v6227_v25 = vshll.u32 %v10653_v62, 16  ;;  %v7278_v26 = vpack.c.b16 %v7261_v60, %v7260_v12  ;;  %v7931_v61 = vsel %vm7696_vm4, %v10219_v17, %v7637_v41  ;;  %v13741_v17 = vpop.f32.mrf.mxu1 }
 0x5a6   : > { %8889 = vst.msk [vmem:[%s13658_s19 + $0x8] sm:$0xf] %vm5139_vm7, %v8855_v51  ;;  %v6223_v1 = vrot.slane %v14458_v45, 4  ;;  %v6219_v30 = vrot.slane %v6217_v22, 5  ;;  %v7670_v46 = vunpack.c.l.b16 %v7056_v53  ;;  %v7671_v32 = vunpack.c.l.b16 %v7059_v40  ;;  %v6924_v53 = vld [vmem:[#allocation2 + $0xa8] sm:$0xe] }
 0x5a7   : > { %v8572_v63 = vpop.f32.mrf.mxu3  ;;  %v6214_v43 = vor.u32 %v6213_v44, %v6210_v42  ;;  %v8398_v5 = vadd.f32 %v13512_v55, %v13311_v50  ;;  %v7871_v52 = vsel %vm7696_vm4, %v7419_v9, %v7495_v34  ;;  %v7819_v8 = vsel %vm7696_vm4, %v7278_v26, %v7373_v4  ;;  %v10654_v55 = vld [vmem:[#allocation2 + $0xac] sm:$0xf]  ;;  %v5707_v4 = vld [vmem:[#allocation2 + $0xb4] sm:$0xe] }
 0x5a8   : > { %v8573_v6 = vadd.f32 %v8572_v63, %v8484_v21  ;;  %v6224_v51 = vor.u32 %v6223_v1, %v6219_v30  ;;  %v7691_v50 = vpack.c.b16 %v7671_v32, %v7670_v46  ;;  %v6245_v41 = vshrl.u32 %v10654_v55, 16  ;;  %v10220_v32 = vld [vmem:[#allocation2 + $0x9c] sm:$0xff] }
 0x5a9   : > { %v6215_v60 = vrot.slane %v6214_v43, 4  ;;  %v8487_v21 = vadd.f32 %v13687_v35, %v8398_v5  ;;  %v7062_v63 = vrot.slane %v13388_v23, 5  ;;  %v6232_v40 = vshrl.u32 %v5897_v24, 16  ;;  %v10655_v23 = vld [vmem:[#allocation2 + $0xb8] sm:$0xf] }
 0x5aa   : > { %v13731_v11 = vadd.f32 %v13587_v56, %v8573_v6  ;;  %v6229_v56 = vrot.slane %v6227_v25, 5  ;;  %v6225_v37 = vrot.slane %v6224_v51, 4  ;;  %v6235_v35 = vshll.u32 %v5897_v24, 16  ;;  %v7639_v51 = vpop.permute.xlu2 %7638 }
 0x5ab   : > { %8456 = vmatmul.bf16.gmra.mxu1 %v7819_v8  ;;  %v6220_v7 = vsel %vm12593_vm0, %v6215_v60, %v6219_v30  ;;  %v7065_v45 = vrot.slane %v13402_v36, 5  ;;  %v6241_v1 = vshll.u32 %v10654_v55, 16  ;;  %v8400_v62 = vadd.f32 %v13553_v33, %v13325_v18  ;;  %v10656_v8 = vld [vmem:[#allocation2 + $0xbc] sm:$0x1] }
 0x5ac   : > { %v8856_v12 = vpack.c.bf16 %v13731_v11, %v13731_v11  ;;  %8614 = vmatmul.bf16.gmra.mxu3 %v7931_v61  ;;  %8530 = vmatmul.bf16.gmra.mxu2 %v7871_v52  ;;  %v6230_v22 = vsel %vm12593_vm0, %v6225_v37, %v6229_v56  ;;  %v5866_v6 = vrot.slane %v10655_v23, 5  ;;  %v9726_v34 = vrot.slane %v6924_v53, 9  ;;  %v13762_v46 = vpop.f32.mrf.mxu0  ;;  %v7497_v53 = vpop.permute.xlu1 %7496 }
 0x5ad   : > { %v13743_v42 = vpop.f32.mrf.mxu2  ;;  %v7400_v26 = vunpack.c.l.b16 %v6220_v7  ;;  %v7401_v61 = vunpack.c.l.b16 %v6230_v22  ;;  %v7064_v43 = vrot.slane %v7062_v63, 4  ;;  %v6234_v30 = vrot.slane %v6232_v40, 4  ;;  %v13769_v56 = vpop.f32.mrf.mxu1 }
 0x5ae   : > { %8890 = vst.msk [vmem:[%s13658_s19 + $0xc] sm:$0xf] %vm5139_vm7, %v8856_v12  ;;  %v6237_v18 = vrot.slane %v6235_v35, 5  ;;  %v6243_v33 = vrot.slane %v6241_v1, 5  ;;  %v8489_v52 = vadd.f32 %v13718_v13, %v8400_v62  ;;  %v9697_v12 = vrot.slane %v5707_v4, 9 }
 0x5af   : > { %v8575_v9 = vpop.f32.mrf.mxu3  ;;  %v5869_v60 = vrot.slane %v10656_v8, 5  ;;  %v7420_v37 = vpack.c.b16 %v7401_v61, %v7400_v26  ;;  %v7066_v55 = vsel %vm12832_vm3, %v7064_v43, %v7065_v45  ;;  %v7935_v7 = vsel %vm7696_vm4, %v10220_v32, %v7639_v51  ;;  %v5899_v4 = vld [vmem:[#allocation2 + $0xb4] sm:$0xf] }
 0x5b0   : > { %v8576_v44 = vadd.f32 %v8575_v9, %v8487_v21  ;;  %v5868_v21 = vrot.slane %v5866_v6, 4  ;;  %v6238_v40 = vor.u32 %v6237_v18, %v6234_v30  ;;  %v7673_v1 = vunpack.c.l.b16 %v7066_v55  ;;  %v6925_v32 = vld [vmem:[#allocation2 + $0xb4] sm:$0xe] }
 0x5b1   : > { %10077 = vmatmul.msk.bf16.gmra.mxu0 %vm7696_vm4, %v7691_v50  ;;  %v7063_v50 = vsel %vm12832_vm3, %v9726_v34, %v7062_v63  ;;  %v8403_v63 = vadd.f32 %v13591_v10, %v13349_v38  ;;  %v7875_v62 = vsel %vm7696_vm4, %v7420_v37, %v7497_v53  ;;  %v5867_v45 = vsel %vm12832_vm3, %v9697_v12, %v5866_v6 }
 0x5b2   : > { %v13757_v25 = vadd.f32 %v13627_v39, %v8576_v44  ;;  %v6247_v39 = vrot.slane %v6245_v41, 4  ;;  %v10657_v41 = vld [vmem:[#allocation2 + $0xb0] sm:$0x1]  ;;  %v7672_v35 = vunpack.c.l.b16 %v7063_v50  ;;  %v5870_v23 = vsel %vm12832_vm3, %v5868_v21, %v5869_v60 }
 0x5b3   : > { %v6251_v9 = vshll.u32 %v10657_v41, 16  ;;  %v6239_v26 = vrot.slane %v6238_v40, 4  ;;  %v8492_v38 = vadd.f32 %v13743_v42, %v8403_v63  ;;  %v7262_v10 = vunpack.c.l.b16 %v5867_v45 }
 0x5b4   : > { %v8857_v36 = vpack.c.bf16 %v13757_v25, %v13757_v25  ;;  %v6248_v44 = vor.u32 %v6247_v39, %v6243_v33  ;;  %v7263_v6 = vunpack.c.l.b16 %v5870_v23  ;;  %v7692_v30 = vpack.c.b16 %v7673_v1, %v7672_v35  ;;  %v10221_v35 = vld [vmem:[#allocation2 + $0xa8] sm:$0xff] }
 0x5b5   : > { %v13764_v5 = vpop.f32.mrf.mxu2  ;;  %v6253_v61 = vrot.slane %v6251_v9, 5  ;;  %v6269_v18 = vshrl.u32 %v13413_v2, 16  ;;  %v6256_v51 = vshrl.u32 %v5899_v4, 16  ;;  %v6259_v12 = vshll.u32 %v5899_v4, 16  ;;  %v13802_v50 = vpop.f32.mrf.mxu1 }
 0x5b6   : > { %8891 = vst.msk [vmem:[%s13658_s19 + $0x10] sm:$0xf] %vm5139_vm7, %v8857_v36  ;;  %v13793_v36 = vpop.f32.mrf.mxu0  ;;  %v6244_v42 = vsel %vm12593_vm0, %v6239_v26, %v6243_v33  ;;  %v7072_v21 = vrot.slane %v13472_v31, 5  ;;  %v8405_v2 = vadd.f32 %v13632_v57, %v13373_v49  ;;  %v7279_v55 = vpack.c.b16 %v7263_v6, %v7262_v10  ;;  %v10659_v26 = vld [vmem:[#allocation2 + $0xbc] sm:$0x1] }
 0x5b7   : > { %v8577_v24 = vpop.f32.mrf.mxu3  ;;  %v9727_v33 = vrot.slane %v6925_v32, 9  ;;  %v7402_v41 = vunpack.c.l.b16 %v6244_v42  ;;  %v6258_v53 = vrot.slane %v6256_v51, 4  ;;  %v6261_v40 = vrot.slane %v6259_v12, 5 }
 0x5b8   : > { %v8578_v13 = vadd.f32 %v8577_v24, %v8489_v52  ;;  %v7069_v52 = vrot.slane %v13464_v19, 5  ;;  %v10658_v24 = vld [vmem:[#allocation2 + $0xb8] sm:$0xf]  ;;  %v8494_v57 = vadd.f32 %v13764_v5, %v8405_v2  ;;  %v8408_v32 = vadd.f32 %v13672_v14, %v13404_v54 }
 0x5b9   : > { %v6265_v37 = vshll.u32 %v10658_v24, 16  ;;  %v7076_v54 = vrot.slane %v13541_v27, 5 }
 0x5ba   : > { %v13777_v22 = vadd.f32 %v13662_v28, %v8578_v13  ;;  %v6249_v28 = vrot.slane %v6248_v44, 4  ;;  %v7071_v13 = vrot.slane %v7069_v52, 4  ;;  %v7070_v23 = vsel %vm12832_vm3, %v9727_v33, %v7069_v52  ;;  %v6926_v33 = vld [vmem:[#allocation2 + $0xc0] sm:$0xe] }
 0x5bb   : > { %v6267_v44 = vrot.slane %v6265_v37, 5  ;;  %v7499_v4 = vpop.permute.xlu1 %7498 }
 0x5bc   : > { %v8858_v34 = vpack.c.bf16 %v13777_v22, %v13777_v22  ;;  %8619 = vmatmul.bf16.gmra.mxu3 %v7935_v7  ;;  %8535 = vmatmul.bf16.gmra.mxu2 %v7875_v62  ;;  %v6254_v60 = vsel %vm12593_vm0, %v6249_v28, %v6253_v61  ;;  %v6271_v7 = vrot.slane %v6269_v18, 4  ;;  %v6275_v28 = vshll.u32 %v10659_v26, 16 }
 0x5bd   : > { %v13788_v43 = vpop.f32.mrf.mxu2  ;;  %v7403_v9 = vunpack.c.l.b16 %v6254_v60  ;;  %v7375_v1 = vpop.permute.xlu0 %7374  ;;  %v7674_v18 = vunpack.c.l.b16 %v7070_v23 }
 0x5be   : > { %8892 = vst.msk [vmem:[%s13658_s19 + $0x14] sm:$0xf] %vm5139_vm7, %v8858_v34  ;;  %v7823_v62 = vsel %vm7696_vm4, %v7279_v55, %v7375_v1  ;;  %v7073_v34 = vsel %vm12832_vm3, %v7071_v13, %v7072_v21  ;;  %v13820_v5 = vpop.f32.mrf.mxu0  ;;  %v6272_v10 = vor.u32 %v6271_v7, %v6267_v44  ;;  %v13828_v52 = vpop.f32.mrf.mxu1  ;;  %v6277_v60 = vrot.slane %v6275_v28, 5  ;;  %v14461_v1 = vld [vmem:[#allocation50_spill] sm:$0xff] }
 0x5bf   : > { %v8580_v39 = vpop.f32.mrf.mxu3  ;;  %v7421_v45 = vpack.c.b16 %v7403_v9, %v7402_v41  ;;  %8461 = vmatmul.bf16.gmra.mxu1 %v7823_v62  ;;  %v5901_v41 = vld [vmem:[#allocation2 + $0xc0] sm:$0xf]  ;;  %v14459_v9 = vld [vmem:[#allocation56_spill] sm:$0xff]  ;;  %v7078_v7 = vrot.slane %v7076_v54, 4  ;;  %v6289_v23 = vshll.u32 %v14461_v1, 16 }
 0x5c0   : > { %v8581_v8 = vadd.f32 %v8580_v39, %v8492_v38  ;;  %v6262_v38 = vor.u32 %v6261_v40, %v6258_v53  ;;  %v7675_v39 = vunpack.c.l.b16 %v7073_v34  ;;  %v6273_v42 = vrot.slane %v6272_v10, 4  ;;  %v10222_v62 = vld [vmem:[#allocation2 + $0xb4] sm:$0xff] }
 0x5c1   : > { %10078 = vmatmul.msk.bf16.gmra.mxu0 %vm7696_vm4, %v7692_v30  ;;  %v7879_v51 = vsel %vm7696_vm4, %v7421_v45, %v7499_v4  ;;  %v7079_v13 = vrot.slane %v14459_v9, 5  ;;  %v9728_v40 = vrot.slane %v6926_v33, 9  ;;  %v6283_v45 = vshll.u32 %v5901_v41, 16 }
 0x5c2   : > { %v13807_v19 = vadd.f32 %v13700_v47, %v8581_v8  ;;  %v7641_v47 = vpop.permute.xlu2 %7640  ;;  %v6263_v8 = vrot.slane %v6262_v38, 4  ;;  %v7693_v37 = vpack.c.b16 %v7675_v39, %v7674_v18  ;;  %v6278_v55 = vsel %vm12593_vm0, %v6273_v42, %v6277_v60 }
 0x5c3   : > { %v7939_v6 = vsel %vm7696_vm4, %v10221_v35, %v7641_v47  ;;  %v6280_v47 = vshrl.u32 %v5901_v41, 16  ;;  %v7080_v38 = vsel %vm12832_vm3, %v7078_v7, %v7079_v13  ;;  %v7083_v13 = vrot.slane %v13608_v58, 5 }
 0x5c4   : > { %v8859_v31 = vpack.c.bf16 %v13807_v19, %v13807_v19  ;;  %v6268_v2 = vsel %vm12593_vm0, %v6263_v8, %v6267_v44  ;;  %v14460_v44 = vld [vmem:[#allocation47_spill] sm:$0xff]  ;;  %v7677_v42 = vunpack.c.l.b16 %v7080_v38 }
 0x5c5   : > { %v8498_v49 = vpop.f32.mrf.mxu2  ;;  %v7404_v27 = vunpack.c.l.b16 %v6268_v2  ;;  %v8410_v35 = vadd.f32 %v13710_v3, %v14460_v44  ;;  %v7077_v3 = vsel %vm12832_vm3, %v9728_v40, %v7076_v54  ;;  %v6927_v40 = vld [vmem:[#allocation2 + $0xcc] sm:$0xe] }
 0x5c6   : > { %8893 = vst.msk [vmem:[%s13658_s19 + $0x18] sm:$0xf] %vm5139_vm7, %v8859_v31  ;;  %v13846_v53 = vpop.f32.mrf.mxu0  ;;  %v7405_v31 = vunpack.c.l.b16 %v6278_v55  ;;  %v7676_v8 = vunpack.c.l.b16 %v7077_v3 }
 0x5c7   : > { %v8582_v63 = vpop.f32.mrf.mxu3  ;;  %v8499_v34 = vadd.f32 %v8498_v49, %v8410_v35  ;;  %v6291_v49 = vrot.slane %v6289_v23, 5  ;;  %v10223_v23 = vld [vmem:[#allocation2 + $0xc0] sm:$0xff] }
 0x5c8   : > { %v8583_v61 = vadd.f32 %v8582_v63, %v8494_v57  ;;  %v6293_v63 = vshrl.u32 %v14461_v1, 16  ;;  %v7422_v4 = vpack.c.b16 %v7405_v31, %v7404_v27  ;;  %v7085_v1 = vrot.slane %v7083_v13, 4 }
 0x5ca   : > { %v13824_v30 = vadd.f32 %v13733_v16, %v8583_v61  ;;  %v8497_v16 = vadd.f32 %v13788_v43, %v8408_v32  ;;  %v6285_v32 = vrot.slane %v6283_v45, 5 }
 0x5cc   : > { %v8860_v12 = vpack.c.bf16 %v13824_v30, %v13824_v30  ;;  %8624 = vmatmul.bf16.gmra.mxu3 %v7939_v6  ;;  %8540 = vmatmul.bf16.gmra.mxu2 %v7879_v51  ;;  %v6282_v6 = vrot.slane %v6280_v47, 4  ;;  %v6295_v51 = vrot.slane %v6293_v63, 4  ;;  %v9729_v47 = vrot.slane %v6927_v40, 9  ;;  %v14464_v63 = vld [vmem:[#allocation36_spill] sm:$0xff] }
 0x5cd   : > { %v8501_v24 = vpop.f32.mrf.mxu2  ;;  %v7643_v26 = vpop.permute.xlu2 %7642  ;;  %v8415_v58 = vadd.f32 %v13769_v56, %v14464_v63 }
 0x5ce   : > { %8894 = vst.msk [vmem:[%s13658_s19 + $0x1c] sm:$0xf] %vm5139_vm7, %v8860_v12  ;;  %v7943_v18 = vsel %vm7696_vm4, %v10222_v62, %v7643_v26  ;;  %v6286_v55 = vor.u32 %v6285_v32, %v6282_v6  ;;  %v6296_v33 = vor.u32 %v6295_v51, %v6291_v49 }
 0x5cf   : > { %v8585_v21 = vpop.f32.mrf.mxu3 }
 0x5d0   : > { %v8586_v14 = vadd.f32 %v8585_v21, %v8497_v16  ;;  %v14462_v16 = vld [vmem:[#allocation34_spill] sm:$0xff]  ;;  %v6287_v7 = vrot.slane %v6286_v55, 4  ;;  %v6297_v44 = vrot.slane %v6296_v33, 4 }
 0x5d1   : > { %10079 = vmatmul.msk.bf16.gmra.mxu0 %vm7696_vm4, %v7693_v37  ;;  %v8413_v37 = vadd.f32 %v13741_v17, %v14462_v16 }
 0x5d2   : > { %v13843_v43 = vadd.f32 %v13762_v46, %v8586_v14  ;;  %v13853_v46 = vpop.f32.mrf.mxu1  ;;  %v14463_v14 = vld [vmem:[#allocation54_spill] sm:$0xff] }
 0x5d3   : > { %v6299_v2 = vshll.u32 %v14463_v14, 16  ;;  %v8502_v41 = vadd.f32 %v8501_v24, %v8413_v37  ;;  %v7086_v24 = vrot.slane %v13613_v15, 5 }
 0x5d4   : > { %v8861_v57 = vpack.c.bf16 %v13843_v43, %v13843_v43 }
 0x5d5   : > { %v8503_v28 = vpop.f32.mrf.mxu2  ;;  %v6301_v35 = vrot.slane %v6299_v2, 5  ;;  %v7087_v56 = vsel %vm12832_vm3, %v7085_v1, %v7086_v24 }
 0x5d6   : > { %8895 = vst.msk [vmem:[%s13658_s19 + $0x20] sm:$0xf] %vm5139_vm7, %v8861_v57  ;;  %v8684_v54 = vpop.f32.mrf.mxu0  ;;  %v8504_v26 = vadd.f32 %v8503_v28, %v8415_v58  ;;  %v7679_v32 = vunpack.c.l.b16 %v7087_v56 }
 0x5d7   : > { %v8587_v61 = vpop.f32.mrf.mxu3  ;;  %v7501_v39 = vpop.permute.xlu1 %7500 }
 0x5d8   : > { %v8588_v10 = vadd.f32 %v8587_v61, %v8499_v34  ;;  %v7883_v60 = vsel %vm7696_vm4, %v7422_v4, %v7501_v39  ;;  %v6292_v34 = vsel %vm12593_vm0, %v6287_v7, %v6291_v49  ;;  %v7084_v4 = vsel %vm12832_vm3, %v9729_v47, %v7083_v13  ;;  %v14465_v49 = vld [vmem:[#allocation37_spill] sm:$0xff]  ;;  %v10224_v13 = vld [vmem:[#allocation2 + $0xcc] sm:$0xff] }
 0x5d9   : > { %v7678_v39 = vunpack.c.l.b16 %v7084_v4  ;;  %v8418_v51 = vadd.f32 %v13802_v50, %v14465_v49  ;;  %v14466_v50 = vld [vmem:[#allocation39_spill] sm:$0xff] }
 0x5da   : > { %v13864_v12 = vadd.f32 %v13793_v36, %v8588_v10  ;;  %v7694_v36 = vpack.c.b16 %v7677_v42, %v7676_v8  ;;  %v13875_v27 = vpop.f32.mrf.mxu1  ;;  %v7406_v10 = vunpack.c.l.b16 %v6292_v34  ;;  %v8420_v33 = vadd.f32 %v13828_v52, %v14466_v50  ;;  %v14467_v52 = vld [vmem:[#allocation41_spill] sm:$0xff] }
 0x5db   : > { %v7695_v16 = vpack.c.b16 %v7679_v32, %v7678_v39  ;;  %v8423_v24 = vadd.f32 %v13853_v46, %v14467_v52 }
 0x5dc   : > { %v8862_v21 = vpack.c.bf16 %v13864_v12, %v13864_v12  ;;  %8629 = vmatmul.bf16.gmra.mxu3 %v7943_v18  ;;  %8545 = vmatmul.bf16.gmra.mxu2 %v7883_v60 }
 0x5dd   : > { %v8506_v31 = vpop.f32.mrf.mxu2 }
 0x5de   : > { %8896 = vst.msk [vmem:[%s13658_s19 + $0x24] sm:$0xf] %vm5139_vm7, %v8862_v21  ;;  %v8686_v45 = vpop.f32.mrf.mxu0  ;;  %v8507_v60 = vadd.f32 %v8506_v31, %v8418_v51 }
 0x5df   : > { %v8590_v9 = vpop.f32.mrf.mxu3 }
 0x5e0   : > { %v8591_v17 = vadd.f32 %v8590_v9, %v8502_v41 }
 0x5e1   : > { %10080 = vmatmul.msk.bf16.gmra.mxu0 %vm7696_vm4, %v7694_v36  ;;  %v7645_v15 = vpop.permute.xlu2 %7644 }
 0x5e2   : > { %v13878_v57 = vadd.f32 %v13820_v5, %v8591_v17  ;;  %v6302_v5 = vsel %vm12593_vm0, %v6297_v44, %v6301_v35  ;;  %v7947_v18 = vsel %vm7696_vm4, %v10223_v23, %v7645_v15  ;;  %v8427_v59 = vpop.f32.mrf.mxu1 }
 0x5e3   : > { %v7407_v6 = vunpack.c.l.b16 %v6302_v5 }
 0x5e4   : > { %v8863_v62 = vpack.c.bf16 %v13878_v57, %v13878_v57 }
 0x5e5   : > { %v8508_v38 = vpop.f32.mrf.mxu2  ;;  %v7423_v8 = vpack.c.b16 %v7407_v6, %v7406_v10  ;;  %v14469_v6 = vld [vmem:[#allocation45_spill] sm:$0xff] }
 0x5e6   : > { %8897 = vst.msk [vmem:[%s13658_s19 + $0x28] sm:$0xf] %vm5139_vm7, %v8863_v62  ;;  %v8509_v17 = vadd.f32 %v8508_v38, %v8420_v33  ;;  %v14471_v33 = vld [vmem:[#allocation51_spill] sm:$0xff] }
 0x5e7   : > { %v8592_v61 = vpop.f32.mrf.mxu3 }
 0x5e8   : > { %v8593_v3 = vadd.f32 %v8592_v61, %v8504_v26  ;;  %v8689_v42 = vpop.f32.mrf.mxu0 }
 0x5ea   : > { %v13898_v28 = vadd.f32 %v13846_v53, %v8593_v3  ;;  %v8429_v41 = vpop.f32.mrf.mxu1 }
 0x5ec   : > { %v8864_v29 = vpack.c.bf16 %v13898_v28, %v13898_v28  ;;  %8634 = vmatmul.bf16.gmra.mxu3 %v7947_v18  ;;  %v8428_v18 = vadd.f32 %v8427_v59, %v14469_v6  ;;  %v14470_v59 = vld [vmem:[#allocation48_spill] sm:$0xff] }
 0x5ed   : > { %v8511_v2 = vpop.f32.mrf.mxu2 }
 0x5ee   : > { %8898 = vst.msk [vmem:[%s13658_s19 + $0x2c] sm:$0xf] %vm5139_vm7, %v8864_v29  ;;  %v7503_v21 = vpop.permute.xlu1 %7502  ;;  %v8512_v63 = vadd.f32 %v8511_v2, %v8423_v24 }
 0x5ef   : > { %v8595_v37 = vpop.f32.mrf.mxu3  ;;  %v7887_v14 = vsel %vm7696_vm4, %v7423_v8, %v7503_v21 }
 0x5f0   : > { %v8596_v53 = vadd.f32 %v8595_v37, %v8507_v60  ;;  %8550 = vmatmul.bf16.gmra.mxu2 %v7887_v14  ;;  %v8691_v9 = vpop.f32.mrf.mxu0  ;;  %v7647_v31 = vpop.permute.xlu2 %7646  ;;  %v8430_v60 = vadd.f32 %v8429_v41, %v14470_v59 }
 0x5f1   : > { %10081 = vmatmul.msk.bf16.gmra.mxu0 %vm7696_vm4, %v7695_v16 }
 0x5f2   : > { %v13907_v55 = vadd.f32 %v8684_v54, %v8596_v53  ;;  %v7951_v54 = vsel %vm7696_vm4, %v10224_v13, %v7647_v31  ;;  %v8432_v1 = vpop.f32.mrf.mxu1 }
 0x5f3   : > { %v8433_v41 = vadd.f32 %v8432_v1, %v14471_v33 }
 0x5f4   : > { %v8865_v36 = vpack.c.bf16 %v13907_v55, %v13907_v55 }
 0x5f5   : > { %v8513_v44 = vpop.f32.mrf.mxu2 }
 0x5f6   : > { %8899 = vst.msk [vmem:[%s13658_s19 + $0x30] sm:$0xf] %vm5139_vm7, %v8865_v36 }
 0x5f7   : > { %v8597_v40 = vpop.f32.mrf.mxu3 }
 0x5f8   : > { %v8598_v7 = vadd.f32 %v8597_v40, %v8509_v17 }
 0x5fa   : > { %v13917_v35 = vadd.f32 %v8686_v45, %v8598_v7  ;;  %v14468_v45 = vld [vmem:[#allocation43_spill] sm:$0xff]  ;;  %v8434_v56 = vpop.f32.mrf.mxu1 }
 0x5fb   : > { %v8694_v58 = vpop.f32.mrf.mxu0  ;;  %v8425_v26 = vadd.f32 %v13875_v27, %v14468_v45 }
 0x5fc   : > { %v8866_v47 = vpack.c.bf16 %v13917_v35, %v13917_v35  ;;  %8639 = vmatmul.bf16.gmra.mxu3 %v7951_v54 }
 0x5fd   : > { %v8514_v15 = vadd.f32 %v8513_v44, %v8425_v26  ;;  %v14472_v44 = vld [vmem:[#allocation53_spill] sm:$0xff] }
 0x5fe   : > { %8900 = vst.msk [vmem:[%s13658_s19 + $0x34] sm:$0xf] %vm5139_vm7, %v8866_v47  ;;  %v8516_v34 = vpop.f32.mrf.mxu2  ;;  %v8435_v52 = vadd.f32 %v8434_v56, %v14472_v44 }
 0x5ff   : > { %v8600_v62 = vpop.f32.mrf.mxu3  ;;  %v8517_v32 = vadd.f32 %v8516_v34, %v8428_v18  ;;  %v8790_v18 = vmul.f32 %v13898_v28, %v13898_v28 }
 0x600   : > { %v8601_v23 = vadd.f32 %v8600_v62, %v8512_v63 }
 0x602   : > { %v13925_v5 = vadd.f32 %v8689_v42, %v8601_v23  ;;  %v8437_v8 = vpop.f32.mrf.mxu1 }
 0x603   : > { %v8696_v61 = vpop.f32.mrf.mxu0 }
 0x604   : > { %v8867_v46 = vpack.c.bf16 %v13925_v5, %v13925_v5  ;;  %v8793_v26 = vmul.f32 %v13925_v5, %v13925_v5 }
 0x606   : > { %8901 = vst.msk [vmem:[%s13658_s19 + $0x38] sm:$0xf] %vm5139_vm7, %v8867_v46  ;;  %v8518_v38 = vpop.f32.mrf.mxu2  ;;  %v14473_v46 = vld [vmem:[#allocation33_spill] sm:$0xff] }
 0x607   : > { %v8602_v4 = vpop.f32.mrf.mxu3  ;;  %v8519_v37 = vadd.f32 %v8518_v38, %v8430_v60  ;;  %v8791_v38 = vmul.f32 %v13907_v55, %v13907_v55 }
 0x608   : > { %v8603_v3 = vadd.f32 %v8602_v4, %v8514_v15  ;;  %v8438_v15 = vadd.f32 %v8437_v8, %v14473_v46  ;;  %v8792_v4 = vmul.f32 %v13917_v35, %v13917_v35  ;;  %v8787_v8 = vmul.f32 %v13843_v43, %v13843_v43 }
 0x60a   : > { %v8692_v10 = vadd.f32 %v8691_v9, %v8603_v3  ;;  %v8439_v36 = vpop.f32.mrf.mxu1 }
 0x60b   : > { %v8699_v27 = vpop.f32.mrf.mxu0 }
 0x60c   : > { %v8868_v39 = vpack.c.bf16 %v8692_v10, %v8692_v10  ;;  %8735 = vmatpush.msrb.mxu1 %v8692_v10  ;;  %v8794_v23 = vmul.f32 %v8692_v10, %v8692_v10 }
 0x60e   : > { %8902 = vst.msk [vmem:[%s13658_s19 + $0x3c] sm:$0xf] %vm5139_vm7, %v8868_v39  ;;  %8736 = vmatpush.msrb.mxu1 %v13925_v5 }
 0x60f   : > { %v8605_v49 = vpop.f32.mrf.mxu3  ;;  %v8521_v29 = vpop.f32.mrf.mxu2 }
 0x610   : > { %v8606_v51 = vadd.f32 %v8605_v49, %v8517_v32  ;;  %8737 = vmatpush.msrb.mxu1 %v13917_v35  ;;  %v8522_v13 = vadd.f32 %v8521_v29, %v8433_v41  ;;  %v8789_v35 = vmul.f32 %v13878_v57, %v13878_v57  ;;  %v8783_v41 = vmul.f32 %v13757_v25, %v13757_v25 }
 0x612   : > { %v13938_v42 = vadd.f32 %v8694_v58, %v8606_v51  ;;  %8738 = vmatpush.msrb.mxu1 %v13907_v55  ;;  %v8442_v47 = vpop.f32.mrf.mxu1  ;;  %v8788_v55 = vmul.f32 %v13864_v12, %v13864_v12 }
 0x613   : > { %v8701_v21 = vpop.f32.mrf.mxu0 }
 0x614   : > { %v8869_v16 = vpack.c.bf16 %v13938_v42, %v13938_v42  ;;  %8739 = vmatpush.msrb.mxu1 %v13898_v28 }
 0x616   : > { %8903 = vst.msk [vmem:[%s13658_s19 + $0x40] sm:$0xf] %vm5139_vm7, %v8869_v16  ;;  %8740 = vmatpush.msrb.mxu1 %v13878_v57  ;;  %v8786_v57 = vmul.f32 %v13824_v30, %v13824_v30 }
 0x617   : > { %v8607_v53 = vpop.f32.mrf.mxu3  ;;  %v8523_v2 = vpop.f32.mrf.mxu2 }
 0x618   : > { %v8608_v14 = vadd.f32 %v8607_v53, %v8519_v37  ;;  %8741 = vmatpush.msrb.mxu1 %v13864_v12  ;;  %v8524_v1 = vadd.f32 %v8523_v2, %v8435_v52  ;;  %v8785_v12 = vmul.f32 %v13807_v19, %v13807_v19  ;;  %v14475_v53 = vld [vmem:[#allocation38_spill] sm:$0xff] }
 0x61a   : > { %v13949_v50 = vadd.f32 %v8696_v61, %v8608_v14  ;;  %8742 = vmatpush.msrb.mxu1 %v13843_v43  ;;  %v8444_v6 = vpop.f32.mrf.mxu1  ;;  %v8443_v14 = vadd.f32 %v8442_v47, %v14475_v53  ;;  %v8784_v43 = vmul.f32 %v13777_v22, %v13777_v22 }
 0x61c   : > { %v8870_v9 = vpack.c.bf16 %v13949_v50, %v13949_v50  ;;  %8743 = vmatpush.msrb.mxu1 %v13824_v30 }
 0x61e   : > { %8904 = vst.msk [vmem:[%s13658_s19 + $0x44] sm:$0xf] %vm5139_vm7, %v8870_v9  ;;  %8744 = vmatpush.msrb.mxu1 %v13807_v19  ;;  %v8704_v31 = vpop.f32.mrf.mxu0  ;;  %v8782_v19 = vmul.f32 %v13731_v11, %v13731_v11 }
 0x61f   : > { %v8610_v17 = vpop.f32.mrf.mxu3  ;;  %v8526_v7 = vpop.f32.mrf.mxu2 }
 0x620   : > { %v8611_v40 = vadd.f32 %v8610_v17, %v8522_v13  ;;  %8745 = vmatpush.msrb.mxu1 %v13777_v22  ;;  %v8527_v56 = vadd.f32 %v8526_v7, %v8438_v15  ;;  %v8781_v22 = vmul.f32 %v13705_v48, %v13705_v48 }
 0x622   : > { %v13960_v54 = vadd.f32 %v8699_v27, %v8611_v40  ;;  %8746 = vmatpush.msrb.mxu1 %v13757_v25  ;;  %v14474_v27 = vld [vmem:[#allocation35_spill] sm:$0xff]  ;;  %v8780_v25 = vmul.f32 %v13675_v20, %v13675_v20 }
 0x623   : > { %v8440_v49 = vadd.f32 %v8439_v36, %v14474_v27 }
 0x624   : > { %v8871_v24 = vpack.c.bf16 %v13960_v54, %v13960_v54  ;;  %8747 = vmatpush.msrb.mxu1 %v13731_v11 }
 0x626   : > { %8905 = vst.msk [vmem:[%s13658_s19 + $0x48] sm:$0xf] %vm5139_vm7, %v8871_v24  ;;  %8748 = vmatpush.msrb.mxu1 %v13705_v48  ;;  %v8706_v58 = vpop.f32.mrf.mxu0  ;;  %v8779_v48 = vmul.f32 %v13641_v0, %v13641_v0 }
 0x627   : > { %v8612_v63 = vpop.f32.mrf.mxu3  ;;  %v8528_v34 = vpop.f32.mrf.mxu2 }
 0x628   : > { %v8613_v62 = vadd.f32 %v8612_v63, %v8524_v1  ;;  %8749 = vmatpush.msrb.mxu1 %v13675_v20  ;;  %v8529_v29 = vadd.f32 %v8528_v34, %v8440_v49  ;;  %v14477_v63 = vld [vmem:[#allocation42_spill] sm:$0xff] }
 0x62a   : > { %v13971_v45 = vadd.f32 %v8701_v21, %v8613_v62  ;;  %8750 = vmatpush.msrb.mxu1 %v13641_v0  ;;  %v8447_v21 = vpop.f32.mrf.mxu1 }
 0x62c   : > { %8811 = vmatpush.msra.mxu1 %v8794_v23  ;;  %v8872_v61 = vpack.c.bf16 %v13971_v45, %v13971_v45 }
 0x62e   : > { %8812 = vmatpush.msra.mxu1 %v8793_v26  ;;  %8906 = vst.msk [vmem:[%s13658_s19 + $0x4c] sm:$0xf] %vm5139_vm7, %v8872_v61  ;;  %v8709_v10 = vpop.f32.mrf.mxu0  ;;  %v14478_v61 = vld [vmem:[#allocation44_spill] sm:$0xff] }
 0x62f   : > { %v8615_v3 = vpop.f32.mrf.mxu3  ;;  %v8531_v39 = vpop.f32.mrf.mxu2 }
 0x630   : > { %8813 = vmatpush.msra.mxu1 %v8792_v4  ;;  %v8616_v5 = vadd.f32 %v8615_v3, %v8527_v56  ;;  %v8532_v33 = vadd.f32 %v8531_v39, %v8443_v14 }
 0x632   : > { %8814 = vmatpush.msra.mxu1 %v8791_v38  ;;  %v13987_v32 = vadd.f32 %v8704_v31, %v8616_v5  ;;  %v14476_v31 = vld [vmem:[#allocation40_spill] sm:$0xff]  ;;  %v8449_v44 = vpop.f32.mrf.mxu1 }
 0x633   : > { %v8445_v40 = vadd.f32 %v8444_v6, %v14476_v31  ;;  %v8450_v4 = vadd.f32 %v8449_v44, %v14478_v61 }
 0x634   : > { %8815 = vmatpush.msra.mxu1 %v8790_v18  ;;  %v8873_v51 = vpack.c.bf16 %v13987_v32, %v13987_v32 }
 0x636   : > { %8816 = vmatpush.msra.mxu1 %v8789_v35  ;;  %8907 = vst.msk [vmem:[%s13658_s19 + $0x50] sm:$0xf] %vm5139_vm7, %v8873_v51  ;;  %v8711_v16 = vpop.f32.mrf.mxu0  ;;  %v14479_v35 = vld [vmem:[#allocation46_spill] sm:$0xff] }
 0x637   : > { %v8617_v28 = vpop.f32.mrf.mxu3  ;;  %v8533_v60 = vpop.f32.mrf.mxu2 }
 0x638   : > { %8817 = vmatpush.msra.mxu1 %v8788_v55  ;;  %v8618_v59 = vadd.f32 %v8617_v28, %v8529_v29  ;;  %v8534_v11 = vadd.f32 %v8533_v60, %v8445_v40 }
 0x63a   : > { %8818 = vmatpush.msra.mxu1 %v8787_v8  ;;  %v14002_v37 = vadd.f32 %v8706_v58, %v8618_v59  ;;  %v8448_v58 = vadd.f32 %v8447_v21, %v14477_v63  ;;  %v8452_v34 = vpop.f32.mrf.mxu1 }
 0x63b   : > { %v8453_v27 = vadd.f32 %v8452_v34, %v14479_v35 }
 0x63c   : > { %8819 = vmatpush.msra.mxu1 %v8786_v57  ;;  %v8874_v2 = vpack.c.bf16 %v14002_v37, %v14002_v37  ;;  %v14480_v57 = vld [vmem:[#allocation49_spill] sm:$0xff] }
 0x63e   : > { %8820 = vmatpush.msra.mxu1 %v8785_v12  ;;  %8908 = vst.msk [vmem:[%s13658_s19 + $0x54] sm:$0xf] %vm5139_vm7, %v8874_v2  ;;  %v8714_v17 = vpop.f32.mrf.mxu0 }
 0x63f   : > { %v8620_v30 = vpop.f32.mrf.mxu3  ;;  %v8536_v9 = vpop.f32.mrf.mxu2 }
 0x640   : > { %8821 = vmatpush.msra.mxu1 %v8784_v43  ;;  %v8621_v36 = vadd.f32 %v8620_v30, %v8532_v33  ;;  %v8537_v23 = vadd.f32 %v8536_v9, %v8448_v58  ;;  %v14481_v33 = vld [vmem:[#allocation52_spill] sm:$0xff] }
 0x642   : > { %8822 = vmatpush.msra.mxu1 %v8783_v41  ;;  %v14017_v13 = vadd.f32 %v8709_v10, %v8621_v36  ;;  %v8454_v6 = vpop.f32.mrf.mxu1 }
 0x643   : > { %v8455_v60 = vadd.f32 %v8454_v6, %v14480_v57 }
 0x644   : > { %8823 = vmatpush.msra.mxu1 %v8782_v19  ;;  %v8875_v7 = vpack.c.bf16 %v14017_v13, %v14017_v13 }
 0x646   : > { %8824 = vmatpush.msra.mxu1 %v8781_v22  ;;  %8909 = vst.msk [vmem:[%s13658_s19 + $0x58] sm:$0xf] %vm5139_vm7, %v8875_v7  ;;  %v8716_v20 = vpop.f32.mrf.mxu0  ;;  %v14482_v7 = vld [vmem:[#allocation55_spill] sm:$0xff] }
 0x647   : > { %v8622_v52 = vpop.f32.mrf.mxu3  ;;  %v8538_v47 = vpop.f32.mrf.mxu2 }
 0x648   : > { %8825 = vmatpush.msra.mxu1 %v8780_v25  ;;  %v8623_v24 = vadd.f32 %v8622_v52, %v8534_v11  ;;  %v8539_v3 = vadd.f32 %v8538_v47, %v8450_v4 }
 0x64a   : > { %8826 = vmatpush.msra.mxu1 %v8779_v48  ;;  %v14030_v1 = vadd.f32 %v8711_v16, %v8623_v24  ;;  %v8457_v59 = vpop.f32.mrf.mxu1 }
 0x64b   : > { %v8458_v30 = vadd.f32 %v8457_v59, %v14481_v33 }
 0x64c   : > { %v8876_v62 = vpack.c.bf16 %v14030_v1, %v14030_v1 }
 0x64e   : > { %8910 = vst.msk [vmem:[%s13658_s19 + $0x5c] sm:$0xf] %vm5139_vm7, %v8876_v62  ;;  %v8719_v10 = vpop.f32.mrf.mxu0  ;;  %v14483_v62 = vld [vmem:[#allocation57_spill] sm:$0xff] }
 0x64f   : > { %v8625_v26 = vpop.f32.mrf.mxu3  ;;  %v8541_v0 = vpop.f32.mrf.mxu2 }
 0x650   : > { %v8626_v46 = vadd.f32 %v8625_v26, %v8537_v23  ;;  %v8542_v51 = vadd.f32 %v8541_v0, %v8453_v27 }
 0x652   : > { %v14037_v15 = vadd.f32 %v8714_v17, %v8626_v46  ;;  %v8459_v36 = vpop.f32.mrf.mxu1  ;;  %v10709_v17 = vmov 1.0  }
 0x653   : > { %8751 = vmatmul.f32.vlgmr.msrb.gmra.mxu1 %v10709_v17  ;;  %v8460_v44 = vadd.f32 %v8459_v36, %v14482_v7 }
 0x654   : > { %v8877_v56 = vpack.c.bf16 %v14037_v15, %v14037_v15 }
 0x656   : > { %8911 = vst.msk [vmem:[%s13658_s19 + $0x60] sm:$0xf] %vm5139_vm7, %v8877_v56  ;;  %v8721_v28 = vpop.f32.mrf.mxu0 }
 0x657   : > { %v8627_v38 = vpop.f32.mrf.mxu3  ;;  %v8543_v39 = vpop.f32.mrf.mxu2 }
 0x658   : > { %v8628_v5 = vadd.f32 %v8627_v38, %v8539_v3  ;;  %v8544_v12 = vadd.f32 %v8543_v39, %v8455_v60  ;;  %v14484_v3 = vld [vmem:[#allocation58_spill] sm:$0xff] }
 0x65a   : > { %v14044_v18 = vadd.f32 %v8716_v20, %v8628_v5  ;;  %v8462_v48 = vpop.f32.mrf.mxu1 }
 0x65b   : > { %8827 = vmatmul.f32.vlgmr.msra.gmra.mxu1 %v10709_v17  ;;  %v8463_v20 = vadd.f32 %v8462_v48, %v14483_v62 }
 0x65c   : > { %v8878_v49 = vpack.c.bf16 %v14044_v18, %v14044_v18  ;;  %v8804_v60 = vmul.f32 %v14044_v18, %v14044_v18 }
 0x65e   : > { %8912 = vst.msk [vmem:[%s13658_s19 + $0x64] sm:$0xf] %vm5139_vm7, %v8878_v49  ;;  %v8724_v43 = vpop.f32.mrf.mxu0 }
 0x65f   : > { %v8630_v55 = vpop.f32.mrf.mxu3  ;;  %v8546_v21 = vpop.f32.mrf.mxu2 }
 0x660   : > { %v8631_v29 = vadd.f32 %v8630_v55, %v8542_v51  ;;  %v8547_v19 = vadd.f32 %v8546_v21, %v8458_v30  ;;  %v8802_v21 = vmul.f32 %v14030_v1, %v14030_v1 }
 0x662   : > { %v14051_v8 = vadd.f32 %v8719_v10, %v8631_v29  ;;  %v8464_v61 = vpop.f32.mrf.mxu1 }
 0x663   : > { %v8465_v38 = vadd.f32 %v8464_v61, %v14484_v3 }
 0x664   : > { %v8879_v16 = vpack.c.bf16 %v14051_v8, %v14051_v8  ;;  %v8805_v57 = vmul.f32 %v14051_v8, %v14051_v8 }
 0x666   : > { %8913 = vst.msk [vmem:[%s13658_s19 + $0x68] sm:$0xf] %vm5139_vm7, %v8879_v16  ;;  %v8726_v11 = vpop.f32.mrf.mxu0  ;;  %v8803_v16 = vmul.f32 %v14037_v15, %v14037_v15 }
 0x667   : > { %v8632_v53 = vpop.f32.mrf.mxu3  ;;  %v8548_v9 = vpop.f32.mrf.mxu2 }
 0x668   : > { %v8633_v14 = vadd.f32 %v8632_v53, %v8544_v12  ;;  %v8549_v52 = vadd.f32 %v8548_v9, %v8460_v44 }
 0x66a   : > { %v8722_v2 = vadd.f32 %v8721_v28, %v8633_v14 }
 0x66c   : > { %v8880_v41 = vpack.c.bf16 %v8722_v2, %v8722_v2  ;;  %v8806_v59 = vmul.f32 %v8722_v2, %v8722_v2 }
 0x66e   : > { %8914 = vst.msk [vmem:[%s13658_s19 + $0x6c] sm:$0xf] %vm5139_vm7, %v8880_v41  ;;  %v8729_v26 = vpop.f32.mrf.mxu0 }
 0x66f   : > { %v8635_v22 = vpop.f32.mrf.mxu3 }
 0x670   : > { %v8636_v31 = vadd.f32 %v8635_v22, %v8547_v19 }
 0x672   : > { %v8725_v40 = vadd.f32 %v8724_v43, %v8636_v31  ;;  %v8734_v43 = vld [vmem:[#allocation5 + $0x2] sm:$0x1] }
 0x673   : > { %v8551_v63 = vpop.f32.mrf.mxu2 }
 0x674   : > { %v8881_v25 = vpack.c.bf16 %v8725_v40, %v8725_v40  ;;  %v8552_v34 = vadd.f32 %v8551_v63, %v8463_v20  ;;  %v8807_v28 = vmul.f32 %v8725_v40, %v8725_v40 }
 0x676   : > { %8915 = vst.msk [vmem:[%s13658_s19 + $0x70] sm:$0xf] %vm5139_vm7, %v8881_v25  ;;  %v8731_v35 = vpop.f32.mrf.mxu0 }
 0x677   : > { %v8637_v24 = vpop.f32.mrf.mxu3 }
 0x678   : > { %v8638_v47 = vadd.f32 %v8637_v24, %v8549_v52 }
 0x67a   : > { %v8727_v58 = vadd.f32 %v8726_v11, %v8638_v47 }
 0x67b   : > { %v8553_v56 = vpop.f32.mrf.mxu2 }
 0x67c   : > { %v8882_v23 = vpack.c.bf16 %v8727_v58, %v8727_v58  ;;  %v8554_v5 = vadd.f32 %v8553_v56, %v8465_v38  ;;  %v8808_v29 = vmul.f32 %v8727_v58, %v8727_v58 }
 0x67e   : > { %8916 = vst.msk [vmem:[%s13658_s19 + $0x74] sm:$0xf] %vm5139_vm7, %v8882_v23 }
 0x67f   : > { %v8640_v46 = vpop.f32.mrf.mxu3 }
 0x680   : > { %v8641_v0 = vadd.f32 %v8640_v46, %v8552_v34 }
 0x682   : > { %v8730_v4 = vadd.f32 %v8729_v26, %v8641_v0 }
 0x684   : > { %v8883_v10 = vpack.c.bf16 %v8730_v4, %v8730_v4  ;;  %v8809_v55 = vmul.f32 %v8730_v4, %v8730_v4 }
 0x686   : > { %8917 = vst.msk [vmem:[%s13658_s19 + $0x78] sm:$0xf] %vm5139_vm7, %v8883_v10 }
 0x687   : > { %v8642_v6 = vpop.f32.mrf.mxu3 }
 0x688   : > { %v8643_v39 = vadd.f32 %v8642_v6, %v8554_v5 }
 0x68a   : > { %v8732_v27 = vadd.f32 %v8731_v35, %v8643_v39 }
 0x68c   : > { %v8810_v49 = vmul.f32 %v8732_v27, %v8732_v27  ;;  %v8884_v51 = vpack.c.bf16 %v8732_v27, %v8732_v27  ;;  %8755 = vmatpush.msra.mxu2 %v8732_v27 }
 0x68e   : > { %8918 = vst.msk [vmem:[%s13658_s19 + $0x7c] sm:$0xf] %vm5139_vm7, %v8884_v51  ;;  %8756 = vmatpush.msra.mxu2 %v8730_v4  ;;  %8831 = vmatpush.msrb.mxu1 %v8810_v49 }
 0x690   : > { %8757 = vmatpush.msra.mxu2 %v8727_v58  ;;  %8832 = vmatpush.msrb.mxu1 %v8809_v55 }
 0x692   : > { %8758 = vmatpush.msra.mxu2 %v8725_v40  ;;  %8833 = vmatpush.msrb.mxu1 %v8808_v29 }
 0x694   : > { %8759 = vmatpush.msra.mxu2 %v8722_v2  ;;  %8834 = vmatpush.msrb.mxu1 %v8807_v28 }
 0x696   : > { %8760 = vmatpush.msra.mxu2 %v14051_v8  ;;  %8835 = vmatpush.msrb.mxu1 %v8806_v59  ;;  %v8801_v8 = vmul.f32 %v14017_v13, %v14017_v13 }
 0x698   : > { %8761 = vmatpush.msra.mxu2 %v14044_v18  ;;  %8836 = vmatpush.msrb.mxu1 %v8805_v57  ;;  %v8800_v18 = vmul.f32 %v14002_v37, %v14002_v37 }
 0x69a   : > { %8762 = vmatpush.msra.mxu2 %v14037_v15  ;;  %8837 = vmatpush.msrb.mxu1 %v8804_v60  ;;  %v8799_v15 = vmul.f32 %v13987_v32, %v13987_v32 }
 0x69c   : > { %8763 = vmatpush.msra.mxu2 %v14030_v1  ;;  %8838 = vmatpush.msrb.mxu1 %v8803_v16  ;;  %v8798_v1 = vmul.f32 %v13971_v45, %v13971_v45 }
 0x69e   : > { %8764 = vmatpush.msra.mxu2 %v14017_v13  ;;  %8839 = vmatpush.msrb.mxu1 %v8802_v21  ;;  %v8797_v13 = vmul.f32 %v13960_v54, %v13960_v54 }
 0x6a0   : > { %8765 = vmatpush.msra.mxu2 %v14002_v37  ;;  %8840 = vmatpush.msrb.mxu1 %v8801_v8  ;;  %v8796_v37 = vmul.f32 %v13949_v50, %v13949_v50 }
 0x6a2   : > { %8766 = vmatpush.msra.mxu2 %v13987_v32  ;;  %8841 = vmatpush.msrb.mxu1 %v8800_v18  ;;  %v8795_v32 = vmul.f32 %v13938_v42, %v13938_v42 }
 0x6a4   : > { %8767 = vmatpush.msra.mxu2 %v13971_v45  ;;  %8842 = vmatpush.msrb.mxu1 %v8799_v15 }
 0x6a6   : > { %8768 = vmatpush.msra.mxu2 %v13960_v54  ;;  %8843 = vmatpush.msrb.mxu1 %v8798_v1  ;;  %v8778_v54 = vld [vmem:[#allocation5 + $0x3] sm:$0x1] }
 0x6a8   : > { %8769 = vmatpush.msra.mxu2 %v13949_v50  ;;  %8844 = vmatpush.msrb.mxu1 %v8797_v13 }
 0x6aa   : > { %8770 = vmatpush.msra.mxu2 %v13938_v42  ;;  %8845 = vmatpush.msrb.mxu1 %v8796_v37 }
 0x6ab   : > { %8771 = vmatmul.f32.vlgmr.msra.gmra.mxu2 %v10709_v17 }
 0x6ac   : > { %8846 = vmatpush.msrb.mxu1 %v8795_v32 }
 0x6ad   : > { %8847 = vmatmul.f32.vlgmr.msrb.gmra.mxu1 %v10709_v17 }
 0x6d0   : > { %v8752_v45 = vpop.f32.mrf.mxu1 }
 0x6d8   : > { %v8828_v12 = vpop.f32.mrf.mxu1 }
 0x72a   : > { %v8848_v53 = vpop.f32.mrf.mxu1 }
 0x72b   : > { %v8849_v14 = vadd.f32 %v8848_v53, %v8828_v12 }
 0x72d   : > { %v8851_v2 = vadd.f32 %v8849_v14, %v8778_v54 }
 0x72e   : > { %v8772_v33 = vpop.f32.mrf.mxu2 }
 0x72f   : > { %v8773_v50 = vadd.f32 %v8772_v33, %v8752_v45  ;;  %8852 = vst.msk [vmem:[#allocation5 + $0x3] sm:$0x1] %vm5147_vm10, %v8851_v2 }
 0x731   : > { %v8775_v30 = vadd.f32 %v8773_v50, %v8734_v43 }
 0x733   : > { %8777 = vst.msk [vmem:[#allocation5 + $0x2] sm:$0x1] %vm5147_vm10, %v8775_v30 }
 0x734 PF: > { %p10083_p13 = scmp.ne.s32.totalorder %s10690_s25, 2 }
 0x735   : > { %p10084_p0 = scmp.ne.s32.totalorder (!%p10083_p13), %s10686_s24, 0 }
 0x736   : > { %8922 = sbr.rel (%p10083_p13) target bundleno = 1933 (0x78d), region = 68 }
 0x73b   : > { %8926 = sbr.rel (%p10084_p0) target bundleno = 1890 (0x762), region = 72 }
 0x740   : > { %v8927_v42 = vld [vmem:[#allocation5 + $0x2] sm:$0x1]  ;;  %v8929_v41 = vld [vmem:[#allocation5 + $0x3] sm:$0x1]  ;;  %v8933_v11 = vld [vmem:[%s14322_s5] sm:$0x1] }
 0x741   : > { %v8928_v36 = vmul.f32 0.001953125, %v8927_v42  ;;  %v8930_v19 = vmul.f32 0.001953125, %v8929_v41  ;;  %vm8946_vm8 = vcmask 516096   ;;  %v8948_v47 = vld [vmem:[%s14323_s6] sm:$0x1] }
 0x743   : > { %v8931_v9 = vmul.f32 %v8928_v36, %v8928_v36 }
 0x745   : > { %v8932_v22 = vsub.f32 %v8930_v19, %v8931_v9 }
 0x747   : > { %v8934_v17 = vadd.f32 1e-05, %v8932_v22 }
 0x749   : > { %10660 = vrsqrt.f32 %v8934_v17  ;;  %vm8941_vm5 = vweird.f32 %v8934_v17 }
 0x74f   : > { %v10661_v31 = vpop.eup %10660 }
 0x750   : > { %v8936_v40 = vmul.f32 %v10661_v31, %v8934_v17  ;;  %vm8942_vm6 = vweird.f32 %v10661_v31 }
 0x751   : > { %vm8943_vm7 = vmor %vm8941_vm5, %vm8942_vm6 }
 0x752   : > { %v8937_v7 = vmul.f32 %v10661_v31, %v8936_v40 }
 0x754   : > { %v8938_v44 = vmul.f32 0.5, %v8937_v7 }
 0x756   : > { %v8939_v25 = vsub.f32 1.5, %v8938_v44 }
 0x758   : > { %v8940_v52 = vmul.f32 %v10661_v31, %v8939_v25 }
 0x75a   : > { %v8944_v48 = vsel %vm8943_vm7, %v10661_v31, %v8940_v52 }
 0x75b   : > { %v8945_v24 = vmul.f32 %v8944_v48, %v8933_v11 }
 0x75d   : > { %8947 = vst.msk [vmem:[#allocation6 + $0x2] sm:$0x1] %vm8946_vm8, %v8945_v24  ;;  %v8949_v63 = vmul.f32 %v8945_v24, %v8928_v36 }
 0x75f   : > { %v8950_v58 = vsub.f32 %v8948_v47, %v8949_v63 }
 0x761   : > { %8951 = vst.msk [vmem:[#allocation6 + $0x3] sm:$0x1] %vm8946_vm8, %v8950_v58 }
 0x762 PF: > { %s10262_s18 = sshll.u32 %s10686_s24, 7  ;;  %vm9151_vm9 = vcmask 523264   ;;  %v9021_v10 = vld [vmem:[%s10791_s13] sm:$0xff]  ;;  %v9022_v27 = vld [vmem:[%s10791_s13 + $0x8] sm:$0xff]  ;;  %v9023_v49 = vld [vmem:[%s10791_s13 + $0x10] sm:$0xff] }
 0x763   : > { %s14122_s12 = scalar_lea.vmem [#allocation4], %s10262_s18  ;;  %v9024_v51 = vld [vmem:[%s10791_s13 + $0x18] sm:$0xff]  ;;  %v9025_v8 = vld [vmem:[%s10791_s13 + $0x20] sm:$0xff]  ;;  %v9026_v18 = vld [vmem:[%s10791_s13 + $0x28] sm:$0xff] }
 0x764   : > { %v14120_v62 = vld [vmem:[#allocation6 + $0x2] ss:$0 sm:$0xff]  ;;  %v10328_v20 = vld [vmem:[%s14122_s12] sm:$0xff]   ;;  %v10406_v23 = vld [vmem:[%s14122_s12 + $0x8] sm:$0xff]  }
 0x765   : > { %v10329_v34 = vunpack.c.l.bf16 %v10328_v20  ;;  %v10330_v46 = vunpack.c.h.bf16 %v10328_v20  ;;  %v10333_v0 = vunpack.c.l.bf16 %v10406_v23  ;;  %v10334_v61 = vunpack.c.h.bf16 %v10406_v23  ;;  %v10407_v4 = vld [vmem:[%s14122_s12 + $0x10] sm:$0xff]   ;;  %v10408_v38 = vld [vmem:[%s14122_s12 + $0x18] sm:$0xff]   ;;  %v10409_v32 = vld [vmem:[%s14122_s12 + $0x20] sm:$0xff]  }
 0x766   : > { %v10337_v56 = vunpack.c.l.bf16 %v10407_v4  ;;  %v10338_v3 = vunpack.c.h.bf16 %v10407_v4  ;;  %v10341_v28 = vunpack.c.l.bf16 %v10408_v38  ;;  %v10342_v59 = vunpack.c.h.bf16 %v10408_v38  ;;  %v10410_v45 = vld [vmem:[%s14122_s12 + $0x28] sm:$0xff]   ;;  %v9027_v2 = vld [vmem:[%s10791_s13 + $0x30] sm:$0xff]  ;;  %v9028_v43 = vld [vmem:[%s10791_s13 + $0x38] sm:$0xff] }
 0x767   : > { %v9054_v5 = vmul.f32 %v14120_v62, %v10329_v34  ;;  %v9055_v6 = vmul.f32 %v14120_v62, %v10330_v46  ;;  %v9056_v39 = vmul.f32 %v14120_v62, %v10333_v0  ;;  %v9057_v35 = vmul.f32 %v14120_v62, %v10334_v61  ;;  %v10411_v33 = vld [vmem:[%s14122_s12 + $0x30] sm:$0xff]   ;;  %v10412_v17 = vld [vmem:[%s14122_s12 + $0x38] sm:$0xff]   ;;  %v9029_v25 = vld [vmem:[%s10791_s13 + $0x40] sm:$0xff] }
 0x768   : > { %v14126_v26 = vld [vmem:[#allocation6 + $0x3] ss:$0 sm:$0xff]  ;;  %v9058_v55 = vmul.f32 %v14120_v62, %v10337_v56  ;;  %v9059_v29 = vmul.f32 %v14120_v62, %v10338_v3  ;;  %v9060_v13 = vmul.f32 %v14120_v62, %v10341_v28  ;;  %v9061_v37 = vmul.f32 %v14120_v62, %v10342_v59  ;;  %v9030_v47 = vld [vmem:[%s10791_s13 + $0x48] sm:$0xff]  ;;  %v9031_v63 = vld [vmem:[%s10791_s13 + $0x50] sm:$0xff] }
 0x769   : > { %v9087_v57 = vadd.f32 %v14126_v26, %v9054_v5  ;;  %v9088_v60 = vadd.f32 %v14126_v26, %v9055_v6  ;;  %v9089_v16 = vadd.f32 %v14126_v26, %v9056_v39  ;;  %v9090_v21 = vadd.f32 %v14126_v26, %v9057_v35  ;;  %v9032_v58 = vld [vmem:[%s10791_s13 + $0x58] sm:$0xff]  ;;  %v9033_v3 = vld [vmem:[%s10791_s13 + $0x60] sm:$0xff]  ;;  %v9034_v38 = vld [vmem:[%s10791_s13 + $0x68] sm:$0xff] }
 0x76a   : > { %v9091_v15 = vadd.f32 %v14126_v26, %v9058_v55  ;;  %v9092_v1 = vadd.f32 %v14126_v26, %v9059_v29  ;;  %v9093_v42 = vadd.f32 %v14126_v26, %v9060_v13  ;;  %v9094_v41 = vadd.f32 %v14126_v26, %v9061_v37  ;;  %v10413_v35 = vld [vmem:[%s14122_s12 + $0x40] sm:$0xff]   ;;  %v9035_v28 = vld [vmem:[%s10791_s13 + $0x70] sm:$0xff]  ;;  %v9036_v59 = vld [vmem:[%s10791_s13 + $0x78] sm:$0xff] }
 0x76b   : > { %v9119_v12 = vadd.f32 %v9087_v57, %v9021_v10  ;;  %v9120_v54 = vadd.f32 %v9088_v60, %v9022_v27  ;;  %v9121_v53 = vadd.f32 %v9089_v16, %v9023_v49  ;;  %v9122_v14 = vadd.f32 %v9090_v21, %v9024_v51  ;;  %v10414_v27 = vld [vmem:[%s14122_s12 + $0x48] sm:$0xff]   ;;  %v10415_v57 = vld [vmem:[%s14122_s12 + $0x50] sm:$0xff]   ;;  %v10416_v37 = vld [vmem:[%s14122_s12 + $0x58] sm:$0xff]  }
 0x76c   : > { %v9123_v50 = vadd.f32 %v9091_v15, %v9025_v8  ;;  %v9124_v30 = vadd.f32 %v9092_v1, %v9026_v18  ;;  %v10345_v36 = vunpack.c.l.bf16 %v10409_v32  ;;  %v10346_v19 = vunpack.c.h.bf16 %v10409_v32 }
 0x76d   : > { %9152 = vst.msk [vmem:[%s10796_s17] sm:$0xff] %vm9151_vm9, %v9119_v12  ;;  %v10349_v9 = vunpack.c.l.bf16 %v10410_v45  ;;  %v10350_v22 = vunpack.c.h.bf16 %v10410_v45  ;;  %v9125_v31 = vadd.f32 %v9093_v42, %v9027_v2  ;;  %v9126_v40 = vadd.f32 %v9094_v41, %v9028_v43  ;;  %v9040_v42 = vld [vmem:[%s10791_s13 + $0x98] sm:$0xff] }
 0x76e   : > { %9153 = vst.msk [vmem:[%s10796_s17 + $0x8] sm:$0xff] %vm9151_vm9, %v9120_v54  ;;  %v10353_v7 = vunpack.c.l.bf16 %v10411_v33  ;;  %v10354_v44 = vunpack.c.h.bf16 %v10411_v33  ;;  %v9062_v11 = vmul.f32 %v14120_v62, %v10345_v36  ;;  %v9063_v52 = vmul.f32 %v14120_v62, %v10346_v19 }
 0x76f   : > { %9154 = vst.msk [vmem:[%s10796_s17 + $0x10] sm:$0xff] %vm9151_vm9, %v9121_v53  ;;  %v9064_v48 = vmul.f32 %v14120_v62, %v10349_v9  ;;  %v9065_v24 = vmul.f32 %v14120_v62, %v10350_v22  ;;  %v10357_v34 = vunpack.c.l.bf16 %v10412_v17  ;;  %v10358_v46 = vunpack.c.h.bf16 %v10412_v17  ;;  %v9037_v53 = vld [vmem:[%s10791_s13 + $0x80] sm:$0xff] }
 0x770   : > { %9155 = vst.msk [vmem:[%s10796_s17 + $0x18] sm:$0xff] %vm9151_vm9, %v9122_v14  ;;  %v9066_v20 = vmul.f32 %v14120_v62, %v10353_v7  ;;  %v9067_v23 = vmul.f32 %v14120_v62, %v10354_v44  ;;  %v9095_v0 = vadd.f32 %v14126_v26, %v9062_v11  ;;  %v9096_v61 = vadd.f32 %v14126_v26, %v9063_v52  ;;  %v9041_v7 = vld [vmem:[%s10791_s13 + $0xa0] sm:$0xff]  ;;  %v9042_v44 = vld [vmem:[%s10791_s13 + $0xa8] sm:$0xff] }
 0x771   : > { %9156 = vst.msk [vmem:[%s10796_s17 + $0x20] sm:$0xff] %vm9151_vm9, %v9123_v50  ;;  %v9097_v4 = vadd.f32 %v14126_v26, %v9064_v48  ;;  %v9098_v56 = vadd.f32 %v14126_v26, %v9065_v24  ;;  %v9068_v6 = vmul.f32 %v14120_v62, %v10357_v34  ;;  %v9069_v39 = vmul.f32 %v14120_v62, %v10358_v46  ;;  %v9038_v50 = vld [vmem:[%s10791_s13 + $0x88] sm:$0xff]  ;;  %v10417_v24 = vld [vmem:[%s14122_s12 + $0x60] sm:$0xff]   ;;  %v9043_v34 = vld [vmem:[%s10791_s13 + $0xb0] sm:$0xff] }
 0x772   : > { %9157 = vst.msk [vmem:[%s10796_s17 + $0x28] sm:$0xff] %vm9151_vm9, %v9124_v30  ;;  %v9099_v10 = vadd.f32 %v14126_v26, %v9066_v20  ;;  %v9100_v5 = vadd.f32 %v14126_v26, %v9067_v23  ;;  %v9127_v49 = vadd.f32 %v9095_v0, %v9029_v25  ;;  %v9128_v51 = vadd.f32 %v9096_v61, %v9030_v47  ;;  %v9039_v30 = vld [vmem:[%s10791_s13 + $0x90] sm:$0xff]  ;;  %v10418_v47 = vld [vmem:[%s14122_s12 + $0x68] sm:$0xff]   ;;  %v9044_v46 = vld [vmem:[%s10791_s13 + $0xb8] sm:$0xff] }
 0x773   : > { %9158 = vst.msk [vmem:[%s10796_s17 + $0x30] sm:$0xff] %vm9151_vm9, %v9125_v31  ;;  %v9129_v55 = vadd.f32 %v9097_v4, %v9031_v63  ;;  %v9130_v29 = vadd.f32 %v9098_v56, %v9032_v58  ;;  %v9101_v21 = vadd.f32 %v14126_v26, %v9068_v6  ;;  %v9102_v8 = vadd.f32 %v14126_v26, %v9069_v39  ;;  %v10419_v0 = vld [vmem:[%s14122_s12 + $0x70] sm:$0xff]   ;;  %v10420_v39 = vld [vmem:[%s14122_s12 + $0x78] sm:$0xff]  }
 0x774   : > { %9159 = vst.msk [vmem:[%s10796_s17 + $0x38] sm:$0xff] %vm9151_vm9, %v9126_v40  ;;  %v9131_v60 = vadd.f32 %v9099_v10, %v9033_v3  ;;  %v9132_v16 = vadd.f32 %v9100_v5, %v9034_v38  ;;  %v10361_v18 = vunpack.c.l.bf16 %v10413_v35  ;;  %v10362_v15 = vunpack.c.h.bf16 %v10413_v35 }
 0x775   : > { %9160 = vst.msk [vmem:[%s10796_s17 + $0x40] sm:$0xff] %vm9151_vm9, %v9127_v49  ;;  %v10365_v1 = vunpack.c.l.bf16 %v10414_v27  ;;  %v10366_v13 = vunpack.c.h.bf16 %v10414_v27  ;;  %v9133_v32 = vadd.f32 %v9101_v21, %v9035_v28  ;;  %v9134_v45 = vadd.f32 %v9102_v8, %v9036_v59 }
 0x776   : > { %9161 = vst.msk [vmem:[%s10796_s17 + $0x48] sm:$0xff] %vm9151_vm9, %v9128_v51  ;;  %v10369_v12 = vunpack.c.l.bf16 %v10415_v57  ;;  %v10370_v54 = vunpack.c.h.bf16 %v10415_v57  ;;  %v9070_v14 = vmul.f32 %v14120_v62, %v10361_v18  ;;  %v9071_v2 = vmul.f32 %v14120_v62, %v10362_v15  ;;  %v9045_v57 = vld [vmem:[%s10791_s13 + $0xc0] sm:$0xff] }
 0x777   : > { %9162 = vst.msk [vmem:[%s10796_s17 + $0x50] sm:$0xff] %vm9151_vm9, %v9129_v55  ;;  %v9072_v43 = vmul.f32 %v14120_v62, %v10365_v1  ;;  %v9073_v33 = vmul.f32 %v14120_v62, %v10366_v13  ;;  %v10373_v19 = vunpack.c.l.bf16 %v10416_v37  ;;  %v10374_v9 = vunpack.c.h.bf16 %v10416_v37 }
 0x778   : > { %9163 = vst.msk [vmem:[%s10796_s17 + $0x58] sm:$0xff] %vm9151_vm9, %v9130_v29  ;;  %v9074_v41 = vmul.f32 %v14120_v62, %v10369_v12  ;;  %v9075_v36 = vmul.f32 %v14120_v62, %v10370_v54  ;;  %v9103_v22 = vadd.f32 %v14126_v26, %v9070_v14  ;;  %v9104_v17 = vadd.f32 %v14126_v26, %v9071_v2  ;;  %v9049_v12 = vld [vmem:[%s10791_s13 + $0xe0] sm:$0xff] }
 0x779   : > { %9164 = vst.msk [vmem:[%s10796_s17 + $0x60] sm:$0xff] %vm9151_vm9, %v9131_v60  ;;  %v9105_v31 = vadd.f32 %v14126_v26, %v9072_v43  ;;  %v9106_v40 = vadd.f32 %v14126_v26, %v9073_v33  ;;  %v9076_v52 = vmul.f32 %v14120_v62, %v10373_v19  ;;  %v9077_v48 = vmul.f32 %v14120_v62, %v10374_v9  ;;  %v9046_v60 = vld [vmem:[%s10791_s13 + $0xc8] sm:$0xff]  ;;  %v9052_v9 = vld [vmem:[%s10791_s13 + $0xf8] sm:$0xff] }
 0x77a   : > { %9165 = vst.msk [vmem:[%s10796_s17 + $0x68] sm:$0xff] %vm9151_vm9, %v9132_v16  ;;  %v9107_v25 = vadd.f32 %v14126_v26, %v9074_v41  ;;  %v9108_v11 = vadd.f32 %v14126_v26, %v9075_v36  ;;  %v9135_v63 = vadd.f32 %v9103_v22, %v9037_v53  ;;  %v9136_v58 = vadd.f32 %v9104_v17, %v9038_v50  ;;  %v9047_v16 = vld [vmem:[%s10791_s13 + $0xd0] sm:$0xff] }
 0x77b   : > { %9166 = vst.msk [vmem:[%s10796_s17 + $0x70] sm:$0xff] %vm9151_vm9, %v9133_v32  ;;  %v9137_v20 = vadd.f32 %v9105_v31, %v9039_v30  ;;  %v9138_v23 = vadd.f32 %v9106_v40, %v9040_v42  ;;  %v9109_v56 = vadd.f32 %v14126_v26, %v9076_v52  ;;  %v9110_v3 = vadd.f32 %v14126_v26, %v9077_v48  ;;  %v9048_v32 = vld [vmem:[%s10791_s13 + $0xd8] sm:$0xff]  ;;  %v9050_v30 = vld [vmem:[%s10791_s13 + $0xe8] sm:$0xff]  ;;  %v9051_v41 = vld [vmem:[%s10791_s13 + $0xf0] sm:$0xff] }
 0x77c   : > { %9167 = vst.msk [vmem:[%s10796_s17 + $0x78] sm:$0xff] %vm9151_vm9, %v9134_v45  ;;  %v9139_v61 = vadd.f32 %v9107_v25, %v9041_v7  ;;  %v9140_v4 = vadd.f32 %v9108_v11, %v9042_v44  ;;  %v10377_v38 = vunpack.c.l.bf16 %v10417_v24  ;;  %v10378_v10 = vunpack.c.h.bf16 %v10417_v24 }
 0x77d   : > { %9168 = vst.msk [vmem:[%s10796_s17 + $0x80] sm:$0xff] %vm9151_vm9, %v9135_v63  ;;  %v10381_v5 = vunpack.c.l.bf16 %v10418_v47  ;;  %v10382_v6 = vunpack.c.h.bf16 %v10418_v47  ;;  %v9141_v35 = vadd.f32 %v9109_v56, %v9043_v34  ;;  %v9142_v27 = vadd.f32 %v9110_v3, %v9044_v46 }
 0x77e   : > { %9169 = vst.msk [vmem:[%s10796_s17 + $0x88] sm:$0xff] %vm9151_vm9, %v9136_v58  ;;  %v10385_v49 = vunpack.c.l.bf16 %v10419_v0  ;;  %v10386_v51 = vunpack.c.h.bf16 %v10419_v0  ;;  %v9078_v55 = vmul.f32 %v14120_v62, %v10377_v38  ;;  %v9079_v29 = vmul.f32 %v14120_v62, %v10378_v10 }
 0x77f   : > { %9170 = vst.msk [vmem:[%s10796_s17 + $0x90] sm:$0xff] %vm9151_vm9, %v9137_v20  ;;  %v9080_v28 = vmul.f32 %v14120_v62, %v10381_v5  ;;  %v9081_v59 = vmul.f32 %v14120_v62, %v10382_v6  ;;  %v10389_v18 = vunpack.c.l.bf16 %v10420_v39  ;;  %v10390_v15 = vunpack.c.h.bf16 %v10420_v39 }
 0x780   : > { %9171 = vst.msk [vmem:[%s10796_s17 + $0x98] sm:$0xff] %vm9151_vm9, %v9138_v23  ;;  %v9082_v21 = vmul.f32 %v14120_v62, %v10385_v49  ;;  %v9083_v8 = vmul.f32 %v14120_v62, %v10386_v51  ;;  %v9111_v1 = vadd.f32 %v14126_v26, %v9078_v55  ;;  %v9112_v13 = vadd.f32 %v14126_v26, %v9079_v29 }
 0x781   : > { %9172 = vst.msk [vmem:[%s10796_s17 + $0xa0] sm:$0xff] %vm9151_vm9, %v9139_v61  ;;  %v9113_v37 = vadd.f32 %v14126_v26, %v9080_v28  ;;  %v9114_v45 = vadd.f32 %v14126_v26, %v9081_v59  ;;  %v9084_v14 = vmul.f32 %v14120_v62, %v10389_v18  ;;  %v9085_v2 = vmul.f32 %v14120_v62, %v10390_v15 }
 0x782   : > { %9173 = vst.msk [vmem:[%s10796_s17 + $0xa8] sm:$0xff] %vm9151_vm9, %v9140_v4  ;;  %v9115_v54 = vadd.f32 %v14126_v26, %v9082_v21  ;;  %v9116_v53 = vadd.f32 %v14126_v26, %v9083_v8  ;;  %v9143_v43 = vadd.f32 %v9111_v1, %v9045_v57  ;;  %v9144_v33 = vadd.f32 %v9112_v13, %v9046_v60 }
 0x783   : > { %9174 = vst.msk [vmem:[%s10796_s17 + $0xb0] sm:$0xff] %vm9151_vm9, %v9141_v35  ;;  %v9145_v50 = vadd.f32 %v9113_v37, %v9047_v16  ;;  %v9146_v42 = vadd.f32 %v9114_v45, %v9048_v32  ;;  %v9117_v36 = vadd.f32 %v14126_v26, %v9084_v14  ;;  %v9118_v62 = vadd.f32 %v14126_v26, %v9085_v2 }
 0x784   : > { %9175 = vst.msk [vmem:[%s10796_s17 + $0xb8] sm:$0xff] %vm9151_vm9, %v9142_v27  ;;  %v9147_v19 = vadd.f32 %v9115_v54, %v9049_v12  ;;  %v9148_v22 = vadd.f32 %v9116_v53, %v9050_v30 }
 0x785   : > { %9176 = vst.msk [vmem:[%s10796_s17 + $0xc0] sm:$0xff] %vm9151_vm9, %v9143_v43  ;;  %v9149_v17 = vadd.f32 %v9117_v36, %v9051_v41  ;;  %v9150_v31 = vadd.f32 %v9118_v62, %v9052_v9 }
 0x786   : > { %9177 = vst.msk [vmem:[%s10796_s17 + $0xc8] sm:$0xff] %vm9151_vm9, %v9144_v33 }
 0x787   : > { %9178 = vst.msk [vmem:[%s10796_s17 + $0xd0] sm:$0xff] %vm9151_vm9, %v9145_v50 }
 0x788   : > { %9179 = vst.msk [vmem:[%s10796_s17 + $0xd8] sm:$0xff] %vm9151_vm9, %v9146_v42 }
 0x789   : > { %9180 = vst.msk [vmem:[%s10796_s17 + $0xe0] sm:$0xff] %vm9151_vm9, %v9147_v19 }
 0x78a   : > { %9181 = vst.msk [vmem:[%s10796_s17 + $0xe8] sm:$0xff] %vm9151_vm9, %v9148_v22 }
 0x78b   : > { %9182 = vst.msk [vmem:[%s10796_s17 + $0xf0] sm:$0xff] %vm9151_vm9, %v9149_v17 }
 0x78c   : > { %9183 = vst.msk [vmem:[%s10796_s17 + $0xf8] sm:$0xff] %vm9151_vm9, %v9150_v31 }
 0x78d PF: > { %s17_s28 = sadd.s32 1, %s10702_s28   ;;  %s14485_s24 = smov %s10694_s26 }
 0x78e   : > { %p14_p1 = scmp.ge.s32.totalorder %s17_s28, 8   ;;  %s14486_s25 = smov %s10698_s27 }
 0x78f   : > { %s14487_s26 = smov %s14490_s29  ;;  %s14488_s27 = smov %s14494_s30 }
 0x790   :  { %16 = sbr.rel (!%p14_p1) target bundleno = 3 (0x3), region = 110 }

</bundles_post_ra>
